<compile_context>
chip_gen: v7x
topology: tpu7x:2x2x1
jax: 0.10.0
libtpu: 0.0.40
codegen_flags: <defaults>
</compile_context>

<pallas_src>
import functools
import math

import numpy as np
import jax
import jax.numpy as jnp
from jax import lax
from jax.experimental import pallas as pl
from jax.experimental.pallas import tpu as pltpu

jax.config.update("jax_default_matmul_precision", "highest")


# ----------------------------------------------------------------------------
# LayerNorm (MoEL-style: unbiased std, eps added to std)
# ----------------------------------------------------------------------------
def _layer_norm_k(v, gamma, beta, eps=1e-6):
    """Kernel-side LayerNorm: reciprocal rides the EUP slot instead of a VPU divide."""
    n = v.shape[-1]
    mean = jnp.mean(v, axis=-1, keepdims=True)
    var = jnp.sum((v - mean) ** 2, axis=-1, keepdims=True) * (1.0 / (n - 1))
    inv = pl.reciprocal(jnp.sqrt(var) + eps, approx=True)
    return gamma * (v - mean) * inv + beta


def _layer_norm_ref(v, gamma, beta, eps=1e-6):
    n = v.shape[-1]
    mean = jnp.mean(v, axis=-1, keepdims=True)
    var = jnp.sum((v - mean) ** 2, axis=-1, keepdims=True) / (n - 1)
    std = jnp.sqrt(var)
    return gamma * (v - mean) / (std + eps) + beta


# ----------------------------------------------------------------------------
# Kernel-side helpers
# ----------------------------------------------------------------------------
def _attn_core(q, k, v, wo, bias, nh, return_weights):
    """Multi-head attention core for one batch element.

    q: [Tq, DK]  k: [Tk, DK]  v: [Tk, DV]  (already projected, heads packed on lanes)
    wo: [DV, H]  bias: additive mask bias broadcastable to [Tq, Tk] (-1e18 on masked)

    Per-head logits/context are unavoidable tiny matmuls (dk=8); the output
    projection is a single [Tq, DV]@[DV, H] matmul on lane-concatenated contexts.
    Returns (out [Tq, H], attn_w [Tq, Tk] head-avg of masked logits or None).
    """
    dk = q.shape[1] // nh
    dv = v.shape[1] // nh
    scale = float(dk) ** -0.5
    pet = jnp.float32

    ctxs = []
    logit_sum = None
    for h in range(nh):
        qh = q[:, h * dk:(h + 1) * dk] * scale
        kh = k[:, h * dk:(h + 1) * dk]
        vh = v[:, h * dv:(h + 1) * dv]
        logits = lax.dot_general(qh, kh, (((1,), (1,)), ((), ())),
                                 preferred_element_type=pet) + bias          # [Tq,Tk]
        if return_weights:
            logit_sum = logits if logit_sum is None else logit_sum + logits
        m = jnp.max(logits, axis=-1, keepdims=True)
        e = jnp.exp(logits - m)
        p = e * pl.reciprocal(jnp.sum(e, axis=-1, keepdims=True), approx=True)
        ctxs.append(jnp.dot(p, vh, preferred_element_type=pet))              # [Tq,dv]

    ctx = jnp.concatenate(ctxs, axis=-1)                                     # [Tq,DV]
    out = jnp.dot(ctx, wo, preferred_element_type=pet)                       # [Tq,H]
    attn_w = (logit_sum * (1.0 / nh)) if return_weights else None
    return out, attn_w


def _causal_conv(x, w_flat, bias, m1, m2):
    """Conv1d(kernel=3, left pad 2) as one matmul: [x(t-2) | x(t-1) | x(t)] @ w_flat.

    The shifts use pltpu.roll on the sublane axis (XLU slot); rows whose source
    crosses a sequence boundary (or wraps) are zeroed by the m1/m2 masks.
    x: [M, C]   w_flat: [3*C, Cout]   bias: [1, Cout]   m1/m2: [M, 1]
    """
    x1 = pltpu.roll(x, shift=1, axis=0) * m1
    x2 = pltpu.roll(x, shift=2, axis=0) * m2
    xc = jnp.concatenate([x2, x1, x], axis=-1)                               # [M, 3C]
    return jnp.dot(xc, w_flat, preferred_element_type=jnp.float32) + bias


# ----------------------------------------------------------------------------
# Fused decoder kernel (one grid step == BB batch elements, all layers)
# ----------------------------------------------------------------------------
def decoder_fused_kernel(x_ref, enc_ref, mtrg_ref, msrc_ref,
                         embw_ref, timing_ref,
                         wqkv_s_ref, wo_s_ref,
                         wq_c_ref, wkv_c_ref, wo_c_ref,
                         ln1_ref, ln2_ref, ln3_ref,
                         c1w_ref, c1b_ref, c2w_ref, c2b_ref,
                         lng_ref, lnb_ref,
                         out_ref, *, num_heads, num_layers):
    BB, T, _ = x_ref.shape
    S = enc_ref.shape[1]
    H = embw_ref.shape[1]
    DK = wq_c_ref.shape[2]
    DV = wo_c_ref.shape[1]
    OUT_W = out_ref.shape[2]
    nh = num_heads
    f32 = jnp.float32

    # --- embedding projection + timing signal (batch folded into the M dim) ---
    x2d = (x_ref[0] if BB == 1
           else jnp.concatenate([x_ref[b] for b in range(BB)], axis=0))      # [BB*T, E]
    timing = timing_ref[0]                                                   # [T, H]
    timing_all = timing if BB == 1 else jnp.concatenate([timing] * BB, axis=0)
    x = jnp.dot(x2d, embw_ref[...], preferred_element_type=f32) + timing_all

    # --- additive attention-mask biases (once; shared by all heads & layers) ---
    row_t = lax.broadcasted_iota(jnp.int32, (T, T), 0)        # query index
    col_t = lax.broadcasted_iota(jnp.int32, (T, T), 1)        # key index
    neg = f32(-1e18)
    dec_biases, src_biases = [], []
    for b in range(BB):
        dec_biases.append(jnp.where(
            jnp.logical_or(col_t > row_t, mtrg_ref[b] > 0.5), neg, f32(0.0)))   # [T,T]
        src_biases.append(jnp.where(msrc_ref[b] > 0.5, neg, f32(0.0)))          # [1,S]

    # --- causal-conv row masks (zero rows pulled across a sequence boundary) ---
    pos = lax.broadcasted_iota(jnp.int32, (T, 1), 0)
    pos = pos if BB == 1 else jnp.concatenate([pos] * BB, axis=0)            # [BB*T, 1]
    m1 = (pos >= 1).astype(f32)
    m2 = (pos >= 2).astype(f32)

    # --- layer-invariant cross-attention K/V for ALL layers, hoisted ---
    # one wide (NL*(DK+DV)-lane) matmul per batch element
    enc_kv = [jnp.dot(enc_ref[b], wkv_c_ref[...], preferred_element_type=f32)
              for b in range(BB)]                                            # [S, NL*(DK+DV)]

    attn_rows = None
    for l in range(num_layers):                      # statically unrolled layer loop
        # -- masked multi-head self attention (merged QKV projection) --
        ln1 = ln1_ref[l]
        xn = _layer_norm_k(x, ln1[0:1], ln1[1:2])
        qkv = jnp.dot(xn, wqkv_s_ref[l], preferred_element_type=f32)         # [BB*T, 2DK+DV]
        wo_s = wo_s_ref[l]
        outs = []
        for b in range(BB):
            qkv_b = qkv[b * T:(b + 1) * T]
            o_b, _ = _attn_core(qkv_b[:, 0:DK], qkv_b[:, DK:2 * DK],
                                qkv_b[:, 2 * DK:2 * DK + DV],
                                wo_s, dec_biases[b], nh, False)
            outs.append(o_b)
        x = x + (outs[0] if BB == 1 else jnp.concatenate(outs, axis=0))

        # -- encoder-decoder attention (K/V pre-projected above) --
        ln2 = ln2_ref[l]
        xn = _layer_norm_k(x, ln2[0:1], ln2[1:2])
        q_all = jnp.dot(xn, wq_c_ref[l], preferred_element_type=f32)         # [BB*T, DK]
        wo_c = wo_c_ref[l]
        off = l * (DK + DV)
        last = (l == num_layers - 1)
        outs, attn_outs = [], []
        for b in range(BB):
            kv_b = enc_kv[b]
            o_b, w_b = _attn_core(q_all[b * T:(b + 1) * T],
                                  kv_b[:, off:off + DK],
                                  kv_b[:, off + DK:off + DK + DV],
                                  wo_c, src_biases[b], nh, last)
            outs.append(o_b)
            attn_outs.append(w_b)
        x = x + (outs[0] if BB == 1 else jnp.concatenate(outs, axis=0))
        if last:
            attn_rows = attn_outs                    # last layer's cross-attn weights

        # -- position-wise FFN: causal conv -> ReLU -> causal conv, residual --
        ln3 = ln3_ref[l]
        xn = _layer_norm_k(x, ln3[0:1], ln3[1:2])
        h = jnp.maximum(_causal_conv(xn, c1w_ref[l], c1b_ref[l], m1, m2), 0.0)
        x = x + _causal_conv(h, c2w_ref[l], c2b_ref[l], m1, m2)

    # --- final LayerNorm + lane-dense packed store: [ y | attn | 0-pad ] ---
    y = _layer_norm_k(x, lng_ref[...], lnb_ref[...])                         # [BB*T, H]
    pad_w = OUT_W - H - S
    zpad = jnp.zeros((T, pad_w), f32) if pad_w > 0 else None
    for b in range(BB):
        pieces = [y[b * T:(b + 1) * T], attn_rows[b]]
        if zpad is not None:
            pieces.append(zpad)
        out_ref[b] = jnp.concatenate(pieces, axis=-1).astype(out_ref.dtype)


# ----------------------------------------------------------------------------
# Wrapper
# ----------------------------------------------------------------------------
def _const_index_map(ndim):
    if ndim == 2:
        return lambda i: (0, 0)
    return lambda i: (0, 0, 0)


def _pick_batch_block(batch):
    """Generation-aware batching: single-TensorCore chips (v5e/v6e) fold the whole
    batch into one grid step (less per-step overhead, better MXU M-fill); multi-TC
    chips (v4/v5p megacore, v7x) keep one batch element per grid step so the
    'parallel' grid axis shards across TensorCores."""
    try:
        kind = jax.devices()[0].device_kind.lower()
    except Exception:
        kind = ""
    single_tc = any(t in kind for t in
                    ("v5e", "v5 lite", "v5lite", "v6e", "v6 lite", "v6lite"))
    return batch if single_tc else 1


def _stack_layer_params(params):
    """Stack per-layer weights along a leading [NL, ...] axis and pre-merge:
       * wq|wk|wv (self attn) -> one [NL, H, 2*DK+DV] projection matrix
       * wk|wv (cross attn) for ALL layers -> one [H, NL*(DK+DV)] matrix
       * conv kernels [3, C, Cout] -> [3*C, Cout] (matches the in-kernel concat order)
    """
    layers = params['layers']
    nl = len(layers)

    def stack(k):
        return jnp.stack([lp[k] for lp in layers])

    wqkv_s = jnp.concatenate([stack('wq_s'), stack('wk_s'), stack('wv_s')], axis=-1)
    wkv_c = jnp.concatenate(
        [jnp.concatenate([lp['wk_c'], lp['wv_c']], axis=-1) for lp in layers], axis=-1)
    c1w = stack('c1w').reshape(nl, -1, layers[0]['c1w'].shape[-1])   # [NL, 3H, F]
    c2w = stack('c2w').reshape(nl, -1, layers[0]['c2w'].shape[-1])   # [NL, 3F, H]

    return dict(
        wqkv_s=wqkv_s, wo_s=stack('wo_s'),
        wq_c=stack('wq_c'), wkv_c=wkv_c, wo_c=stack('wo_c'),
        ln1=stack('ln1'), ln2=stack('ln2'), ln3=stack('ln3'),
        c1w=c1w, c1b=stack('c1b'), c2w=c2w, c2b=stack('c2b'))


def decoder_forward(params, inputs, encoder_output, mask_src, mask_trg,
                    num_heads, num_layers, batch_block=None):
    """Mirrors Decoder.forward (universal=False, eval mode) as ONE fused pallas_call."""
    B, T, E = inputs.shape
    S = encoder_output.shape[1]
    H = params['emb_w'].shape[1]

    bb = _pick_batch_block(B) if batch_block is None else batch_block
    if B % bb != 0:
        bb = 1
    nb = B // bb

    out_w = max(128, ((H + S + 127) // 128) * 128)   # lane-dense packed output width

    timing = params['timing'][:, :T, :]
    sp = _stack_layer_params(params)

    mask_trg_f = mask_trg.astype(jnp.float32)    # [B, 1, T] (1.0 == pad)
    mask_src_f = mask_src.astype(jnp.float32)    # [B, 1, S]

    kern = functools.partial(decoder_fused_kernel,
                             num_heads=num_heads, num_layers=num_layers)

    batch3 = lambda i: (i, 0, 0)

    weight_args = (params['emb_w'], timing,
                   sp['wqkv_s'], sp['wo_s'],
                   sp['wq_c'], sp['wkv_c'], sp['wo_c'],
                   sp['ln1'], sp['ln2'], sp['ln3'],
                   sp['c1w'], sp['c1b'], sp['c2w'], sp['c2b'],
                   params['ln_g'], params['ln_b'])

    in_specs = ([pl.BlockSpec((bb, T, E), batch3),      # inputs
                 pl.BlockSpec((bb, S, H), batch3),      # encoder output
                 pl.BlockSpec((bb, 1, T), batch3),      # mask_trg (padding)
                 pl.BlockSpec((bb, 1, S), batch3)]      # mask_src (padding)
                + [pl.BlockSpec(a.shape, _const_index_map(a.ndim))
                   for a in weight_args])

    out_specs = pl.BlockSpec((bb, T, out_w), batch3)
    out_shape = jax.ShapeDtypeStruct((B, T, out_w), jnp.float32)

    packed = pl.pallas_call(
        kern,
        grid=(nb,),
        in_specs=in_specs,
        out_specs=out_specs,
        out_shape=out_shape,
        compiler_params=pltpu.CompilerParams(dimension_semantics=("parallel",)),
    )(inputs, encoder_output, mask_trg_f, mask_src_f, *weight_args)

    y = packed[:, :, :H]
    attn = packed[:, :, H:H + S]
    return y, attn


# ----------------------------------------------------------------------------
# Pure-JAX reference (independent formulation: per-head loop, pad-based conv)
# ----------------------------------------------------------------------------
def _mha_ref(q_in, kv_in, wq, wk, wv, wo, mask, num_heads):
    dk_total = wq.shape[1]
    dv_total = wv.shape[1]
    dk = dk_total // num_heads
    dv = dv_total // num_heads
    scale = float(dk) ** -0.5

    q = jnp.dot(q_in, wq, preferred_element_type=jnp.float32)
    k = jnp.dot(kv_in, wk, preferred_element_type=jnp.float32)
    v = jnp.dot(kv_in, wv, preferred_element_type=jnp.float32)

    ctxs = []
    logit_sum = None
    for h in range(num_heads):
        qh = q[:, h * dk:(h + 1) * dk] * scale
        kh = k[:, h * dk:(h + 1) * dk]
        vh = v[:, h * dv:(h + 1) * dv]
        logits = jnp.dot(qh, kh.T, preferred_element_type=jnp.float32)
        logits = jnp.where(mask > 0.5, jnp.float32(-1e18), logits)
        logit_sum = logits if logit_sum is None else logit_sum + logits
        m = jnp.max(logits, axis=-1, keepdims=True)
        e = jnp.exp(logits - m)
        w = e / jnp.sum(e, axis=-1, keepdims=True)
        ctxs.append(jnp.dot(w, vh, preferred_element_type=jnp.float32))

    ctx = jnp.concatenate(ctxs, axis=-1)
    out = jnp.dot(ctx, wo, preferred_element_type=jnp.float32)
    return out, logit_sum / num_heads


def _causal_conv_ref(x, w3, b):
    T = x.shape[0]
    zp = jnp.zeros((2, x.shape[1]), x.dtype)
    xp = jnp.concatenate([zp, x], axis=0)
    out = (jnp.dot(xp[0:T], w3[0], preferred_element_type=jnp.float32)
           + jnp.dot(xp[1:T + 1], w3[1], preferred_element_type=jnp.float32)
           + jnp.dot(xp[2:T + 2], w3[2], preferred_element_type=jnp.float32))
    return out + b


def reference_forward(params, inputs, encoder_output, mask_src, mask_trg,
                      num_heads, num_layers):
    B, T, E = inputs.shape
    timing = params['timing'][:, :T, :]
    sub = params['subseq_mask'][:, :T, :T]
    dec_mask = ((mask_trg + sub) > 0).astype(jnp.float32)
    src_mask = mask_src.astype(jnp.float32)

    x = jnp.einsum('bte,eh->bth', inputs, params['emb_w'],
                   preferred_element_type=jnp.float32) + timing
    attn = None
    for l in range(num_layers):
        p = params['layers'][l]
        ys, attns = [], []
        for b in range(B):
            xb = x[b]
            encb = encoder_output[b]
            xn = _layer_norm_ref(xb, p['ln1'][0:1], p['ln1'][1:2])
            y_sa, _ = _mha_ref(xn, xn, p['wq_s'], p['wk_s'], p['wv_s'], p['wo_s'],
                               dec_mask[b], num_heads)
            xb = xb + y_sa
            xn = _layer_norm_ref(xb, p['ln2'][0:1], p['ln2'][1:2])
            y_ca, aw = _mha_ref(xn, encb, p['wq_c'], p['wk_c'], p['wv_c'], p['wo_c'],
                                src_mask[b], num_heads)
            xb = xb + y_ca
            xn = _layer_norm_ref(xb, p['ln3'][0:1], p['ln3'][1:2])
            h = jnp.maximum(_causal_conv_ref(xn, p['c1w'], p['c1b']), 0.0)
            ffn = _causal_conv_ref(h, p['c2w'], p['c2b'])
            ys.append(xb + ffn)
            attns.append(aw)
        x = jnp.stack(ys)
        attn = jnp.stack(attns)
    y = _layer_norm_ref(x, params['ln_g'], params['ln_b'])
    return y, attn


# ----------------------------------------------------------------------------
# Deterministic parameter / constant construction
# ----------------------------------------------------------------------------
def gen_timing_signal(length, channels, min_timescale=1.0, max_timescale=1.0e4):
    position = np.arange(length, dtype=np.float64)
    num_timescales = channels // 2
    log_timescale_increment = (math.log(float(max_timescale) / float(min_timescale))
                               / max(float(num_timescales) - 1, 1.0))
    inv_timescales = min_timescale * np.exp(
        np.arange(num_timescales, dtype=np.float64) * -log_timescale_increment)
    scaled_time = position[:, None] * inv_timescales[None, :]
    signal = np.concatenate([np.sin(scaled_time), np.cos(scaled_time)], axis=1)
    signal = np.pad(signal, [[0, 0], [0, channels % 2]], 'constant')
    return jnp.asarray(signal.reshape(1, length, channels), dtype=jnp.float32)


def init_params(key, E, H, DK, DV, F, num_layers, max_length):
    scale = 0.08
    keys = jax.random.split(key, 1 + num_layers)
    ln_default = jnp.concatenate([jnp.ones((1, H), jnp.float32),
                                  jnp.zeros((1, H), jnp.float32)], axis=0)
    params = {
        'emb_w': jax.random.normal(keys[0], (E, H), jnp.float32) * scale,
        'ln_g': jnp.ones((1, H), jnp.float32),
        'ln_b': jnp.zeros((1, H), jnp.float32),
        'timing': gen_timing_signal(max_length, H),
        'subseq_mask': jnp.asarray(
            np.triu(np.ones((1, max_length, max_length), np.float32), k=1)),
        'layers': [],
    }
    for l in range(num_layers):
        lk = jax.random.split(keys[1 + l], 12)
        layer = {
            'wq_s': jax.random.normal(lk[0], (H, DK), jnp.float32) * scale,
            'wk_s': jax.random.normal(lk[1], (H, DK), jnp.float32) * scale,
            'wv_s': jax.random.normal(lk[2], (H, DV), jnp.float32) * scale,
            'wo_s': jax.random.normal(lk[3], (DV, H), jnp.float32) * scale,
            'wq_c': jax.random.normal(lk[4], (H, DK), jnp.float32) * scale,
            'wk_c': jax.random.normal(lk[5], (H, DK), jnp.float32) * scale,
            'wv_c': jax.random.normal(lk[6], (H, DV), jnp.float32) * scale,
            'wo_c': jax.random.normal(lk[7], (DV, H), jnp.float32) * scale,
            'ln1': ln_default,
            'ln2': ln_default,
            'ln3': ln_default,
            'c1w': jax.random.normal(lk[8], (3, H, F), jnp.float32) * scale,
            'c1b': jax.random.normal(lk[9], (1, F), jnp.float32) * scale,
            'c2w': jax.random.normal(lk[10], (3, F, H), jnp.float32) * scale,
            'c2b': jax.random.normal(lk[11], (1, H), jnp.float32) * scale,
        }
        params['layers'].append(layer)
    return params


# ----------------------------------------------------------------------------
if __name__ == "__main__":
    # Module hyper-params (small, consistent with the forward pass)
    E = 32      # embedding_size
    H = 32      # hidden_size
    NL = 2      # num_layers
    NH = 4      # num_heads
    DK = 32     # total_key_depth
    DV = 32     # total_value_depth
    F = 64      # filter_size
    MAXLEN = 64

    B, T, S = 2, 8, 10   # batch, target length, source length

    key = jax.random.PRNGKey(0)
    kp, kx, ke = jax.random.split(key, 3)
    params = init_params(kp, E, H, DK, DV, F, NL, MAXLEN)

    inputs = jax.random.normal(kx, (B, T, E), jnp.float32)
    encoder_output = jax.random.normal(ke, (B, S, H), jnp.float32)

    # Padding masks (1.0 == pad position), shapes as in the PyTorch module
    mask_src = np.zeros((B, 1, S), np.float32)
    mask_src[0, 0, 8:] = 1.0
    mask_src[1, 0, 7:] = 1.0
    mask_trg = np.zeros((B, 1, T), np.float32)
    mask_trg[0, 0, 7:] = 1.0
    mask_trg[1, 0, 6:] = 1.0
    mask_src = jnp.asarray(mask_src)
    mask_trg = jnp.asarray(mask_trg)

    y, attn_dist = decoder_forward(params, inputs, encoder_output,
                                   mask_src, mask_trg, NH, NL)
    jax.block_until_ready((y, attn_dist))

    y_ref, attn_ref = reference_forward(params, inputs, encoder_output,
                                        mask_src, mask_trg, NH, NL)
    np.testing.assert_allclose(np.asarray(y), np.asarray(y_ref),
                               rtol=5e-3, atol=5e-3)
    np.testing.assert_allclose(np.asarray(attn_dist), np.asarray(attn_ref),
                               rtol=5e-3, atol=5e-3)

    print("KERNEL_OK")
</pallas_src>

<mosaic_0001>
module attributes {stable_mosaic.version = 11 : i64} {
  func.func @decoder_fused_kernel(%arg0: i32, %arg1: memref<1x8x32xf32, #tpu.memory_space<vmem>>, %arg2: memref<1x10x32xf32, #tpu.memory_space<vmem>>, %arg3: memref<1x1x8xf32, #tpu.memory_space<vmem>>, %arg4: memref<1x1x10xf32, #tpu.memory_space<vmem>>, %arg5: memref<32x32xf32, #tpu.memory_space<vmem>>, %arg6: memref<1x8x32xf32, #tpu.memory_space<vmem>>, %arg7: memref<2x32x96xf32, #tpu.memory_space<vmem>>, %arg8: memref<2x32x32xf32, #tpu.memory_space<vmem>>, %arg9: memref<2x32x32xf32, #tpu.memory_space<vmem>>, %arg10: memref<32x128xf32, #tpu.memory_space<vmem>>, %arg11: memref<2x32x32xf32, #tpu.memory_space<vmem>>, %arg12: memref<2x2x32xf32, #tpu.memory_space<vmem>>, %arg13: memref<2x2x32xf32, #tpu.memory_space<vmem>>, %arg14: memref<2x2x32xf32, #tpu.memory_space<vmem>>, %arg15: memref<2x96x64xf32, #tpu.memory_space<vmem>>, %arg16: memref<2x1x64xf32, #tpu.memory_space<vmem>>, %arg17: memref<2x192x32xf32, #tpu.memory_space<vmem>>, %arg18: memref<2x1x32xf32, #tpu.memory_space<vmem>>, %arg19: memref<1x32xf32, #tpu.memory_space<vmem>>, %arg20: memref<1x32xf32, #tpu.memory_space<vmem>>, %arg21: memref<1x8x128xf32, #tpu.memory_space<vmem>>) attributes {dimension_semantics = [#tpu.dimension_semantics<parallel>], iteration_bounds = array<i64: 2>, scalar_prefetch = 0 : i64, scratch_operands = 0 : i64, tpu.core_type = #tpu.core_type<tc>, window_params = [{transform_indices = @transform_0, window_bounds = array<i64: 1, 8, 32>}, {transform_indices = @transform_1, window_bounds = array<i64: 1, 10, 32>}, {transform_indices = @transform_2, window_bounds = array<i64: 1, 1, 8>}, {transform_indices = @transform_3, window_bounds = array<i64: 1, 1, 10>}, {pipeline_mode = #tpu.pipeline_mode<synchronous>, transform_indices = @transform_4, window_bounds = array<i64: 32, 32>}, {pipeline_mode = #tpu.pipeline_mode<synchronous>, transform_indices = @transform_5, window_bounds = array<i64: 1, 8, 32>}, {pipeline_mode = #tpu.pipeline_mode<synchronous>, transform_indices = @transform_6, window_bounds = array<i64: 2, 32, 96>}, {pipeline_mode = #tpu.pipeline_mode<synchronous>, transform_indices = @transform_7, window_bounds = array<i64: 2, 32, 32>}, {pipeline_mode = #tpu.pipeline_mode<synchronous>, transform_indices = @transform_8, window_bounds = array<i64: 2, 32, 32>}, {pipeline_mode = #tpu.pipeline_mode<synchronous>, transform_indices = @transform_9, window_bounds = array<i64: 32, 128>}, {pipeline_mode = #tpu.pipeline_mode<synchronous>, transform_indices = @transform_10, window_bounds = array<i64: 2, 32, 32>}, {pipeline_mode = #tpu.pipeline_mode<synchronous>, transform_indices = @transform_11, window_bounds = array<i64: 2, 2, 32>}, {pipeline_mode = #tpu.pipeline_mode<synchronous>, transform_indices = @transform_12, window_bounds = array<i64: 2, 2, 32>}, {pipeline_mode = #tpu.pipeline_mode<synchronous>, transform_indices = @transform_13, window_bounds = array<i64: 2, 2, 32>}, {pipeline_mode = #tpu.pipeline_mode<synchronous>, transform_indices = @transform_14, window_bounds = array<i64: 2, 96, 64>}, {pipeline_mode = #tpu.pipeline_mode<synchronous>, transform_indices = @transform_15, window_bounds = array<i64: 2, 1, 64>}, {pipeline_mode = #tpu.pipeline_mode<synchronous>, transform_indices = @transform_16, window_bounds = array<i64: 2, 192, 32>}, {pipeline_mode = #tpu.pipeline_mode<synchronous>, transform_indices = @transform_17, window_bounds = array<i64: 2, 1, 32>}, {pipeline_mode = #tpu.pipeline_mode<synchronous>, transform_indices = @transform_18, window_bounds = array<i64: 1, 32>}, {pipeline_mode = #tpu.pipeline_mode<synchronous>, transform_indices = @transform_19, window_bounds = array<i64: 1, 32>}, {transform_indices = @transform_20, window_bounds = array<i64: 1, 8, 128>}]} {
    %c0 = arith.constant 0 : index
    %c0_0 = arith.constant 0 : index
    %c0_1 = arith.constant 0 : index
    %0 = vector.load %arg1[%c0, %c0_0, %c0_1] : memref<1x8x32xf32, #tpu.memory_space<vmem>>, vector<1x8x32xf32>
    %1 = vector.shape_cast %0 : vector<1x8x32xf32> to vector<8x32xf32>
    %c0_2 = arith.constant 0 : index
    %c0_3 = arith.constant 0 : index
    %c0_4 = arith.constant 0 : index
    %2 = vector.load %arg6[%c0_2, %c0_3, %c0_4] : memref<1x8x32xf32, #tpu.memory_space<vmem>>, vector<1x8x32xf32>
    %3 = vector.shape_cast %2 : vector<1x8x32xf32> to vector<8x32xf32>
    %c0_5 = arith.constant 0 : index
    %c0_6 = arith.constant 0 : index
    %4 = vector.load %arg5[%c0_5, %c0_6] : memref<32x32xf32, #tpu.memory_space<vmem>>, vector<32x32xf32>
    %cst = arith.constant dense<0.000000e+00> : vector<8x32xf32>
    %5 = tpu.matmul %1, %4, %cst {dimension_numbers = #tpu.dot_dimension_numbers<[1], [0], [0], [1], [0, 0, 1, 1], [], []>, precision = #tpu.contract_precision<fp32>} : vector<8x32xf32>, vector<32x32xf32>, vector<8x32xf32> -> vector<8x32xf32>
    %6 = arith.addf %5, %3 : vector<8x32xf32>
    %7 = tpu.iota {dimensions = array<i32: 0>} : vector<8x8xi32>
    %8 = tpu.iota {dimensions = array<i32: 1>} : vector<8x8xi32>
    %9 = arith.cmpi sgt, %8, %7 : vector<8x8xi32>
    %c0_7 = arith.constant 0 : index
    %c0_8 = arith.constant 0 : index
    %c0_9 = arith.constant 0 : index
    %10 = vector.load %arg3[%c0_7, %c0_8, %c0_9] : memref<1x1x8xf32, #tpu.memory_space<vmem>>, vector<1x1x8xf32>
    %11 = vector.shape_cast %10 : vector<1x1x8xf32> to vector<1x8xf32>
    %cst_10 = arith.constant 5.000000e-01 : f32
    %12 = vector.broadcast %cst_10 : f32 to vector<1x8xf32>
    %13 = arith.cmpf ogt, %11, %12 : vector<1x8xf32>
    %14 = vector.broadcast %13 : vector<1x8xi1> to vector<8x8xi1>
    %15 = arith.ori %9, %14 : vector<8x8xi1>
    %cst_11 = arith.constant -9.99999984E+17 : f32
    %cst_12 = arith.constant 0.000000e+00 : f32
    %16 = vector.broadcast %cst_11 : f32 to vector<8x8xf32>
    %17 = vector.broadcast %cst_12 : f32 to vector<8x8xf32>
    %18 = arith.select %15, %16, %17 : vector<8x8xi1>, vector<8x8xf32>
    %c0_13 = arith.constant 0 : index
    %c0_14 = arith.constant 0 : index
    %c0_15 = arith.constant 0 : index
    %19 = vector.load %arg4[%c0_13, %c0_14, %c0_15] : memref<1x1x10xf32, #tpu.memory_space<vmem>>, vector<1x1x10xf32>
    %20 = vector.shape_cast %19 : vector<1x1x10xf32> to vector<1x10xf32>
    %cst_16 = arith.constant 5.000000e-01 : f32
    %21 = vector.broadcast %cst_16 : f32 to vector<1x10xf32>
    %22 = arith.cmpf ogt, %20, %21 : vector<1x10xf32>
    %cst_17 = arith.constant -9.99999984E+17 : f32
    %cst_18 = arith.constant 0.000000e+00 : f32
    %23 = vector.broadcast %cst_17 : f32 to vector<1x10xf32>
    %24 = vector.broadcast %cst_18 : f32 to vector<1x10xf32>
    %25 = arith.select %22, %23, %24 : vector<1x10xi1>, vector<1x10xf32>
    %26 = tpu.iota {dimensions = array<i32: 0>} : vector<8x1xi32>
    %c1_i32 = arith.constant 1 : i32
    %27 = vector.broadcast %c1_i32 : i32 to vector<8x1xi32>
    %28 = arith.cmpi sge, %26, %27 : vector<8x1xi32>
    %29 = arith.extui %28 : vector<8x1xi1> to vector<8x1xi32>
    %30 = arith.sitofp %29 : vector<8x1xi32> to vector<8x1xf32>
    %c2_i32 = arith.constant 2 : i32
    %31 = vector.broadcast %c2_i32 : i32 to vector<8x1xi32>
    %32 = arith.cmpi sge, %26, %31 : vector<8x1xi32>
    %33 = arith.extui %32 : vector<8x1xi1> to vector<8x1xi32>
    %34 = arith.sitofp %33 : vector<8x1xi32> to vector<8x1xf32>
    %c0_19 = arith.constant 0 : index
    %c0_20 = arith.constant 0 : index
    %c0_21 = arith.constant 0 : index
    %35 = vector.load %arg2[%c0_19, %c0_20, %c0_21] : memref<1x10x32xf32, #tpu.memory_space<vmem>>, vector<1x10x32xf32>
    %36 = vector.shape_cast %35 : vector<1x10x32xf32> to vector<10x32xf32>
    %c0_22 = arith.constant 0 : index
    %c0_23 = arith.constant 0 : index
    %37 = vector.load %arg10[%c0_22, %c0_23] : memref<32x128xf32, #tpu.memory_space<vmem>>, vector<32x128xf32>
    %cst_24 = arith.constant dense<0.000000e+00> : vector<10x128xf32>
    %38 = tpu.matmul %36, %37, %cst_24 {dimension_numbers = #tpu.dot_dimension_numbers<[1], [0], [0], [1], [0, 0, 1, 1], [], []>, precision = #tpu.contract_precision<fp32>} : vector<10x32xf32>, vector<32x128xf32>, vector<10x128xf32> -> vector<10x128xf32>
    %c0_25 = arith.constant 0 : index
    %c0_26 = arith.constant 0 : index
    %c0_27 = arith.constant 0 : index
    %39 = vector.load %arg12[%c0_25, %c0_26, %c0_27] : memref<2x2x32xf32, #tpu.memory_space<vmem>>, vector<1x2x32xf32>
    %40 = vector.shape_cast %39 : vector<1x2x32xf32> to vector<2x32xf32>
    %41 = vector.extract_strided_slice %40 {offsets = [0, 0], sizes = [1, 32], strides = [1, 1]} : vector<2x32xf32> to vector<1x32xf32>
    %42 = vector.extract_strided_slice %40 {offsets = [1, 0], sizes = [1, 32], strides = [1, 1]} : vector<2x32xf32> to vector<1x32xf32>
    %cst_28 = arith.constant dense<0.000000e+00> : vector<8xf32>
    %43 = vector.multi_reduction <add>, %6, %cst_28 [1] : vector<8x32xf32> to vector<8xf32>
    %44 = vector.shape_cast %43 : vector<8xf32> to vector<8x1xf32>
    %cst_29 = arith.constant 3.200000e+01 : f32
    %45 = vector.broadcast %cst_29 : f32 to vector<8x1xf32>
    %46 = arith.divf %44, %45 : vector<8x1xf32>
    %47 = vector.broadcast %46 : vector<8x1xf32> to vector<8x32xf32>
    %48 = arith.subf %6, %47 : vector<8x32xf32>
    %49 = arith.mulf %48, %48 : vector<8x32xf32>
    %cst_30 = arith.constant dense<0.000000e+00> : vector<8xf32>
    %50 = vector.multi_reduction <add>, %49, %cst_30 [1] : vector<8x32xf32> to vector<8xf32>
    %51 = vector.shape_cast %50 : vector<8xf32> to vector<8x1xf32>
    %cst_31 = arith.constant 0.0322580636 : f32
    %52 = vector.broadcast %cst_31 : f32 to vector<8x1xf32>
    %53 = arith.mulf %51, %52 : vector<8x1xf32>
    %54 = math.sqrt %53 : vector<8x1xf32>
    %cst_32 = arith.constant 9.99999997E-7 : f32
    %55 = vector.broadcast %cst_32 : f32 to vector<8x1xf32>
    %56 = arith.addf %54, %55 : vector<8x1xf32>
    %57 = tpu.reciprocal %56 {approx = true} : vector<8x1xf32> -> vector<8x1xf32>
    %58 = vector.broadcast %46 : vector<8x1xf32> to vector<8x32xf32>
    %59 = arith.subf %6, %58 : vector<8x32xf32>
    %60 = vector.broadcast %41 : vector<1x32xf32> to vector<8x32xf32>
    %61 = arith.mulf %60, %59 : vector<8x32xf32>
    %62 = vector.broadcast %57 : vector<8x1xf32> to vector<8x32xf32>
    %63 = arith.mulf %61, %62 : vector<8x32xf32>
    %64 = vector.broadcast %42 : vector<1x32xf32> to vector<8x32xf32>
    %65 = arith.addf %63, %64 : vector<8x32xf32>
    %c0_33 = arith.constant 0 : index
    %c0_34 = arith.constant 0 : index
    %c0_35 = arith.constant 0 : index
    %66 = vector.load %arg7[%c0_33, %c0_34, %c0_35] : memref<2x32x96xf32, #tpu.memory_space<vmem>>, vector<1x32x96xf32>
    %67 = vector.shape_cast %66 : vector<1x32x96xf32> to vector<32x96xf32>
    %cst_36 = arith.constant dense<0.000000e+00> : vector<8x96xf32>
    %68 = tpu.matmul %65, %67, %cst_36 {dimension_numbers = #tpu.dot_dimension_numbers<[1], [0], [0], [1], [0, 0, 1, 1], [], []>, precision = #tpu.contract_precision<fp32>} : vector<8x32xf32>, vector<32x96xf32>, vector<8x96xf32> -> vector<8x96xf32>
    %c0_37 = arith.constant 0 : index
    %c0_38 = arith.constant 0 : index
    %c0_39 = arith.constant 0 : index
    %69 = vector.load %arg8[%c0_37, %c0_38, %c0_39] : memref<2x32x32xf32, #tpu.memory_space<vmem>>, vector<1x32x32xf32>
    %70 = vector.shape_cast %69 : vector<1x32x32xf32> to vector<32x32xf32>
    %71 = vector.extract_strided_slice %68 {offsets = [0, 0], sizes = [8, 32], strides = [1, 1]} : vector<8x96xf32> to vector<8x32xf32>
    %72 = vector.extract_strided_slice %68 {offsets = [0, 32], sizes = [8, 32], strides = [1, 1]} : vector<8x96xf32> to vector<8x32xf32>
    %73 = vector.extract_strided_slice %68 {offsets = [0, 64], sizes = [8, 32], strides = [1, 1]} : vector<8x96xf32> to vector<8x32xf32>
    %74 = vector.extract_strided_slice %71 {offsets = [0, 0], sizes = [8, 8], strides = [1, 1]} : vector<8x32xf32> to vector<8x8xf32>
    %cst_40 = arith.constant 0.353553385 : f32
    %75 = vector.broadcast %cst_40 : f32 to vector<8x8xf32>
    %76 = arith.mulf %74, %75 : vector<8x8xf32>
    %77 = vector.extract_strided_slice %72 {offsets = [0, 0], sizes = [8, 8], strides = [1, 1]} : vector<8x32xf32> to vector<8x8xf32>
    %78 = vector.extract_strided_slice %73 {offsets = [0, 0], sizes = [8, 8], strides = [1, 1]} : vector<8x32xf32> to vector<8x8xf32>
    %cst_41 = arith.constant dense<0.000000e+00> : vector<8x8xf32>
    %79 = tpu.matmul %76, %77, %cst_41 {dimension_numbers = #tpu.dot_dimension_numbers<[1], [1], [0], [0], [0, 0, 1, 0], [], []>, precision = #tpu.contract_precision<fp32>} : vector<8x8xf32>, vector<8x8xf32>, vector<8x8xf32> -> vector<8x8xf32>
    %80 = arith.addf %79, %18 : vector<8x8xf32>
    %cst_42 = arith.constant dense<0xFF800000> : vector<8xf32>
    %81 = vector.multi_reduction <maximumf>, %80, %cst_42 [1] : vector<8x8xf32> to vector<8xf32>
    %82 = vector.shape_cast %81 : vector<8xf32> to vector<8x1xf32>
    %83 = vector.broadcast %82 : vector<8x1xf32> to vector<8x8xf32>
    %84 = arith.subf %80, %83 : vector<8x8xf32>
    %85 = math.exp %84 : vector<8x8xf32>
    %cst_43 = arith.constant dense<0.000000e+00> : vector<8xf32>
    %86 = vector.multi_reduction <add>, %85, %cst_43 [1] : vector<8x8xf32> to vector<8xf32>
    %87 = vector.shape_cast %86 : vector<8xf32> to vector<8x1xf32>
    %88 = tpu.reciprocal %87 {approx = true} : vector<8x1xf32> -> vector<8x1xf32>
    %89 = vector.broadcast %88 : vector<8x1xf32> to vector<8x8xf32>
    %90 = arith.mulf %85, %89 : vector<8x8xf32>
    %cst_44 = arith.constant dense<0.000000e+00> : vector<8x8xf32>
    %91 = tpu.matmul %90, %78, %cst_44 {dimension_numbers = #tpu.dot_dimension_numbers<[1], [0], [0], [1], [0, 0, 1, 1], [], []>, precision = #tpu.contract_precision<fp32>} : vector<8x8xf32>, vector<8x8xf32>, vector<8x8xf32> -> vector<8x8xf32>
    %92 = vector.extract_strided_slice %71 {offsets = [0, 8], sizes = [8, 8], strides = [1, 1]} : vector<8x32xf32> to vector<8x8xf32>
    %cst_45 = arith.constant 0.353553385 : f32
    %93 = vector.broadcast %cst_45 : f32 to vector<8x8xf32>
    %94 = arith.mulf %92, %93 : vector<8x8xf32>
    %95 = vector.extract_strided_slice %72 {offsets = [0, 8], sizes = [8, 8], strides = [1, 1]} : vector<8x32xf32> to vector<8x8xf32>
    %96 = vector.extract_strided_slice %73 {offsets = [0, 8], sizes = [8, 8], strides = [1, 1]} : vector<8x32xf32> to vector<8x8xf32>
    %cst_46 = arith.constant dense<0.000000e+00> : vector<8x8xf32>
    %97 = tpu.matmul %94, %95, %cst_46 {dimension_numbers = #tpu.dot_dimension_numbers<[1], [1], [0], [0], [0, 0, 1, 0], [], []>, precision = #tpu.contract_precision<fp32>} : vector<8x8xf32>, vector<8x8xf32>, vector<8x8xf32> -> vector<8x8xf32>
    %98 = arith.addf %97, %18 : vector<8x8xf32>
    %cst_47 = arith.constant dense<0xFF800000> : vector<8xf32>
    %99 = vector.multi_reduction <maximumf>, %98, %cst_47 [1] : vector<8x8xf32> to vector<8xf32>
    %100 = vector.shape_cast %99 : vector<8xf32> to vector<8x1xf32>
    %101 = vector.broadcast %100 : vector<8x1xf32> to vector<8x8xf32>
    %102 = arith.subf %98, %101 : vector<8x8xf32>
    %103 = math.exp %102 : vector<8x8xf32>
    %cst_48 = arith.constant dense<0.000000e+00> : vector<8xf32>
    %104 = vector.multi_reduction <add>, %103, %cst_48 [1] : vector<8x8xf32> to vector<8xf32>
    %105 = vector.shape_cast %104 : vector<8xf32> to vector<8x1xf32>
    %106 = tpu.reciprocal %105 {approx = true} : vector<8x1xf32> -> vector<8x1xf32>
    %107 = vector.broadcast %106 : vector<8x1xf32> to vector<8x8xf32>
    %108 = arith.mulf %103, %107 : vector<8x8xf32>
    %cst_49 = arith.constant dense<0.000000e+00> : vector<8x8xf32>
    %109 = tpu.matmul %108, %96, %cst_49 {dimension_numbers = #tpu.dot_dimension_numbers<[1], [0], [0], [1], [0, 0, 1, 1], [], []>, precision = #tpu.contract_precision<fp32>} : vector<8x8xf32>, vector<8x8xf32>, vector<8x8xf32> -> vector<8x8xf32>
    %110 = vector.extract_strided_slice %71 {offsets = [0, 16], sizes = [8, 8], strides = [1, 1]} : vector<8x32xf32> to vector<8x8xf32>
    %cst_50 = arith.constant 0.353553385 : f32
    %111 = vector.broadcast %cst_50 : f32 to vector<8x8xf32>
    %112 = arith.mulf %110, %111 : vector<8x8xf32>
    %113 = vector.extract_strided_slice %72 {offsets = [0, 16], sizes = [8, 8], strides = [1, 1]} : vector<8x32xf32> to vector<8x8xf32>
    %114 = vector.extract_strided_slice %73 {offsets = [0, 16], sizes = [8, 8], strides = [1, 1]} : vector<8x32xf32> to vector<8x8xf32>
    %cst_51 = arith.constant dense<0.000000e+00> : vector<8x8xf32>
    %115 = tpu.matmul %112, %113, %cst_51 {dimension_numbers = #tpu.dot_dimension_numbers<[1], [1], [0], [0], [0, 0, 1, 0], [], []>, precision = #tpu.contract_precision<fp32>} : vector<8x8xf32>, vector<8x8xf32>, vector<8x8xf32> -> vector<8x8xf32>
    %116 = arith.addf %115, %18 : vector<8x8xf32>
    %cst_52 = arith.constant dense<0xFF800000> : vector<8xf32>
    %117 = vector.multi_reduction <maximumf>, %116, %cst_52 [1] : vector<8x8xf32> to vector<8xf32>
    %118 = vector.shape_cast %117 : vector<8xf32> to vector<8x1xf32>
    %119 = vector.broadcast %118 : vector<8x1xf32> to vector<8x8xf32>
    %120 = arith.subf %116, %119 : vector<8x8xf32>
    %121 = math.exp %120 : vector<8x8xf32>
    %cst_53 = arith.constant dense<0.000000e+00> : vector<8xf32>
    %122 = vector.multi_reduction <add>, %121, %cst_53 [1] : vector<8x8xf32> to vector<8xf32>
    %123 = vector.shape_cast %122 : vector<8xf32> to vector<8x1xf32>
    %124 = tpu.reciprocal %123 {approx = true} : vector<8x1xf32> -> vector<8x1xf32>
    %125 = vector.broadcast %124 : vector<8x1xf32> to vector<8x8xf32>
    %126 = arith.mulf %121, %125 : vector<8x8xf32>
    %cst_54 = arith.constant dense<0.000000e+00> : vector<8x8xf32>
    %127 = tpu.matmul %126, %114, %cst_54 {dimension_numbers = #tpu.dot_dimension_numbers<[1], [0], [0], [1], [0, 0, 1, 1], [], []>, precision = #tpu.contract_precision<fp32>} : vector<8x8xf32>, vector<8x8xf32>, vector<8x8xf32> -> vector<8x8xf32>
    %128 = vector.extract_strided_slice %71 {offsets = [0, 24], sizes = [8, 8], strides = [1, 1]} : vector<8x32xf32> to vector<8x8xf32>
    %cst_55 = arith.constant 0.353553385 : f32
    %129 = vector.broadcast %cst_55 : f32 to vector<8x8xf32>
    %130 = arith.mulf %128, %129 : vector<8x8xf32>
    %131 = vector.extract_strided_slice %72 {offsets = [0, 24], sizes = [8, 8], strides = [1, 1]} : vector<8x32xf32> to vector<8x8xf32>
    %132 = vector.extract_strided_slice %73 {offsets = [0, 24], sizes = [8, 8], strides = [1, 1]} : vector<8x32xf32> to vector<8x8xf32>
    %cst_56 = arith.constant dense<0.000000e+00> : vector<8x8xf32>
    %133 = tpu.matmul %130, %131, %cst_56 {dimension_numbers = #tpu.dot_dimension_numbers<[1], [1], [0], [0], [0, 0, 1, 0], [], []>, precision = #tpu.contract_precision<fp32>} : vector<8x8xf32>, vector<8x8xf32>, vector<8x8xf32> -> vector<8x8xf32>
    %134 = arith.addf %133, %18 : vector<8x8xf32>
    %cst_57 = arith.constant dense<0xFF800000> : vector<8xf32>
    %135 = vector.multi_reduction <maximumf>, %134, %cst_57 [1] : vector<8x8xf32> to vector<8xf32>
    %136 = vector.shape_cast %135 : vector<8xf32> to vector<8x1xf32>
    %137 = vector.broadcast %136 : vector<8x1xf32> to vector<8x8xf32>
    %138 = arith.subf %134, %137 : vector<8x8xf32>
    %139 = math.exp %138 : vector<8x8xf32>
    %cst_58 = arith.constant dense<0.000000e+00> : vector<8xf32>
    %140 = vector.multi_reduction <add>, %139, %cst_58 [1] : vector<8x8xf32> to vector<8xf32>
    %141 = vector.shape_cast %140 : vector<8xf32> to vector<8x1xf32>
    %142 = tpu.reciprocal %141 {approx = true} : vector<8x1xf32> -> vector<8x1xf32>
    %143 = vector.broadcast %142 : vector<8x1xf32> to vector<8x8xf32>
    %144 = arith.mulf %139, %143 : vector<8x8xf32>
    %cst_59 = arith.constant dense<0.000000e+00> : vector<8x8xf32>
    %145 = tpu.matmul %144, %132, %cst_59 {dimension_numbers = #tpu.dot_dimension_numbers<[1], [0], [0], [1], [0, 0, 1, 1], [], []>, precision = #tpu.contract_precision<fp32>} : vector<8x8xf32>, vector<8x8xf32>, vector<8x8xf32> -> vector<8x8xf32>
    %146 = tpu.concatenate %91, %109, %127, %145 in 1 : vector<8x8xf32>, vector<8x8xf32>, vector<8x8xf32>, vector<8x8xf32> -> vector<8x32xf32>
    %cst_60 = arith.constant dense<0.000000e+00> : vector<8x32xf32>
    %147 = tpu.matmul %146, %70, %cst_60 {dimension_numbers = #tpu.dot_dimension_numbers<[1], [0], [0], [1], [0, 0, 1, 1], [], []>, precision = #tpu.contract_precision<fp32>} : vector<8x32xf32>, vector<32x32xf32>, vector<8x32xf32> -> vector<8x32xf32>
    %148 = arith.addf %6, %147 : vector<8x32xf32>
    %c0_61 = arith.constant 0 : index
    %c0_62 = arith.constant 0 : index
    %c0_63 = arith.constant 0 : index
    %149 = vector.load %arg13[%c0_61, %c0_62, %c0_63] : memref<2x2x32xf32, #tpu.memory_space<vmem>>, vector<1x2x32xf32>
    %150 = vector.shape_cast %149 : vector<1x2x32xf32> to vector<2x32xf32>
    %151 = vector.extract_strided_slice %150 {offsets = [0, 0], sizes = [1, 32], strides = [1, 1]} : vector<2x32xf32> to vector<1x32xf32>
    %152 = vector.extract_strided_slice %150 {offsets = [1, 0], sizes = [1, 32], strides = [1, 1]} : vector<2x32xf32> to vector<1x32xf32>
    %cst_64 = arith.constant dense<0.000000e+00> : vector<8xf32>
    %153 = vector.multi_reduction <add>, %148, %cst_64 [1] : vector<8x32xf32> to vector<8xf32>
    %154 = vector.shape_cast %153 : vector<8xf32> to vector<8x1xf32>
    %cst_65 = arith.constant 3.200000e+01 : f32
    %155 = vector.broadcast %cst_65 : f32 to vector<8x1xf32>
    %156 = arith.divf %154, %155 : vector<8x1xf32>
    %157 = vector.broadcast %156 : vector<8x1xf32> to vector<8x32xf32>
    %158 = arith.subf %148, %157 : vector<8x32xf32>
    %159 = arith.mulf %158, %158 : vector<8x32xf32>
    %cst_66 = arith.constant dense<0.000000e+00> : vector<8xf32>
    %160 = vector.multi_reduction <add>, %159, %cst_66 [1] : vector<8x32xf32> to vector<8xf32>
    %161 = vector.shape_cast %160 : vector<8xf32> to vector<8x1xf32>
    %cst_67 = arith.constant 0.0322580636 : f32
    %162 = vector.broadcast %cst_67 : f32 to vector<8x1xf32>
    %163 = arith.mulf %161, %162 : vector<8x1xf32>
    %164 = math.sqrt %163 : vector<8x1xf32>
    %cst_68 = arith.constant 9.99999997E-7 : f32
    %165 = vector.broadcast %cst_68 : f32 to vector<8x1xf32>
    %166 = arith.addf %164, %165 : vector<8x1xf32>
    %167 = tpu.reciprocal %166 {approx = true} : vector<8x1xf32> -> vector<8x1xf32>
    %168 = vector.broadcast %156 : vector<8x1xf32> to vector<8x32xf32>
    %169 = arith.subf %148, %168 : vector<8x32xf32>
    %170 = vector.broadcast %151 : vector<1x32xf32> to vector<8x32xf32>
    %171 = arith.mulf %170, %169 : vector<8x32xf32>
    %172 = vector.broadcast %167 : vector<8x1xf32> to vector<8x32xf32>
    %173 = arith.mulf %171, %172 : vector<8x32xf32>
    %174 = vector.broadcast %152 : vector<1x32xf32> to vector<8x32xf32>
    %175 = arith.addf %173, %174 : vector<8x32xf32>
    %c0_69 = arith.constant 0 : index
    %c0_70 = arith.constant 0 : index
    %c0_71 = arith.constant 0 : index
    %176 = vector.load %arg9[%c0_69, %c0_70, %c0_71] : memref<2x32x32xf32, #tpu.memory_space<vmem>>, vector<1x32x32xf32>
    %177 = vector.shape_cast %176 : vector<1x32x32xf32> to vector<32x32xf32>
    %cst_72 = arith.constant dense<0.000000e+00> : vector<8x32xf32>
    %178 = tpu.matmul %175, %177, %cst_72 {dimension_numbers = #tpu.dot_dimension_numbers<[1], [0], [0], [1], [0, 0, 1, 1], [], []>, precision = #tpu.contract_precision<fp32>} : vector<8x32xf32>, vector<32x32xf32>, vector<8x32xf32> -> vector<8x32xf32>
    %c0_73 = arith.constant 0 : index
    %c0_74 = arith.constant 0 : index
    %c0_75 = arith.constant 0 : index
    %179 = vector.load %arg11[%c0_73, %c0_74, %c0_75] : memref<2x32x32xf32, #tpu.memory_space<vmem>>, vector<1x32x32xf32>
    %180 = vector.shape_cast %179 : vector<1x32x32xf32> to vector<32x32xf32>
    %181 = vector.extract_strided_slice %38 {offsets = [0, 0], sizes = [10, 32], strides = [1, 1]} : vector<10x128xf32> to vector<10x32xf32>
    %182 = vector.extract_strided_slice %38 {offsets = [0, 32], sizes = [10, 32], strides = [1, 1]} : vector<10x128xf32> to vector<10x32xf32>
    %183 = vector.extract_strided_slice %178 {offsets = [0, 0], sizes = [8, 8], strides = [1, 1]} : vector<8x32xf32> to vector<8x8xf32>
    %cst_76 = arith.constant 0.353553385 : f32
    %184 = vector.broadcast %cst_76 : f32 to vector<8x8xf32>
    %185 = arith.mulf %183, %184 : vector<8x8xf32>
    %186 = vector.extract_strided_slice %181 {offsets = [0, 0], sizes = [10, 8], strides = [1, 1]} : vector<10x32xf32> to vector<10x8xf32>
    %187 = vector.extract_strided_slice %182 {offsets = [0, 0], sizes = [10, 8], strides = [1, 1]} : vector<10x32xf32> to vector<10x8xf32>
    %cst_77 = arith.constant dense<0.000000e+00> : vector<8x10xf32>
    %188 = tpu.matmul %185, %186, %cst_77 {dimension_numbers = #tpu.dot_dimension_numbers<[1], [1], [0], [0], [0, 0, 1, 0], [], []>, precision = #tpu.contract_precision<fp32>} : vector<8x8xf32>, vector<10x8xf32>, vector<8x10xf32> -> vector<8x10xf32>
    %189 = vector.broadcast %25 : vector<1x10xf32> to vector<8x10xf32>
    %190 = arith.addf %188, %189 : vector<8x10xf32>
    %cst_78 = arith.constant dense<0xFF800000> : vector<8xf32>
    %191 = vector.multi_reduction <maximumf>, %190, %cst_78 [1] : vector<8x10xf32> to vector<8xf32>
    %192 = vector.shape_cast %191 : vector<8xf32> to vector<8x1xf32>
    %193 = vector.broadcast %192 : vector<8x1xf32> to vector<8x10xf32>
    %194 = arith.subf %190, %193 : vector<8x10xf32>
    %195 = math.exp %194 : vector<8x10xf32>
    %cst_79 = arith.constant dense<0.000000e+00> : vector<8xf32>
    %196 = vector.multi_reduction <add>, %195, %cst_79 [1] : vector<8x10xf32> to vector<8xf32>
    %197 = vector.shape_cast %196 : vector<8xf32> to vector<8x1xf32>
    %198 = tpu.reciprocal %197 {approx = true} : vector<8x1xf32> -> vector<8x1xf32>
    %199 = vector.broadcast %198 : vector<8x1xf32> to vector<8x10xf32>
    %200 = arith.mulf %195, %199 : vector<8x10xf32>
    %cst_80 = arith.constant dense<0.000000e+00> : vector<8x8xf32>
    %201 = tpu.matmul %200, %187, %cst_80 {dimension_numbers = #tpu.dot_dimension_numbers<[1], [0], [0], [1], [0, 0, 1, 1], [], []>, precision = #tpu.contract_precision<fp32>} : vector<8x10xf32>, vector<10x8xf32>, vector<8x8xf32> -> vector<8x8xf32>
    %202 = vector.extract_strided_slice %178 {offsets = [0, 8], sizes = [8, 8], strides = [1, 1]} : vector<8x32xf32> to vector<8x8xf32>
    %cst_81 = arith.constant 0.353553385 : f32
    %203 = vector.broadcast %cst_81 : f32 to vector<8x8xf32>
    %204 = arith.mulf %202, %203 : vector<8x8xf32>
    %205 = vector.extract_strided_slice %181 {offsets = [0, 8], sizes = [10, 8], strides = [1, 1]} : vector<10x32xf32> to vector<10x8xf32>
    %206 = vector.extract_strided_slice %182 {offsets = [0, 8], sizes = [10, 8], strides = [1, 1]} : vector<10x32xf32> to vector<10x8xf32>
    %cst_82 = arith.constant dense<0.000000e+00> : vector<8x10xf32>
    %207 = tpu.matmul %204, %205, %cst_82 {dimension_numbers = #tpu.dot_dimension_numbers<[1], [1], [0], [0], [0, 0, 1, 0], [], []>, precision = #tpu.contract_precision<fp32>} : vector<8x8xf32>, vector<10x8xf32>, vector<8x10xf32> -> vector<8x10xf32>
    %208 = vector.broadcast %25 : vector<1x10xf32> to vector<8x10xf32>
    %209 = arith.addf %207, %208 : vector<8x10xf32>
    %cst_83 = arith.constant dense<0xFF800000> : vector<8xf32>
    %210 = vector.multi_reduction <maximumf>, %209, %cst_83 [1] : vector<8x10xf32> to vector<8xf32>
    %211 = vector.shape_cast %210 : vector<8xf32> to vector<8x1xf32>
    %212 = vector.broadcast %211 : vector<8x1xf32> to vector<8x10xf32>
    %213 = arith.subf %209, %212 : vector<8x10xf32>
    %214 = math.exp %213 : vector<8x10xf32>
    %cst_84 = arith.constant dense<0.000000e+00> : vector<8xf32>
    %215 = vector.multi_reduction <add>, %214, %cst_84 [1] : vector<8x10xf32> to vector<8xf32>
    %216 = vector.shape_cast %215 : vector<8xf32> to vector<8x1xf32>
    %217 = tpu.reciprocal %216 {approx = true} : vector<8x1xf32> -> vector<8x1xf32>
    %218 = vector.broadcast %217 : vector<8x1xf32> to vector<8x10xf32>
    %219 = arith.mulf %214, %218 : vector<8x10xf32>
    %cst_85 = arith.constant dense<0.000000e+00> : vector<8x8xf32>
    %220 = tpu.matmul %219, %206, %cst_85 {dimension_numbers = #tpu.dot_dimension_numbers<[1], [0], [0], [1], [0, 0, 1, 1], [], []>, precision = #tpu.contract_precision<fp32>} : vector<8x10xf32>, vector<10x8xf32>, vector<8x8xf32> -> vector<8x8xf32>
    %221 = vector.extract_strided_slice %178 {offsets = [0, 16], sizes = [8, 8], strides = [1, 1]} : vector<8x32xf32> to vector<8x8xf32>
    %cst_86 = arith.constant 0.353553385 : f32
    %222 = vector.broadcast %cst_86 : f32 to vector<8x8xf32>
    %223 = arith.mulf %221, %222 : vector<8x8xf32>
    %224 = vector.extract_strided_slice %181 {offsets = [0, 16], sizes = [10, 8], strides = [1, 1]} : vector<10x32xf32> to vector<10x8xf32>
    %225 = vector.extract_strided_slice %182 {offsets = [0, 16], sizes = [10, 8], strides = [1, 1]} : vector<10x32xf32> to vector<10x8xf32>
    %cst_87 = arith.constant dense<0.000000e+00> : vector<8x10xf32>
    %226 = tpu.matmul %223, %224, %cst_87 {dimension_numbers = #tpu.dot_dimension_numbers<[1], [1], [0], [0], [0, 0, 1, 0], [], []>, precision = #tpu.contract_precision<fp32>} : vector<8x8xf32>, vector<10x8xf32>, vector<8x10xf32> -> vector<8x10xf32>
    %227 = vector.broadcast %25 : vector<1x10xf32> to vector<8x10xf32>
    %228 = arith.addf %226, %227 : vector<8x10xf32>
    %cst_88 = arith.constant dense<0xFF800000> : vector<8xf32>
    %229 = vector.multi_reduction <maximumf>, %228, %cst_88 [1] : vector<8x10xf32> to vector<8xf32>
    %230 = vector.shape_cast %229 : vector<8xf32> to vector<8x1xf32>
    %231 = vector.broadcast %230 : vector<8x1xf32> to vector<8x10xf32>
    %232 = arith.subf %228, %231 : vector<8x10xf32>
    %233 = math.exp %232 : vector<8x10xf32>
    %cst_89 = arith.constant dense<0.000000e+00> : vector<8xf32>
    %234 = vector.multi_reduction <add>, %233, %cst_89 [1] : vector<8x10xf32> to vector<8xf32>
    %235 = vector.shape_cast %234 : vector<8xf32> to vector<8x1xf32>
    %236 = tpu.reciprocal %235 {approx = true} : vector<8x1xf32> -> vector<8x1xf32>
    %237 = vector.broadcast %236 : vector<8x1xf32> to vector<8x10xf32>
    %238 = arith.mulf %233, %237 : vector<8x10xf32>
    %cst_90 = arith.constant dense<0.000000e+00> : vector<8x8xf32>
    %239 = tpu.matmul %238, %225, %cst_90 {dimension_numbers = #tpu.dot_dimension_numbers<[1], [0], [0], [1], [0, 0, 1, 1], [], []>, precision = #tpu.contract_precision<fp32>} : vector<8x10xf32>, vector<10x8xf32>, vector<8x8xf32> -> vector<8x8xf32>
    %240 = vector.extract_strided_slice %178 {offsets = [0, 24], sizes = [8, 8], strides = [1, 1]} : vector<8x32xf32> to vector<8x8xf32>
    %cst_91 = arith.constant 0.353553385 : f32
    %241 = vector.broadcast %cst_91 : f32 to vector<8x8xf32>
    %242 = arith.mulf %240, %241 : vector<8x8xf32>
    %243 = vector.extract_strided_slice %181 {offsets = [0, 24], sizes = [10, 8], strides = [1, 1]} : vector<10x32xf32> to vector<10x8xf32>
    %244 = vector.extract_strided_slice %182 {offsets = [0, 24], sizes = [10, 8], strides = [1, 1]} : vector<10x32xf32> to vector<10x8xf32>
    %cst_92 = arith.constant dense<0.000000e+00> : vector<8x10xf32>
    %245 = tpu.matmul %242, %243, %cst_92 {dimension_numbers = #tpu.dot_dimension_numbers<[1], [1], [0], [0], [0, 0, 1, 0], [], []>, precision = #tpu.contract_precision<fp32>} : vector<8x8xf32>, vector<10x8xf32>, vector<8x10xf32> -> vector<8x10xf32>
    %246 = vector.broadcast %25 : vector<1x10xf32> to vector<8x10xf32>
    %247 = arith.addf %245, %246 : vector<8x10xf32>
    %cst_93 = arith.constant dense<0xFF800000> : vector<8xf32>
    %248 = vector.multi_reduction <maximumf>, %247, %cst_93 [1] : vector<8x10xf32> to vector<8xf32>
    %249 = vector.shape_cast %248 : vector<8xf32> to vector<8x1xf32>
    %250 = vector.broadcast %249 : vector<8x1xf32> to vector<8x10xf32>
    %251 = arith.subf %247, %250 : vector<8x10xf32>
    %252 = math.exp %251 : vector<8x10xf32>
    %cst_94 = arith.constant dense<0.000000e+00> : vector<8xf32>
    %253 = vector.multi_reduction <add>, %252, %cst_94 [1] : vector<8x10xf32> to vector<8xf32>
    %254 = vector.shape_cast %253 : vector<8xf32> to vector<8x1xf32>
    %255 = tpu.reciprocal %254 {approx = true} : vector<8x1xf32> -> vector<8x1xf32>
    %256 = vector.broadcast %255 : vector<8x1xf32> to vector<8x10xf32>
    %257 = arith.mulf %252, %256 : vector<8x10xf32>
    %cst_95 = arith.constant dense<0.000000e+00> : vector<8x8xf32>
    %258 = tpu.matmul %257, %244, %cst_95 {dimension_numbers = #tpu.dot_dimension_numbers<[1], [0], [0], [1], [0, 0, 1, 1], [], []>, precision = #tpu.contract_precision<fp32>} : vector<8x10xf32>, vector<10x8xf32>, vector<8x8xf32> -> vector<8x8xf32>
    %259 = tpu.concatenate %201, %220, %239, %258 in 1 : vector<8x8xf32>, vector<8x8xf32>, vector<8x8xf32>, vector<8x8xf32> -> vector<8x32xf32>
    %cst_96 = arith.constant dense<0.000000e+00> : vector<8x32xf32>
    %260 = tpu.matmul %259, %180, %cst_96 {dimension_numbers = #tpu.dot_dimension_numbers<[1], [0], [0], [1], [0, 0, 1, 1], [], []>, precision = #tpu.contract_precision<fp32>} : vector<8x32xf32>, vector<32x32xf32>, vector<8x32xf32> -> vector<8x32xf32>
    %261 = arith.addf %148, %260 : vector<8x32xf32>
    %c0_97 = arith.constant 0 : index
    %c0_98 = arith.constant 0 : index
    %c0_99 = arith.constant 0 : index
    %262 = vector.load %arg14[%c0_97, %c0_98, %c0_99] : memref<2x2x32xf32, #tpu.memory_space<vmem>>, vector<1x2x32xf32>
    %263 = vector.shape_cast %262 : vector<1x2x32xf32> to vector<2x32xf32>
    %264 = vector.extract_strided_slice %263 {offsets = [0, 0], sizes = [1, 32], strides = [1, 1]} : vector<2x32xf32> to vector<1x32xf32>
    %265 = vector.extract_strided_slice %263 {offsets = [1, 0], sizes = [1, 32], strides = [1, 1]} : vector<2x32xf32> to vector<1x32xf32>
    %cst_100 = arith.constant dense<0.000000e+00> : vector<8xf32>
    %266 = vector.multi_reduction <add>, %261, %cst_100 [1] : vector<8x32xf32> to vector<8xf32>
    %267 = vector.shape_cast %266 : vector<8xf32> to vector<8x1xf32>
    %cst_101 = arith.constant 3.200000e+01 : f32
    %268 = vector.broadcast %cst_101 : f32 to vector<8x1xf32>
    %269 = arith.divf %267, %268 : vector<8x1xf32>
    %270 = vector.broadcast %269 : vector<8x1xf32> to vector<8x32xf32>
    %271 = arith.subf %261, %270 : vector<8x32xf32>
    %272 = arith.mulf %271, %271 : vector<8x32xf32>
    %cst_102 = arith.constant dense<0.000000e+00> : vector<8xf32>
    %273 = vector.multi_reduction <add>, %272, %cst_102 [1] : vector<8x32xf32> to vector<8xf32>
    %274 = vector.shape_cast %273 : vector<8xf32> to vector<8x1xf32>
    %cst_103 = arith.constant 0.0322580636 : f32
    %275 = vector.broadcast %cst_103 : f32 to vector<8x1xf32>
    %276 = arith.mulf %274, %275 : vector<8x1xf32>
    %277 = math.sqrt %276 : vector<8x1xf32>
    %cst_104 = arith.constant 9.99999997E-7 : f32
    %278 = vector.broadcast %cst_104 : f32 to vector<8x1xf32>
    %279 = arith.addf %277, %278 : vector<8x1xf32>
    %280 = tpu.reciprocal %279 {approx = true} : vector<8x1xf32> -> vector<8x1xf32>
    %281 = vector.broadcast %269 : vector<8x1xf32> to vector<8x32xf32>
    %282 = arith.subf %261, %281 : vector<8x32xf32>
    %283 = vector.broadcast %264 : vector<1x32xf32> to vector<8x32xf32>
    %284 = arith.mulf %283, %282 : vector<8x32xf32>
    %285 = vector.broadcast %280 : vector<8x1xf32> to vector<8x32xf32>
    %286 = arith.mulf %284, %285 : vector<8x32xf32>
    %287 = vector.broadcast %265 : vector<1x32xf32> to vector<8x32xf32>
    %288 = arith.addf %286, %287 : vector<8x32xf32>
    %c0_105 = arith.constant 0 : index
    %c0_106 = arith.constant 0 : index
    %c0_107 = arith.constant 0 : index
    %289 = vector.load %arg15[%c0_105, %c0_106, %c0_107] : memref<2x96x64xf32, #tpu.memory_space<vmem>>, vector<1x96x64xf32>
    %290 = vector.shape_cast %289 : vector<1x96x64xf32> to vector<96x64xf32>
    %c0_108 = arith.constant 0 : index
    %c0_109 = arith.constant 0 : index
    %c0_110 = arith.constant 0 : index
    %291 = vector.load %arg16[%c0_108, %c0_109, %c0_110] : memref<2x1x64xf32, #tpu.memory_space<vmem>>, vector<1x1x64xf32>
    %292 = vector.shape_cast %291 : vector<1x1x64xf32> to vector<1x64xf32>
    %c1_i32_111 = arith.constant 1 : i32
    %293 = tpu.dynamic_rotate %288 by %c1_i32_111 dim 0 : vector<8x32xf32>, i32 -> vector<8x32xf32>
    %294 = vector.broadcast %30 : vector<8x1xf32> to vector<8x32xf32>
    %295 = arith.mulf %293, %294 : vector<8x32xf32>
    %c2_i32_112 = arith.constant 2 : i32
    %296 = tpu.dynamic_rotate %288 by %c2_i32_112 dim 0 : vector<8x32xf32>, i32 -> vector<8x32xf32>
    %297 = vector.broadcast %34 : vector<8x1xf32> to vector<8x32xf32>
    %298 = arith.mulf %296, %297 : vector<8x32xf32>
    %299 = tpu.concatenate %298, %295, %288 in 1 : vector<8x32xf32>, vector<8x32xf32>, vector<8x32xf32> -> vector<8x96xf32>
    %cst_113 = arith.constant dense<0.000000e+00> : vector<8x64xf32>
    %300 = tpu.matmul %299, %290, %cst_113 {dimension_numbers = #tpu.dot_dimension_numbers<[1], [0], [0], [1], [0, 0, 1, 1], [], []>, precision = #tpu.contract_precision<fp32>} : vector<8x96xf32>, vector<96x64xf32>, vector<8x64xf32> -> vector<8x64xf32>
    %301 = vector.broadcast %292 : vector<1x64xf32> to vector<8x64xf32>
    %302 = arith.addf %300, %301 : vector<8x64xf32>
    %cst_114 = arith.constant 0.000000e+00 : f32
    %303 = vector.broadcast %cst_114 : f32 to vector<8x64xf32>
    %304 = arith.maximumf %302, %303 : vector<8x64xf32>
    %c0_115 = arith.constant 0 : index
    %c0_116 = arith.constant 0 : index
    %c0_117 = arith.constant 0 : index
    %305 = vector.load %arg17[%c0_115, %c0_116, %c0_117] : memref<2x192x32xf32, #tpu.memory_space<vmem>>, vector<1x192x32xf32>
    %306 = vector.shape_cast %305 : vector<1x192x32xf32> to vector<192x32xf32>
    %c0_118 = arith.constant 0 : index
    %c0_119 = arith.constant 0 : index
    %c0_120 = arith.constant 0 : index
    %307 = vector.load %arg18[%c0_118, %c0_119, %c0_120] : memref<2x1x32xf32, #tpu.memory_space<vmem>>, vector<1x1x32xf32>
    %308 = vector.shape_cast %307 : vector<1x1x32xf32> to vector<1x32xf32>
    %c1_i32_121 = arith.constant 1 : i32
    %309 = tpu.dynamic_rotate %304 by %c1_i32_121 dim 0 : vector<8x64xf32>, i32 -> vector<8x64xf32>
    %310 = vector.broadcast %30 : vector<8x1xf32> to vector<8x64xf32>
    %311 = arith.mulf %309, %310 : vector<8x64xf32>
    %c2_i32_122 = arith.constant 2 : i32
    %312 = tpu.dynamic_rotate %304 by %c2_i32_122 dim 0 : vector<8x64xf32>, i32 -> vector<8x64xf32>
    %313 = vector.broadcast %34 : vector<8x1xf32> to vector<8x64xf32>
    %314 = arith.mulf %312, %313 : vector<8x64xf32>
    %315 = tpu.concatenate %314, %311, %304 in 1 : vector<8x64xf32>, vector<8x64xf32>, vector<8x64xf32> -> vector<8x192xf32>
    %cst_123 = arith.constant dense<0.000000e+00> : vector<8x32xf32>
    %316 = tpu.matmul %315, %306, %cst_123 {dimension_numbers = #tpu.dot_dimension_numbers<[1], [0], [0], [1], [0, 0, 1, 1], [], []>, precision = #tpu.contract_precision<fp32>} : vector<8x192xf32>, vector<192x32xf32>, vector<8x32xf32> -> vector<8x32xf32>
    %317 = vector.broadcast %308 : vector<1x32xf32> to vector<8x32xf32>
    %318 = arith.addf %316, %317 : vector<8x32xf32>
    %319 = arith.addf %261, %318 : vector<8x32xf32>
    %c1 = arith.constant 1 : index
    %c0_124 = arith.constant 0 : index
    %c0_125 = arith.constant 0 : index
    %320 = vector.load %arg12[%c1, %c0_124, %c0_125] : memref<2x2x32xf32, #tpu.memory_space<vmem>>, vector<1x2x32xf32>
    %321 = vector.shape_cast %320 : vector<1x2x32xf32> to vector<2x32xf32>
    %322 = vector.extract_strided_slice %321 {offsets = [0, 0], sizes = [1, 32], strides = [1, 1]} : vector<2x32xf32> to vector<1x32xf32>
    %323 = vector.extract_strided_slice %321 {offsets = [1, 0], sizes = [1, 32], strides = [1, 1]} : vector<2x32xf32> to vector<1x32xf32>
    %cst_126 = arith.constant dense<0.000000e+00> : vector<8xf32>
    %324 = vector.multi_reduction <add>, %319, %cst_126 [1] : vector<8x32xf32> to vector<8xf32>
    %325 = vector.shape_cast %324 : vector<8xf32> to vector<8x1xf32>
    %cst_127 = arith.constant 3.200000e+01 : f32
    %326 = vector.broadcast %cst_127 : f32 to vector<8x1xf32>
    %327 = arith.divf %325, %326 : vector<8x1xf32>
    %328 = vector.broadcast %327 : vector<8x1xf32> to vector<8x32xf32>
    %329 = arith.subf %319, %328 : vector<8x32xf32>
    %330 = arith.mulf %329, %329 : vector<8x32xf32>
    %cst_128 = arith.constant dense<0.000000e+00> : vector<8xf32>
    %331 = vector.multi_reduction <add>, %330, %cst_128 [1] : vector<8x32xf32> to vector<8xf32>
    %332 = vector.shape_cast %331 : vector<8xf32> to vector<8x1xf32>
    %cst_129 = arith.constant 0.0322580636 : f32
    %333 = vector.broadcast %cst_129 : f32 to vector<8x1xf32>
    %334 = arith.mulf %332, %333 : vector<8x1xf32>
    %335 = math.sqrt %334 : vector<8x1xf32>
    %cst_130 = arith.constant 9.99999997E-7 : f32
    %336 = vector.broadcast %cst_130 : f32 to vector<8x1xf32>
    %337 = arith.addf %335, %336 : vector<8x1xf32>
    %338 = tpu.reciprocal %337 {approx = true} : vector<8x1xf32> -> vector<8x1xf32>
    %339 = vector.broadcast %327 : vector<8x1xf32> to vector<8x32xf32>
    %340 = arith.subf %319, %339 : vector<8x32xf32>
    %341 = vector.broadcast %322 : vector<1x32xf32> to vector<8x32xf32>
    %342 = arith.mulf %341, %340 : vector<8x32xf32>
    %343 = vector.broadcast %338 : vector<8x1xf32> to vector<8x32xf32>
    %344 = arith.mulf %342, %343 : vector<8x32xf32>
    %345 = vector.broadcast %323 : vector<1x32xf32> to vector<8x32xf32>
    %346 = arith.addf %344, %345 : vector<8x32xf32>
    %c1_131 = arith.constant 1 : index
    %c0_132 = arith.constant 0 : index
    %c0_133 = arith.constant 0 : index
    %347 = vector.load %arg7[%c1_131, %c0_132, %c0_133] : memref<2x32x96xf32, #tpu.memory_space<vmem>>, vector<1x32x96xf32>
    %348 = vector.shape_cast %347 : vector<1x32x96xf32> to vector<32x96xf32>
    %cst_134 = arith.constant dense<0.000000e+00> : vector<8x96xf32>
    %349 = tpu.matmul %346, %348, %cst_134 {dimension_numbers = #tpu.dot_dimension_numbers<[1], [0], [0], [1], [0, 0, 1, 1], [], []>, precision = #tpu.contract_precision<fp32>} : vector<8x32xf32>, vector<32x96xf32>, vector<8x96xf32> -> vector<8x96xf32>
    %c1_135 = arith.constant 1 : index
    %c0_136 = arith.constant 0 : index
    %c0_137 = arith.constant 0 : index
    %350 = vector.load %arg8[%c1_135, %c0_136, %c0_137] : memref<2x32x32xf32, #tpu.memory_space<vmem>>, vector<1x32x32xf32>
    %351 = vector.shape_cast %350 : vector<1x32x32xf32> to vector<32x32xf32>
    %352 = vector.extract_strided_slice %349 {offsets = [0, 0], sizes = [8, 32], strides = [1, 1]} : vector<8x96xf32> to vector<8x32xf32>
    %353 = vector.extract_strided_slice %349 {offsets = [0, 32], sizes = [8, 32], strides = [1, 1]} : vector<8x96xf32> to vector<8x32xf32>
    %354 = vector.extract_strided_slice %349 {offsets = [0, 64], sizes = [8, 32], strides = [1, 1]} : vector<8x96xf32> to vector<8x32xf32>
    %355 = vector.extract_strided_slice %352 {offsets = [0, 0], sizes = [8, 8], strides = [1, 1]} : vector<8x32xf32> to vector<8x8xf32>
    %cst_138 = arith.constant 0.353553385 : f32
    %356 = vector.broadcast %cst_138 : f32 to vector<8x8xf32>
    %357 = arith.mulf %355, %356 : vector<8x8xf32>
    %358 = vector.extract_strided_slice %353 {offsets = [0, 0], sizes = [8, 8], strides = [1, 1]} : vector<8x32xf32> to vector<8x8xf32>
    %359 = vector.extract_strided_slice %354 {offsets = [0, 0], sizes = [8, 8], strides = [1, 1]} : vector<8x32xf32> to vector<8x8xf32>
    %cst_139 = arith.constant dense<0.000000e+00> : vector<8x8xf32>
    %360 = tpu.matmul %357, %358, %cst_139 {dimension_numbers = #tpu.dot_dimension_numbers<[1], [1], [0], [0], [0, 0, 1, 0], [], []>, precision = #tpu.contract_precision<fp32>} : vector<8x8xf32>, vector<8x8xf32>, vector<8x8xf32> -> vector<8x8xf32>
    %361 = arith.addf %360, %18 : vector<8x8xf32>
    %cst_140 = arith.constant dense<0xFF800000> : vector<8xf32>
    %362 = vector.multi_reduction <maximumf>, %361, %cst_140 [1] : vector<8x8xf32> to vector<8xf32>
    %363 = vector.shape_cast %362 : vector<8xf32> to vector<8x1xf32>
    %364 = vector.broadcast %363 : vector<8x1xf32> to vector<8x8xf32>
    %365 = arith.subf %361, %364 : vector<8x8xf32>
    %366 = math.exp %365 : vector<8x8xf32>
    %cst_141 = arith.constant dense<0.000000e+00> : vector<8xf32>
    %367 = vector.multi_reduction <add>, %366, %cst_141 [1] : vector<8x8xf32> to vector<8xf32>
    %368 = vector.shape_cast %367 : vector<8xf32> to vector<8x1xf32>
    %369 = tpu.reciprocal %368 {approx = true} : vector<8x1xf32> -> vector<8x1xf32>
    %370 = vector.broadcast %369 : vector<8x1xf32> to vector<8x8xf32>
    %371 = arith.mulf %366, %370 : vector<8x8xf32>
    %cst_142 = arith.constant dense<0.000000e+00> : vector<8x8xf32>
    %372 = tpu.matmul %371, %359, %cst_142 {dimension_numbers = #tpu.dot_dimension_numbers<[1], [0], [0], [1], [0, 0, 1, 1], [], []>, precision = #tpu.contract_precision<fp32>} : vector<8x8xf32>, vector<8x8xf32>, vector<8x8xf32> -> vector<8x8xf32>
    %373 = vector.extract_strided_slice %352 {offsets = [0, 8], sizes = [8, 8], strides = [1, 1]} : vector<8x32xf32> to vector<8x8xf32>
    %cst_143 = arith.constant 0.353553385 : f32
    %374 = vector.broadcast %cst_143 : f32 to vector<8x8xf32>
    %375 = arith.mulf %373, %374 : vector<8x8xf32>
    %376 = vector.extract_strided_slice %353 {offsets = [0, 8], sizes = [8, 8], strides = [1, 1]} : vector<8x32xf32> to vector<8x8xf32>
    %377 = vector.extract_strided_slice %354 {offsets = [0, 8], sizes = [8, 8], strides = [1, 1]} : vector<8x32xf32> to vector<8x8xf32>
    %cst_144 = arith.constant dense<0.000000e+00> : vector<8x8xf32>
    %378 = tpu.matmul %375, %376, %cst_144 {dimension_numbers = #tpu.dot_dimension_numbers<[1], [1], [0], [0], [0, 0, 1, 0], [], []>, precision = #tpu.contract_precision<fp32>} : vector<8x8xf32>, vector<8x8xf32>, vector<8x8xf32> -> vector<8x8xf32>
    %379 = arith.addf %378, %18 : vector<8x8xf32>
    %cst_145 = arith.constant dense<0xFF800000> : vector<8xf32>
    %380 = vector.multi_reduction <maximumf>, %379, %cst_145 [1] : vector<8x8xf32> to vector<8xf32>
    %381 = vector.shape_cast %380 : vector<8xf32> to vector<8x1xf32>
    %382 = vector.broadcast %381 : vector<8x1xf32> to vector<8x8xf32>
    %383 = arith.subf %379, %382 : vector<8x8xf32>
    %384 = math.exp %383 : vector<8x8xf32>
    %cst_146 = arith.constant dense<0.000000e+00> : vector<8xf32>
    %385 = vector.multi_reduction <add>, %384, %cst_146 [1] : vector<8x8xf32> to vector<8xf32>
    %386 = vector.shape_cast %385 : vector<8xf32> to vector<8x1xf32>
    %387 = tpu.reciprocal %386 {approx = true} : vector<8x1xf32> -> vector<8x1xf32>
    %388 = vector.broadcast %387 : vector<8x1xf32> to vector<8x8xf32>
    %389 = arith.mulf %384, %388 : vector<8x8xf32>
    %cst_147 = arith.constant dense<0.000000e+00> : vector<8x8xf32>
    %390 = tpu.matmul %389, %377, %cst_147 {dimension_numbers = #tpu.dot_dimension_numbers<[1], [0], [0], [1], [0, 0, 1, 1], [], []>, precision = #tpu.contract_precision<fp32>} : vector<8x8xf32>, vector<8x8xf32>, vector<8x8xf32> -> vector<8x8xf32>
    %391 = vector.extract_strided_slice %352 {offsets = [0, 16], sizes = [8, 8], strides = [1, 1]} : vector<8x32xf32> to vector<8x8xf32>
    %cst_148 = arith.constant 0.353553385 : f32
    %392 = vector.broadcast %cst_148 : f32 to vector<8x8xf32>
    %393 = arith.mulf %391, %392 : vector<8x8xf32>
    %394 = vector.extract_strided_slice %353 {offsets = [0, 16], sizes = [8, 8], strides = [1, 1]} : vector<8x32xf32> to vector<8x8xf32>
    %395 = vector.extract_strided_slice %354 {offsets = [0, 16], sizes = [8, 8], strides = [1, 1]} : vector<8x32xf32> to vector<8x8xf32>
    %cst_149 = arith.constant dense<0.000000e+00> : vector<8x8xf32>
    %396 = tpu.matmul %393, %394, %cst_149 {dimension_numbers = #tpu.dot_dimension_numbers<[1], [1], [0], [0], [0, 0, 1, 0], [], []>, precision = #tpu.contract_precision<fp32>} : vector<8x8xf32>, vector<8x8xf32>, vector<8x8xf32> -> vector<8x8xf32>
    %397 = arith.addf %396, %18 : vector<8x8xf32>
    %cst_150 = arith.constant dense<0xFF800000> : vector<8xf32>
    %398 = vector.multi_reduction <maximumf>, %397, %cst_150 [1] : vector<8x8xf32> to vector<8xf32>
    %399 = vector.shape_cast %398 : vector<8xf32> to vector<8x1xf32>
    %400 = vector.broadcast %399 : vector<8x1xf32> to vector<8x8xf32>
    %401 = arith.subf %397, %400 : vector<8x8xf32>
    %402 = math.exp %401 : vector<8x8xf32>
    %cst_151 = arith.constant dense<0.000000e+00> : vector<8xf32>
    %403 = vector.multi_reduction <add>, %402, %cst_151 [1] : vector<8x8xf32> to vector<8xf32>
    %404 = vector.shape_cast %403 : vector<8xf32> to vector<8x1xf32>
    %405 = tpu.reciprocal %404 {approx = true} : vector<8x1xf32> -> vector<8x1xf32>
    %406 = vector.broadcast %405 : vector<8x1xf32> to vector<8x8xf32>
    %407 = arith.mulf %402, %406 : vector<8x8xf32>
    %cst_152 = arith.constant dense<0.000000e+00> : vector<8x8xf32>
    %408 = tpu.matmul %407, %395, %cst_152 {dimension_numbers = #tpu.dot_dimension_numbers<[1], [0], [0], [1], [0, 0, 1, 1], [], []>, precision = #tpu.contract_precision<fp32>} : vector<8x8xf32>, vector<8x8xf32>, vector<8x8xf32> -> vector<8x8xf32>
    %409 = vector.extract_strided_slice %352 {offsets = [0, 24], sizes = [8, 8], strides = [1, 1]} : vector<8x32xf32> to vector<8x8xf32>
    %cst_153 = arith.constant 0.353553385 : f32
    %410 = vector.broadcast %cst_153 : f32 to vector<8x8xf32>
    %411 = arith.mulf %409, %410 : vector<8x8xf32>
    %412 = vector.extract_strided_slice %353 {offsets = [0, 24], sizes = [8, 8], strides = [1, 1]} : vector<8x32xf32> to vector<8x8xf32>
    %413 = vector.extract_strided_slice %354 {offsets = [0, 24], sizes = [8, 8], strides = [1, 1]} : vector<8x32xf32> to vector<8x8xf32>
    %cst_154 = arith.constant dense<0.000000e+00> : vector<8x8xf32>
    %414 = tpu.matmul %411, %412, %cst_154 {dimension_numbers = #tpu.dot_dimension_numbers<[1], [1], [0], [0], [0, 0, 1, 0], [], []>, precision = #tpu.contract_precision<fp32>} : vector<8x8xf32>, vector<8x8xf32>, vector<8x8xf32> -> vector<8x8xf32>
    %415 = arith.addf %414, %18 : vector<8x8xf32>
    %cst_155 = arith.constant dense<0xFF800000> : vector<8xf32>
    %416 = vector.multi_reduction <maximumf>, %415, %cst_155 [1] : vector<8x8xf32> to vector<8xf32>
    %417 = vector.shape_cast %416 : vector<8xf32> to vector<8x1xf32>
    %418 = vector.broadcast %417 : vector<8x1xf32> to vector<8x8xf32>
    %419 = arith.subf %415, %418 : vector<8x8xf32>
    %420 = math.exp %419 : vector<8x8xf32>
    %cst_156 = arith.constant dense<0.000000e+00> : vector<8xf32>
    %421 = vector.multi_reduction <add>, %420, %cst_156 [1] : vector<8x8xf32> to vector<8xf32>
    %422 = vector.shape_cast %421 : vector<8xf32> to vector<8x1xf32>
    %423 = tpu.reciprocal %422 {approx = true} : vector<8x1xf32> -> vector<8x1xf32>
    %424 = vector.broadcast %423 : vector<8x1xf32> to vector<8x8xf32>
    %425 = arith.mulf %420, %424 : vector<8x8xf32>
    %cst_157 = arith.constant dense<0.000000e+00> : vector<8x8xf32>
    %426 = tpu.matmul %425, %413, %cst_157 {dimension_numbers = #tpu.dot_dimension_numbers<[1], [0], [0], [1], [0, 0, 1, 1], [], []>, precision = #tpu.contract_precision<fp32>} : vector<8x8xf32>, vector<8x8xf32>, vector<8x8xf32> -> vector<8x8xf32>
    %427 = tpu.concatenate %372, %390, %408, %426 in 1 : vector<8x8xf32>, vector<8x8xf32>, vector<8x8xf32>, vector<8x8xf32> -> vector<8x32xf32>
    %cst_158 = arith.constant dense<0.000000e+00> : vector<8x32xf32>
    %428 = tpu.matmul %427, %351, %cst_158 {dimension_numbers = #tpu.dot_dimension_numbers<[1], [0], [0], [1], [0, 0, 1, 1], [], []>, precision = #tpu.contract_precision<fp32>} : vector<8x32xf32>, vector<32x32xf32>, vector<8x32xf32> -> vector<8x32xf32>
    %429 = arith.addf %319, %428 : vector<8x32xf32>
    %c1_159 = arith.constant 1 : index
    %c0_160 = arith.constant 0 : index
    %c0_161 = arith.constant 0 : index
    %430 = vector.load %arg13[%c1_159, %c0_160, %c0_161] : memref<2x2x32xf32, #tpu.memory_space<vmem>>, vector<1x2x32xf32>
    %431 = vector.shape_cast %430 : vector<1x2x32xf32> to vector<2x32xf32>
    %432 = vector.extract_strided_slice %431 {offsets = [0, 0], sizes = [1, 32], strides = [1, 1]} : vector<2x32xf32> to vector<1x32xf32>
    %433 = vector.extract_strided_slice %431 {offsets = [1, 0], sizes = [1, 32], strides = [1, 1]} : vector<2x32xf32> to vector<1x32xf32>
    %cst_162 = arith.constant dense<0.000000e+00> : vector<8xf32>
    %434 = vector.multi_reduction <add>, %429, %cst_162 [1] : vector<8x32xf32> to vector<8xf32>
    %435 = vector.shape_cast %434 : vector<8xf32> to vector<8x1xf32>
    %cst_163 = arith.constant 3.200000e+01 : f32
    %436 = vector.broadcast %cst_163 : f32 to vector<8x1xf32>
    %437 = arith.divf %435, %436 : vector<8x1xf32>
    %438 = vector.broadcast %437 : vector<8x1xf32> to vector<8x32xf32>
    %439 = arith.subf %429, %438 : vector<8x32xf32>
    %440 = arith.mulf %439, %439 : vector<8x32xf32>
    %cst_164 = arith.constant dense<0.000000e+00> : vector<8xf32>
    %441 = vector.multi_reduction <add>, %440, %cst_164 [1] : vector<8x32xf32> to vector<8xf32>
    %442 = vector.shape_cast %441 : vector<8xf32> to vector<8x1xf32>
    %cst_165 = arith.constant 0.0322580636 : f32
    %443 = vector.broadcast %cst_165 : f32 to vector<8x1xf32>
    %444 = arith.mulf %442, %443 : vector<8x1xf32>
    %445 = math.sqrt %444 : vector<8x1xf32>
    %cst_166 = arith.constant 9.99999997E-7 : f32
    %446 = vector.broadcast %cst_166 : f32 to vector<8x1xf32>
    %447 = arith.addf %445, %446 : vector<8x1xf32>
    %448 = tpu.reciprocal %447 {approx = true} : vector<8x1xf32> -> vector<8x1xf32>
    %449 = vector.broadcast %437 : vector<8x1xf32> to vector<8x32xf32>
    %450 = arith.subf %429, %449 : vector<8x32xf32>
    %451 = vector.broadcast %432 : vector<1x32xf32> to vector<8x32xf32>
    %452 = arith.mulf %451, %450 : vector<8x32xf32>
    %453 = vector.broadcast %448 : vector<8x1xf32> to vector<8x32xf32>
    %454 = arith.mulf %452, %453 : vector<8x32xf32>
    %455 = vector.broadcast %433 : vector<1x32xf32> to vector<8x32xf32>
    %456 = arith.addf %454, %455 : vector<8x32xf32>
    %c1_167 = arith.constant 1 : index
    %c0_168 = arith.constant 0 : index
    %c0_169 = arith.constant 0 : index
    %457 = vector.load %arg9[%c1_167, %c0_168, %c0_169] : memref<2x32x32xf32, #tpu.memory_space<vmem>>, vector<1x32x32xf32>
    %458 = vector.shape_cast %457 : vector<1x32x32xf32> to vector<32x32xf32>
    %cst_170 = arith.constant dense<0.000000e+00> : vector<8x32xf32>
    %459 = tpu.matmul %456, %458, %cst_170 {dimension_numbers = #tpu.dot_dimension_numbers<[1], [0], [0], [1], [0, 0, 1, 1], [], []>, precision = #tpu.contract_precision<fp32>} : vector<8x32xf32>, vector<32x32xf32>, vector<8x32xf32> -> vector<8x32xf32>
    %c1_171 = arith.constant 1 : index
    %c0_172 = arith.constant 0 : index
    %c0_173 = arith.constant 0 : index
    %460 = vector.load %arg11[%c1_171, %c0_172, %c0_173] : memref<2x32x32xf32, #tpu.memory_space<vmem>>, vector<1x32x32xf32>
    %461 = vector.shape_cast %460 : vector<1x32x32xf32> to vector<32x32xf32>
    %462 = vector.extract_strided_slice %38 {offsets = [0, 64], sizes = [10, 32], strides = [1, 1]} : vector<10x128xf32> to vector<10x32xf32>
    %463 = vector.extract_strided_slice %38 {offsets = [0, 96], sizes = [10, 32], strides = [1, 1]} : vector<10x128xf32> to vector<10x32xf32>
    %464 = vector.extract_strided_slice %459 {offsets = [0, 0], sizes = [8, 8], strides = [1, 1]} : vector<8x32xf32> to vector<8x8xf32>
    %cst_174 = arith.constant 0.353553385 : f32
    %465 = vector.broadcast %cst_174 : f32 to vector<8x8xf32>
    %466 = arith.mulf %464, %465 : vector<8x8xf32>
    %467 = vector.extract_strided_slice %462 {offsets = [0, 0], sizes = [10, 8], strides = [1, 1]} : vector<10x32xf32> to vector<10x8xf32>
    %468 = vector.extract_strided_slice %463 {offsets = [0, 0], sizes = [10, 8], strides = [1, 1]} : vector<10x32xf32> to vector<10x8xf32>
    %cst_175 = arith.constant dense<0.000000e+00> : vector<8x10xf32>
    %469 = tpu.matmul %466, %467, %cst_175 {dimension_numbers = #tpu.dot_dimension_numbers<[1], [1], [0], [0], [0, 0, 1, 0], [], []>, precision = #tpu.contract_precision<fp32>} : vector<8x8xf32>, vector<10x8xf32>, vector<8x10xf32> -> vector<8x10xf32>
    %470 = vector.broadcast %25 : vector<1x10xf32> to vector<8x10xf32>
    %471 = arith.addf %469, %470 : vector<8x10xf32>
    %cst_176 = arith.constant dense<0xFF800000> : vector<8xf32>
    %472 = vector.multi_reduction <maximumf>, %471, %cst_176 [1] : vector<8x10xf32> to vector<8xf32>
    %473 = vector.shape_cast %472 : vector<8xf32> to vector<8x1xf32>
    %474 = vector.broadcast %473 : vector<8x1xf32> to vector<8x10xf32>
    %475 = arith.subf %471, %474 : vector<8x10xf32>
    %476 = math.exp %475 : vector<8x10xf32>
    %cst_177 = arith.constant dense<0.000000e+00> : vector<8xf32>
    %477 = vector.multi_reduction <add>, %476, %cst_177 [1] : vector<8x10xf32> to vector<8xf32>
    %478 = vector.shape_cast %477 : vector<8xf32> to vector<8x1xf32>
    %479 = tpu.reciprocal %478 {approx = true} : vector<8x1xf32> -> vector<8x1xf32>
    %480 = vector.broadcast %479 : vector<8x1xf32> to vector<8x10xf32>
    %481 = arith.mulf %476, %480 : vector<8x10xf32>
    %cst_178 = arith.constant dense<0.000000e+00> : vector<8x8xf32>
    %482 = tpu.matmul %481, %468, %cst_178 {dimension_numbers = #tpu.dot_dimension_numbers<[1], [0], [0], [1], [0, 0, 1, 1], [], []>, precision = #tpu.contract_precision<fp32>} : vector<8x10xf32>, vector<10x8xf32>, vector<8x8xf32> -> vector<8x8xf32>
    %483 = vector.extract_strided_slice %459 {offsets = [0, 8], sizes = [8, 8], strides = [1, 1]} : vector<8x32xf32> to vector<8x8xf32>
    %cst_179 = arith.constant 0.353553385 : f32
    %484 = vector.broadcast %cst_179 : f32 to vector<8x8xf32>
    %485 = arith.mulf %483, %484 : vector<8x8xf32>
    %486 = vector.extract_strided_slice %462 {offsets = [0, 8], sizes = [10, 8], strides = [1, 1]} : vector<10x32xf32> to vector<10x8xf32>
    %487 = vector.extract_strided_slice %463 {offsets = [0, 8], sizes = [10, 8], strides = [1, 1]} : vector<10x32xf32> to vector<10x8xf32>
    %cst_180 = arith.constant dense<0.000000e+00> : vector<8x10xf32>
    %488 = tpu.matmul %485, %486, %cst_180 {dimension_numbers = #tpu.dot_dimension_numbers<[1], [1], [0], [0], [0, 0, 1, 0], [], []>, precision = #tpu.contract_precision<fp32>} : vector<8x8xf32>, vector<10x8xf32>, vector<8x10xf32> -> vector<8x10xf32>
    %489 = vector.broadcast %25 : vector<1x10xf32> to vector<8x10xf32>
    %490 = arith.addf %488, %489 : vector<8x10xf32>
    %491 = arith.addf %471, %490 : vector<8x10xf32>
    %cst_181 = arith.constant dense<0xFF800000> : vector<8xf32>
    %492 = vector.multi_reduction <maximumf>, %490, %cst_181 [1] : vector<8x10xf32> to vector<8xf32>
    %493 = vector.shape_cast %492 : vector<8xf32> to vector<8x1xf32>
    %494 = vector.broadcast %493 : vector<8x1xf32> to vector<8x10xf32>
    %495 = arith.subf %490, %494 : vector<8x10xf32>
    %496 = math.exp %495 : vector<8x10xf32>
    %cst_182 = arith.constant dense<0.000000e+00> : vector<8xf32>
    %497 = vector.multi_reduction <add>, %496, %cst_182 [1] : vector<8x10xf32> to vector<8xf32>
    %498 = vector.shape_cast %497 : vector<8xf32> to vector<8x1xf32>
    %499 = tpu.reciprocal %498 {approx = true} : vector<8x1xf32> -> vector<8x1xf32>
    %500 = vector.broadcast %499 : vector<8x1xf32> to vector<8x10xf32>
    %501 = arith.mulf %496, %500 : vector<8x10xf32>
    %cst_183 = arith.constant dense<0.000000e+00> : vector<8x8xf32>
    %502 = tpu.matmul %501, %487, %cst_183 {dimension_numbers = #tpu.dot_dimension_numbers<[1], [0], [0], [1], [0, 0, 1, 1], [], []>, precision = #tpu.contract_precision<fp32>} : vector<8x10xf32>, vector<10x8xf32>, vector<8x8xf32> -> vector<8x8xf32>
    %503 = vector.extract_strided_slice %459 {offsets = [0, 16], sizes = [8, 8], strides = [1, 1]} : vector<8x32xf32> to vector<8x8xf32>
    %cst_184 = arith.constant 0.353553385 : f32
    %504 = vector.broadcast %cst_184 : f32 to vector<8x8xf32>
    %505 = arith.mulf %503, %504 : vector<8x8xf32>
    %506 = vector.extract_strided_slice %462 {offsets = [0, 16], sizes = [10, 8], strides = [1, 1]} : vector<10x32xf32> to vector<10x8xf32>
    %507 = vector.extract_strided_slice %463 {offsets = [0, 16], sizes = [10, 8], strides = [1, 1]} : vector<10x32xf32> to vector<10x8xf32>
    %cst_185 = arith.constant dense<0.000000e+00> : vector<8x10xf32>
    %508 = tpu.matmul %505, %506, %cst_185 {dimension_numbers = #tpu.dot_dimension_numbers<[1], [1], [0], [0], [0, 0, 1, 0], [], []>, precision = #tpu.contract_precision<fp32>} : vector<8x8xf32>, vector<10x8xf32>, vector<8x10xf32> -> vector<8x10xf32>
    %509 = vector.broadcast %25 : vector<1x10xf32> to vector<8x10xf32>
    %510 = arith.addf %508, %509 : vector<8x10xf32>
    %511 = arith.addf %491, %510 : vector<8x10xf32>
    %cst_186 = arith.constant dense<0xFF800000> : vector<8xf32>
    %512 = vector.multi_reduction <maximumf>, %510, %cst_186 [1] : vector<8x10xf32> to vector<8xf32>
    %513 = vector.shape_cast %512 : vector<8xf32> to vector<8x1xf32>
    %514 = vector.broadcast %513 : vector<8x1xf32> to vector<8x10xf32>
    %515 = arith.subf %510, %514 : vector<8x10xf32>
    %516 = math.exp %515 : vector<8x10xf32>
    %cst_187 = arith.constant dense<0.000000e+00> : vector<8xf32>
    %517 = vector.multi_reduction <add>, %516, %cst_187 [1] : vector<8x10xf32> to vector<8xf32>
    %518 = vector.shape_cast %517 : vector<8xf32> to vector<8x1xf32>
    %519 = tpu.reciprocal %518 {approx = true} : vector<8x1xf32> -> vector<8x1xf32>
    %520 = vector.broadcast %519 : vector<8x1xf32> to vector<8x10xf32>
    %521 = arith.mulf %516, %520 : vector<8x10xf32>
    %cst_188 = arith.constant dense<0.000000e+00> : vector<8x8xf32>
    %522 = tpu.matmul %521, %507, %cst_188 {dimension_numbers = #tpu.dot_dimension_numbers<[1], [0], [0], [1], [0, 0, 1, 1], [], []>, precision = #tpu.contract_precision<fp32>} : vector<8x10xf32>, vector<10x8xf32>, vector<8x8xf32> -> vector<8x8xf32>
    %523 = vector.extract_strided_slice %459 {offsets = [0, 24], sizes = [8, 8], strides = [1, 1]} : vector<8x32xf32> to vector<8x8xf32>
    %cst_189 = arith.constant 0.353553385 : f32
    %524 = vector.broadcast %cst_189 : f32 to vector<8x8xf32>
    %525 = arith.mulf %523, %524 : vector<8x8xf32>
    %526 = vector.extract_strided_slice %462 {offsets = [0, 24], sizes = [10, 8], strides = [1, 1]} : vector<10x32xf32> to vector<10x8xf32>
    %527 = vector.extract_strided_slice %463 {offsets = [0, 24], sizes = [10, 8], strides = [1, 1]} : vector<10x32xf32> to vector<10x8xf32>
    %cst_190 = arith.constant dense<0.000000e+00> : vector<8x10xf32>
    %528 = tpu.matmul %525, %526, %cst_190 {dimension_numbers = #tpu.dot_dimension_numbers<[1], [1], [0], [0], [0, 0, 1, 0], [], []>, precision = #tpu.contract_precision<fp32>} : vector<8x8xf32>, vector<10x8xf32>, vector<8x10xf32> -> vector<8x10xf32>
    %529 = vector.broadcast %25 : vector<1x10xf32> to vector<8x10xf32>
    %530 = arith.addf %528, %529 : vector<8x10xf32>
    %531 = arith.addf %511, %530 : vector<8x10xf32>
    %cst_191 = arith.constant dense<0xFF800000> : vector<8xf32>
    %532 = vector.multi_reduction <maximumf>, %530, %cst_191 [1] : vector<8x10xf32> to vector<8xf32>
    %533 = vector.shape_cast %532 : vector<8xf32> to vector<8x1xf32>
    %534 = vector.broadcast %533 : vector<8x1xf32> to vector<8x10xf32>
    %535 = arith.subf %530, %534 : vector<8x10xf32>
    %536 = math.exp %535 : vector<8x10xf32>
    %cst_192 = arith.constant dense<0.000000e+00> : vector<8xf32>
    %537 = vector.multi_reduction <add>, %536, %cst_192 [1] : vector<8x10xf32> to vector<8xf32>
    %538 = vector.shape_cast %537 : vector<8xf32> to vector<8x1xf32>
    %539 = tpu.reciprocal %538 {approx = true} : vector<8x1xf32> -> vector<8x1xf32>
    %540 = vector.broadcast %539 : vector<8x1xf32> to vector<8x10xf32>
    %541 = arith.mulf %536, %540 : vector<8x10xf32>
    %cst_193 = arith.constant dense<0.000000e+00> : vector<8x8xf32>
    %542 = tpu.matmul %541, %527, %cst_193 {dimension_numbers = #tpu.dot_dimension_numbers<[1], [0], [0], [1], [0, 0, 1, 1], [], []>, precision = #tpu.contract_precision<fp32>} : vector<8x10xf32>, vector<10x8xf32>, vector<8x8xf32> -> vector<8x8xf32>
    %543 = tpu.concatenate %482, %502, %522, %542 in 1 : vector<8x8xf32>, vector<8x8xf32>, vector<8x8xf32>, vector<8x8xf32> -> vector<8x32xf32>
    %cst_194 = arith.constant dense<0.000000e+00> : vector<8x32xf32>
    %544 = tpu.matmul %543, %461, %cst_194 {dimension_numbers = #tpu.dot_dimension_numbers<[1], [0], [0], [1], [0, 0, 1, 1], [], []>, precision = #tpu.contract_precision<fp32>} : vector<8x32xf32>, vector<32x32xf32>, vector<8x32xf32> -> vector<8x32xf32>
    %cst_195 = arith.constant 2.500000e-01 : f32
    %545 = vector.broadcast %cst_195 : f32 to vector<8x10xf32>
    %546 = arith.mulf %531, %545 : vector<8x10xf32>
    %547 = arith.addf %429, %544 : vector<8x32xf32>
    %c1_196 = arith.constant 1 : index
    %c0_197 = arith.constant 0 : index
    %c0_198 = arith.constant 0 : index
    %548 = vector.load %arg14[%c1_196, %c0_197, %c0_198] : memref<2x2x32xf32, #tpu.memory_space<vmem>>, vector<1x2x32xf32>
    %549 = vector.shape_cast %548 : vector<1x2x32xf32> to vector<2x32xf32>
    %550 = vector.extract_strided_slice %549 {offsets = [0, 0], sizes = [1, 32], strides = [1, 1]} : vector<2x32xf32> to vector<1x32xf32>
    %551 = vector.extract_strided_slice %549 {offsets = [1, 0], sizes = [1, 32], strides = [1, 1]} : vector<2x32xf32> to vector<1x32xf32>
    %cst_199 = arith.constant dense<0.000000e+00> : vector<8xf32>
    %552 = vector.multi_reduction <add>, %547, %cst_199 [1] : vector<8x32xf32> to vector<8xf32>
    %553 = vector.shape_cast %552 : vector<8xf32> to vector<8x1xf32>
    %cst_200 = arith.constant 3.200000e+01 : f32
    %554 = vector.broadcast %cst_200 : f32 to vector<8x1xf32>
    %555 = arith.divf %553, %554 : vector<8x1xf32>
    %556 = vector.broadcast %555 : vector<8x1xf32> to vector<8x32xf32>
    %557 = arith.subf %547, %556 : vector<8x32xf32>
    %558 = arith.mulf %557, %557 : vector<8x32xf32>
    %cst_201 = arith.constant dense<0.000000e+00> : vector<8xf32>
    %559 = vector.multi_reduction <add>, %558, %cst_201 [1] : vector<8x32xf32> to vector<8xf32>
    %560 = vector.shape_cast %559 : vector<8xf32> to vector<8x1xf32>
    %cst_202 = arith.constant 0.0322580636 : f32
    %561 = vector.broadcast %cst_202 : f32 to vector<8x1xf32>
    %562 = arith.mulf %560, %561 : vector<8x1xf32>
    %563 = math.sqrt %562 : vector<8x1xf32>
    %cst_203 = arith.constant 9.99999997E-7 : f32
    %564 = vector.broadcast %cst_203 : f32 to vector<8x1xf32>
    %565 = arith.addf %563, %564 : vector<8x1xf32>
    %566 = tpu.reciprocal %565 {approx = true} : vector<8x1xf32> -> vector<8x1xf32>
    %567 = vector.broadcast %555 : vector<8x1xf32> to vector<8x32xf32>
    %568 = arith.subf %547, %567 : vector<8x32xf32>
    %569 = vector.broadcast %550 : vector<1x32xf32> to vector<8x32xf32>
    %570 = arith.mulf %569, %568 : vector<8x32xf32>
    %571 = vector.broadcast %566 : vector<8x1xf32> to vector<8x32xf32>
    %572 = arith.mulf %570, %571 : vector<8x32xf32>
    %573 = vector.broadcast %551 : vector<1x32xf32> to vector<8x32xf32>
    %574 = arith.addf %572, %573 : vector<8x32xf32>
    %c1_204 = arith.constant 1 : index
    %c0_205 = arith.constant 0 : index
    %c0_206 = arith.constant 0 : index
    %575 = vector.load %arg15[%c1_204, %c0_205, %c0_206] : memref<2x96x64xf32, #tpu.memory_space<vmem>>, vector<1x96x64xf32>
    %576 = vector.shape_cast %575 : vector<1x96x64xf32> to vector<96x64xf32>
    %c1_207 = arith.constant 1 : index
    %c0_208 = arith.constant 0 : index
    %c0_209 = arith.constant 0 : index
    %577 = vector.load %arg16[%c1_207, %c0_208, %c0_209] : memref<2x1x64xf32, #tpu.memory_space<vmem>>, vector<1x1x64xf32>
    %578 = vector.shape_cast %577 : vector<1x1x64xf32> to vector<1x64xf32>
    %c1_i32_210 = arith.constant 1 : i32
    %579 = tpu.dynamic_rotate %574 by %c1_i32_210 dim 0 : vector<8x32xf32>, i32 -> vector<8x32xf32>
    %580 = vector.broadcast %30 : vector<8x1xf32> to vector<8x32xf32>
    %581 = arith.mulf %579, %580 : vector<8x32xf32>
    %c2_i32_211 = arith.constant 2 : i32
    %582 = tpu.dynamic_rotate %574 by %c2_i32_211 dim 0 : vector<8x32xf32>, i32 -> vector<8x32xf32>
    %583 = vector.broadcast %34 : vector<8x1xf32> to vector<8x32xf32>
    %584 = arith.mulf %582, %583 : vector<8x32xf32>
    %585 = tpu.concatenate %584, %581, %574 in 1 : vector<8x32xf32>, vector<8x32xf32>, vector<8x32xf32> -> vector<8x96xf32>
    %cst_212 = arith.constant dense<0.000000e+00> : vector<8x64xf32>
    %586 = tpu.matmul %585, %576, %cst_212 {dimension_numbers = #tpu.dot_dimension_numbers<[1], [0], [0], [1], [0, 0, 1, 1], [], []>, precision = #tpu.contract_precision<fp32>} : vector<8x96xf32>, vector<96x64xf32>, vector<8x64xf32> -> vector<8x64xf32>
    %587 = vector.broadcast %578 : vector<1x64xf32> to vector<8x64xf32>
    %588 = arith.addf %586, %587 : vector<8x64xf32>
    %cst_213 = arith.constant 0.000000e+00 : f32
    %589 = vector.broadcast %cst_213 : f32 to vector<8x64xf32>
    %590 = arith.maximumf %588, %589 : vector<8x64xf32>
    %c1_214 = arith.constant 1 : index
    %c0_215 = arith.constant 0 : index
    %c0_216 = arith.constant 0 : index
    %591 = vector.load %arg17[%c1_214, %c0_215, %c0_216] : memref<2x192x32xf32, #tpu.memory_space<vmem>>, vector<1x192x32xf32>
    %592 = vector.shape_cast %591 : vector<1x192x32xf32> to vector<192x32xf32>
    %c1_217 = arith.constant 1 : index
    %c0_218 = arith.constant 0 : index
    %c0_219 = arith.constant 0 : index
    %593 = vector.load %arg18[%c1_217, %c0_218, %c0_219] : memref<2x1x32xf32, #tpu.memory_space<vmem>>, vector<1x1x32xf32>
    %594 = vector.shape_cast %593 : vector<1x1x32xf32> to vector<1x32xf32>
    %c1_i32_220 = arith.constant 1 : i32
    %595 = tpu.dynamic_rotate %590 by %c1_i32_220 dim 0 : vector<8x64xf32>, i32 -> vector<8x64xf32>
    %596 = vector.broadcast %30 : vector<8x1xf32> to vector<8x64xf32>
    %597 = arith.mulf %595, %596 : vector<8x64xf32>
    %c2_i32_221 = arith.constant 2 : i32
    %598 = tpu.dynamic_rotate %590 by %c2_i32_221 dim 0 : vector<8x64xf32>, i32 -> vector<8x64xf32>
    %599 = vector.broadcast %34 : vector<8x1xf32> to vector<8x64xf32>
    %600 = arith.mulf %598, %599 : vector<8x64xf32>
    %601 = tpu.concatenate %600, %597, %590 in 1 : vector<8x64xf32>, vector<8x64xf32>, vector<8x64xf32> -> vector<8x192xf32>
    %cst_222 = arith.constant dense<0.000000e+00> : vector<8x32xf32>
    %602 = tpu.matmul %601, %592, %cst_222 {dimension_numbers = #tpu.dot_dimension_numbers<[1], [0], [0], [1], [0, 0, 1, 1], [], []>, precision = #tpu.contract_precision<fp32>} : vector<8x192xf32>, vector<192x32xf32>, vector<8x32xf32> -> vector<8x32xf32>
    %603 = vector.broadcast %594 : vector<1x32xf32> to vector<8x32xf32>
    %604 = arith.addf %602, %603 : vector<8x32xf32>
    %605 = arith.addf %547, %604 : vector<8x32xf32>
    %c0_223 = arith.constant 0 : index
    %c0_224 = arith.constant 0 : index
    %606 = vector.load %arg19[%c0_223, %c0_224] : memref<1x32xf32, #tpu.memory_space<vmem>>, vector<1x32xf32>
    %c0_225 = arith.constant 0 : index
    %c0_226 = arith.constant 0 : index
    %607 = vector.load %arg20[%c0_225, %c0_226] : memref<1x32xf32, #tpu.memory_space<vmem>>, vector<1x32xf32>
    %cst_227 = arith.constant dense<0.000000e+00> : vector<8xf32>
    %608 = vector.multi_reduction <add>, %605, %cst_227 [1] : vector<8x32xf32> to vector<8xf32>
    %609 = vector.shape_cast %608 : vector<8xf32> to vector<8x1xf32>
    %cst_228 = arith.constant 3.200000e+01 : f32
    %610 = vector.broadcast %cst_228 : f32 to vector<8x1xf32>
    %611 = arith.divf %609, %610 : vector<8x1xf32>
    %612 = vector.broadcast %611 : vector<8x1xf32> to vector<8x32xf32>
    %613 = arith.subf %605, %612 : vector<8x32xf32>
    %614 = arith.mulf %613, %613 : vector<8x32xf32>
    %cst_229 = arith.constant dense<0.000000e+00> : vector<8xf32>
    %615 = vector.multi_reduction <add>, %614, %cst_229 [1] : vector<8x32xf32> to vector<8xf32>
    %616 = vector.shape_cast %615 : vector<8xf32> to vector<8x1xf32>
    %cst_230 = arith.constant 0.0322580636 : f32
    %617 = vector.broadcast %cst_230 : f32 to vector<8x1xf32>
    %618 = arith.mulf %616, %617 : vector<8x1xf32>
    %619 = math.sqrt %618 : vector<8x1xf32>
    %cst_231 = arith.constant 9.99999997E-7 : f32
    %620 = vector.broadcast %cst_231 : f32 to vector<8x1xf32>
    %621 = arith.addf %619, %620 : vector<8x1xf32>
    %622 = tpu.reciprocal %621 {approx = true} : vector<8x1xf32> -> vector<8x1xf32>
    %623 = vector.broadcast %611 : vector<8x1xf32> to vector<8x32xf32>
    %624 = arith.subf %605, %623 : vector<8x32xf32>
    %625 = vector.broadcast %606 : vector<1x32xf32> to vector<8x32xf32>
    %626 = arith.mulf %625, %624 : vector<8x32xf32>
    %627 = vector.broadcast %622 : vector<8x1xf32> to vector<8x32xf32>
    %628 = arith.mulf %626, %627 : vector<8x32xf32>
    %629 = vector.broadcast %607 : vector<1x32xf32> to vector<8x32xf32>
    %630 = arith.addf %628, %629 : vector<8x32xf32>
    %cst_232 = arith.constant 0.000000e+00 : f32
    %631 = vector.broadcast %cst_232 : f32 to vector<8x86xf32>
    %632 = tpu.concatenate %630, %546, %631 in 1 : vector<8x32xf32>, vector<8x10xf32>, vector<8x86xf32> -> vector<8x128xf32>
    %c0_233 = arith.constant 0 : index
    %c0_234 = arith.constant 0 : index
    %c0_235 = arith.constant 0 : index
    %633 = vector.load %arg21[%c0_233, %c0_234, %c0_235] : memref<1x8x128xf32, #tpu.memory_space<vmem>>, vector<1x8x128xf32>
    %634 = vector.shape_cast %633 : vector<1x8x128xf32> to vector<8x128xf32>
    %635 = vector.shape_cast %632 : vector<8x128xf32> to vector<1x8x128xf32>
    tpu.vector_store %arg21[%c0_233, %c0_234, %c0_235], %635 {strides = array<i32>} : memref<1x8x128xf32, #tpu.memory_space<vmem>>, vector<1x8x128xf32>,
    return
  }
  func.func @transform_0(%arg0: i32) -> (i32, i32, i32) {
    %c0_i32 = arith.constant 0 : i32
    %c0_i32_0 = arith.constant 0 : i32
    %c0_i32_1 = arith.constant 0 : i32
    return %arg0, %c0_i32, %c0_i32_0 : i32, i32, i32
  }
  func.func @transform_1(%arg0: i32) -> (i32, i32, i32) {
    %c0_i32 = arith.constant 0 : i32
    %c0_i32_0 = arith.constant 0 : i32
    %c0_i32_1 = arith.constant 0 : i32
    return %arg0, %c0_i32, %c0_i32_0 : i32, i32, i32
  }
  func.func @transform_2(%arg0: i32) -> (i32, i32, i32) {
    %c0_i32 = arith.constant 0 : i32
    %c0_i32_0 = arith.constant 0 : i32
    %c0_i32_1 = arith.constant 0 : i32
    return %arg0, %c0_i32, %c0_i32_0 : i32, i32, i32
  }
  func.func @transform_3(%arg0: i32) -> (i32, i32, i32) {
    %c0_i32 = arith.constant 0 : i32
    %c0_i32_0 = arith.constant 0 : i32
    %c0_i32_1 = arith.constant 0 : i32
    return %arg0, %c0_i32, %c0_i32_0 : i32, i32, i32
  }
  func.func @transform_4(%arg0: i32) -> (i32, i32) {
    %c0_i32 = arith.constant 0 : i32
    %c0_i32_0 = arith.constant 0 : i32
    %c0_i32_1 = arith.constant 0 : i32
    return %c0_i32, %c0_i32_0 : i32, i32
  }
  func.func @transform_5(%arg0: i32) -> (i32, i32, i32) {
    %c0_i32 = arith.constant 0 : i32
    %c0_i32_0 = arith.constant 0 : i32
    %c0_i32_1 = arith.constant 0 : i32
    %c0_i32_2 = arith.constant 0 : i32
    return %c0_i32, %c0_i32_0, %c0_i32_1 : i32, i32, i32
  }
  func.func @transform_6(%arg0: i32) -> (i32, i32, i32) {
    %c0_i32 = arith.constant 0 : i32
    %c0_i32_0 = arith.constant 0 : i32
    %c0_i32_1 = arith.constant 0 : i32
    %c0_i32_2 = arith.constant 0 : i32
    return %c0_i32, %c0_i32_0, %c0_i32_1 : i32, i32, i32
  }
  func.func @transform_7(%arg0: i32) -> (i32, i32, i32) {
    %c0_i32 = arith.constant 0 : i32
    %c0_i32_0 = arith.constant 0 : i32
    %c0_i32_1 = arith.constant 0 : i32
    %c0_i32_2 = arith.constant 0 : i32
    return %c0_i32, %c0_i32_0, %c0_i32_1 : i32, i32, i32
  }
  func.func @transform_8(%arg0: i32) -> (i32, i32, i32) {
    %c0_i32 = arith.constant 0 : i32
    %c0_i32_0 = arith.constant 0 : i32
    %c0_i32_1 = arith.constant 0 : i32
    %c0_i32_2 = arith.constant 0 : i32
    return %c0_i32, %c0_i32_0, %c0_i32_1 : i32, i32, i32
  }
  func.func @transform_9(%arg0: i32) -> (i32, i32) {
    %c0_i32 = arith.constant 0 : i32
    %c0_i32_0 = arith.constant 0 : i32
    %c0_i32_1 = arith.constant 0 : i32
    return %c0_i32, %c0_i32_0 : i32, i32
  }
  func.func @transform_10(%arg0: i32) -> (i32, i32, i32) {
    %c0_i32 = arith.constant 0 : i32
    %c0_i32_0 = arith.constant 0 : i32
    %c0_i32_1 = arith.constant 0 : i32
    %c0_i32_2 = arith.constant 0 : i32
    return %c0_i32, %c0_i32_0, %c0_i32_1 : i32, i32, i32
  }
  func.func @transform_11(%arg0: i32) -> (i32, i32, i32) {
    %c0_i32 = arith.constant 0 : i32
    %c0_i32_0 = arith.constant 0 : i32
    %c0_i32_1 = arith.constant 0 : i32
    %c0_i32_2 = arith.constant 0 : i32
    return %c0_i32, %c0_i32_0, %c0_i32_1 : i32, i32, i32
  }
  func.func @transform_12(%arg0: i32) -> (i32, i32, i32) {
    %c0_i32 = arith.constant 0 : i32
    %c0_i32_0 = arith.constant 0 : i32
    %c0_i32_1 = arith.constant 0 : i32
    %c0_i32_2 = arith.constant 0 : i32
    return %c0_i32, %c0_i32_0, %c0_i32_1 : i32, i32, i32
  }
  func.func @transform_13(%arg0: i32) -> (i32, i32, i32) {
    %c0_i32 = arith.constant 0 : i32
    %c0_i32_0 = arith.constant 0 : i32
    %c0_i32_1 = arith.constant 0 : i32
    %c0_i32_2 = arith.constant 0 : i32
    return %c0_i32, %c0_i32_0, %c0_i32_1 : i32, i32, i32
  }
  func.func @transform_14(%arg0: i32) -> (i32, i32, i32) {
    %c0_i32 = arith.constant 0 : i32
    %c0_i32_0 = arith.constant 0 : i32
    %c0_i32_1 = arith.constant 0 : i32
    %c0_i32_2 = arith.constant 0 : i32
    return %c0_i32, %c0_i32_0, %c0_i32_1 : i32, i32, i32
  }
  func.func @transform_15(%arg0: i32) -> (i32, i32, i32) {
    %c0_i32 = arith.constant 0 : i32
    %c0_i32_0 = arith.constant 0 : i32
    %c0_i32_1 = arith.constant 0 : i32
    %c0_i32_2 = arith.constant 0 : i32
    return %c0_i32, %c0_i32_0, %c0_i32_1 : i32, i32, i32
  }
  func.func @transform_16(%arg0: i32) -> (i32, i32, i32) {
    %c0_i32 = arith.constant 0 : i32
    %c0_i32_0 = arith.constant 0 : i32
    %c0_i32_1 = arith.constant 0 : i32
    %c0_i32_2 = arith.constant 0 : i32
    return %c0_i32, %c0_i32_0, %c0_i32_1 : i32, i32, i32
  }
  func.func @transform_17(%arg0: i32) -> (i32, i32, i32) {
    %c0_i32 = arith.constant 0 : i32
    %c0_i32_0 = arith.constant 0 : i32
    %c0_i32_1 = arith.constant 0 : i32
    %c0_i32_2 = arith.constant 0 : i32
    return %c0_i32, %c0_i32_0, %c0_i32_1 : i32, i32, i32
  }
  func.func @transform_18(%arg0: i32) -> (i32, i32) {
    %c0_i32 = arith.constant 0 : i32
    %c0_i32_0 = arith.constant 0 : i32
    %c0_i32_1 = arith.constant 0 : i32
    return %c0_i32, %c0_i32_0 : i32, i32
  }
  func.func @transform_19(%arg0: i32) -> (i32, i32) {
    %c0_i32 = arith.constant 0 : i32
    %c0_i32_0 = arith.constant 0 : i32
    %c0_i32_1 = arith.constant 0 : i32
    return %c0_i32, %c0_i32_0 : i32, i32
  }
  func.func @transform_20(%arg0: i32) -> (i32, i32, i32) {
    %c0_i32 = arith.constant 0 : i32
    %c0_i32_0 = arith.constant 0 : i32
    %c0_i32_1 = arith.constant 0 : i32
    return %arg0, %c0_i32, %c0_i32_0 : i32, i32, i32
  }
}

</mosaic_0001>

<bundles_post_ra>
// kernel: tpu_custom_call.1
= control target key start
LH: loop header
LB: loop body
LE: loop exit
PB: predicated region body
PF: predicated region fallthrough
CT: control target
= control target key end

     0   :  { %s32589_s0 = inlined_call_operand.vmem [shape: f32[2,8,32], index: 0, kind: input, shape index: {}]   ;;  %s32590_s1 = inlined_call_operand.vmem [shape: f32[2,10,32], index: 1, kind: input, shape index: {}]   ;;  %s32591_s2 = inlined_call_operand.vmem [shape: f32[2,1,8], index: 2, kind: input, shape index: {}]   ;;  %s32592_s3 = inlined_call_operand.vmem [shape: f32[2,1,10], index: 3, kind: input, shape index: {}]   ;;  %s32593_s4 = inlined_call_operand.vmem [shape: f32[32,32], index: 4, kind: input, shape index: {}]   ;;  %s32594_s5 = inlined_call_operand.vmem [shape: f32[1,8,32], index: 5, kind: input, shape index: {}]   ;;  %s32595_s6 = inlined_call_operand.vmem [shape: f32[2,32,96], index: 6, kind: input, shape index: {}]   ;;  %s32596_s7 = inlined_call_operand.vmem [shape: f32[2,32,32], index: 7, kind: input, shape index: {}]   ;;  %s32597_s8 = inlined_call_operand.vmem [shape: f32[2,32,32], index: 8, kind: input, shape index: {}]   ;;  %s32598_s9 = inlined_call_operand.vmem [shape: f32[32,128], index: 9, kind: input, shape index: {}]   ;;  %s32599_s10 = inlined_call_operand.vmem [shape: f32[2,32,32], index: 10, kind: input, shape index: {}]   ;;  %s32600_s11 = inlined_call_operand.vmem [shape: f32[2,2,32], index: 11, kind: input, shape index: {}]   ;;  %s32601_s12 = inlined_call_operand.vmem [shape: f32[2,2,32], index: 12, kind: input, shape index: {}]   ;;  %s32602_s13 = inlined_call_operand.vmem [shape: f32[2,2,32], index: 13, kind: input, shape index: {}]   ;;  %s32603_s14 = inlined_call_operand.vmem [shape: f32[2,96,64], index: 14, kind: input, shape index: {}]   ;;  %s32604_s15 = inlined_call_operand.vmem [shape: f32[2,1,64], index: 15, kind: input, shape index: {}]   ;;  %s32605_s16 = inlined_call_operand.vmem [shape: f32[2,192,32], index: 16, kind: input, shape index: {}]   ;;  %s32606_s17 = inlined_call_operand.vmem [shape: f32[2,1,32], index: 17, kind: input, shape index: {}]   ;;  %s32607_s18 = inlined_call_operand.vmem [shape: f32[1,32], index: 18, kind: input, shape index: {}]   ;;  %s32608_s19 = inlined_call_operand.vmem [shape: f32[1,32], index: 19, kind: input, shape index: {}]   ;;  %s32609_s20 = inlined_call_operand.hbm [shape: f32[2,8,128], index: 20, kind: output, shape index: {}]  }
   0x1   :  { %32720 = sst [smem:[#allocation19_spill]] %s32589_s0 }
   0x2   :  { %32721 = sst [smem:[#allocation20_spill]] %s32590_s1 }
   0x3   :  { %32722 = sst [smem:[#allocation21_spill]] %s32591_s2 }
   0x4   :  { %32723 = sst [smem:[#allocation22_spill]] %s32592_s3 }
   0x5   :  { %32724 = sst [smem:[#allocation23_spill]] %s32593_s4 }
   0x6   :  { %32725 = sst [smem:[#allocation24_spill]] %s32594_s5 }
   0x7   :  { %32726 = sst [smem:[#allocation25_spill]] %s32598_s9 }
   0x8   :  { %32727 = sst [smem:[#allocation26_spill]] %s32607_s18 }
   0x9   :  { %32728 = sst [smem:[#allocation27_spill]] %s32608_s19 }
   0xa   :  { %32729 = sst [smem:[#allocation28_spill]] %s32609_s20 }
   0xb   :  { %25 = vsyncpa [#allocation3], 0 }
   0xc   :  { %27 = vsyncpa [#allocation3 + $0x1], 0  ;;  %s29115_s1 = smov 0   ;;  %s29117_s22 = smov 0  }
   0xd   :  { %s29119_s23 = smov 0   ;;  %s29121_s24 = smov 0  }
   0xe LB: > { %32730 = sst [smem:[#allocation5_spill]] %s28976_s1  ;;  %s29136_s2 = sadd.s32 4294967295, %s28988_s24   ;;  %s28988_s24 = sphi %s29121_s24, %s32860_s24   ;;  %s28984_s23 = sphi %s29119_s23, %s32862_s23   ;;  %s28980_s22 = sphi %s29117_s22, %s32864_s22   ;;  %s28976_s1 = sphi %s29115_s1, %s32863_s1  }
   0xf   : > { %32731 = sst [smem:[#allocation6_spill]] %s28984_s23  ;;  %s23894_s25 = sadd.s32 4294967294, %s28988_s24  }
  0x10   : > { %32732 = sst [smem:[#allocation7_spill]] %s28988_s24  ;;  %s29140_s3 = sadd.s32 1, %s28988_s24  }
  0x11   : > { %32733 = sst [smem:[#allocation8_spill]] %s29140_s3  ;;  %s480_s26 = sadd.s32 1, %s28984_s23 }
  0x12   : > { %s477_s27 = ssub.s32 %s28988_s24, %s29140_s3  ;;  %p490_p0 = scmp.ne.s32.totalorder %s28984_s23, %s28980_s22 }
  0x13   : > { %p478_p1 = scmp.eq.s32.totalorder %s477_s27, 0  ;;  %p491_p2 = scmp.eq.s32.totalorder %s29136_s2, 1 }
  0x14   : > { %p496_p3 = scmp.ne.s32.totalorder %s28980_s22, %s28976_s1  ;;  %p497_p4 = scmp.eq.s32.totalorder %s23894_s25, 1 }
  0x15   : > { %s29151_s28 = scalar_select %p478_p1, %s28984_s23, %s480_s26  }
  0x16   : > { %p29153_p5 = por %p491_p2, %p490_p0  ;;  %p29157_p6 = por %p497_p4, %p496_p3 }
  0x17   : > { %32734 = sst [smem:[#allocation9_spill]] %s29151_s28  ;;  %p23897_p7 = scmp.ge.s32.totalorder %s28988_s24, 1 }
  0x18   : > { %s32735_s4 = scalar_select %p29153_p5, 1, 0 }
  0x19   : > { %s32737_s29 = scalar_select %p29157_p6, 1, 0 }
  0x1a   : > { %32736 = sst [smem:[#allocation10_spill]] %s32735_s4  ;;  %p590_p8 = scmp.lt.s32.totalorder %s28988_s24, 3 }
  0x1b   : > { %32738 = sst [smem:[#allocation11_spill]] %s32737_s29 }
  0x1c   : > { %p591_p9 = pnand %p23897_p7, %p590_p8 }
  0x1e   : > { %594 = sbr.rel (%p591_p9) target bundleno = 13631 (0x353f), region = 100 }
  0x25   : > { %s32739_s21 = sld [smem:[#allocation23_spill]]  ;;  %v32657_v3 = vmov 0.0|0.0   ;;  %vm28991_vm0 = vmmov 0   ;;  %v32653_v8 = vmov 0.0   ;;  %p658_p10 = scmp.lt.s32.totalorder %s29136_s2, 1  ;;  %vm679_vm1 = vcmask 261120  }
  0x26   : > { %27050 = vmatprep.subr.bf16.mxu0 %v32657_v3  ;;  %24922 = vmatprep.mubr.msk.f32.mxu0 %vm28991_vm0, %v32653_v8  ;;  %s32740_s0 = sld [smem:[#allocation19_spill]]  ;;  %s32741_s5 = sld [smem:[#allocation24_spill]]  ;;  %v1764_v51 = vld [vmem:[%s32595_s6] sm:$0xff]  ;;  %v1765_v52 = vld [vmem:[%s32595_s6 + $0x8] sm:$0xff]  ;;  %v1766_v53 = vld [vmem:[%s32595_s6 + $0x10] sm:$0xff]  ;;  %vm2264_vm4 = vcmask 64512  }
  0x27   : > { %s29182_s28 = scalar_select %p658_p10, %s29136_s2, 1  ;;  %v1772_v54 = vand.u32 4294901760, %v1764_v51  ;;  %v1775_v55 = vand.u32 4294901760, %v1765_v52  ;;  %v1767_v56 = vld [vmem:[%s32595_s6 + $0x18] sm:$0xff]  ;;  %v1778_v57 = vand.u32 4294901760, %v1766_v53  ;;  %vm5943_vm9 = vcmask 130048  }
  0x28   : > { %v1781_v58 = vand.u32 4294901760, %v1767_v56  ;;  %s32744_s9 = sld [smem:[#allocation25_spill]]  ;;  %s32745_s3 = sld [smem:[#allocation20_spill]]  ;;  %vm5945_vm10 = vcmask 195584   ;;  %vm7438_vm14 = vcmask 80896   ;;  %vm7458_vm15 = vcmask 1041408  }
  0x29   : > { %s23899_s23 = sshll.u32 %s29182_s28, 3  ;;  %v29237_v59 = vpack.c.bf16 %v1775_v55, %v1772_v54  ;;  %v29239_v60 = vsub.f32 %v1764_v51, %v1772_v54  ;;  %v1859_v61 = vsub.f32 %v1765_v52, %v1775_v55  ;;  %v29241_v62 = vsub.f32 %v1766_v53, %v1778_v57  ;;  %s32639_s1 = smov 88  }
  0x2a   : > { %v29243_v63 = vsub.f32 %v1767_v56, %v1781_v58  ;;  %s32642_s29 = smov 96   ;;  %s32633_s26 = smov 104  }
  0x2b   : > { %v675_v0 = vld [vmem:[%s32739_s21] sm:$0xff]  ;;  %v676_v1 = vld [vmem:[%s32739_s21 + $0x8] sm:$0xff]  ;;  %v677_v2 = vld [vmem:[%s32739_s21 + $0x10] sm:$0xff]  ;;  %s32625_s27 = smov 72   ;;  %s32760_s19 = smov 64  }
  0x2c   : > { %v684_v4 = vand.u32 4294901760, %v675_v0  ;;  %v687_v5 = vand.u32 4294901760, %v676_v1  ;;  %v678_v6 = vld [vmem:[%s32739_s21 + $0x18] sm:$0xff]  ;;  %v690_v7 = vand.u32 4294901760, %v677_v2  ;;  %s661_s25 = scalar_lea.vmem %s32740_s0, %s23899_s23  ;;  %v674_v41 = vld [vmem:[%s32741_s5] sm:$0xff]  ;;  %s23971_s5 = sshll.u32 %s29182_s28, 4 }
  0x2d   : > { %v693_v9 = vand.u32 4294901760, %v678_v6  ;;  %v673_v18 = vld [vmem:[%s661_s25] sm:$0xff]  ;;  %s32640_s21 = smov 120   ;;  %s32637_s0 = smov 112  }
  0x2e   : > { %v29179_v10 = vpack.c.bf16 %v687_v5, %v684_v4  ;;  %v764_v11 = vsub.f32 %v675_v0, %v684_v4  ;;  %v771_v12 = vsub.f32 %v676_v1, %v687_v5  ;;  %v778_v13 = vsub.f32 %v677_v2, %v690_v7  ;;  %v1197_v52 = vld [vmem:[%s32744_s9 + $0x18] sm:$0xff]  ;;  %s666_s30 = scalar_lea.vmem %s32745_s3, %s23971_s5  ;;  %s32635_s25 = smov 80  }
  0x2f   : > { %v785_v14 = vsub.f32 %v678_v6, %v693_v9  ;;  %v27054_v15 = vpack.c.bf16 %v693_v9, %v690_v7  ;;  %v681_v20 = vsel %vm679_vm1, %v673_v18, 0  ;;  %v29246_v0 = vpack.c.bf16 %v1781_v58, %v1778_v57  ;;  %v1192_v55 = vld [vmem:[%s666_s30] sm:$0xff]  ;;  %v1193_v56 = vld [vmem:[%s666_s30 + $0x8] sm:$0x3]  ;;  %s32748_s3 = sld [smem:[#allocation21_spill]]  ;;  %s32623_s5 = smov 64  }
  0x30   : > { %27052 = vmatpush3.bf16.msra.mxu0 %v29179_v10  ;;  %v765_v16 = vand.u32 4294901760, %v764_v11  ;;  %v772_v17 = vand.u32 4294901760, %v771_v12  ;;  %v779_v19 = vand.u32 4294901760, %v778_v13  ;;  %v752_v24 = vand.u32 4294901760, %v681_v20  ;;  %s32621_s23 = smov 56   ;;  %s32647_s4 = smov 32  }
  0x31   : > { %27053 = vmatprep.subr.bf16.mxu0 %v32657_v3  ;;  %v786_v23 = vand.u32 4294901760, %v785_v14  ;;  %v27063_v37 = vpack.c.bf16 %v771_v12, %v764_v11  ;;  %v27066_v38 = vpack.c.bf16 %v785_v14, %v778_v13  ;;  %v1853_v1 = vand.u32 4294901760, %v29239_v60 }
  0x32   : > { %v766_v21 = vsub.f32 %v764_v11, %v765_v16  ;;  %v773_v22 = vsub.f32 %v771_v12, %v772_v17  ;;  %v753_v25 = vsub.f32 %v681_v20, %v752_v24  ;;  %v780_v28 = vsub.f32 %v778_v13, %v779_v19 }
  0x33   : > { %v787_v29 = vsub.f32 %v785_v14, %v786_v23  ;;  %v27075_v39 = vpack.c.bf16 %v772_v17, %v765_v16  ;;  %v27078_v40 = vpack.c.bf16 %v786_v23, %v779_v19  ;;  %v1860_v2 = vand.u32 4294901760, %v1859_v61 }
  0x34   : > { %27055 = vmatpush3.bf16.msra.mxu0 %v27054_v15  ;;  %v767_v26 = vand.u32 4294901760, %v766_v21  ;;  %v774_v27 = vand.u32 4294901760, %v773_v22  ;;  %v754_v30 = vand.u32 4294901760, %v753_v25  ;;  %v781_v33 = vand.u32 4294901760, %v780_v28 }
  0x35   : > { %27056 = vmatprep.subr.bf16.mxu0 %v32657_v3  ;;  %v788_v34 = vand.u32 4294901760, %v787_v29  ;;  %v1854_v4 = vsub.f32 %v29239_v60, %v1853_v1  ;;  %v1861_v5 = vsub.f32 %v1859_v61, %v1860_v2  ;;  %v1867_v9 = vand.u32 4294901760, %v29241_v62  ;;  %s669_s30 = scalar_lea.vmem %s32748_s3, %s29182_s28  ;;  %s32619_s3 = smov 48  }
  0x36   : > { %v755_v31 = vsub.f32 %v753_v25, %v754_v30  ;;  %v27057_v32 = vpack.c.bf16 %v774_v27, %v767_v26  ;;  %v27147_v17 = vpack.c.bf16 %v1859_v61, %v29239_v60  ;;  %v27150_v18 = vpack.c.bf16 %v29243_v63, %v29241_v62 }
  0x37   : > { %v27060_v36 = vpack.c.bf16 %v788_v34, %v781_v33  ;;  %v1855_v6 = vand.u32 4294901760, %v1854_v4  ;;  %v1862_v7 = vand.u32 4294901760, %v1861_v5  ;;  %v1868_v12 = vsub.f32 %v29241_v62, %v1867_v9 }
  0x38   : > { %v756_v35 = vand.u32 4294901760, %v755_v31  ;;  %v27159_v19 = vpack.c.bf16 %v1860_v2, %v1853_v1  ;;  %v1214_v54 = vand.u32 4294901760, %v1197_v52  ;;  %v1199_v58 = vsel %vm679_vm1, %v1192_v55, 0 }
  0x39   : > { %v27141_v11 = vpack.c.bf16 %v1862_v7, %v1855_v6  ;;  %v1869_v14 = vand.u32 4294901760, %v1868_v12  ;;  %v1273_v62 = vand.u32 4294901760, %v1199_v58 }
  0x3a   : > { %24923 = vmatmul.mubr.f32.vlgmr.msra.gmra.mrb[0].mxu0 %v756_v35  ;;  %v1316_v4 = vsub.f32 %v1197_v52, %v1214_v54 }
  0x3b   : > { %27058 = vmatpush3.bf16.msra.mxu0 %v27057_v32  ;;  %24933 = vmatprep.mubr.msk.f32.mxu0 %vm28991_vm0, %v32653_v8  ;;  %v1732_v32 = vld [vmem:[%s32600_s11] sm:$0x3]  ;;  %v1274_v5 = vsub.f32 %v1199_v58, %v1273_v62 }
  0x3c   : > { %27059 = vmatprep.subr.bf16.mxu0 %v32657_v3 }
  0x3d   : > { %v1275_v12 = vand.u32 4294901760, %v1274_v5 }
  0x3f   : > { %27061 = vmatpush3.bf16.msra.mxu0 %v27060_v36 }
  0x40   : > { %27062 = vmatprep.subr.bf16.mxu0 %v32657_v3 }
  0x42   : > { %24934 = vmatmul.mubr.f32.vlgmr.msra.gmra.mrb[0].mxu0 %v752_v24 }
  0x43   : > { %27064 = vmatpush3.bf16.msra.mxu0 %v27063_v37  ;;  %24944 = vmatprep.mubr.msk.f32.mxu0 %vm28991_vm0, %v32653_v8 }
  0x44   : > { %27065 = vmatprep.subr.bf16.mxu0 %v32657_v3 }
  0x47   : > { %27067 = vmatpush3.bf16.msra.mxu0 %v27066_v38 }
  0x48   : > { %27068 = vmatprep.subr.bf16.mxu0 %v32657_v3 }
  0x4a   : > { %24945 = vmatmul.mubr.f32.vlgmr.msra.gmra.mrb[0].mxu0 %v753_v25 }
  0x4b   : > { %27070 = vmatpush3.bf16.msra.mxu0 %v29179_v10  ;;  %24955 = vmatprep.mubr.msk.f32.mxu0 %vm28991_vm0, %v32653_v8 }
  0x4c   : > { %27071 = vmatprep.subr.bf16.mxu0 %v32657_v3 }
  0x4f   : > { %27073 = vmatpush3.bf16.msra.mxu0 %v27054_v15 }
  0x50   : > { %27074 = vmatprep.subr.bf16.mxu0 %v32657_v3 }
  0x52   : > { %24956 = vmatmul.mubr.f32.vlgmr.msra.gmra.mrb[0].mxu0 %v754_v30 }
  0x53   : > { %27076 = vmatpush3.bf16.msra.mxu0 %v27075_v39  ;;  %24966 = vmatprep.mubr.msk.f32.mxu0 %vm28991_vm0, %v32653_v8 }
  0x54   : > { %27077 = vmatprep.subr.bf16.mxu0 %v32657_v3 }
  0x57   : > { %27079 = vmatpush3.bf16.msra.mxu0 %v27078_v40 }
  0x58   : > { %27080 = vmatprep.subr.bf16.mxu0 %v32657_v3 }
  0x5a   : > { %24967 = vmatmul.mubr.f32.vlgmr.msra.gmra.mrb[0].mxu0 %v752_v24 }
  0x5b   : > { %27082 = vmatpush3.bf16.msra.mxu0 %v29179_v10  ;;  %24977 = vmatprep.mubr.msk.f32.mxu0 %vm28991_vm0, %v32653_v8  ;;  %v1874_v10 = vand.u32 4294901760, %v29243_v63 }
  0x5c   : > { %27083 = vmatprep.subr.bf16.mxu0 %v32657_v3 }
  0x5d   : > { %v1875_v13 = vsub.f32 %v29243_v63, %v1874_v10  ;;  %v27162_v20 = vpack.c.bf16 %v1874_v10, %v1867_v9 }
  0x5f   : > { %27085 = vmatpush3.bf16.msra.mxu0 %v27054_v15  ;;  %v1876_v15 = vand.u32 4294901760, %v1875_v13 }
  0x60   : > { %27134 = vmatprep.subr.bf16.mxu0 %v32657_v3 }
  0x61   : > { %v27144_v16 = vpack.c.bf16 %v1876_v15, %v1869_v14 }
  0x62   : > { %24978 = vmatmul.mubr.f32.vlgmr.msra.gmra.mrb[0].mxu0 %v752_v24  ;;  %v1168_v24 = vlaneseq }
  0x63   : > { %25054 = vmatprep.mubr.msk.f32.mxu0 %vm28991_vm0, %v32653_v8  ;;  %27136 = vmatpush3.bf16.msra.mxu0 %v29237_v59 }
  0x64   : > { %27137 = vmatprep.subr.bf16.mxu0 %v32657_v3  ;;  %v29261_v28 = vshrl.u32 %v1168_v24, 7 }
  0x66   : > { %v29264_v31 = vsub.s32 0, %v29261_v28  ;;  %v29271_v34 = vsub.s32 1, %v29261_v28 }
  0x67   : > { %27139 = vmatpush3.bf16.msra.mxu0 %v29246_v0 }
  0x68   : > { %27140 = vmatprep.subr.bf16.mxu0 %v32657_v3  ;;  %32742 = vst [vmem:[#allocation12_spill] sm:$0xff] %v29264_v31  ;;  %v1756_v33 = vrot.slane %v1732_v32, %v29264_v31  ;;  %32743 = vst [vmem:[#allocation13_spill] sm:$0xff] %v29271_v34  ;;  %v1762_v35 = vrot.slane %v1732_v32, %v29271_v34 }
 0x135   : > { %v1164_v42 = vpop.f32.mrb[0].mxu0 }
 0x136   : > { %v29219_v43 = vadd.f32 %v1164_v42, %v674_v41  ;;  %v24979_v44 = vpop.f32.mrb[1].mxu0 }
 0x138   : > { %v1733_v45 = vsel %vm679_vm1, %v29219_v43, 0.0 }
 0x139   : > { %1734 = vadd.xlane.f32.xlu0 %v1733_v45 }
 0x1c6   : > { %v1735_v46 = vpop.xlane.xlu0 %1734 }
 0x1c7   : > { %v1737_v47 = vmul.f32 0.03125, %v1735_v46 }
 0x1c9   : > { %v1738_v48 = vsub.f32 %v29219_v43, %v1737_v47  ;;  %v1194_v47 = vld [vmem:[%s32744_s9] sm:$0xff] }
 0x1cb   : > { %v1739_v49 = vmul.f32 %v1738_v48, %v1738_v48  ;;  %v1757_v36 = vmul.f32 %v1756_v33, %v1738_v48  ;;  %v1195_v48 = vld [vmem:[%s32744_s9 + $0x8] sm:$0xff] }
 0x1cc   : > { %v1208_v51 = vand.u32 4294901760, %v1195_v48 }
 0x1cd   : > { %v1740_v50 = vsel %vm679_vm1, %v1739_v49, 0.0  ;;  %v1196_v49 = vld [vmem:[%s32744_s9 + $0x10] sm:$0xff]  ;;  %s32800_s9 = smov 88  }
 0x1ce   : > { %1741 = vadd.xlane.f32.xlu0 %v1740_v50  ;;  %v1205_v50 = vand.u32 4294901760, %v1194_v47  ;;  %v1211_v53 = vand.u32 4294901760, %v1196_v49 }
 0x1d0   : > { %v29317_v57 = vpack.c.bf16 %v1208_v51, %v1205_v50  ;;  %v1295_v60 = vsub.f32 %v1194_v47, %v1205_v50  ;;  %v29321_v61 = vpack.c.bf16 %v1214_v54, %v1211_v53  ;;  %v1309_v2 = vsub.f32 %v1196_v49, %v1211_v53 }
 0x1d2   : > { %27087 = vmatprep.subr.bf16.mxu1 %v29317_v57  ;;  %v1296_v1 = vand.u32 4294901760, %v1295_v60  ;;  %v1310_v10 = vand.u32 4294901760, %v1309_v2 }
 0x1d3   : > { %27089 = vmatpush3.bf16.msra.mxu1 %v29317_v57 }
 0x1d4   : > { %27091 = vmatprep.subr.bf16.mxu1 %v29321_v61  ;;  %v1297_v9 = vsub.f32 %v1295_v60, %v1296_v1 }
 0x1d6   : > { %v1298_v15 = vand.u32 4294901760, %v1297_v9 }
 0x1d7   : > { %27093 = vmatpush3.bf16.msra.mxu1 %v29321_v61 }
 0x25b   : > { %v1742_v21 = vpop.xlane.xlu0 %1741 }
 0x25c   : > { %v1743_v22 = vmul.f32 0.032258064, %v1742_v21 }
 0x25e   : > { %28834 = vrsqrt.f32 %v1743_v22  ;;  %vm1746_vm2 = vcmp.eq.f32.partialorder %v1743_v22, inf  ;;  %v1749_v26 = vand.u32 2147483648, %v1743_v22  ;;  %vm1748_vm3 = vcmp.eq.f32.partialorder %v1743_v22, 0.0 }
 0x268   : > { %v28835_v23 = vpop.eup %28834 }
 0x269   : > { %v1745_v25 = vmul.f32 %v28835_v23, %v1743_v22 }
 0x26b   : > { %v1747_v27 = vsel %vm1746_vm2, %v1743_v22, %v1745_v25 }
 0x26c   : > { %v1750_v29 = vsel %vm1748_vm3, %v1749_v26, %v1747_v27 }
 0x26d   : > { %v1751_v30 = vadd.f32 1e-06, %v1750_v29 }
 0x26f   : > { %28836 = vrcp.f32 %v1751_v30  ;;  %v27106_v30 = vpack.c.bf16 %v1316_v4, %v1309_v2 }
 0x279   : > { %v28837_v37 = vpop.eup %28836 }
 0x27a   : > { %v1758_v38 = vmul.f32 %v28837_v37, %v1757_v36 }
 0x27c   : > { %v1763_v39 = vadd.f32 %v1762_v35, %v1758_v38 }
 0x27e   : > { %v1769_v40 = vsel %vm679_vm1, %v1763_v39, 0 }
 0x27f   : > { %v1840_v41 = vand.u32 4294901760, %v1769_v40 }
 0x281   : > { %v1841_v42 = vsub.f32 %v1769_v40, %v1840_v41 }
 0x283   : > { %v1842_v44 = vand.u32 4294901760, %v1841_v42 }
 0x285   : > { %v1843_v45 = vsub.f32 %v1841_v42, %v1842_v44 }
 0x287   : > { %v1844_v46 = vand.u32 4294901760, %v1843_v45 }
 0x289   : > { %25055 = vmatmul.mubr.f32.vlgmr.msra.gmra.mrb[2].mxu0 %v1844_v46 }
 0x28a   : > { %27142 = vmatpush3.bf16.msra.mxu0 %v27141_v11  ;;  %25065 = vmatprep.mubr.msk.f32.mxu0 %vm28991_vm0, %v32653_v8  ;;  %v1317_v11 = vand.u32 4294901760, %v1316_v4 }
 0x28b   : > { %27143 = vmatprep.subr.bf16.mxu0 %v32657_v3 }
 0x28c   : > { %v27122_v33 = vpack.c.bf16 %v1317_v11, %v1310_v10 }
 0x28e   : > { %27145 = vmatpush3.bf16.msra.mxu0 %v27144_v16  ;;  %v1311_v16 = vsub.f32 %v1309_v2, %v1310_v10 }
 0x28f   : > { %27146 = vmatprep.subr.bf16.mxu0 %v32657_v3 }
 0x290   : > { %v1312_v21 = vand.u32 4294901760, %v1311_v16 }
 0x291   : > { %25066 = vmatmul.mubr.f32.vlgmr.msra.gmra.mrb[2].mxu0 %v1840_v41 }
 0x292   : > { %27148 = vmatpush3.bf16.msra.mxu0 %v27147_v17  ;;  %25076 = vmatprep.mubr.msk.f32.mxu0 %vm28991_vm0, %v32653_v8  ;;  %v1318_v17 = vsub.f32 %v1316_v4, %v1317_v11 }
 0x293   : > { %27149 = vmatprep.subr.bf16.mxu0 %v32657_v3 }
 0x294   : > { %v1319_v22 = vand.u32 4294901760, %v1318_v17 }
 0x296   : > { %27151 = vmatpush3.bf16.msra.mxu0 %v27150_v18  ;;  %v1276_v18 = vsub.f32 %v1274_v5, %v1275_v12  ;;  %v27098_v27 = vpack.c.bf16 %v1319_v22, %v1312_v21 }
 0x297   : > { %27152 = vmatprep.subr.bf16.mxu0 %v32657_v3 }
 0x298   : > { %v1277_v23 = vand.u32 4294901760, %v1276_v18 }
 0x299   : > { %25077 = vmatmul.mubr.f32.vlgmr.msra.gmra.mrb[2].mxu0 %v1841_v42 }
 0x29a   : > { %27154 = vmatpush3.bf16.msra.mxu0 %v29237_v59  ;;  %25087 = vmatprep.mubr.msk.f32.mxu0 %vm28991_vm0, %v32653_v8 }
 0x29b   : > { %27155 = vmatprep.subr.bf16.mxu0 %v32657_v3  ;;  %24988 = vmatprep.mubr.f32.mxu1 %v1277_v23 }
 0x29e   : > { %27157 = vmatpush3.bf16.msra.mxu0 %v29246_v0 }
 0x29f   : > { %27158 = vmatprep.subr.bf16.mxu0 %v32657_v3 }
 0x2a1   : > { %25088 = vmatmul.mubr.f32.vlgmr.msra.gmra.mrb[2].mxu0 %v1842_v44 }
 0x2a2   : > { %27160 = vmatpush3.bf16.msra.mxu0 %v27159_v19  ;;  %25098 = vmatprep.mubr.msk.f32.mxu0 %vm28991_vm0, %v32653_v8 }
 0x2a3   : > { %27161 = vmatprep.subr.bf16.mxu0 %v32657_v3 }
 0x2a6   : > { %27163 = vmatpush3.bf16.msra.mxu0 %v27162_v20 }
 0x2a7   : > { %27164 = vmatprep.subr.bf16.mxu0 %v32657_v3 }
 0x2a9   : > { %25099 = vmatmul.mubr.f32.vlgmr.msra.gmra.mrb[2].mxu0 %v1840_v41 }
 0x2aa   : > { %27166 = vmatpush3.bf16.msra.mxu0 %v29237_v59  ;;  %25109 = vmatprep.mubr.msk.f32.mxu0 %vm28991_vm0, %v32653_v8  ;;  %v1202_v59 = vsel %vm679_vm1, %v1193_v56, 0 }
 0x2ab   : > { %27167 = vmatprep.subr.bf16.mxu0 %v32657_v3  ;;  %v29323_v63 = vand.u32 4294901760, %v1202_v59 }
 0x2ad   : > { %v1284_v6 = vsub.f32 %v1202_v59, %v29323_v63 }
 0x2ae   : > { %27169 = vmatpush3.bf16.msra.mxu0 %v29246_v0  ;;  %v1302_v0 = vsub.f32 %v1195_v48, %v1208_v51 }
 0x2af   : > { %25172 = vmatprep.subr.mxu0 %v32653_v8  ;;  %v1285_v13 = vand.u32 4294901760, %v1284_v6 }
 0x2b0   : > { %v1303_v7 = vand.u32 4294901760, %v1302_v0  ;;  %v27102_v29 = vpack.c.bf16 %v1302_v0, %v1295_v60 }
 0x2b1   : > { %25110 = vmatmul.mubr.f32.vlgmr.msra.gmra.mrb[2].mxu0 %v1840_v41  ;;  %v1286_v19 = vsub.f32 %v1284_v6, %v1285_v13 }
 0x2b2   : > { %25174 = vmatprep.mubr.msk.f32.mxu0 %vm28991_vm0, %v32653_v8  ;;  %v1304_v14 = vsub.f32 %v1302_v0, %v1303_v7  ;;  %v27118_v32 = vpack.c.bf16 %v1303_v7, %v1296_v1 }
 0x2b3   : > { %v1287_v25 = vand.u32 4294901760, %v1286_v19 }
 0x2b4   : > { %v1305_v20 = vand.u32 4294901760, %v1304_v14 }
 0x2b5   : > { %24989 = vmatmul.mubr.f32.vlgmr.msra.gmra.mrb[0].mxu1 %v1287_v25 }
 0x2b6   : > { %v27094_v26 = vpack.c.bf16 %v1305_v20, %v1298_v15  ;;  %24999 = vmatprep.mubr.f32.mxu1 %v1273_v62 }
 0x2b8   : > { %27095 = vmatprep.subr.bf16.mxu1 %v27094_v26 }
 0x2b9   : > { %27097 = vmatpush3.bf16.msra.mxu1 %v27094_v26 }
 0x2ba   : > { %27099 = vmatprep.subr.bf16.mxu1 %v27098_v27 }
 0x2bd   : > { %27101 = vmatpush3.bf16.msra.mxu1 %v27098_v27 }
 0x2be   : > { %27103 = vmatprep.subr.bf16.mxu1 %v27102_v29 }
 0x2c0   : > { %25000 = vmatmul.mubr.f32.vlgmr.msra.gmra.mrb[0].mxu1 %v29323_v63 }
 0x2c1   : > { %27105 = vmatpush3.bf16.msra.mxu1 %v27102_v29  ;;  %25010 = vmatprep.mubr.f32.mxu1 %v1274_v5 }
 0x2c2   : > { %27107 = vmatprep.subr.bf16.mxu1 %v27106_v30 }
 0x2c5   : > { %27109 = vmatpush3.bf16.msra.mxu1 %v27106_v30 }
 0x2c6   : > { %27111 = vmatprep.subr.bf16.mxu1 %v29317_v57 }
 0x2c8   : > { %25011 = vmatmul.mubr.f32.vlgmr.msra.gmra.mrb[0].mxu1 %v1284_v6 }
 0x2c9   : > { %27113 = vmatpush3.bf16.msra.mxu1 %v29317_v57  ;;  %25021 = vmatprep.mubr.f32.mxu1 %v1275_v12 }
 0x2ca   : > { %27115 = vmatprep.subr.bf16.mxu1 %v29321_v61 }
 0x2cd   : > { %27117 = vmatpush3.bf16.msra.mxu1 %v29321_v61 }
 0x2ce   : > { %27119 = vmatprep.subr.bf16.mxu1 %v27118_v32 }
 0x2d0   : > { %25022 = vmatmul.mubr.f32.vlgmr.msra.gmra.mrb[0].mxu1 %v1285_v13 }
 0x2d1   : > { %27121 = vmatpush3.bf16.msra.mxu1 %v27118_v32  ;;  %25032 = vmatprep.mubr.f32.mxu1 %v1273_v62 }
 0x2d2   : > { %27123 = vmatprep.subr.bf16.mxu1 %v27122_v33 }
 0x2d5   : > { %27125 = vmatpush3.bf16.msra.mxu1 %v27122_v33 }
 0x2d6   : > { %27127 = vmatprep.subr.bf16.mxu1 %v29317_v57 }
 0x2d8   : > { %25033 = vmatmul.mubr.f32.vlgmr.msra.gmra.mrb[0].mxu1 %v29323_v63 }
 0x2d9   : > { %27129 = vmatpush3.bf16.msra.mxu1 %v29317_v57  ;;  %25043 = vmatprep.mubr.f32.mxu1 %v1273_v62 }
 0x2da   : > { %27131 = vmatprep.subr.bf16.mxu1 %v29321_v61 }
 0x2dd   : > { %27133 = vmatpush3.bf16.msra.mxu1 %v29321_v61 }
 0x2de   : > { %25112 = vmatprep.subr.mxu1 %v32653_v8 }
 0x2e0   : > { %25044 = vmatmul.mubr.f32.vlgmr.msra.gmra.mrb[0].mxu1 %v29323_v63 }
 0x2e1   : > { %25114 = vmatprep.mubr.msk.f32.mxu1 %vm28991_vm0, %v32653_v8 }
 0x384   : > { %v29344_v35 = vpop.f32.mrb[2].mxu0 }
 0x385   : > { %3181 = vrot.lane.b32.xlu0 %v29344_v35, %s32639_s1  ;;  %2262 = vrot.lane.b32.xlu1 %v29344_v35, %s32642_s29  ;;  %v25111_v36 = vpop.f32.mrb[3].mxu0  ;;  %v2260_v37 = vmul.f32 0.35355338, %v29344_v35 }
 0x387   : > { %v2266_v38 = vsel %vm2264_vm4, %v2260_v37, 0 }
 0x388   : > { %v29359_v39 = vand.u32 4294901760, %v2266_v38 }
 0x389   : > { %3179 = vrot.lane.b32.xlu1 %v2260_v37, %s32640_s21 }
 0x38a   : > { %v2337_v40 = vsub.f32 %v2266_v38, %v29359_v39 }
 0x38c   : > { %v2338_v41 = vand.u32 4294901760, %v2337_v40 }
 0x38d   : > { %4096 = vrot.lane.b32.xlu1 %v2260_v37, %s32637_s0  ;;  %s32755_s0 = smov 72  }
 0x38e   : > { %v2339_v47 = vsub.f32 %v2337_v40, %v2338_v41 }
 0x390   : > { %v2340_v54 = vand.u32 4294901760, %v2339_v47 }
 0x391   : > { %4098 = vrot.lane.b32.xlu1 %v29344_v35, %s32635_s25  ;;  %s32756_s25 = smov 8  }
 0x395   : > { %5013 = vrot.lane.b32.xlu1 %v2260_v37, %s32633_s26  ;;  %s32757_s26 = smov 16  }
 0x399   : > { %5015 = vrot.lane.b32.xlu1 %v29344_v35, %s32625_s27  ;;  %s32631_s27 = smov 16  }
 0x3b3   : > { %v29409_v10 = vpop.f32.mrb[0].mxu1 }
 0x3b4   : > { %32746 = vst [vmem:[#allocation14_spill] sm:$0xff] %v29409_v10  ;;  %v29411_v11 = vpop.f32.mrb[1].mxu1  ;;  %v6977_v22 = vsel %vm2264_vm4, %v29409_v10, 0 }
 0x3b5   : > { %32747 = vst [vmem:[#allocation15_spill] sm:$0xff] %v29411_v11  ;;  %v6974_v21 = vsel %vm2264_vm4, %v29411_v11, 0  ;;  %v6983_v25 = vand.u32 4294901760, %v6977_v22 }
 0x3b6   : > { %v6980_v23 = vand.u32 4294901760, %v6974_v21 }
 0x3b7   : > { %v29442_v29 = vsub.f32 %v6977_v22, %v6983_v25 }
 0x3b8   : > { %v29440_v27 = vsub.f32 %v6974_v21, %v6980_v23  ;;  %v29451_v38 = vpack.c.bf16 %v6983_v25, %v6980_v23 }
 0x3b9   : > { %v7066_v36 = vand.u32 4294901760, %v29442_v29 }
 0x3ba   : > { %v7059_v33 = vand.u32 4294901760, %v29440_v27 }
 0x3f7   : > { %v3182_v42 = vpop.permute.xlu0 %3181  ;;  %v2263_v44 = vpop.permute.xlu1 %2262 }
 0x3f8   : > { %v3185_v45 = vsel %vm2264_vm4, %v3182_v42, 0  ;;  %v2268_v46 = vsel %vm2264_vm4, %v2263_v44, 0  ;;  %v27249_v42 = vpack.c.bf16 %v29442_v29, %v29440_v27 }
 0x3f9   : > { %v29364_v48 = vand.u32 4294901760, %v3185_v45  ;;  %v2271_v49 = vand.u32 4294901760, %v2268_v46 }
 0x3fb   : > { %v3265_v50 = vsub.f32 %v3185_v45, %v29364_v48  ;;  %v2348_v51 = vsub.f32 %v2268_v46, %v2271_v49  ;;  %25113 = vmatpush3.xpose.msra.mxu1 %v2271_v49  ;;  %25173 = vmatpush3.xpose.msra.mxu0 %v29364_v48  ;;  %v3180_v52 = vpop.permute.xlu1 %3179  ;;  %v29457_v46 = vpack.c.bf16 %v7066_v36, %v7059_v33 }
 0x3fc   : > { %v3183_v53 = vsel %vm2264_vm4, %v3180_v52, 0  ;;  %25117 = vmatprep.subr.mxu1 %v32653_v8  ;;  %25177 = vmatprep.subr.mxu0 %v32653_v8 }
 0x3fd   : > { %v2349_v55 = vand.u32 4294901760, %v2348_v51  ;;  %v29371_v56 = vand.u32 4294901760, %v3183_v53  ;;  %v3266_v57 = vand.u32 4294901760, %v3265_v50 }
 0x3fe   : > { %25115 = vmatmul.mubr.f32.vlgmr.msra.gmra.mrb[2].mxu1 %v2340_v54 }
 0x3ff   : > { %v2350_v58 = vsub.f32 %v2348_v51, %v2349_v55  ;;  %v3254_v59 = vsub.f32 %v3183_v53, %v29371_v56  ;;  %25119 = vmatprep.mubr.msk.f32.mxu1 %vm28991_vm0, %v32653_v8  ;;  %v3267_v62 = vsub.f32 %v3265_v50, %v3266_v57  ;;  %v4097_v2 = vpop.permute.xlu1 %4096 }
 0x400   : > { %v4100_v5 = vsel %vm2264_vm4, %v4097_v2, 0 }
 0x401   : > { %v3255_v60 = vand.u32 4294901760, %v3254_v59  ;;  %v2351_v61 = vand.u32 4294901760, %v2350_v58  ;;  %v3268_v1 = vand.u32 4294901760, %v3267_v62  ;;  %v29403_v7 = vand.u32 4294901760, %v4100_v5 }
 0x403   : > { %v3256_v63 = vsub.f32 %v3254_v59, %v3255_v60  ;;  %25118 = vmatpush3.xpose.msra.mxu1 %v2351_v61  ;;  %v4099_v4 = vpop.permute.xlu1 %4098  ;;  %v4171_v12 = vsub.f32 %v4100_v5, %v29403_v7 }
 0x404   : > { %25122 = vmatprep.subr.mxu1 %v32653_v8  ;;  %v4102_v6 = vsel %vm2264_vm4, %v4099_v4, 0 }
 0x405   : > { %v3257_v0 = vand.u32 4294901760, %v3256_v63  ;;  %v4105_v9 = vand.u32 4294901760, %v4102_v6  ;;  %v4172_v14 = vand.u32 4294901760, %v4171_v12 }
 0x406   : > { %25120 = vmatmul.mubr.f32.vlgmr.msra.gmra.mrb[2].mxu1 %v29359_v39 }
 0x407   : > { %25175 = vmatmul.mubr.f32.vlgmr.msra.gmra.mrb[4].mxu0 %v3257_v0  ;;  %25123 = vmatpush3.xpose.msra.mxu1 %v2348_v51  ;;  %v4182_v13 = vsub.f32 %v4102_v6, %v4105_v9  ;;  %v4173_v16 = vsub.f32 %v4171_v12, %v4172_v14  ;;  %v5014_v20 = vpop.permute.xlu1 %5013 }
 0x408   : > { %25178 = vmatpush3.xpose.msra.mxu0 %v3268_v1  ;;  %25124 = vmatprep.mubr.msk.f32.mxu1 %vm28991_vm0, %v32653_v8  ;;  %v5017_v30 = vsel %vm2264_vm4, %v5014_v20, 0 }
 0x409   : > { %25127 = vmatprep.subr.mxu1 %v32653_v8  ;;  %25179 = vmatprep.mubr.msk.f32.mxu0 %vm28991_vm0, %v32653_v8  ;;  %v4183_v15 = vand.u32 4294901760, %v4182_v13  ;;  %v4174_v18 = vand.u32 4294901760, %v4173_v16  ;;  %v5087_v37 = vand.u32 4294901760, %v5017_v30 }
 0x40a   : > { %25182 = vmatprep.subr.mxu0 %v32653_v8 }
 0x40b   : > { %v4184_v17 = vsub.f32 %v4182_v13, %v4183_v15  ;;  %v5016_v26 = vpop.permute.xlu1 %5015  ;;  %v5088_v47 = vsub.f32 %v5017_v30, %v5087_v37 }
 0x40c   : > { %v5019_v32 = vsel %vm2264_vm4, %v5016_v26, 0 }
 0x40d   : > { %v4185_v19 = vand.u32 4294901760, %v4184_v17 }
 0x40e   : > { %25125 = vmatmul.mubr.f32.vlgmr.msra.gmra.mrb[2].mxu1 %v2337_v40  ;;  %v7067_v40 = vsub.f32 %v29442_v29, %v7066_v36 }
 0x40f   : > { %25128 = vmatpush3.xpose.msra.mxu1 %v2271_v49  ;;  %25180 = vmatmul.mubr.f32.vlgmr.msra.gmra.mrb[4].mxu0 %v29371_v56 }
 0x410   : > { %25183 = vmatpush3.xpose.msra.mxu0 %v3265_v50  ;;  %25129 = vmatprep.mubr.msk.f32.mxu1 %vm28991_vm0, %v32653_v8  ;;  %v7068_v45 = vand.u32 4294901760, %v7067_v40  ;;  %v5089_v50 = vand.u32 4294901760, %v5088_v47 }
 0x411   : > { %25132 = vmatprep.subr.mxu1 %v32653_v8  ;;  %25184 = vmatprep.mubr.msk.f32.mxu0 %vm28991_vm0, %v32653_v8 }
 0x412   : > { %25187 = vmatprep.subr.mxu0 %v32653_v8  ;;  %v5090_v52 = vsub.f32 %v5088_v47, %v5089_v50 }
 0x414   : > { %v5091_v54 = vand.u32 4294901760, %v5090_v52 }
 0x416   : > { %25130 = vmatmul.mubr.f32.vlgmr.msra.gmra.mrb[2].mxu1 %v2338_v41  ;;  %v5022_v41 = vand.u32 4294901760, %v5019_v32 }
 0x417   : > { %25133 = vmatpush3.xpose.msra.mxu1 %v2349_v55  ;;  %25185 = vmatmul.mubr.f32.vlgmr.msra.gmra.mrb[4].mxu0 %v3254_v59  ;;  %v1171_v59 = vand.u32 127, %v1168_v24 }
 0x418   : > { %25188 = vmatpush3.xpose.msra.mxu0 %v29364_v48  ;;  %25134 = vmatprep.mubr.msk.f32.mxu1 %vm28991_vm0, %v32653_v8 }
 0x419   : > { %25137 = vmatprep.subr.mxu1 %v32653_v8  ;;  %25189 = vmatprep.mubr.msk.f32.mxu0 %vm28991_vm0, %v32653_v8  ;;  %vm1172_vm6 = vcmp.gt.s32.totalorder %v1171_v59, %v29261_v28 }
 0x41a   : > { %25192 = vmatprep.subr.mxu0 %v32653_v8 }
 0x41e   : > { %25135 = vmatmul.mubr.f32.vlgmr.msra.gmra.mrb[2].mxu1 %v29359_v39 }
 0x41f   : > { %25138 = vmatpush3.xpose.msra.mxu1 %v2271_v49  ;;  %25190 = vmatmul.mubr.f32.vlgmr.msra.gmra.mrb[4].mxu0 %v3255_v60  ;;  %v5099_v49 = vsub.f32 %v5019_v32, %v5022_v41 }
 0x420   : > { %25193 = vmatpush3.xpose.msra.mxu0 %v3266_v57  ;;  %25139 = vmatprep.mubr.msk.f32.mxu1 %vm28991_vm0, %v32653_v8  ;;  %v29000_v57 = vmov 0  }
 0x421   : > { %25194 = vmatprep.mubr.msk.f32.mxu0 %vm28991_vm0, %v32653_v8  ;;  %25197 = vmatprep.subr.mxu0 %v32653_v8  ;;  %v5100_v51 = vand.u32 4294901760, %v5099_v49 }
 0x422   : > { %25142 = vmatprep.subr.mxu1 %v32653_v8 }
 0x423   : > { %v5101_v53 = vsub.f32 %v5099_v49, %v5100_v51 }
 0x425   : > { %v5102_v55 = vand.u32 4294901760, %v5101_v53 }
 0x426   : > { %25140 = vmatmul.mubr.f32.vlgmr.msra.gmra.mrb[2].mxu1 %v29359_v39  ;;  %v7060_v39 = vsub.f32 %v29440_v27, %v7059_v33 }
 0x427   : > { %25195 = vmatmul.mubr.f32.vlgmr.msra.gmra.mrb[4].mxu0 %v29371_v56  ;;  %25144 = vmatprep.mubr.msk.f32.mxu1 %vm28991_vm0, %v32653_v8 }
 0x428   : > { %25198 = vmatpush3.xpose.msra.mxu0 %v29364_v48  ;;  %25199 = vmatprep.mubr.msk.f32.mxu0 %vm28991_vm0, %v32653_v8  ;;  %v7061_v44 = vand.u32 4294901760, %v7060_v39 }
 0x429   : > { %25232 = vmatprep.subr.mxu0 %v32653_v8 }
 0x42a   : > { %v29459_v48 = vpack.c.bf16 %v7068_v45, %v7061_v44 }
 0x42f   : > { %25200 = vmatmul.mubr.f32.vlgmr.msra.gmra.mrb[4].mxu0 %v29371_v56  ;;  %v1173_v56 = vld [vmem:[%s669_s30] sm:$0x1]  ;;  %s32617_s30 = smov 40  }
 0x430   : > { %25233 = vmatpush3.xpose.msra.mxu0 %v4105_v9  ;;  %25234 = vmatprep.mubr.msk.f32.mxu0 %vm28991_vm0, %v32653_v8  ;;  %vm1174_vm5 = vcmp.gt.f32.partialorder %v1173_v56, 0.5 }
 0x431   : > { %25237 = vmatprep.subr.mxu0 %v32653_v8  ;;  %v1175_v58 = vsel %vm1174_vm5, 1, %v29000_v57  ;;  %vm1186_vm5 = vcmp.ge.s32.totalorder %v29261_v28, 1 }
 0x432   : > { %v1179_v60 = vrot.slane %v1175_v58, %v29264_v31 }
 0x433   : > { %25235 = vmatmul.mubr.f32.vlgmr.msra.gmra.mrb[6].mxu0 %v4174_v18 }
 0x434   : > { %25238 = vmatpush3.xpose.msra.mxu0 %v4185_v19  ;;  %25239 = vmatprep.mubr.msk.f32.mxu0 %vm28991_vm0, %v32653_v8  ;;  %vm1180_vm7 = vcmp.eq.s32.totalorder %v1179_v60, 1 }
 0x435   : > { %25242 = vmatprep.subr.mxu0 %v32653_v8  ;;  %vm1181_vm8 = vmor %vm1172_vm6, %vm1180_vm7  ;;  %vm1189_vm6 = vcmp.ge.s32.totalorder %v29261_v28, 2  ;;  %vm11334_vm7 = vcmask 523264  }
 0x436   : > { %v29494_v61 = vsel %vm1181_vm8, -1e+18, %v32653_v8  ;;  %vm11342_vm8 = vcmask 785408  }
 0x437   : > { %32749 = vst [vmem:[#allocation16_spill] sm:$0xff] %v29494_v61 }
 0x43b   : > { %25240 = vmatmul.mubr.f32.vlgmr.msra.gmra.mrb[6].mxu0 %v29403_v7 }
 0x43c   : > { %25243 = vmatpush3.xpose.msra.mxu0 %v4182_v13  ;;  %25244 = vmatprep.mubr.msk.f32.mxu0 %vm28991_vm0, %v32653_v8 }
 0x43d   : > { %25247 = vmatprep.subr.mxu0 %v32653_v8 }
 0x443   : > { %25245 = vmatmul.mubr.f32.vlgmr.msra.gmra.mrb[6].mxu0 %v4171_v12 }
 0x444   : > { %25248 = vmatpush3.xpose.msra.mxu0 %v4105_v9  ;;  %25249 = vmatprep.mubr.msk.f32.mxu0 %vm28991_vm0, %v32653_v8 }
 0x445   : > { %25252 = vmatprep.subr.mxu0 %v32653_v8 }
 0x44b   : > { %25250 = vmatmul.mubr.f32.vlgmr.msra.gmra.mrb[6].mxu0 %v4172_v14 }
 0x44c   : > { %25253 = vmatpush3.xpose.msra.mxu0 %v4183_v15  ;;  %25254 = vmatprep.mubr.msk.f32.mxu0 %vm28991_vm0, %v32653_v8 }
 0x44d   : > { %25257 = vmatprep.subr.mxu0 %v32653_v8 }
 0x453   : > { %25255 = vmatmul.mubr.f32.vlgmr.msra.gmra.mrb[6].mxu0 %v29403_v7 }
 0x454   : > { %25258 = vmatpush3.xpose.msra.mxu0 %v4105_v9  ;;  %25259 = vmatprep.mubr.msk.f32.mxu0 %vm28991_vm0, %v32653_v8 }
 0x455   : > { %25292 = vmatprep.subr.mxu0 %v32653_v8 }
 0x45b   : > { %25260 = vmatmul.mubr.f32.vlgmr.msra.gmra.mrb[6].mxu0 %v29403_v7 }
 0x45c   : > { %25293 = vmatpush3.xpose.msra.mxu0 %v5022_v41  ;;  %25294 = vmatprep.mubr.msk.f32.mxu0 %vm28991_vm0, %v32653_v8 }
 0x45d   : > { %25297 = vmatprep.subr.mxu0 %v32653_v8 }
 0x45f   : > { %25295 = vmatmul.mubr.f32.vlgmr.msra.gmra.mrb[8].mxu0 %v5091_v54 }
 0x460   : > { %25298 = vmatpush3.xpose.msra.mxu0 %v5102_v55  ;;  %25299 = vmatprep.mubr.msk.f32.mxu0 %vm28991_vm0, %v32653_v8 }
 0x461   : > { %25302 = vmatprep.subr.mxu0 %v32653_v8 }
 0x467   : > { %25300 = vmatmul.mubr.f32.vlgmr.msra.gmra.mrb[8].mxu0 %v5087_v37 }
 0x468   : > { %25303 = vmatpush3.xpose.msra.mxu0 %v5099_v49  ;;  %25304 = vmatprep.mubr.msk.f32.mxu0 %vm28991_vm0, %v32653_v8 }
 0x469   : > { %25307 = vmatprep.subr.mxu0 %v32653_v8 }
 0x46f   : > { %25305 = vmatmul.mubr.f32.vlgmr.msra.gmra.mrb[8].mxu0 %v5088_v47 }
 0x470   : > { %25308 = vmatpush3.xpose.msra.mxu0 %v5022_v41  ;;  %25309 = vmatprep.mubr.msk.f32.mxu0 %vm28991_vm0, %v32653_v8 }
 0x471   : > { %25312 = vmatprep.subr.mxu0 %v32653_v8 }
 0x477   : > { %25310 = vmatmul.mubr.f32.vlgmr.msra.gmra.mrb[8].mxu0 %v5089_v50 }
 0x478   : > { %25313 = vmatpush3.xpose.msra.mxu0 %v5100_v51  ;;  %25314 = vmatprep.mubr.msk.f32.mxu0 %vm28991_vm0, %v32653_v8 }
 0x479   : > { %25317 = vmatprep.subr.mxu0 %v32653_v8 }
 0x47f   : > { %25315 = vmatmul.mubr.f32.vlgmr.msra.gmra.mrb[8].mxu0 %v5087_v37 }
 0x480   : > { %25318 = vmatpush3.xpose.msra.mxu0 %v5022_v41  ;;  %25319 = vmatprep.mubr.msk.f32.mxu0 %vm28991_vm0, %v32653_v8 }
 0x481   : > { %27170 = vmatprep.subr.bf16.mxu0 %v32657_v3 }
 0x487   : > { %25320 = vmatmul.mubr.f32.vlgmr.msra.gmra.mrb[8].mxu0 %v5087_v37 }
 0x488   : > { %25360 = vmatprep.mubr.msk.f32.mxu0 %vm28991_vm0, %v32653_v8 }
 0x4f9   : > { %v2712_v62 = vpop.f32.mrb[2].mxu1 }
 0x4fa   : > { %v28359_v63 = vadd.f32 %v2712_v62, %v29494_v61  ;;  %v25141_v0 = vpop.f32.mrb[3].mxu1 }
 0x4fc   : > { %v2716_v1 = vsel %vm2264_vm4, %v28359_v63, -inf }
 0x4fd   : > { %2717 = vmax.xlane.f32.xlu1 %v2716_v1 }
 0x502   : > { %v3629_v2 = vpop.f32.mrb[4].mxu0 }
 0x503   : > { %v28360_v4 = vadd.f32 %v3629_v2, %v29494_v61  ;;  %v25201_v24 = vpop.f32.mrb[5].mxu0 }
 0x505   : > { %v3633_v5 = vsel %vm2264_vm4, %v28360_v4, -inf }
 0x506   : > { %3634 = vmax.xlane.f32.xlu0 %v3633_v5 }
 0x52e   : > { %v4546_v6 = vpop.f32.mrb[6].mxu0 }
 0x52f   : > { %v28361_v7 = vadd.f32 %v4546_v6, %v29494_v61  ;;  %v25261_v9 = vpop.f32.mrb[7].mxu0 }
 0x531   : > { %v4550_v12 = vsel %vm2264_vm4, %v28361_v7, -inf }
 0x532   : > { %4551 = vmax.xlane.f32.xlu0 %v4550_v12 }
 0x55a   : > { %v5463_v13 = vpop.f32.mrb[8].mxu0 }
 0x55b   : > { %v25321_v14 = vpop.f32.mrb[9].mxu0  ;;  %v28362_v25 = vadd.f32 %v5463_v13, %v29494_v61 }
 0x55d   : > { %v5467_v30 = vsel %vm2264_vm4, %v28362_v25, -inf }
 0x58a   : > { %v2718_v15 = vpop.xlane.xlu1 %2717 }
 0x58b   : > { %v2719_v16 = vsub.f32 %v28359_v63, %v2718_v15 }
 0x58d   : > { %v2720_v17 = vmul.f32 1.442695, %v2719_v16 }
 0x58f   : > { %28838 = vpow2.f32 %v2720_v17 }
 0x593   : > { %v3635_v18 = vpop.xlane.xlu0 %3634 }
 0x594   : > { %v3636_v19 = vsub.f32 %v28360_v4, %v3635_v18 }
 0x596   : > { %v3637_v20 = vmul.f32 1.442695, %v3636_v19 }
 0x598   : > { %28840 = vpow2.f32 %v3637_v20 }
 0x599   : > { %v28839_v21 = vpop.eup %28838 }
 0x59a   : > { %v2722_v22 = vsel %vm2264_vm4, %v28839_v21, 0.0 }
 0x59b   : > { %2723 = vadd.xlane.f32.xlu1 %v2722_v22 }
 0x5a2   : > { %v28841_v23 = vpop.eup %28840 }
 0x5a3   : > { %v3639_v26 = vsel %vm2264_vm4, %v28841_v23, 0.0 }
 0x5a4   : > { %3640 = vadd.xlane.f32.xlu0 %v3639_v26 }
 0x5a8   : > { %5468 = vmax.xlane.f32.xlu0 %v5467_v30 }
 0x5ac   : > { %2727 = vrot.lane.b32.xlu1 %v29344_v35, %s32623_s5 }
 0x5be   : > { %3644 = vrot.lane.b32.xlu0 %v29344_v35, %s32621_s23  ;;  %s32753_s23 = smov 80  }
 0x5bf   : > { %v4552_v32 = vpop.xlane.xlu0 %4551 }
 0x5c0   : > { %v4553_v33 = vsub.f32 %v28361_v7, %v4552_v32 }
 0x5c2   : > { %v4554_v36 = vmul.f32 1.442695, %v4553_v33  ;;  %4561 = vrot.lane.b32.xlu0 %v29344_v35, %s32619_s3  ;;  %s32754_s3 = smov 104  }
 0x5c4   : > { %28842 = vpow2.f32 %v4554_v36 }
 0x5ce   : > { %v29512_v37 = vpop.eup %28842 }
 0x5cf   : > { %v4556_v39 = vsel %vm2264_vm4, %v29512_v37, 0.0 }
 0x5d0   : > { %4557 = vadd.xlane.f32.xlu1 %v4556_v39 }
 0x5e1   : > { %5478 = vrot.lane.b32.xlu1 %v29344_v35, %s32617_s30  ;;  %s32627_s30 = smov 8  }
 0x628   : > { %v2724_v40 = vpop.xlane.xlu1 %2723 }
 0x629   : > { %28844 = vrcp.f32 %v2724_v40 }
 0x62c   : > { %v2728_v41 = vpop.permute.xlu1 %2727 }
 0x62d   : > { %v2734_v44 = vand.u32 4294901760, %v2728_v41 }
 0x62f   : > { %25143 = vmatpush3.msra.mxu1 %v2734_v44  ;;  %v2811_v50 = vsub.f32 %v2728_v41, %v2734_v44 }
 0x630   : > { %25147 = vmatprep.subr.mxu1 %v32653_v8 }
 0x631   : > { %v3641_v45 = vpop.xlane.xlu0 %3640  ;;  %v2812_v55 = vand.u32 4294901760, %v2811_v50 }
 0x633   : > { %v28845_v47 = vpop.eup %28844  ;;  %v2813_v58 = vsub.f32 %v2811_v50, %v2812_v55 }
 0x634   : > { %v2726_v49 = vmul.f32 %v28845_v47, %v28839_v21 }
 0x635   : > { %v5469_v51 = vpop.xlane.xlu0 %5468  ;;  %v2814_v62 = vand.u32 4294901760, %v2813_v58 }
 0x636   : > { %v5470_v52 = vsub.f32 %v28362_v25, %v5469_v51  ;;  %v2731_v53 = vsel %vm2264_vm4, %v2726_v49, 0 }
 0x637   : > { %v2799_v54 = vand.u32 4294901760, %v2731_v53 }
 0x638   : > { %v5471_v56 = vmul.f32 1.442695, %v5470_v52 }
 0x639   : > { %v2800_v57 = vsub.f32 %v2731_v53, %v2799_v54  ;;  %v3645_v24 = vpop.permute.xlu0 %3644 }
 0x63a   : > { %28846 = vpow2.f32 %v5471_v56  ;;  %v3651_v6 = vand.u32 4294901760, %v3645_v24 }
 0x63b   : > { %v2801_v35 = vand.u32 4294901760, %v2800_v57  ;;  %28848 = vrcp.f32 %v3641_v45 }
 0x63c   : > { %v3728_v9 = vsub.f32 %v3645_v24, %v3651_v6 }
 0x63d   : > { %v2802_v59 = vsub.f32 %v2800_v57, %v2801_v35  ;;  %v4562_v22 = vpop.permute.xlu0 %4561 }
 0x63e   : > { %v3729_v13 = vand.u32 4294901760, %v3728_v9  ;;  %v4568_v25 = vand.u32 4294901760, %v4562_v22 }
 0x63f   : > { %v2803_v60 = vand.u32 4294901760, %v2802_v59 }
 0x640   : > { %v3730_v15 = vsub.f32 %v3728_v9, %v3729_v13  ;;  %v4645_v30 = vsub.f32 %v4562_v22, %v4568_v25 }
 0x641   : > { %25145 = vmatmul.mubr.f32.vlgmr.msra.gmra.mrb[4].mxu1 %v2803_v60 }
 0x642   : > { %25148 = vmatpush3.msra.mxu1 %v2814_v62  ;;  %25149 = vmatprep.mubr.msk.f32.mxu1 %vm28991_vm0, %v32653_v8  ;;  %v3731_v17 = vand.u32 4294901760, %v3730_v15  ;;  %v4646_v33 = vand.u32 4294901760, %v4645_v30 }
 0x643   : > { %25152 = vmatprep.subr.mxu1 %v32653_v8 }
 0x644   : > { %v29523_v63 = vpop.eup %28846 }
 0x645   : > { %v5473_v0 = vsel %vm2264_vm4, %v29523_v63, 0.0  ;;  %v28849_v1 = vpop.eup %28848 }
 0x646   : > { %5474 = vadd.xlane.f32.xlu0 %v5473_v0  ;;  %v3643_v2 = vmul.f32 %v28849_v1, %v28841_v23  ;;  %v2256_v0 = vld [vmem:[%s32596_s7] sm:$0xff]  ;;  %v2257_v1 = vld [vmem:[%s32596_s7 + $0x8] sm:$0xff] }
 0x648   : > { %v3648_v4 = vsel %vm2264_vm4, %v3643_v2, 0  ;;  %v5951_v2 = vand.u32 4294901760, %v2256_v0 }
 0x649   : > { %25150 = vmatmul.mubr.f32.vlgmr.msra.gmra.mrb[4].mxu1 %v2799_v54  ;;  %v3716_v5 = vand.u32 4294901760, %v3648_v4 }
 0x64a   : > { %25153 = vmatpush3.msra.mxu1 %v2811_v50  ;;  %25154 = vmatprep.mubr.msk.f32.mxu1 %vm28991_vm0, %v32653_v8  ;;  %v29607_v24 = vsub.f32 %v2256_v0, %v5951_v2 }
 0x64b   : > { %25157 = vmatprep.subr.mxu1 %v32653_v8  ;;  %v3717_v7 = vsub.f32 %v3648_v4, %v3716_v5  ;;  %v5954_v4 = vand.u32 4294901760, %v2257_v1 }
 0x64d   : > { %v3718_v12 = vand.u32 4294901760, %v3717_v7 }
 0x64f   : > { %v3719_v14 = vsub.f32 %v3717_v7, %v3718_v12 }
 0x651   : > { %25155 = vmatmul.mubr.f32.vlgmr.msra.gmra.mrb[4].mxu1 %v2800_v57  ;;  %v3720_v16 = vand.u32 4294901760, %v3719_v14 }
 0x652   : > { %25158 = vmatpush3.msra.mxu1 %v2734_v44  ;;  %25159 = vmatprep.mubr.msk.f32.mxu1 %vm28991_vm0, %v32653_v8 }
 0x653   : > { %25162 = vmatprep.subr.mxu1 %v32653_v8 }
 0x659   : > { %25160 = vmatmul.mubr.f32.vlgmr.msra.gmra.mrb[4].mxu1 %v2801_v35 }
 0x65a   : > { %25163 = vmatpush3.msra.mxu1 %v2812_v55  ;;  %25164 = vmatprep.mubr.msk.f32.mxu1 %vm28991_vm0, %v32653_v8 }
 0x65b   : > { %25167 = vmatprep.subr.mxu1 %v32653_v8 }
 0x65d   : > { %v4558_v18 = vpop.xlane.xlu1 %4557 }
 0x65e   : > { %28850 = vrcp.f32 %v4558_v18  ;;  %v2258_v18 = vld [vmem:[%s32596_s7 + $0x10] sm:$0xff] }
 0x661   : > { %25165 = vmatmul.mubr.f32.vlgmr.msra.gmra.mrb[4].mxu1 %v2799_v54  ;;  %v5479_v41 = vpop.permute.xlu1 %5478 }
 0x662   : > { %25168 = vmatpush3.msra.mxu1 %v2734_v44  ;;  %25169 = vmatprep.mubr.msk.f32.mxu1 %vm28991_vm0, %v32653_v8  ;;  %v5485_v44 = vand.u32 4294901760, %v5479_v41 }
 0x663   : > { %25202 = vmatprep.subr.mxu1 %v32653_v8 }
 0x664   : > { %v5562_v49 = vsub.f32 %v5479_v41, %v5485_v44 }
 0x666   : > { %v5563_v53 = vand.u32 4294901760, %v5562_v49 }
 0x668   : > { %v28851_v19 = vpop.eup %28850  ;;  %v5564_v56 = vsub.f32 %v5562_v49, %v5563_v53 }
 0x669   : > { %25170 = vmatmul.mubr.f32.vlgmr.msra.gmra.mrb[4].mxu1 %v2799_v54  ;;  %v4560_v20 = vmul.f32 %v28851_v19, %v29512_v37  ;;  %v4647_v37 = vsub.f32 %v4645_v30, %v4646_v33  ;;  %v2259_v19 = vld [vmem:[%s32596_s7 + $0x18] sm:$0xff] }
 0x66a   : > { %25203 = vmatpush3.msra.mxu1 %v3651_v6  ;;  %25204 = vmatprep.mubr.msk.f32.mxu1 %vm28991_vm0, %v32653_v8  ;;  %v5565_v58 = vand.u32 4294901760, %v5564_v56 }
 0x66b   : > { %25207 = vmatprep.subr.mxu1 %v32653_v8  ;;  %v4565_v21 = vsel %vm2264_vm4, %v4560_v20, 0  ;;  %v4648_v40 = vand.u32 4294901760, %v4647_v37  ;;  %v5957_v20 = vand.u32 4294901760, %v2258_v18 }
 0x66c   : > { %v4633_v23 = vand.u32 4294901760, %v4565_v21 }
 0x66d   : > { %25205 = vmatmul.mubr.f32.vlgmr.msra.gmra.mrb[6].mxu1 %v3720_v16  ;;  %v6045_v22 = vsub.f32 %v2258_v18, %v5957_v20 }
 0x66e   : > { %25208 = vmatpush3.msra.mxu1 %v3731_v17  ;;  %25209 = vmatprep.mubr.msk.f32.mxu1 %vm28991_vm0, %v32653_v8  ;;  %v4634_v26 = vsub.f32 %v4565_v21, %v4633_v23  ;;  %v5960_v21 = vand.u32 4294901760, %v2259_v19 }
 0x66f   : > { %25212 = vmatprep.subr.mxu1 %v32653_v8 }
 0x670   : > { %v4635_v32 = vand.u32 4294901760, %v4634_v26 }
 0x672   : > { %v4636_v36 = vsub.f32 %v4634_v26, %v4635_v32 }
 0x674   : > { %v4637_v39 = vand.u32 4294901760, %v4636_v36 }
 0x675   : > { %25210 = vmatmul.mubr.f32.vlgmr.msra.gmra.mrb[6].mxu1 %v3716_v5 }
 0x676   : > { %25213 = vmatpush3.msra.mxu1 %v3728_v9  ;;  %25214 = vmatprep.mubr.msk.f32.mxu1 %vm28991_vm0, %v32653_v8 }
 0x677   : > { %25217 = vmatprep.subr.mxu1 %v32653_v8 }
 0x67d   : > { %25215 = vmatmul.mubr.f32.vlgmr.msra.gmra.mrb[6].mxu1 %v3717_v7 }
 0x67e   : > { %25218 = vmatpush3.msra.mxu1 %v3651_v6  ;;  %25219 = vmatprep.mubr.msk.f32.mxu1 %vm28991_vm0, %v32653_v8 }
 0x67f   : > { %25222 = vmatprep.subr.mxu1 %v32653_v8 }
 0x685   : > { %25220 = vmatmul.mubr.f32.vlgmr.msra.gmra.mrb[6].mxu1 %v3718_v12 }
 0x686   : > { %25223 = vmatpush3.msra.mxu1 %v3729_v13  ;;  %25224 = vmatprep.mubr.msk.f32.mxu1 %vm28991_vm0, %v32653_v8 }
 0x687   : > { %25227 = vmatprep.subr.mxu1 %v32653_v8 }
 0x68d   : > { %25225 = vmatmul.mubr.f32.vlgmr.msra.gmra.mrb[6].mxu1 %v3716_v5 }
 0x68e   : > { %25228 = vmatpush3.msra.mxu1 %v3651_v6  ;;  %25229 = vmatprep.mubr.msk.f32.mxu1 %vm28991_vm0, %v32653_v8  ;;  %v6032_v6 = vand.u32 4294901760, %v29607_v24 }
 0x68f   : > { %25262 = vmatprep.subr.mxu1 %v32653_v8 }
 0x690   : > { %v6033_v9 = vsub.f32 %v29607_v24, %v6032_v6 }
 0x692   : > { %v6034_v13 = vand.u32 4294901760, %v6033_v9 }
 0x695   : > { %25230 = vmatmul.mubr.f32.vlgmr.msra.gmra.mrb[6].mxu1 %v3716_v5  ;;  %v29609_v5 = vsub.f32 %v2257_v1, %v5954_v4 }
 0x696   : > { %25263 = vmatpush3.msra.mxu1 %v4568_v25  ;;  %25264 = vmatprep.mubr.msk.f32.mxu1 %vm28991_vm0, %v32653_v8 }
 0x697   : > { %25267 = vmatprep.subr.mxu1 %v32653_v8  ;;  %v6039_v7 = vand.u32 4294901760, %v29609_v5 }
 0x699   : > { %25265 = vmatmul.mubr.f32.vlgmr.msra.gmra.mrb[8].mxu1 %v4637_v39  ;;  %v6040_v12 = vsub.f32 %v29609_v5, %v6039_v7  ;;  %v27171_v39 = vpack.c.bf16 %v5954_v4, %v5951_v2 }
 0x69a   : > { %25268 = vmatpush3.msra.mxu1 %v4648_v40  ;;  %25269 = vmatprep.mubr.msk.f32.mxu1 %vm28991_vm0, %v32653_v8  ;;  %v27174_v40 = vpack.c.bf16 %v5960_v21, %v5957_v20 }
 0x69b   : > { %25272 = vmatprep.subr.mxu1 %v32653_v8  ;;  %v6041_v14 = vand.u32 4294901760, %v6040_v12  ;;  %27172 = vmatpush3.bf16.msra.mxu0 %v27171_v39 }
 0x69c   : > { %27173 = vmatprep.subr.bf16.mxu0 %v32657_v3 }
 0x69d   : > { %v27177_v15 = vpack.c.bf16 %v6041_v14, %v6034_v13 }
 0x69f   : > { %27175 = vmatpush3.bf16.msra.mxu0 %v27174_v40 }
 0x6a0   : > { %27182 = vmatprep.subr.bf16.mxu0 %v32657_v3 }
 0x6a1   : > { %25270 = vmatmul.mubr.f32.vlgmr.msra.gmra.mrb[8].mxu1 %v4633_v23 }
 0x6a2   : > { %25273 = vmatpush3.msra.mxu1 %v4645_v30  ;;  %25274 = vmatprep.mubr.msk.f32.mxu1 %vm28991_vm0, %v32653_v8 }
 0x6a3   : > { %25277 = vmatprep.subr.mxu1 %v32653_v8 }
 0x6a9   : > { %25275 = vmatmul.mubr.f32.vlgmr.msra.gmra.mrb[8].mxu1 %v4634_v26 }
 0x6aa   : > { %25278 = vmatpush3.msra.mxu1 %v4568_v25  ;;  %25279 = vmatprep.mubr.msk.f32.mxu1 %vm28991_vm0, %v32653_v8 }
 0x6ab   : > { %25282 = vmatprep.subr.mxu1 %v32653_v8 }
 0x6b1   : > { %25280 = vmatmul.mubr.f32.vlgmr.msra.gmra.mrb[8].mxu1 %v4635_v32 }
 0x6b2   : > { %25283 = vmatpush3.msra.mxu1 %v4646_v33  ;;  %25284 = vmatprep.mubr.msk.f32.mxu1 %vm28991_vm0, %v32653_v8 }
 0x6b3   : > { %25287 = vmatprep.subr.mxu1 %v32653_v8 }
 0x6b9   : > { %25285 = vmatmul.mubr.f32.vlgmr.msra.gmra.mrb[8].mxu1 %v4633_v23 }
 0x6ba   : > { %25288 = vmatpush3.msra.mxu1 %v4568_v25  ;;  %25289 = vmatprep.mubr.msk.f32.mxu1 %vm28991_vm0, %v32653_v8  ;;  %v6046_v25 = vand.u32 4294901760, %v6045_v22 }
 0x6bb   : > { %25322 = vmatprep.subr.mxu1 %v32653_v8 }
 0x6bc   : > { %v6047_v30 = vsub.f32 %v6045_v22, %v6046_v25 }
 0x6be   : > { %v6048_v33 = vand.u32 4294901760, %v6047_v30  ;;  %v6468_v30 = vld [vmem:[%s32597_s8 + $0x8] sm:$0xff] }
 0x6c1   : > { %25290 = vmatmul.mubr.f32.vlgmr.msra.gmra.mrb[8].mxu1 %v4633_v23  ;;  %v6052_v23 = vsub.f32 %v2259_v19, %v5960_v21 }
 0x6c2   : > { %25323 = vmatpush3.msra.mxu1 %v5485_v44  ;;  %25324 = vmatprep.mubr.msk.f32.mxu1 %vm28991_vm0, %v32653_v8 }
 0x6c3   : > { %25327 = vmatprep.subr.mxu1 %v32653_v8  ;;  %v6053_v26 = vand.u32 4294901760, %v6052_v23 }
 0x6c5   : > { %v6054_v32 = vsub.f32 %v6052_v23, %v6053_v26 }
 0x6c7   : > { %v6055_v36 = vand.u32 4294901760, %v6054_v32  ;;  %v6469_v32 = vld [vmem:[%s32597_s8 + $0x10] sm:$0xff] }
 0x6c9   : > { %v27180_v37 = vpack.c.bf16 %v6055_v36, %v6048_v33  ;;  %v6478_v36 = vand.u32 4294901760, %v6468_v30 }
 0x6d3   : > { %v5475_v45 = vpop.xlane.xlu0 %5474 }
 0x6d4   : > { %28852 = vrcp.f32 %v5475_v45  ;;  %v27186_v45 = vpack.c.bf16 %v6052_v23, %v6045_v22 }
 0x6de   : > { %v28853_v47 = vpop.eup %28852 }
 0x6df   : > { %v5477_v50 = vmul.f32 %v28853_v47, %v29523_v63  ;;  %v27198_v47 = vpack.c.bf16 %v6053_v26, %v6046_v25 }
 0x6e1   : > { %v5482_v51 = vsel %vm2264_vm4, %v5477_v50, 0 }
 0x6e2   : > { %v5550_v52 = vand.u32 4294901760, %v5482_v51 }
 0x6e4   : > { %v5551_v54 = vsub.f32 %v5482_v51, %v5550_v52 }
 0x6e6   : > { %v5552_v55 = vand.u32 4294901760, %v5551_v54 }
 0x6e8   : > { %v5553_v57 = vsub.f32 %v5551_v54, %v5552_v55 }
 0x6ea   : > { %v5554_v35 = vand.u32 4294901760, %v5553_v57 }
 0x6ec   : > { %25325 = vmatmul.mubr.f32.vlgmr.msra.gmra.mrb[10].mxu1 %v5554_v35 }
 0x6ed   : > { %25328 = vmatpush3.msra.mxu1 %v5565_v58  ;;  %25329 = vmatprep.mubr.msk.f32.mxu1 %vm28991_vm0, %v32653_v8 }
 0x6ee   : > { %25332 = vmatprep.subr.mxu1 %v32653_v8 }
 0x6f4   : > { %25330 = vmatmul.mubr.f32.vlgmr.msra.gmra.mrb[10].mxu1 %v5550_v52 }
 0x6f5   : > { %25333 = vmatpush3.msra.mxu1 %v5562_v49  ;;  %25334 = vmatprep.mubr.msk.f32.mxu1 %vm28991_vm0, %v32653_v8 }
 0x6f6   : > { %25337 = vmatprep.subr.mxu1 %v32653_v8 }
 0x6fc   : > { %25335 = vmatmul.mubr.f32.vlgmr.msra.gmra.mrb[10].mxu1 %v5551_v54 }
 0x6fd   : > { %25338 = vmatpush3.msra.mxu1 %v5485_v44  ;;  %25339 = vmatprep.mubr.msk.f32.mxu1 %vm28991_vm0, %v32653_v8 }
 0x6fe   : > { %25342 = vmatprep.subr.mxu1 %v32653_v8 }
 0x704   : > { %25340 = vmatmul.mubr.f32.vlgmr.msra.gmra.mrb[10].mxu1 %v5552_v55 }
 0x705   : > { %25343 = vmatpush3.msra.mxu1 %v5563_v53  ;;  %25344 = vmatprep.mubr.msk.f32.mxu1 %vm28991_vm0, %v32653_v8 }
 0x706   : > { %25347 = vmatprep.subr.mxu1 %v32653_v8 }
 0x70c   : > { %25345 = vmatmul.mubr.f32.vlgmr.msra.gmra.mrb[10].mxu1 %v5550_v52 }
 0x70d   : > { %25348 = vmatpush3.msra.mxu1 %v5485_v44  ;;  %25349 = vmatprep.mubr.msk.f32.mxu1 %vm28991_vm0, %v32653_v8 }
 0x70e   : > { %27176 = vmatprep.subr.bf16.mxu1 %v32657_v3 }
 0x714   : > { %25350 = vmatmul.mubr.f32.vlgmr.msra.gmra.mrb[10].mxu1 %v5550_v52 }
 0x715   : > { %25371 = vmatprep.mubr.msk.f32.mxu1 %vm28991_vm0, %v32653_v8  ;;  %27178 = vmatpush3.bf16.msra.mxu1 %v27177_v15 }
 0x716   : > { %27179 = vmatprep.subr.bf16.mxu1 %v32657_v3 }
 0x719   : > { %27181 = vmatpush3.bf16.msra.mxu1 %v27180_v37  ;;  %v6470_v37 = vld [vmem:[%s32597_s8 + $0x18] sm:$0xff] }
 0x71a   : > { %27188 = vmatprep.subr.bf16.mxu1 %v32657_v3 }
 0x73c   : > { %v3175_v59 = vpop.f32.mrb[4].mxu1 }
 0x73d   : > { %v25171_v60 = vpop.f32.mrb[5].mxu1 }
 0x768   : > { %v4092_v62 = vpop.f32.mrb[6].mxu1 }
 0x769   : > { %5931 = vrot.lane.b32.xlu0 %v4092_v62, %s32627_s30  ;;  %v25231_v63 = vpop.f32.mrb[7].mxu1  ;;  %s32629_s30 = smov 24   ;;  %v27195_v62 = vpack.c.bf16 %v6039_v7, %v6032_v6 }
 0x794   : > { %v5009_v16 = vpop.f32.mrb[8].mxu1 }
 0x795   : > { %5935 = vrot.lane.b32.xlu1 %v5009_v16, %s32631_s27  ;;  %v25291_v17 = vpop.f32.mrb[9].mxu1  ;;  %s32798_s27 = smov 96  }
 0x7db   : > { %v5932_v49 = vpop.permute.xlu0 %5931 }
 0x7dc   : > { %v5942_v51 = vsel %vm2264_vm4, %v3175_v59, %v5932_v49  ;;  %v27183_v59 = vpack.c.bf16 %v29609_v5, %v29607_v24 }
 0x7e7   : > { %v5926_v41 = vpop.f32.mrb[10].mxu1 }
 0x7e8   : > { %5939 = vrot.lane.b32.xlu1 %v5926_v41, %s32629_s30  ;;  %v25351_v44 = vpop.f32.mrb[11].mxu1  ;;  %s32750_s30 = sld [smem:[#allocation22_spill]] }
 0x7ee   : > { %s672_s5 = scalar_lea.vmem %s32750_s30, %s29182_s28  ;;  %s32752_s28 = smov 112  }
 0x7ef   : > { %s32799_s30 = smov 120  }
 0x807   : > { %v5936_v50 = vpop.permute.xlu1 %5935 }
 0x808   : > { %v5944_v52 = vsel %vm5943_vm9, %v5942_v51, %v5936_v50 }
 0x85a   : > { %v5940_v53 = vpop.permute.xlu1 %5939 }
 0x85b   : > { %v5946_v54 = vsel %vm5945_vm10, %v5944_v52, %v5940_v53 }
 0x85c   : > { %v5948_v55 = vsel %vm679_vm1, %v5946_v54, 0 }
 0x85d   : > { %v6019_v56 = vand.u32 4294901760, %v5948_v55 }
 0x85f   : > { %v6020_v57 = vsub.f32 %v5948_v55, %v6019_v56  ;;  %25372 = vmatmul.mubr.f32.vlgmr.msra.gmra.mrb[12].mxu1 %v6019_v56 }
 0x860   : > { %27190 = vmatpush3.bf16.msra.mxu1 %v27171_v39  ;;  %25393 = vmatprep.mubr.msk.f32.mxu1 %vm28991_vm0, %v32653_v8 }
 0x861   : > { %27191 = vmatprep.subr.bf16.mxu1 %v32657_v3  ;;  %v6021_v35 = vand.u32 4294901760, %v6020_v57 }
 0x863   : > { %v6022_v58 = vsub.f32 %v6020_v57, %v6021_v35 }
 0x864   : > { %27193 = vmatpush3.bf16.msra.mxu1 %v27174_v40 }
 0x865   : > { %27200 = vmatprep.subr.bf16.mxu1 %v32657_v3  ;;  %v6023_v60 = vand.u32 4294901760, %v6022_v58 }
 0x867   : > { %25394 = vmatmul.mubr.f32.vlgmr.msra.gmra.mrb[14].mxu1 %v6021_v35  ;;  %25361 = vmatmul.mubr.f32.vlgmr.msra.gmra.mrb[10].mxu0 %v6023_v60 }
 0x868   : > { %27184 = vmatpush3.bf16.msra.mxu0 %v27183_v59  ;;  %27202 = vmatpush3.bf16.msra.mxu1 %v27171_v39  ;;  %v6481_v39 = vand.u32 4294901760, %v6469_v32 }
 0x869   : > { %27185 = vmatprep.subr.bf16.mxu0 %v32657_v3  ;;  %27203 = vmatprep.subr.bf16.mxu1 %v32657_v3 }
 0x86a   : > { %25382 = vmatprep.mubr.msk.f32.mxu0 %vm28991_vm0, %v32653_v8  ;;  %25415 = vmatprep.mubr.msk.f32.mxu1 %vm28991_vm0, %v32653_v8 }
 0x86c   : > { %27187 = vmatpush3.bf16.msra.mxu0 %v27186_v45  ;;  %27205 = vmatpush3.bf16.msra.mxu1 %v27174_v40  ;;  %v6484_v40 = vand.u32 4294901760, %v6470_v37  ;;  %v29694_v45 = vsub.f32 %v6468_v30, %v6478_v36 }
 0x86d   : > { %27194 = vmatprep.subr.bf16.mxu0 %v32657_v3  ;;  %27242 = vmatprep.subr.bf16.mxu1 %v32657_v3 }
 0x86e   : > { %v29698_v49 = vsub.f32 %v6470_v37, %v6484_v40  ;;  %v29701_v50 = vpack.c.bf16 %v6484_v40, %v6481_v39  ;;  %v6563_v52 = vand.u32 4294901760, %v29694_v45 }
 0x86f   : > { %25383 = vmatmul.mubr.f32.vlgmr.msra.gmra.mrb[12].mxu0 %v6020_v57  ;;  %25416 = vmatmul.mubr.f32.vlgmr.msra.gmra.mrb[16].mxu1 %v6019_v56 }
 0x870   : > { %27196 = vmatpush3.bf16.msra.mxu0 %v27195_v62  ;;  %25404 = vmatprep.mubr.msk.f32.mxu0 %vm28991_vm0, %v32653_v8  ;;  %v6564_v54 = vsub.f32 %v29694_v45, %v6563_v52  ;;  %v6577_v35 = vand.u32 4294901760, %v29698_v49 }
 0x871   : > { %27197 = vmatprep.subr.bf16.mxu0 %v32657_v3  ;;  %25488 = vmatprep.mubr.msk.f32.mxu1 %vm28991_vm0, %v32653_v8 }
 0x872   : > { %v6578_v60 = vsub.f32 %v29698_v49, %v6577_v35 }
 0x874   : > { %27199 = vmatpush3.bf16.msra.mxu0 %v27198_v47  ;;  %v29696_v47 = vsub.f32 %v6469_v32, %v6481_v39 }
 0x875   : > { %27244 = vmatpush3.bf16.xpose.msra.mxu1 %v29451_v38  ;;  %27206 = vmatprep.subr.bf16.mxu0 %v32657_v3 }
 0x876   : > { %27245 = vmatprep.subr.bf16.mxu1 %v32657_v3  ;;  %v6570_v57 = vand.u32 4294901760, %v29696_v47 }
 0x877   : > { %25405 = vmatmul.mubr.f32.vlgmr.msra.gmra.mrb[14].mxu0 %v6019_v56  ;;  %v6565_v56 = vand.u32 4294901760, %v6564_v54 }
 0x878   : > { %25426 = vmatprep.mubr.msk.f32.mxu0 %vm28991_vm0, %v32653_v8  ;;  %v6571_v59 = vsub.f32 %v29696_v47, %v6570_v57 }
 0x87a   : > { %v6572_v62 = vand.u32 4294901760, %v6571_v59 }
 0x932   : > { %v6116_v63 = vpop.f32.mrb[12].mxu1 }
 0x933   : > { %v25373_v0 = vpop.f32.mrb[13].mxu1 }
 0x93a   : > { %v6273_v1 = vpop.f32.mrb[14].mxu1  ;;  %v6025_v2 = vpop.f32.mrb[10].mxu0 }
 0x93b   : > { %v6117_v4 = vadd.f32 %v6116_v63, %v6025_v2  ;;  %v25395_v24 = vpop.f32.mrb[15].mxu1  ;;  %v25362_v5 = vpop.f32.mrb[11].mxu0  ;;  %v6579_v63 = vand.u32 4294901760, %v6578_v60  ;;  %v27222_v2 = vpack.c.bf16 %v29698_v49, %v29696_v47 }
 0x93c   : > { %v29718_v24 = vpack.c.bf16 %v6577_v35, %v6570_v57 }
 0x93d   : > { %v27216_v0 = vpack.c.bf16 %v6579_v63, %v6572_v62 }
 0x942   : > { %v6196_v6 = vpop.f32.mrb[12].mxu0  ;;  %v6431_v7 = vpop.f32.mrb[16].mxu1 }
 0x943   : > { %v6197_v9 = vadd.f32 %v6196_v6, %v6117_v4  ;;  %v25384_v12 = vpop.f32.mrb[13].mxu0  ;;  %v25417_v13 = vpop.f32.mrb[17].mxu1 }
 0x945   : > { %v6274_v14 = vadd.f32 %v6273_v1, %v6197_v9 }
 0x94a   : > { %v6356_v15 = vpop.f32.mrb[14].mxu0 }
 0x94b   : > { %v6357_v16 = vadd.f32 %v6356_v15, %v6274_v14  ;;  %v25406_v17 = vpop.f32.mrb[15].mxu0 }
 0x94d   : > { %v6432_v18 = vadd.f32 %v6431_v7, %v6357_v16 }
 0x94f   : > { %v29664_v19 = vadd.f32 %v29219_v43, %v6432_v18  ;;  %v6467_v43 = vld [vmem:[%s32597_s8] sm:$0xff] }
 0x950   : > { %v6475_v33 = vand.u32 4294901760, %v6467_v43 }
 0x951   : > { %v6437_v20 = vsel %vm679_vm1, %v29664_v19, 0.0 }
 0x952   : > { %6438 = vadd.xlane.f32.xlu1 %v6437_v20  ;;  %v29690_v41 = vpack.c.bf16 %v6478_v36, %v6475_v33  ;;  %v29692_v44 = vsub.f32 %v6467_v43, %v6475_v33 }
 0x954   : > { %27208 = vmatpush3.bf16.msra.mxu0 %v29690_v41  ;;  %v6556_v51 = vand.u32 4294901760, %v29692_v44  ;;  %v27219_v1 = vpack.c.bf16 %v29694_v45, %v29692_v44  ;;  %v6436_v45 = vld [vmem:[%s32601_s12] sm:$0x3] }
 0x955   : > { %27209 = vmatprep.subr.bf16.mxu0 %v32657_v3  ;;  %v6459_v47 = vrot.slane %v6436_v45, %v29264_v31  ;;  %v6465_v49 = vrot.slane %v6436_v45, %v29271_v34 }
 0x956   : > { %v6557_v53 = vsub.f32 %v29692_v44, %v6556_v51  ;;  %v27231_v4 = vpack.c.bf16 %v6563_v52, %v6556_v51 }
 0x958   : > { %27211 = vmatpush3.bf16.msra.mxu0 %v29701_v50  ;;  %v6558_v55 = vand.u32 4294901760, %v6557_v53 }
 0x959   : > { %27212 = vmatprep.subr.bf16.mxu0 %v32657_v3 }
 0x95a   : > { %v27213_v58 = vpack.c.bf16 %v6565_v56, %v6558_v55 }
 0x963   : > { %7922 = vrot.lane.b32.xlu1 %v29411_v11, %s32640_s21 }
 0x9df   : > { %v6439_v21 = vpop.xlane.xlu1 %6438 }
 0x9e0   : > { %v6440_v22 = vmul.f32 0.03125, %v6439_v21 }
 0x9e2   : > { %v29671_v23 = vsub.f32 %v29664_v19, %v6440_v22 }
 0x9e3   : > { %v7923_v5 = vpop.permute.xlu1 %7922 }
 0x9e4   : > { %v6442_v25 = vmul.f32 %v29671_v23, %v29671_v23  ;;  %v29721_v6 = vsel %vm2264_vm4, %v7923_v5, 0  ;;  %v6460_v51 = vmul.f32 %v6459_v47, %v29671_v23  ;;  %v1183_v5 = vld [vmem:[%s672_s5] sm:$0x1]  ;;  %s32854_s5 = sld [smem:[#allocation27_spill]] }
 0x9e5   : > { %v7933_v7 = vand.u32 4294901760, %v29721_v6  ;;  %vm1184_vm13 = vcmp.gt.f32.partialorder %v1183_v5, 0.5 }
 0x9e6   : > { %v6443_v26 = vsel %vm679_vm1, %v6442_v25, 0.0 }
 0x9e7   : > { %6444 = vadd.xlane.f32.xlu0 %v6443_v26  ;;  %v29727_v13 = vsub.f32 %v29721_v6, %v7933_v7  ;;  %v1185_v6 = vsel %vm1184_vm13, -1e+18, %v32653_v8 }
 0x9e9   : > { %v8012_v16 = vand.u32 4294901760, %v29727_v13 }
 0x9eb   : > { %v8013_v20 = vsub.f32 %v29727_v13, %v8012_v16 }
 0x9ed   : > { %v8014_v30 = vand.u32 4294901760, %v8013_v20 }
 0x9fd   : > { %7924 = vrot.lane.b32.xlu0 %v29409_v10, %s32640_s21 }
 0xa74   : > { %v6445_v9 = vpop.xlane.xlu0 %6444 }
 0xa75   : > { %v6446_v12 = vmul.f32 0.032258064, %v6445_v9 }
 0xa77   : > { %28854 = vrsqrt.f32 %v6446_v12  ;;  %vm6449_vm11 = vcmp.eq.f32.partialorder %v6446_v12, inf  ;;  %v6452_v36 = vand.u32 2147483648, %v6446_v12  ;;  %vm6451_vm12 = vcmp.eq.f32.partialorder %v6446_v12, 0.0 }
 0xa78   : > { %v7925_v14 = vpop.permute.xlu0 %7924 }
 0xa79   : > { %v29730_v15 = vsel %vm2264_vm4, %v7925_v14, 0 }
 0xa7a   : > { %v7936_v17 = vand.u32 4294901760, %v29730_v15 }
 0xa7c   : > { %v29737_v18 = vsub.f32 %v29730_v15, %v7936_v17  ;;  %v27279_v27 = vpack.c.bf16 %v7936_v17, %v7933_v7  ;;  %v29846_v7 = vrot.slane %v1185_v6, %v29264_v31 }
 0xa7e   : > { %v8019_v21 = vand.u32 4294901760, %v29737_v18  ;;  %v27285_v22 = vpack.c.bf16 %v29737_v18, %v29727_v13  ;;  %32751 = vst [vmem:[#allocation17_spill] sm:$0xff] %v29846_v7 }
 0xa80   : > { %v8020_v25 = vsub.f32 %v29737_v18, %v8019_v21  ;;  %v29744_v26 = vpack.c.bf16 %v8019_v21, %v8012_v16 }
 0xa81   : > { %v28855_v43 = vpop.eup %28854 }
 0xa82   : > { %v6448_v32 = vmul.f32 %v28855_v43, %v6446_v12  ;;  %v8021_v33 = vand.u32 4294901760, %v8020_v25 }
 0xa84   : > { %v6450_v37 = vsel %vm6449_vm11, %v6446_v12, %v6448_v32  ;;  %v29746_v39 = vpack.c.bf16 %v8021_v33, %v8014_v30 }
 0xa85   : > { %v6453_v40 = vsel %vm6451_vm12, %v6452_v36, %v6450_v37 }
 0xa86   : > { %v6454_v44 = vadd.f32 1e-06, %v6453_v40 }
 0xa88   : > { %28856 = vrcp.f32 %v6454_v44 }
 0xa92   : > { %v28857_v52 = vpop.eup %28856 }
 0xa93   : > { %v6461_v53 = vmul.f32 %v28857_v52, %v6460_v51 }
 0xa95   : > { %v6466_v54 = vadd.f32 %v6465_v49, %v6461_v53 }
 0xa97   : > { %v6472_v55 = vsel %vm679_vm1, %v6466_v54, 0 }
 0xa98   : > { %v6543_v56 = vand.u32 4294901760, %v6472_v55 }
 0xa9a   : > { %v6544_v57 = vsub.f32 %v6472_v55, %v6543_v56 }
 0xa9c   : > { %v6545_v35 = vand.u32 4294901760, %v6544_v57 }
 0xa9e   : > { %v6546_v59 = vsub.f32 %v6544_v57, %v6545_v35 }
 0xaa0   : > { %v6547_v60 = vand.u32 4294901760, %v6546_v59 }
 0xaa2   : > { %25427 = vmatmul.mubr.f32.vlgmr.msra.gmra.mrb[16].mxu0 %v6547_v60 }
 0xaa3   : > { %27214 = vmatpush3.bf16.msra.mxu0 %v27213_v58  ;;  %25437 = vmatprep.mubr.msk.f32.mxu0 %vm28991_vm0, %v32653_v8 }
 0xaa4   : > { %27215 = vmatprep.subr.bf16.mxu0 %v32657_v3 }
 0xaa7   : > { %27217 = vmatpush3.bf16.msra.mxu0 %v27216_v0 }
 0xaa8   : > { %27218 = vmatprep.subr.bf16.mxu0 %v32657_v3 }
 0xaaa   : > { %25438 = vmatmul.mubr.f32.vlgmr.msra.gmra.mrb[16].mxu0 %v6543_v56 }
 0xaab   : > { %27220 = vmatpush3.bf16.msra.mxu0 %v27219_v1  ;;  %25448 = vmatprep.mubr.msk.f32.mxu0 %vm28991_vm0, %v32653_v8 }
 0xaac   : > { %27221 = vmatprep.subr.bf16.mxu0 %v32657_v3 }
 0xaaf   : > { %27223 = vmatpush3.bf16.msra.mxu0 %v27222_v2 }
 0xab0   : > { %27224 = vmatprep.subr.bf16.mxu0 %v32657_v3 }
 0xab2   : > { %25449 = vmatmul.mubr.f32.vlgmr.msra.gmra.mrb[16].mxu0 %v6544_v57 }
 0xab3   : > { %27226 = vmatpush3.bf16.msra.mxu0 %v29690_v41  ;;  %25459 = vmatprep.mubr.msk.f32.mxu0 %vm28991_vm0, %v32653_v8 }
 0xab4   : > { %27227 = vmatprep.subr.bf16.mxu0 %v32657_v3 }
 0xab7   : > { %27229 = vmatpush3.bf16.msra.mxu0 %v29701_v50 }
 0xab8   : > { %27230 = vmatprep.subr.bf16.mxu0 %v32657_v3 }
 0xaba   : > { %25460 = vmatmul.mubr.f32.vlgmr.msra.gmra.mrb[16].mxu0 %v6545_v35 }
 0xabb   : > { %27232 = vmatpush3.bf16.msra.mxu0 %v27231_v4  ;;  %25470 = vmatprep.mubr.msk.f32.mxu0 %vm28991_vm0, %v32653_v8 }
 0xabc   : > { %27233 = vmatprep.subr.bf16.mxu0 %v32657_v3 }
 0xabf   : > { %27235 = vmatpush3.bf16.msra.mxu0 %v29718_v24 }
 0xac0   : > { %27236 = vmatprep.subr.bf16.mxu0 %v32657_v3 }
 0xac2   : > { %25471 = vmatmul.mubr.f32.vlgmr.msra.gmra.mrb[16].mxu0 %v6543_v56 }
 0xac3   : > { %27238 = vmatpush3.bf16.msra.mxu0 %v29690_v41  ;;  %25481 = vmatprep.mubr.msk.f32.mxu0 %vm28991_vm0, %v32653_v8 }
 0xac4   : > { %27239 = vmatprep.subr.bf16.mxu0 %v32657_v3 }
 0xac7   : > { %27241 = vmatpush3.bf16.msra.mxu0 %v29701_v50 }
 0xac8   : > { %27260 = vmatprep.subr.bf16.mxu0 %v32657_v3 }
 0xaca   : > { %25482 = vmatmul.mubr.f32.vlgmr.msra.gmra.mrb[16].mxu0 %v6543_v56 }
 0xacb   : > { %25530 = vmatprep.mubr.msk.f32.mxu0 %vm28991_vm0, %v32653_v8 }
 0xb9d   : > { %v6955_v23 = vpop.f32.mrb[16].mxu0 }
 0xb9e   : > { %v29782_v58 = vmul.f32 0.35355338, %v6955_v23  ;;  %v25483_v62 = vpop.f32.mrb[17].mxu0 }
 0xba0   : > { %v6971_v41 = vsel %vm2264_vm4, %v29782_v58, 0  ;;  %7920 = vrot.lane.b32.xlu1 %v29782_v58, %s32640_s21 }
 0xba1   : > { %v7046_v63 = vand.u32 4294901760, %v6971_v41 }
 0xba3   : > { %v7047_v0 = vsub.f32 %v6971_v41, %v7046_v63 }
 0xba5   : > { %v7048_v1 = vand.u32 4294901760, %v7047_v0 }
 0xba7   : > { %v7049_v50 = vsub.f32 %v7047_v0, %v7048_v1 }
 0xba9   : > { %v7050_v2 = vand.u32 4294901760, %v7049_v50 }
 0xbab   : > { %25489 = vmatmul.mubr.f32.vlgmr.msra.gmra.mrb[18].mxu1 %v7050_v2 }
 0xbac   : > { %27247 = vmatpush3.bf16.xpose.msra.mxu1 %v29459_v48  ;;  %25495 = vmatprep.mubr.msk.f32.mxu1 %vm28991_vm0, %v32653_v8 }
 0xbad   : > { %27248 = vmatprep.subr.bf16.mxu1 %v32657_v3 }
 0xbb3   : > { %25496 = vmatmul.mubr.f32.vlgmr.msra.gmra.mrb[18].mxu1 %v7046_v63 }
 0xbb4   : > { %27250 = vmatpush3.bf16.xpose.msra.mxu1 %v27249_v42  ;;  %25502 = vmatprep.mubr.msk.f32.mxu1 %vm28991_vm0, %v32653_v8 }
 0xbb5   : > { %27251 = vmatprep.subr.bf16.mxu1 %v32657_v3 }
 0xbbb   : > { %25503 = vmatmul.mubr.f32.vlgmr.msra.gmra.mrb[18].mxu1 %v7047_v0 }
 0xbbc   : > { %27253 = vmatpush3.bf16.xpose.msra.mxu1 %v29451_v38  ;;  %25509 = vmatprep.mubr.msk.f32.mxu1 %vm28991_vm0, %v32653_v8 }
 0xbbd   : > { %27254 = vmatprep.subr.bf16.mxu1 %v32657_v3 }
 0xbc3   : > { %25510 = vmatmul.mubr.f32.vlgmr.msra.gmra.mrb[18].mxu1 %v7048_v1 }
 0xbc4   : > { %27256 = vmatpush3.bf16.xpose.msra.mxu1 %v29457_v46  ;;  %25516 = vmatprep.mubr.msk.f32.mxu1 %vm28991_vm0, %v32653_v8 }
 0xbc5   : > { %27257 = vmatprep.subr.bf16.mxu1 %v32657_v3 }
 0xbcb   : > { %25517 = vmatmul.mubr.f32.vlgmr.msra.gmra.mrb[18].mxu1 %v7046_v63 }
 0xbcc   : > { %27259 = vmatpush3.bf16.xpose.msra.mxu1 %v29451_v38  ;;  %25523 = vmatprep.mubr.msk.f32.mxu1 %vm28991_vm0, %v32653_v8 }
 0xbcd   : > { %27278 = vmatprep.subr.bf16.mxu1 %v32657_v3 }
 0xbd3   : > { %25524 = vmatmul.mubr.f32.vlgmr.msra.gmra.mrb[18].mxu1 %v7046_v63 }
 0xbd4   : > { %27280 = vmatpush3.bf16.xpose.msra.mxu1 %v27279_v27  ;;  %25572 = vmatprep.mubr.msk.f32.mxu1 %vm28991_vm0, %v32653_v8 }
 0xbd5   : > { %27281 = vmatprep.subr.bf16.mxu1 %v32657_v3 }
 0xc12   : > { %v7921_v29 = vpop.permute.xlu1 %7920 }
 0xc13   : > { %v7926_v38 = vsel %vm2264_vm4, %v7921_v29, 0 }
 0xc14   : > { %v7999_v42 = vand.u32 4294901760, %v7926_v38 }
 0xc16   : > { %v8000_v46 = vsub.f32 %v7926_v38, %v7999_v42 }
 0xc18   : > { %v8001_v48 = vand.u32 4294901760, %v8000_v46 }
 0xc1a   : > { %v8002_v4 = vsub.f32 %v8000_v46, %v8001_v48 }
 0xc1c   : > { %v8003_v24 = vand.u32 4294901760, %v8002_v4 }
 0xc1e   : > { %25573 = vmatmul.mubr.f32.vlgmr.msra.gmra.mrb[20].mxu1 %v8003_v24 }
 0xc1f   : > { %27283 = vmatpush3.bf16.xpose.msra.mxu1 %v29746_v39  ;;  %25579 = vmatprep.mubr.msk.f32.mxu1 %vm28991_vm0, %v32653_v8 }
 0xc20   : > { %27284 = vmatprep.subr.bf16.mxu1 %v32657_v3 }
 0xc26   : > { %25580 = vmatmul.mubr.f32.vlgmr.msra.gmra.mrb[20].mxu1 %v7999_v42 }
 0xc27   : > { %27286 = vmatpush3.bf16.xpose.msra.mxu1 %v27285_v22  ;;  %25586 = vmatprep.mubr.msk.f32.mxu1 %vm28991_vm0, %v32653_v8 }
 0xc28   : > { %27287 = vmatprep.subr.bf16.mxu1 %v32657_v3 }
 0xc2e   : > { %25587 = vmatmul.mubr.f32.vlgmr.msra.gmra.mrb[20].mxu1 %v8000_v46 }
 0xc2f   : > { %27289 = vmatpush3.bf16.xpose.msra.mxu1 %v27279_v27  ;;  %25593 = vmatprep.mubr.msk.f32.mxu1 %vm28991_vm0, %v32653_v8 }
 0xc30   : > { %27290 = vmatprep.subr.bf16.mxu1 %v32657_v3 }
 0xc36   : > { %25594 = vmatmul.mubr.f32.vlgmr.msra.gmra.mrb[20].mxu1 %v8001_v48 }
 0xc37   : > { %27292 = vmatpush3.bf16.xpose.msra.mxu1 %v29744_v26  ;;  %25600 = vmatprep.mubr.msk.f32.mxu1 %vm28991_vm0, %v32653_v8 }
 0xc38   : > { %27293 = vmatprep.subr.bf16.mxu1 %v32657_v3 }
 0xc3e   : > { %25601 = vmatmul.mubr.f32.vlgmr.msra.gmra.mrb[20].mxu1 %v7999_v42 }
 0xc3f   : > { %27295 = vmatpush3.bf16.xpose.msra.mxu1 %v27279_v27  ;;  %25607 = vmatprep.mubr.msk.f32.mxu1 %vm28991_vm0, %v32653_v8 }
 0xc40   : > { %27332 = vmatprep.subr.bf16.mxu1 %v32657_v3 }
 0xc46   : > { %25608 = vmatmul.mubr.f32.vlgmr.msra.gmra.mrb[20].mxu1 %v7999_v42 }
 0xc47   : > { %25698 = vmatprep.mubr.msk.f32.mxu1 %vm28991_vm0, %v32653_v8 }
 0xca6   : > { %v7434_v9 = vpop.f32.mrb[18].mxu1 }
 0xca7   : > { %v28363_v12 = vadd.f32 %v7434_v9, %v29846_v7  ;;  %v25525_v13 = vpop.f32.mrb[19].mxu1 }
 0xca9   : > { %v7439_v14 = vsel %vm7438_vm14, %v28363_v12, -inf }
 0xcaa   : > { %7440 = vmax.xlane.f32.xlu1 %v7439_v14 }
 0xd19   : > { %v8387_v15 = vpop.f32.mrb[20].mxu1 }
 0xd1a   : > { %v28364_v16 = vadd.f32 %v8387_v15, %v29846_v7  ;;  %v25609_v17 = vpop.f32.mrb[21].mxu1 }
 0xd1c   : > { %v8391_v18 = vsel %vm7438_vm14, %v28364_v16, -inf }
 0xd1d   : > { %8392 = vmax.xlane.f32.xlu0 %v8391_v18 }
 0xd33   : > { %7452 = vrot.lane.b32.xlu0 %v29409_v10, %s32642_s29 }
 0xd37   : > { %v7441_v20 = vpop.xlane.xlu1 %7440  ;;  %8404 = vrot.lane.b32.xlu0 %v29409_v10, %s32639_s1 }
 0xd38   : > { %v7442_v21 = vsub.f32 %v28363_v12, %v7441_v20 }
 0xd3a   : > { %v7443_v22 = vmul.f32 1.442695, %v7442_v21 }
 0xd3b   : > { %8402 = vrot.lane.b32.xlu0 %v29411_v11, %s32639_s1  ;;  %s32758_s1 = smov 24  }
 0xd3c   : > { %28858 = vpow2.f32 %v7443_v22 }
 0xd3f   : > { %8873 = vrot.lane.b32.xlu0 %v29411_v11, %s32752_s28 }
 0xd43   : > { %8875 = vrot.lane.b32.xlu0 %v29409_v10, %s32752_s28 }
 0xd46   : > { %v28859_v25 = vpop.eup %28858 }
 0xd47   : > { %8871 = vrot.lane.b32.xlu0 %v29782_v58, %s32752_s28  ;;  %v7445_v26 = vsel %vm7438_vm14, %v28859_v25, 0.0 }
 0xd48   : > { %7446 = vadd.xlane.f32.xlu1 %v7445_v26 }
 0xd59   : > { %7450 = vrot.lane.b32.xlu1 %v29411_v11, %s32642_s29  ;;  %s32804_s29 = smov 40  }
 0xdaa   : > { %v8393_v43 = vpop.xlane.xlu0 %8392 }
 0xdab   : > { %v8394_v30 = vsub.f32 %v28364_v16, %v8393_v43 }
 0xdad   : > { %v8395_v32 = vmul.f32 1.442695, %v8394_v30 }
 0xdae   : > { %v7453_v33 = vpop.permute.xlu0 %7452 }
 0xdaf   : > { %28860 = vpow2.f32 %v8395_v32  ;;  %v7459_v62 = vsel %vm7458_vm15, %v7453_v33, 0 }
 0xdb0   : > { %v7465_v63 = vand.u32 4294901760, %v7459_v62 }
 0xdb2   : > { %v8405_v36 = vpop.permute.xlu0 %8404  ;;  %v7547_v2 = vsub.f32 %v7459_v62, %v7465_v63 }
 0xdb3   : > { %v29868_v37 = vsel %vm7458_vm15, %v8405_v36, 0 }
 0xdb4   : > { %v8416_v39 = vand.u32 4294901760, %v29868_v37  ;;  %v7548_v42 = vand.u32 4294901760, %v7547_v2 }
 0xdb6   : > { %v29874_v40 = vsub.f32 %v29868_v37, %v8416_v39  ;;  %v29876_v44 = vpop.permute.xlu0 %8402  ;;  %v7549_v5 = vsub.f32 %v7547_v2, %v7548_v42 }
 0xdb7   : > { %v8413_v45 = vand.u32 4294901760, %v29876_v44 }
 0xdb8   : > { %v8499_v47 = vand.u32 4294901760, %v29874_v40  ;;  %v7550_v13 = vand.u32 4294901760, %v7549_v5 }
 0xdb9   : > { %v29880_v49 = vpop.eup %28860  ;;  %v29883_v51 = vsub.f32 %v29876_v44, %v8413_v45  ;;  %v27297_v18 = vpack.c.bf16 %v8416_v39, %v8413_v45 }
 0xdba   : > { %v8397_v52 = vsel %vm7438_vm14, %v29880_v49, 0.0  ;;  %v8500_v53 = vsub.f32 %v29874_v40, %v8499_v47  ;;  %v8874_v36 = vpop.permute.xlu0 %8873 }
 0xdbb   : > { %v8492_v54 = vand.u32 4294901760, %v29883_v51  ;;  %v27303_v55 = vpack.c.bf16 %v29874_v40, %v29883_v51  ;;  %8398 = vadd.xlane.f32.xlu1 %v8397_v52  ;;  %v8879_v40 = vsel %vm2264_vm4, %v8874_v36, 0 }
 0xdbc   : > { %v8501_v35 = vand.u32 4294901760, %v8500_v53 }
 0xdbd   : > { %v8493_v56 = vsub.f32 %v29883_v51, %v8492_v54  ;;  %v29892_v57 = vpack.c.bf16 %v8499_v47, %v8492_v54 }
 0xdbe   : > { %v8876_v37 = vpop.permute.xlu0 %8875 }
 0xdbf   : > { %v8494_v59 = vand.u32 4294901760, %v8493_v56  ;;  %v8881_v39 = vsel %vm2264_vm4, %v8876_v37, 0 }
 0xdc0   : > { %v8887_v45 = vand.u32 4294901760, %v8881_v39 }
 0xdc1   : > { %v29894_v60 = vpack.c.bf16 %v8501_v35, %v8494_v59 }
 0xdc2   : > { %v8872_v44 = vpop.permute.xlu0 %8871  ;;  %v8969_v52 = vsub.f32 %v8881_v39, %v8887_v45 }
 0xdc3   : > { %v8877_v47 = vsel %vm2264_vm4, %v8872_v44, 0 }
 0xdc4   : > { %v8950_v51 = vand.u32 4294901760, %v8877_v47 }
 0xdc6   : > { %v8951_v54 = vsub.f32 %v8877_v47, %v8950_v51 }
 0xdd5   : > { %v7447_v23 = vpop.xlane.xlu1 %7446 }
 0xdd6   : > { %28862 = vrcp.f32 %v7447_v23 }
 0xdd9   : > { %v7451_v41 = vpop.permute.xlu1 %7450 }
 0xdda   : > { %v7462_v0 = vand.u32 4294901760, %v7451_v41 }
 0xddc   : > { %v27261_v1 = vpack.c.bf16 %v7465_v63, %v7462_v0  ;;  %v7540_v50 = vsub.f32 %v7451_v41, %v7462_v0 }
 0xdde   : > { %27262 = vmatpush3.bf16.msra.mxu0 %v27261_v1  ;;  %v7541_v38 = vand.u32 4294901760, %v7540_v50  ;;  %v27267_v16 = vpack.c.bf16 %v7547_v2, %v7540_v50 }
 0xddf   : > { %27263 = vmatprep.subr.bf16.mxu0 %v32657_v3 }
 0xde0   : > { %v28863_v27 = vpop.eup %28862  ;;  %v7542_v4 = vsub.f32 %v7540_v50, %v7541_v38  ;;  %v27273_v17 = vpack.c.bf16 %v7548_v42, %v7541_v38 }
 0xde1   : > { %v7449_v29 = vmul.f32 %v28863_v27, %v28859_v25 }
 0xde2   : > { %v7543_v9 = vand.u32 4294901760, %v7542_v4 }
 0xde3   : > { %v7456_v46 = vsel %vm7438_vm14, %v7449_v29, 0 }
 0xde4   : > { %v7528_v48 = vand.u32 4294901760, %v7456_v46  ;;  %v27264_v15 = vpack.c.bf16 %v7550_v13, %v7543_v9 }
 0xde6   : > { %v7529_v24 = vsub.f32 %v7456_v46, %v7528_v48 }
 0xde8   : > { %v7530_v6 = vand.u32 4294901760, %v7529_v24 }
 0xdea   : > { %v7531_v12 = vsub.f32 %v7529_v24, %v7530_v6 }
 0xdec   : > { %v7532_v14 = vand.u32 4294901760, %v7531_v12 }
 0xdee   : > { %25531 = vmatmul.mubr.f32.vlgmr.msra.gmra.mrb[18].mxu0 %v7532_v14 }
 0xdef   : > { %27265 = vmatpush3.bf16.msra.mxu0 %v27264_v15  ;;  %25537 = vmatprep.mubr.msk.f32.mxu0 %vm28991_vm0, %v32653_v8 }
 0xdf0   : > { %27266 = vmatprep.subr.bf16.mxu0 %v32657_v3 }
 0xdf6   : > { %25538 = vmatmul.mubr.f32.vlgmr.msra.gmra.mrb[18].mxu0 %v7528_v48 }
 0xdf7   : > { %27268 = vmatpush3.bf16.msra.mxu0 %v27267_v16  ;;  %25544 = vmatprep.mubr.msk.f32.mxu0 %vm28991_vm0, %v32653_v8 }
 0xdf8   : > { %27269 = vmatprep.subr.bf16.mxu0 %v32657_v3 }
 0xdfe   : > { %25545 = vmatmul.mubr.f32.vlgmr.msra.gmra.mrb[18].mxu0 %v7529_v24 }
 0xdff   : > { %27271 = vmatpush3.bf16.msra.mxu0 %v27261_v1  ;;  %25551 = vmatprep.mubr.msk.f32.mxu0 %vm28991_vm0, %v32653_v8 }
 0xe00   : > { %27272 = vmatprep.subr.bf16.mxu0 %v32657_v3 }
 0xe06   : > { %25552 = vmatmul.mubr.f32.vlgmr.msra.gmra.mrb[18].mxu0 %v7530_v6 }
 0xe07   : > { %27274 = vmatpush3.bf16.msra.mxu0 %v27273_v17  ;;  %25558 = vmatprep.mubr.msk.f32.mxu0 %vm28991_vm0, %v32653_v8 }
 0xe08   : > { %27275 = vmatprep.subr.bf16.mxu0 %v32657_v3 }
 0xe0e   : > { %25559 = vmatmul.mubr.f32.vlgmr.msra.gmra.mrb[18].mxu0 %v7528_v48 }
 0xe0f   : > { %27277 = vmatpush3.bf16.msra.mxu0 %v27261_v1  ;;  %25565 = vmatprep.mubr.msk.f32.mxu0 %vm28991_vm0, %v32653_v8 }
 0xe10   : > { %27296 = vmatprep.subr.bf16.mxu0 %v32657_v3 }
 0xe16   : > { %25566 = vmatmul.mubr.f32.vlgmr.msra.gmra.mrb[18].mxu0 %v7528_v48 }
 0xe17   : > { %27298 = vmatpush3.bf16.msra.mxu0 %v27297_v18  ;;  %25614 = vmatprep.mubr.msk.f32.mxu0 %vm28991_vm0, %v32653_v8 }
 0xe18   : > { %27299 = vmatprep.subr.bf16.mxu0 %v32657_v3 }
 0xe48   : > { %v8399_v20 = vpop.xlane.xlu1 %8398 }
 0xe49   : > { %28864 = vrcp.f32 %v8399_v20 }
 0xe53   : > { %v28865_v21 = vpop.eup %28864 }
 0xe54   : > { %v8401_v22 = vmul.f32 %v28865_v21, %v29880_v49  ;;  %v8884_v49 = vand.u32 4294901760, %v8879_v40 }
 0xe56   : > { %v8408_v25 = vsel %vm7438_vm14, %v8401_v22, 0  ;;  %v8962_v53 = vsub.f32 %v8879_v40, %v8884_v49  ;;  %v27315_v35 = vpack.c.bf16 %v8887_v45, %v8884_v49 }
 0xe57   : > { %v8479_v26 = vand.u32 4294901760, %v8408_v25 }
 0xe58   : > { %v8963_v56 = vand.u32 4294901760, %v8962_v53  ;;  %v27321_v1 = vpack.c.bf16 %v8969_v52, %v8962_v53 }
 0xe59   : > { %v8480_v43 = vsub.f32 %v8408_v25, %v8479_v26 }
 0xe5b   : > { %v8481_v30 = vand.u32 4294901760, %v8480_v43 }
 0xe5d   : > { %v8482_v32 = vsub.f32 %v8480_v43, %v8481_v30 }
 0xe5f   : > { %v8483_v33 = vand.u32 4294901760, %v8482_v32 }
 0xe61   : > { %25615 = vmatmul.mubr.f32.vlgmr.msra.gmra.mrb[20].mxu0 %v8483_v33 }
 0xe62   : > { %27301 = vmatpush3.bf16.msra.mxu0 %v29894_v60  ;;  %25621 = vmatprep.mubr.msk.f32.mxu0 %vm28991_vm0, %v32653_v8  ;;  %v8964_v60 = vsub.f32 %v8962_v53, %v8963_v56 }
 0xe63   : > { %27302 = vmatprep.subr.bf16.mxu0 %v32657_v3 }
 0xe64   : > { %v8965_v41 = vand.u32 4294901760, %v8964_v60 }
 0xe69   : > { %25622 = vmatmul.mubr.f32.vlgmr.msra.gmra.mrb[20].mxu0 %v8479_v26 }
 0xe6a   : > { %27304 = vmatpush3.bf16.msra.mxu0 %v27303_v55  ;;  %25628 = vmatprep.mubr.msk.f32.mxu0 %vm28991_vm0, %v32653_v8  ;;  %v8970_v55 = vand.u32 4294901760, %v8969_v52 }
 0xe6b   : > { %27305 = vmatprep.subr.bf16.mxu0 %v32657_v3 }
 0xe6c   : > { %v8971_v59 = vsub.f32 %v8969_v52, %v8970_v55  ;;  %v27327_v50 = vpack.c.bf16 %v8970_v55, %v8963_v56 }
 0xe6e   : > { %v8972_v62 = vand.u32 4294901760, %v8971_v59 }
 0xe70   : > { %v27318_v0 = vpack.c.bf16 %v8972_v62, %v8965_v41 }
 0xe71   : > { %25629 = vmatmul.mubr.f32.vlgmr.msra.gmra.mrb[20].mxu0 %v8480_v43 }
 0xe72   : > { %27307 = vmatpush3.bf16.msra.mxu0 %v27297_v18  ;;  %25635 = vmatprep.mubr.msk.f32.mxu0 %vm28991_vm0, %v32653_v8 }
 0xe73   : > { %27308 = vmatprep.subr.bf16.mxu0 %v32657_v3 }
 0xe79   : > { %25636 = vmatmul.mubr.f32.vlgmr.msra.gmra.mrb[20].mxu0 %v8481_v30 }
 0xe7a   : > { %27310 = vmatpush3.bf16.msra.mxu0 %v29892_v57  ;;  %25642 = vmatprep.mubr.msk.f32.mxu0 %vm28991_vm0, %v32653_v8  ;;  %v8952_v57 = vand.u32 4294901760, %v8951_v54 }
 0xe7b   : > { %27311 = vmatprep.subr.bf16.mxu0 %v32657_v3 }
 0xe7c   : > { %v8953_v23 = vsub.f32 %v8951_v54, %v8952_v57 }
 0xe7e   : > { %v8954_v63 = vand.u32 4294901760, %v8953_v23 }
 0xe81   : > { %25643 = vmatmul.mubr.f32.vlgmr.msra.gmra.mrb[20].mxu0 %v8479_v26 }
 0xe82   : > { %27313 = vmatpush3.bf16.msra.mxu0 %v27297_v18  ;;  %25649 = vmatprep.mubr.msk.f32.mxu0 %vm28991_vm0, %v32653_v8 }
 0xe83   : > { %27314 = vmatprep.subr.bf16.mxu0 %v32657_v3 }
 0xe89   : > { %25650 = vmatmul.mubr.f32.vlgmr.msra.gmra.mrb[20].mxu0 %v8479_v26 }
 0xe8a   : > { %25656 = vmatprep.mubr.msk.f32.mxu0 %vm28991_vm0, %v32653_v8 }
 0xe8b   : > { %27316 = vmatpush3.bf16.xpose.msra.mxu0 %v27315_v35 }
 0xe8c   : > { %27317 = vmatprep.subr.bf16.mxu0 %v32657_v3 }
 0xe92   : > { %25657 = vmatmul.mubr.f32.vlgmr.msra.gmra.mrb[22].mxu0 %v8954_v63 }
 0xe93   : > { %27319 = vmatpush3.bf16.xpose.msra.mxu0 %v27318_v0  ;;  %25663 = vmatprep.mubr.msk.f32.mxu0 %vm28991_vm0, %v32653_v8 }
 0xe94   : > { %27320 = vmatprep.subr.bf16.mxu0 %v32657_v3 }
 0xe9a   : > { %25664 = vmatmul.mubr.f32.vlgmr.msra.gmra.mrb[22].mxu0 %v8950_v51 }
 0xe9b   : > { %27322 = vmatpush3.bf16.xpose.msra.mxu0 %v27321_v1  ;;  %25670 = vmatprep.mubr.msk.f32.mxu0 %vm28991_vm0, %v32653_v8 }
 0xe9c   : > { %27323 = vmatprep.subr.bf16.mxu0 %v32657_v3 }
 0xea2   : > { %25671 = vmatmul.mubr.f32.vlgmr.msra.gmra.mrb[22].mxu0 %v8951_v54 }
 0xea3   : > { %27325 = vmatpush3.bf16.xpose.msra.mxu0 %v27315_v35  ;;  %25677 = vmatprep.mubr.msk.f32.mxu0 %vm28991_vm0, %v32653_v8 }
 0xea4   : > { %27326 = vmatprep.subr.bf16.mxu0 %v32657_v3 }
 0xeaa   : > { %25678 = vmatmul.mubr.f32.vlgmr.msra.gmra.mrb[22].mxu0 %v8952_v57 }
 0xeab   : > { %27328 = vmatpush3.bf16.xpose.msra.mxu0 %v27327_v50  ;;  %25684 = vmatprep.mubr.msk.f32.mxu0 %vm28991_vm0, %v32653_v8 }
 0xeac   : > { %27329 = vmatprep.subr.bf16.mxu0 %v32657_v3 }
 0xeb2   : > { %25685 = vmatmul.mubr.f32.vlgmr.msra.gmra.mrb[22].mxu0 %v8950_v51 }
 0xeb3   : > { %27331 = vmatpush3.bf16.xpose.msra.mxu0 %v27315_v35  ;;  %25691 = vmatprep.mubr.msk.f32.mxu0 %vm28991_vm0, %v32653_v8 }
 0xeb4   : > { %27368 = vmatprep.subr.bf16.mxu0 %v32657_v3 }
 0xeba   : > { %25692 = vmatmul.mubr.f32.vlgmr.msra.gmra.mrb[22].mxu0 %v8950_v51 }
 0xebb   : > { %25782 = vmatprep.mubr.msk.f32.mxu0 %vm28991_vm0, %v32653_v8 }
 0xee9   : > { %v29964_v2 = vpop.f32.mrb[18].mxu0 }
 0xeea   : > { %v25567_v27 = vpop.f32.mrb[19].mxu0 }
 0xf5c   : > { %v29966_v29 = vpop.f32.mrb[20].mxu0 }
 0xf5d   : > { %v25651_v38 = vpop.f32.mrb[21].mxu0 }
 0xf8d   : > { %v9338_v42 = vpop.f32.mrb[22].mxu0 }
 0xf8e   : > { %v28365_v46 = vadd.f32 %v9338_v42, %v29846_v7  ;;  %v25693_v48 = vpop.f32.mrb[23].mxu0 }
 0xf90   : > { %v9342_v4 = vsel %vm7438_vm14, %v28365_v46, -inf }
 0xf91   : > { %9343 = vmax.xlane.f32.xlu0 %v9342_v4 }
 0xfa7   : > { %9353 = vrot.lane.b32.xlu0 %v29411_v11, %s32753_s23 }
0x101e   : > { %v9344_v24 = vpop.xlane.xlu0 %9343 }
0x101f   : > { %v9345_v5 = vsub.f32 %v28365_v46, %v9344_v24 }
0x1021   : > { %v9346_v6 = vmul.f32 1.442695, %v9345_v5 }
0x1022   : > { %v9354_v14 = vpop.permute.xlu0 %9353 }
0x1023   : > { %28866 = vpow2.f32 %v9346_v6  ;;  %v9364_v17 = vand.u32 4294901760, %v9354_v14 }
0x1025   : > { %v9442_v22 = vsub.f32 %v9354_v14, %v9364_v17 }
0x1027   : > { %v9443_v30 = vand.u32 4294901760, %v9442_v22 }
0x1029   : > { %v9444_v37 = vsub.f32 %v9442_v22, %v9443_v30 }
0x102b   : > { %v9445_v45 = vand.u32 4294901760, %v9444_v37 }
0x102d   : > { %v28867_v9 = vpop.eup %28866 }
0x102e   : > { %v9348_v12 = vsel %vm7438_vm14, %v28867_v9, 0.0 }
0x102f   : > { %9349 = vadd.xlane.f32.xlu1 %v9348_v12 }
0x1040   : > { %9355 = vrot.lane.b32.xlu1 %v29409_v10, %s32753_s23 }
0x1044   : > { %9824 = vrot.lane.b32.xlu1 %v29411_v11, %s32754_s3 }
0x1048   : > { %9826 = vrot.lane.b32.xlu1 %v29409_v10, %s32754_s3 }
0x104c   : > { %9822 = vrot.lane.b32.xlu1 %v29782_v58, %s32754_s3 }
0x10bc   : > { %v9350_v13 = vpop.xlane.xlu1 %9349 }
0x10bd   : > { %28868 = vrcp.f32 %v9350_v13 }
0x10c0   : > { %v9356_v15 = vpop.permute.xlu1 %9355 }
0x10c1   : > { %v9361_v16 = vsel %vm7458_vm15, %v9356_v15, 0 }
0x10c2   : > { %v9367_v18 = vand.u32 4294901760, %v9361_v16 }
0x10c4   : > { %v27333_v20 = vpack.c.bf16 %v9367_v18, %v9364_v17  ;;  %v9449_v21 = vsub.f32 %v9361_v16, %v9367_v18  ;;  %v9825_v52 = vpop.permute.xlu1 %9824 }
0x10c5   : > { %v9830_v57 = vsel %vm2264_vm4, %v9825_v52, 0 }
0x10c6   : > { %27334 = vmatpush3.bf16.msra.mxu1 %v27333_v20  ;;  %v9450_v43 = vand.u32 4294901760, %v9449_v21  ;;  %v27339_v51 = vpack.c.bf16 %v9449_v21, %v9442_v22  ;;  %v9835_v60 = vand.u32 4294901760, %v9830_v57 }
0x10c7   : > { %v28869_v25 = vpop.eup %28868  ;;  %27335 = vmatprep.subr.bf16.mxu1 %v32657_v3 }
0x10c8   : > { %v9352_v26 = vmul.f32 %v28869_v25, %v28867_v9  ;;  %v9451_v33 = vsub.f32 %v9449_v21, %v9450_v43  ;;  %v9827_v53 = vpop.permute.xlu1 %9826  ;;  %v27345_v54 = vpack.c.bf16 %v9450_v43, %v9443_v30  ;;  %v9913_v41 = vsub.f32 %v9830_v57, %v9835_v60 }
0x10c9   : > { %v9832_v55 = vsel %vm2264_vm4, %v9827_v53, 0 }
0x10ca   : > { %v9359_v58 = vsel %vm7438_vm14, %v9352_v26, 0  ;;  %v9452_v44 = vand.u32 4294901760, %v9451_v33  ;;  %v9838_v35 = vand.u32 4294901760, %v9832_v55  ;;  %v9914_v1 = vand.u32 4294901760, %v9913_v41 }
0x10cb   : > { %v9430_v32 = vand.u32 4294901760, %v9359_v58 }
0x10cc   : > { %v27336_v49 = vpack.c.bf16 %v9452_v44, %v9445_v45  ;;  %v9823_v56 = vpop.permute.xlu1 %9822  ;;  %v9920_v62 = vsub.f32 %v9832_v55, %v9838_v35  ;;  %v27351_v27 = vpack.c.bf16 %v9838_v35, %v9835_v60  ;;  %v9915_v42 = vsub.f32 %v9913_v41, %v9914_v1 }
0x10cd   : > { %v9431_v36 = vsub.f32 %v9359_v58, %v9430_v32  ;;  %v9828_v59 = vsel %vm2264_vm4, %v9823_v56, 0 }
0x10ce   : > { %v9901_v23 = vand.u32 4294901760, %v9828_v59  ;;  %v9921_v0 = vand.u32 4294901760, %v9920_v62  ;;  %v9916_v4 = vand.u32 4294901760, %v9915_v42  ;;  %v27357_v6 = vpack.c.bf16 %v9920_v62, %v9913_v41  ;;  %v6960_v41 = vld [vmem:[%s32599_s10 + $0x8] sm:$0xff] }
0x10cf   : > { %v9432_v39 = vand.u32 4294901760, %v9431_v36 }
0x10d0   : > { %v9902_v63 = vsub.f32 %v9828_v59, %v9901_v23  ;;  %v9922_v38 = vsub.f32 %v9920_v62, %v9921_v0  ;;  %v27363_v9 = vpack.c.bf16 %v9921_v0, %v9914_v1  ;;  %v6959_v62 = vld [vmem:[%s32599_s10] sm:$0xff]  ;;  %v10795_v0 = vand.u32 4294901760, %v6960_v41 }
0x10d1   : > { %v9433_v40 = vsub.f32 %v9431_v36, %v9432_v39 }
0x10d2   : > { %v9903_v50 = vand.u32 4294901760, %v9902_v63  ;;  %v9923_v48 = vand.u32 4294901760, %v9922_v38 }
0x10d3   : > { %v9434_v47 = vand.u32 4294901760, %v9433_v40 }
0x10d4   : > { %v9904_v46 = vsub.f32 %v9902_v63, %v9903_v50  ;;  %v27354_v5 = vpack.c.bf16 %v9923_v48, %v9916_v4 }
0x10d5   : > { %25699 = vmatmul.mubr.f32.vlgmr.msra.gmra.mrb[22].mxu1 %v9434_v47 }
0x10d6   : > { %27337 = vmatpush3.bf16.msra.mxu1 %v27336_v49  ;;  %25705 = vmatprep.mubr.msk.f32.mxu1 %vm28991_vm0, %v32653_v8  ;;  %v9905_v24 = vand.u32 4294901760, %v9904_v46 }
0x10d7   : > { %27338 = vmatprep.subr.bf16.mxu1 %v32657_v3 }
0x10dd   : > { %25706 = vmatmul.mubr.f32.vlgmr.msra.gmra.mrb[22].mxu1 %v9430_v32 }
0x10de   : > { %27340 = vmatpush3.bf16.msra.mxu1 %v27339_v51  ;;  %25712 = vmatprep.mubr.msk.f32.mxu1 %vm28991_vm0, %v32653_v8 }
0x10df   : > { %27341 = vmatprep.subr.bf16.mxu1 %v32657_v3 }
0x10e5   : > { %25713 = vmatmul.mubr.f32.vlgmr.msra.gmra.mrb[22].mxu1 %v9431_v36 }
0x10e6   : > { %27343 = vmatpush3.bf16.msra.mxu1 %v27333_v20  ;;  %25719 = vmatprep.mubr.msk.f32.mxu1 %vm28991_vm0, %v32653_v8 }
0x10e7   : > { %27344 = vmatprep.subr.bf16.mxu1 %v32657_v3 }
0x10ed   : > { %25720 = vmatmul.mubr.f32.vlgmr.msra.gmra.mrb[22].mxu1 %v9432_v39 }
0x10ee   : > { %27346 = vmatpush3.bf16.msra.mxu1 %v27345_v54  ;;  %25726 = vmatprep.mubr.msk.f32.mxu1 %vm28991_vm0, %v32653_v8 }
0x10ef   : > { %27347 = vmatprep.subr.bf16.mxu1 %v32657_v3 }
0x10f5   : > { %25727 = vmatmul.mubr.f32.vlgmr.msra.gmra.mrb[22].mxu1 %v9430_v32 }
0x10f6   : > { %27349 = vmatpush3.bf16.msra.mxu1 %v27333_v20  ;;  %25733 = vmatprep.mubr.msk.f32.mxu1 %vm28991_vm0, %v32653_v8 }
0x10f7   : > { %27350 = vmatprep.subr.bf16.mxu1 %v32657_v3 }
0x10fd   : > { %25734 = vmatmul.mubr.f32.vlgmr.msra.gmra.mrb[22].mxu1 %v9430_v32 }
0x10fe   : > { %25740 = vmatprep.mubr.msk.f32.mxu1 %vm28991_vm0, %v32653_v8 }
0x10ff   : > { %27352 = vmatpush3.bf16.xpose.msra.mxu1 %v27351_v27 }
0x1100   : > { %27353 = vmatprep.subr.bf16.mxu1 %v32657_v3 }
0x1106   : > { %25741 = vmatmul.mubr.f32.vlgmr.msra.gmra.mrb[24].mxu1 %v9905_v24 }
0x1107   : > { %27355 = vmatpush3.bf16.xpose.msra.mxu1 %v27354_v5  ;;  %25747 = vmatprep.mubr.msk.f32.mxu1 %vm28991_vm0, %v32653_v8  ;;  %v6961_v5 = vld [vmem:[%s32599_s10 + $0x10] sm:$0xff] }
0x1108   : > { %27356 = vmatprep.subr.bf16.mxu1 %v32657_v3 }
0x110e   : > { %25748 = vmatmul.mubr.f32.vlgmr.msra.gmra.mrb[24].mxu1 %v9901_v23 }
0x110f   : > { %27358 = vmatpush3.bf16.xpose.msra.mxu1 %v27357_v6  ;;  %25754 = vmatprep.mubr.msk.f32.mxu1 %vm28991_vm0, %v32653_v8  ;;  %v6962_v6 = vld [vmem:[%s32599_s10 + $0x18] sm:$0xff] }
0x1110   : > { %27359 = vmatprep.subr.bf16.mxu1 %v32657_v3 }
0x1116   : > { %25755 = vmatmul.mubr.f32.vlgmr.msra.gmra.mrb[24].mxu1 %v9902_v63  ;;  %v10792_v63 = vand.u32 4294901760, %v6959_v62 }
0x1117   : > { %27361 = vmatpush3.bf16.xpose.msra.mxu1 %v27351_v27  ;;  %25761 = vmatprep.mubr.msk.f32.mxu1 %vm28991_vm0, %v32653_v8 }
0x1118   : > { %27362 = vmatprep.subr.bf16.mxu1 %v32657_v3  ;;  %v30058_v1 = vsub.f32 %v6959_v62, %v10792_v63 }
0x111e   : > { %25762 = vmatmul.mubr.f32.vlgmr.msra.gmra.mrb[24].mxu1 %v9903_v50  ;;  %v30060_v50 = vsub.f32 %v6960_v41, %v10795_v0 }
0x111f   : > { %27364 = vmatpush3.bf16.xpose.msra.mxu1 %v27363_v9  ;;  %25768 = vmatprep.mubr.msk.f32.mxu1 %vm28991_vm0, %v32653_v8  ;;  %v10798_v9 = vand.u32 4294901760, %v6961_v5 }
0x1120   : > { %27365 = vmatprep.subr.bf16.mxu1 %v32657_v3  ;;  %v10880_v38 = vand.u32 4294901760, %v30060_v50 }
0x1122   : > { %v10881_v46 = vsub.f32 %v30060_v50, %v10880_v38 }
0x1124   : > { %v10882_v4 = vand.u32 4294901760, %v10881_v46 }
0x1126   : > { %25769 = vmatmul.mubr.f32.vlgmr.msra.gmra.mrb[24].mxu1 %v9901_v23 }
0x1127   : > { %27367 = vmatpush3.bf16.xpose.msra.mxu1 %v27351_v27  ;;  %25775 = vmatprep.mubr.msk.f32.mxu1 %vm28991_vm0, %v32653_v8  ;;  %v10873_v27 = vand.u32 4294901760, %v30058_v1 }
0x1128   : > { %27392 = vmatprep.subr.bf16.mxu1 %v32657_v3 }
0x1129   : > { %v10874_v42 = vsub.f32 %v30058_v1, %v10873_v27 }
0x112b   : > { %v10875_v48 = vand.u32 4294901760, %v10874_v42 }
0x112d   : > { %v27393_v24 = vpack.c.bf16 %v10882_v4, %v10875_v48 }
0x112e   : > { %25776 = vmatmul.mubr.f32.vlgmr.msra.gmra.mrb[24].mxu1 %v9901_v23 }
0x112f   : > { %25839 = vmatprep.mubr.msk.f32.mxu1 %vm28991_vm0, %v32653_v8  ;;  %27394 = vmatpush3.bf16.msra.mxu1 %v27393_v24 }
0x1130   : > { %27395 = vmatprep.subr.bf16.mxu1 %v32657_v3 }
0x11d0   : > { %v9818_v12 = vpop.f32.mrb[22].mxu1 }
0x11d1   : > { %v25735_v13 = vpop.f32.mrb[23].mxu1 }
0x11d2   : > { %v10886_v13 = vsub.f32 %v6961_v5, %v10798_v9 }
0x1201   : > { %v10289_v14 = vpop.f32.mrb[24].mxu1 }
0x1202   : > { %v28366_v15 = vadd.f32 %v10289_v14, %v29846_v7  ;;  %v25777_v16 = vpop.f32.mrb[25].mxu1 }
0x1204   : > { %v10293_v17 = vsel %vm7438_vm14, %v28366_v15, -inf }
0x1205   : > { %10294 = vmax.xlane.f32.xlu1 %v10293_v17 }
0x1216   : > { %10306 = vrot.lane.b32.xlu1 %v29409_v10, %s32755_s0 }
0x121a   : > { %10774 = vrot.lane.b32.xlu1 %v29966_v29, %s32756_s25 }
0x121e   : > { %10778 = vrot.lane.b32.xlu1 %v9818_v12, %s32757_s26  ;;  %v10801_v12 = vand.u32 4294901760, %v6962_v6 }
0x1220   : > { %v10893_v14 = vsub.f32 %v6962_v6, %v10801_v12 }
0x1222   : > { %v10894_v16 = vand.u32 4294901760, %v10893_v14 }
0x1292   : > { %v10295_v18 = vpop.xlane.xlu1 %10294 }
0x1293   : > { %v10296_v20 = vsub.f32 %v28366_v15, %v10295_v18  ;;  %v10887_v15 = vand.u32 4294901760, %v10886_v13  ;;  %v10895_v18 = vsub.f32 %v10893_v14, %v10894_v16 }
0x1295   : > { %v10297_v21 = vmul.f32 1.442695, %v10296_v20  ;;  %v10888_v17 = vsub.f32 %v10886_v13, %v10887_v15 }
0x1296   : > { %v10307_v26 = vpop.permute.xlu1 %10306 }
0x1297   : > { %28870 = vpow2.f32 %v10297_v21  ;;  %v10312_v30 = vsel %vm7458_vm15, %v10307_v26, 0  ;;  %v10889_v20 = vand.u32 4294901760, %v10888_v17  ;;  %v10896_v21 = vand.u32 4294901760, %v10895_v18  ;;  %v30138_v18 = vld [vmem:[%s32603_s14 + $0x20] sm:$0xff] }
0x1298   : > { %v10318_v29 = vand.u32 4294901760, %v10312_v30  ;;  %v27390_v26 = vpack.c.bf16 %v10801_v12, %v10798_v9  ;;  %v11309_v12 = vld [vmem:[%s32603_s14 + $0x8] sm:$0xff] }
0x129a   : > { %v10400_v37 = vsub.f32 %v10312_v30, %v10318_v29 }
0x129c   : > { %v10401_v45 = vand.u32 4294901760, %v10400_v37 }
0x129e   : > { %v10402_v53 = vsub.f32 %v10400_v37, %v10401_v45 }
0x12a0   : > { %v10403_v57 = vand.u32 4294901760, %v10402_v53  ;;  %v27411_v53 = vpack.c.bf16 %v10880_v38, %v10873_v27 }
0x12a1   : > { %v28871_v22 = vpop.eup %28870 }
0x12a2   : > { %v10299_v25 = vsel %vm7438_vm14, %v28871_v22, 0.0 }
0x12a3   : > { %10300 = vadd.xlane.f32.xlu0 %v10299_v25  ;;  %v27387_v25 = vpack.c.bf16 %v10795_v0, %v10792_v63 }
0x12b9   : > { %10304 = vrot.lane.b32.xlu0 %v29411_v11, %s32755_s0 }
0x1330   : > { %v10301_v43 = vpop.xlane.xlu0 %10300 }
0x1331   : > { %28872 = vrcp.f32 %v10301_v43 }
0x1334   : > { %v10305_v58 = vpop.permute.xlu0 %10304 }
0x1335   : > { %v10315_v32 = vand.u32 4294901760, %v10305_v58 }
0x1337   : > { %v27369_v33 = vpack.c.bf16 %v10318_v29, %v10315_v32  ;;  %v10393_v36 = vsub.f32 %v10305_v58, %v10315_v32  ;;  %v27402_v58 = vpack.c.bf16 %v10893_v14, %v10886_v13  ;;  %v27414_v29 = vpack.c.bf16 %v10894_v16, %v10887_v15  ;;  %v10775_v32 = vpop.permute.xlu1 %10774  ;;  %v11310_v13 = vld [vmem:[%s32603_s14 + $0x10] sm:$0xff]  ;;  %v11311_v16 = vld [vmem:[%s32603_s14 + $0x18] sm:$0xff] }
0x1338   : > { %v11350_v15 = vand.u32 4294901760, %v11309_v12  ;;  %v11353_v17 = vand.u32 4294901760, %v11310_v13 }
0x1339   : > { %27370 = vmatpush3.bf16.msra.mxu0 %v27369_v33  ;;  %v10394_v40 = vand.u32 4294901760, %v10393_v36  ;;  %v27375_v60 = vpack.c.bf16 %v10400_v37, %v10393_v36 }
0x133a   : > { %27371 = vmatprep.subr.bf16.mxu0 %v32657_v3 }
0x133b   : > { %v28873_v39 = vpop.eup %28872  ;;  %v10395_v51 = vsub.f32 %v10393_v36, %v10394_v40  ;;  %v27381_v23 = vpack.c.bf16 %v10401_v45, %v10394_v40  ;;  %v10785_v36 = vsel %vm2264_vm4, %v29964_v2, %v10775_v32  ;;  %v27399_v2 = vpack.c.bf16 %v30060_v50, %v30058_v1 }
0x133c   : > { %v10303_v44 = vmul.f32 %v28873_v39, %v28871_v22  ;;  %v27396_v22 = vpack.c.bf16 %v10896_v21, %v10889_v20  ;;  %v30143_v20 = vld [vmem:[%s32603_s14 + $0x28] sm:$0xff]  ;;  %v11356_v21 = vand.u32 4294901760, %v11311_v16 }
0x133d   : > { %v10396_v55 = vand.u32 4294901760, %v10395_v51 }
0x133e   : > { %v10310_v47 = vsel %vm7438_vm14, %v10303_v44, 0  ;;  %27397 = vmatpush3.bf16.msra.mxu1 %v27396_v22  ;;  %v11359_v22 = vand.u32 4294901760, %v30138_v18 }
0x133f   : > { %v10381_v49 = vand.u32 4294901760, %v10310_v47  ;;  %v27372_v59 = vpack.c.bf16 %v10403_v57, %v10396_v55  ;;  %27404 = vmatprep.subr.bf16.mxu1 %v32657_v3 }
0x1341   : > { %v10382_v52 = vsub.f32 %v10310_v47, %v10381_v49 }
0x1343   : > { %v10383_v54 = vand.u32 4294901760, %v10382_v52 }
0x1345   : > { %v10384_v56 = vsub.f32 %v10382_v52, %v10383_v54 }
0x1347   : > { %v10385_v35 = vand.u32 4294901760, %v10384_v56 }
0x1349   : > { %25783 = vmatmul.mubr.f32.vlgmr.msra.gmra.mrb[24].mxu0 %v10385_v35 }
0x134a   : > { %27373 = vmatpush3.bf16.msra.mxu0 %v27372_v59  ;;  %25789 = vmatprep.mubr.msk.f32.mxu0 %vm28991_vm0, %v32653_v8 }
0x134b   : > { %27374 = vmatprep.subr.bf16.mxu0 %v32657_v3 }
0x1351   : > { %25790 = vmatmul.mubr.f32.vlgmr.msra.gmra.mrb[24].mxu0 %v10381_v49 }
0x1352   : > { %27376 = vmatpush3.bf16.msra.mxu0 %v27375_v60  ;;  %25796 = vmatprep.mubr.msk.f32.mxu0 %vm28991_vm0, %v32653_v8 }
0x1353   : > { %27377 = vmatprep.subr.bf16.mxu0 %v32657_v3 }
0x1359   : > { %25797 = vmatmul.mubr.f32.vlgmr.msra.gmra.mrb[24].mxu0 %v10382_v52 }
0x135a   : > { %27379 = vmatpush3.bf16.msra.mxu0 %v27369_v33  ;;  %25803 = vmatprep.mubr.msk.f32.mxu0 %vm28991_vm0, %v32653_v8 }
0x135b   : > { %27380 = vmatprep.subr.bf16.mxu0 %v32657_v3 }
0x1361   : > { %25804 = vmatmul.mubr.f32.vlgmr.msra.gmra.mrb[24].mxu0 %v10383_v54 }
0x1362   : > { %27382 = vmatpush3.bf16.msra.mxu0 %v27381_v23  ;;  %25810 = vmatprep.mubr.msk.f32.mxu0 %vm28991_vm0, %v32653_v8 }
0x1363   : > { %27383 = vmatprep.subr.bf16.mxu0 %v32657_v3 }
0x1369   : > { %25811 = vmatmul.mubr.f32.vlgmr.msra.gmra.mrb[24].mxu0 %v10381_v49 }
0x136a   : > { %27385 = vmatpush3.bf16.msra.mxu0 %v27369_v33  ;;  %25817 = vmatprep.mubr.msk.f32.mxu0 %vm28991_vm0, %v32653_v8  ;;  %v10779_v33 = vpop.permute.xlu1 %10778 }
0x136b   : > { %27386 = vmatprep.subr.bf16.mxu0 %v32657_v3  ;;  %v10786_v37 = vsel %vm5943_vm9, %v10785_v36, %v10779_v33  ;;  %v30165_v33 = vsub.f32 %v11311_v16, %v11356_v21  ;;  %v30170_v36 = vsub.f32 %v30138_v18, %v11359_v22 }
0x1371   : > { %25818 = vmatmul.mubr.f32.vlgmr.msra.gmra.mrb[24].mxu0 %v10381_v49 }
0x1372   : > { %25828 = vmatprep.mubr.msk.f32.mxu0 %vm28991_vm0, %v32653_v8  ;;  %27388 = vmatpush3.bf16.msra.mxu0 %v27387_v25 }
0x1373   : > { %27389 = vmatprep.subr.bf16.mxu0 %v32657_v3 }
0x1376   : > { %27391 = vmatpush3.bf16.msra.mxu0 %v27390_v26 }
0x1377   : > { %27398 = vmatprep.subr.bf16.mxu0 %v32657_v3 }
0x1444   : > { %v10769_v43 = vpop.f32.mrb[24].mxu0 }
0x1445   : > { %10782 = vrot.lane.b32.xlu0 %v10769_v43, %s32758_s1  ;;  %v25819_v30 = vpop.f32.mrb[25].mxu0  ;;  %v30155_v43 = vld [vmem:[%s32603_s14 + $0x38] sm:$0xff] }
0x14b7   : > { %v10783_v39 = vpop.permute.xlu0 %10782 }
0x14b8   : > { %v10787_v44 = vsel %vm5945_vm10, %v10786_v37, %v10783_v39 }
0x14b9   : > { %v10789_v40 = vsel %vm679_vm1, %v10787_v44, 0 }
0x14ba   : > { %v10860_v45 = vand.u32 4294901760, %v10789_v40 }
0x14bc   : > { %v10861_v47 = vsub.f32 %v10789_v40, %v10860_v45  ;;  %25840 = vmatmul.mubr.f32.vlgmr.msra.gmra.mrb[26].mxu1 %v10860_v45 }
0x14bd   : > { %27406 = vmatpush3.bf16.msra.mxu1 %v27387_v25  ;;  %25861 = vmatprep.mubr.msk.f32.mxu1 %vm28991_vm0, %v32653_v8 }
0x14be   : > { %27407 = vmatprep.subr.bf16.mxu1 %v32657_v3  ;;  %v10862_v49 = vand.u32 4294901760, %v10861_v47 }
0x14c0   : > { %v10863_v51 = vsub.f32 %v10861_v47, %v10862_v49 }
0x14c1   : > { %27409 = vmatpush3.bf16.msra.mxu1 %v27390_v26 }
0x14c2   : > { %27416 = vmatprep.subr.bf16.mxu1 %v32657_v3  ;;  %v10864_v52 = vand.u32 4294901760, %v10863_v51  ;;  %v11464_v51 = vand.u32 4294901760, %v30170_v36 }
0x14c4   : > { %25862 = vmatmul.mubr.f32.vlgmr.msra.gmra.mrb[28].mxu1 %v10862_v49  ;;  %25829 = vmatmul.mubr.f32.vlgmr.msra.gmra.mrb[26].mxu0 %v10864_v52  ;;  %v11457_v49 = vand.u32 4294901760, %v30165_v33 }
0x14c5   : > { %27400 = vmatpush3.bf16.msra.mxu0 %v27399_v2  ;;  %27418 = vmatpush3.bf16.msra.mxu1 %v27387_v25  ;;  %v11362_v25 = vand.u32 4294901760, %v30143_v20 }
0x14c6   : > { %27401 = vmatprep.subr.bf16.mxu0 %v32657_v3  ;;  %27419 = vmatprep.subr.bf16.mxu1 %v32657_v3 }
0x14c7   : > { %25850 = vmatprep.mubr.msk.f32.mxu0 %vm28991_vm0, %v32653_v8  ;;  %25883 = vmatprep.mubr.msk.f32.mxu1 %vm28991_vm0, %v32653_v8  ;;  %v30175_v37 = vsub.f32 %v30143_v20, %v11362_v25 }
0x14c9   : > { %27403 = vmatpush3.bf16.msra.mxu0 %v27402_v58  ;;  %27421 = vmatpush3.bf16.msra.mxu1 %v27390_v26  ;;  %v30150_v26 = vld [vmem:[%s32603_s14 + $0x30] sm:$0xff]  ;;  %v30159_v58 = vsub.f32 %v11309_v12, %v11350_v15  ;;  %v11471_v2 = vand.u32 4294901760, %v30175_v37 }
0x14ca   : > { %27410 = vmatprep.subr.bf16.mxu0 %v32657_v3  ;;  %27422 = vmatprep.subr.bf16.mxu1 %v32657_v3  ;;  %v11365_v39 = vand.u32 4294901760, %v30150_v26 }
0x14cb   : > { %v11443_v40 = vand.u32 4294901760, %v30159_v58 }
0x14cc   : > { %25851 = vmatmul.mubr.f32.vlgmr.msra.gmra.mrb[28].mxu0 %v10861_v47  ;;  %25884 = vmatmul.mubr.f32.vlgmr.msra.gmra.mrb[30].mxu1 %v10860_v45  ;;  %v11368_v47 = vand.u32 4294901760, %v30155_v43  ;;  %v30190_v52 = vsub.f32 %v30150_v26, %v11365_v39 }
0x14cd   : > { %27412 = vmatpush3.bf16.msra.mxu0 %v27411_v53  ;;  %25872 = vmatprep.mubr.msk.f32.mxu0 %vm28991_vm0, %v32653_v8 }
0x14ce   : > { %27413 = vmatprep.subr.bf16.mxu0 %v32657_v3  ;;  %25910 = vmatprep.mubr.msk.f32.mxu1 %vm28991_vm0, %v32653_v8 }
0x14d1   : > { %27415 = vmatpush3.bf16.msra.mxu0 %v27414_v29  ;;  %v30161_v29 = vsub.f32 %v11310_v13, %v11353_v17 }
0x14d2   : > { %27440 = vmatprep.subr.bf16.mxu0 %v32657_v3 }
0x14d4   : > { %25873 = vmatmul.mubr.f32.vlgmr.msra.gmra.mrb[30].mxu0 %v10860_v45  ;;  %v11450_v45 = vand.u32 4294901760, %v30161_v29 }
0x14d5   : > { %25937 = vmatprep.mubr.msk.f32.mxu0 %vm28991_vm0, %v32653_v8 }
0x158f   : > { %v10957_v54 = vpop.f32.mrb[26].mxu1 }
0x1590   : > { %v25841_v55 = vpop.f32.mrb[27].mxu1 }
0x1591   : > { %v11451_v55 = vsub.f32 %v30161_v29, %v11450_v45 }
0x1597   : > { %v11114_v56 = vpop.f32.mrb[28].mxu1  ;;  %v10866_v57 = vpop.f32.mrb[26].mxu0 }
0x1598   : > { %v10958_v35 = vadd.f32 %v10957_v54, %v10866_v57  ;;  %v25863_v59 = vpop.f32.mrb[29].mxu1  ;;  %v25830_v60 = vpop.f32.mrb[27].mxu0  ;;  %v11444_v54 = vsub.f32 %v30159_v58, %v11443_v40  ;;  %v11458_v57 = vsub.f32 %v30165_v33, %v11457_v49 }
0x1599   : > { %v11472_v59 = vsub.f32 %v30175_v37, %v11471_v2  ;;  %v11478_v60 = vand.u32 4294901760, %v30190_v52 }
0x159f   : > { %v11037_v23 = vpop.f32.mrb[28].mxu0  ;;  %v11272_v62 = vpop.f32.mrb[30].mxu1 }
0x15a0   : > { %v11038_v41 = vadd.f32 %v11037_v23, %v10958_v35  ;;  %v25852_v63 = vpop.f32.mrb[29].mxu0  ;;  %v25885_v0 = vpop.f32.mrb[31].mxu1  ;;  %v11465_v35 = vsub.f32 %v30170_v36, %v11464_v51 }
0x15a1   : > { %v11459_v0 = vand.u32 4294901760, %v11458_v57 }
0x15a2   : > { %v11115_v1 = vadd.f32 %v11114_v56, %v11038_v41  ;;  %v30204_v56 = vsub.f32 %v30155_v43, %v11368_v47  ;;  %v11452_v41 = vand.u32 4294901760, %v11451_v55 }
0x15a4   : > { %v11485_v63 = vand.u32 4294901760, %v30204_v56 }
0x15a7   : > { %v11197_v50 = vpop.f32.mrb[30].mxu0 }
0x15a8   : > { %v11198_v27 = vadd.f32 %v11197_v50, %v11115_v1  ;;  %v25874_v38 = vpop.f32.mrb[31].mxu0  ;;  %v30217_v50 = vpack.c.bf16 %v11356_v21, %v11353_v17 }
0x15a9   : > { %v27444_v38 = vpack.c.bf16 %v11459_v0, %v11452_v41 }
0x15aa   : > { %v11273_v42 = vadd.f32 %v11272_v62, %v11198_v27  ;;  %v11445_v62 = vand.u32 4294901760, %v11444_v54  ;;  %v11466_v27 = vand.u32 4294901760, %v11465_v35  ;;  %v11318_v35 = vld [vmem:[%s32603_s14 + $0x50] sm:$0xff] }
0x15ab   : > { %v11377_v41 = vand.u32 4294901760, %v11318_v35 }
0x15ac   : > { %v30113_v46 = vadd.f32 %v11273_v42, %v29664_v19  ;;  %v11308_v19 = vld [vmem:[%s32603_s14] sm:$0xff]  ;;  %v11473_v42 = vand.u32 4294901760, %v11472_v59  ;;  %v11319_v59 = vld [vmem:[%s32603_s14 + $0x58] sm:$0xff] }
0x15ad   : > { %v11347_v14 = vand.u32 4294901760, %v11308_v19  ;;  %v11380_v0 = vand.u32 4294901760, %v11319_v59 }
0x15ae   : > { %v11278_v48 = vsel %vm679_vm1, %v30113_v46, 0.0 }
0x15af   : > { %11279 = vadd.xlane.f32.xlu1 %v11278_v48  ;;  %v30157_v30 = vsub.f32 %v11308_v19, %v11347_v14  ;;  %v30163_v32 = vpack.c.bf16 %v11350_v15, %v11347_v14  ;;  %v11479_v48 = vsub.f32 %v30190_v52, %v11478_v60  ;;  %v11316_v14 = vld [vmem:[%s32603_s14 + $0x40] sm:$0xff]  ;;  %v11317_v15 = vld [vmem:[%s32603_s14 + $0x48] sm:$0xff] }
0x15b0   : > { %v11371_v16 = vand.u32 4294901760, %v11316_v14  ;;  %v11374_v17 = vand.u32 4294901760, %v11317_v15 }
0x15b1   : > { %v11436_v44 = vand.u32 4294901760, %v30157_v30  ;;  %27424 = vmatpush3.bf16.msra.mxu1 %v30163_v32 }
0x15b2   : > { %27425 = vmatprep.subr.bf16.mxu1 %v32657_v3  ;;  %v30239_v54 = vsub.f32 %v11317_v15, %v11374_v17  ;;  %v11277_v15 = vld [vmem:[%s32602_s13] sm:$0x3]  ;;  %v30292_v26 = vpack.c.bf16 %v11374_v17, %v11371_v16 }
0x15b3   : > { %v11437_v53 = vsub.f32 %v30157_v30, %v11436_v44 }
0x15b5   : > { %v11438_v23 = vand.u32 4294901760, %v11437_v53  ;;  %27427 = vmatpush3.bf16.msra.mxu1 %v30217_v50  ;;  %v30237_v53 = vsub.f32 %v11316_v14, %v11371_v16  ;;  %v30265_v14 = vpack.c.bf16 %v11362_v25, %v11359_v22  ;;  %v11300_v22 = vrot.slane %v11277_v15, %v29264_v31 }
0x15b6   : > { %27428 = vmatprep.subr.bf16.mxu1 %v32657_v3 }
0x15b7   : > { %v27441_v1 = vpack.c.bf16 %v11445_v62, %v11438_v23  ;;  %v11492_v23 = vand.u32 4294901760, %v30237_v53  ;;  %v11499_v62 = vand.u32 4294901760, %v30239_v54  ;;  %v27471_v16 = vpack.c.bf16 %v30239_v54, %v30237_v53 }
0x15b9   : > { %27442 = vmatpush3.bf16.msra.mxu0 %v27441_v1  ;;  %27430 = vmatpush3.bf16.msra.mxu1 %v30265_v14 }
0x15ba   : > { %27443 = vmatprep.subr.bf16.mxu0 %v32657_v3  ;;  %27431 = vmatprep.subr.bf16.mxu1 %v32657_v3 }
0x15bd   : > { %27445 = vmatpush3.bf16.msra.mxu0 %v27444_v38  ;;  %v11493_v38 = vsub.f32 %v30237_v53, %v11492_v23  ;;  %v30427_v53 = vld [vmem:[%s32605_s16 + $0x40] sm:$0xff] }
0x15be   : > { %27446 = vmatprep.subr.bf16.mxu0 %v32657_v3 }
0x163c   : > { %v11280_v4 = vpop.xlane.xlu1 %11279 }
0x163d   : > { %v11281_v24 = vmul.f32 0.03125, %v11280_v4  ;;  %v11486_v4 = vsub.f32 %v30204_v56, %v11485_v63 }
0x163f   : > { %v30118_v5 = vsub.f32 %v30113_v46, %v11281_v24  ;;  %v27447_v24 = vpack.c.bf16 %v11473_v42, %v11466_v27  ;;  %v11500_v42 = vsub.f32 %v30239_v54, %v11499_v62 }
0x1641   : > { %v11283_v6 = vmul.f32 %v30118_v5, %v30118_v5  ;;  %27448 = vmatpush3.bf16.msra.mxu0 %v27447_v24  ;;  %v30257_v24 = vsub.f32 %v11319_v59, %v11380_v0  ;;  %v11306_v59 = vrot.slane %v11277_v15, %v29271_v34 }
0x1642   : > { %27449 = vmatprep.subr.bf16.mxu0 %v32657_v3 }
0x1643   : > { %v11284_v9 = vsel %vm679_vm1, %v11283_v6, 0.0  ;;  %v11480_v6 = vand.u32 4294901760, %v11479_v48  ;;  %v30255_v48 = vsub.f32 %v11318_v35, %v11377_v41  ;;  %v11301_v35 = vmul.f32 %v11300_v22, %v30118_v5 }
0x1644   : > { %11285 = vadd.xlane.f32.xlu0 %v11284_v9  ;;  %v11487_v9 = vand.u32 4294901760, %v11486_v4 }
0x1645   : > { %v27474_v17 = vpack.c.bf16 %v30257_v24, %v30255_v48 }
0x1646   : > { %v27450_v19 = vpack.c.bf16 %v11487_v9, %v11480_v6  ;;  %v11494_v6 = vand.u32 4294901760, %v11493_v38  ;;  %v11501_v9 = vand.u32 4294901760, %v11500_v42 }
0x1648   : > { %27451 = vmatpush3.bf16.msra.mxu0 %v27450_v19  ;;  %v11506_v19 = vand.u32 4294901760, %v30255_v48 }
0x1649   : > { %27452 = vmatprep.subr.bf16.mxu0 %v32657_v3 }
0x16d1   : > { %v11286_v12 = vpop.xlane.xlu0 %11285 }
0x16d2   : > { %v11287_v13 = vmul.f32 0.032258064, %v11286_v12  ;;  %v11513_v12 = vand.u32 4294901760, %v30257_v24 }
0x16d4   : > { %28874 = vrsqrt.f32 %v11287_v13  ;;  %vm11290_vm2 = vcmp.eq.f32.partialorder %v11287_v13, inf  ;;  %v11293_v57 = vand.u32 2147483648, %v11287_v13  ;;  %vm11292_vm3 = vcmp.eq.f32.partialorder %v11287_v13, 0.0 }
0x16de   : > { %v28875_v21 = vpop.eup %28874 }
0x16df   : > { %v11289_v55 = vmul.f32 %v28875_v21, %v11287_v13  ;;  %v11507_v21 = vsub.f32 %v30255_v48, %v11506_v19 }
0x16e1   : > { %v11291_v1 = vsel %vm11290_vm2, %v11287_v13, %v11289_v55  ;;  %v27453_v13 = vpack.c.bf16 %v11501_v9, %v11494_v6  ;;  %v11514_v55 = vsub.f32 %v30257_v24, %v11513_v12  ;;  %v11508_v18 = vand.u32 4294901760, %v11507_v21  ;;  %v30440_v24 = vld [vmem:[%s32605_s16 + $0x48] sm:$0xff] }
0x16e2   : > { %v11294_v27 = vsel %vm11292_vm3, %v11293_v57, %v11291_v1  ;;  %v30284_v57 = vpack.c.bf16 %v11368_v47, %v11365_v39  ;;  %v30296_v39 = vsel %vm1186_vm5, 1.0, %v32653_v8  ;;  %v30300_v47 = vpack.c.bf16 %v11380_v0, %v11377_v41 }
0x16e3   : > { %v11295_v4 = vadd.f32 1e-06, %v11294_v27  ;;  %27454 = vmatpush3.bf16.msra.mxu0 %v27453_v13  ;;  %v11515_v20 = vand.u32 4294901760, %v11514_v55  ;;  %32759 = vst [vmem:[#allocation18_spill] sm:$0xff] %v30296_v39  ;;  %v30312_v41 = vsel %vm1189_vm6, 1.0, %v32653_v8  ;;  %v27459_v21 = vpack.c.bf16 %v30159_v58, %v30157_v30 }
0x16e4   : > { %27455 = vmatprep.subr.bf16.mxu0 %v32657_v3  ;;  %27433 = vmatpush3.bf16.msra.mxu1 %v30284_v57  ;;  %v27501_v30 = vpack.c.bf16 %v11471_v2, %v11464_v51  ;;  %v27504_v58 = vpack.c.bf16 %v11485_v63, %v11478_v60  ;;  %v11940_v51 = vld [vmem:[%s32605_s16 + $0x20] sm:$0xff]  ;;  %v11941_v2 = vld [vmem:[%s32605_s16 + $0x28] sm:$0xff]  ;;  %v11942_v63 = vld [vmem:[%s32605_s16 + $0x30] sm:$0xff] }
0x16e5   : > { %28876 = vrcp.f32 %v11295_v4  ;;  %v27456_v25 = vpack.c.bf16 %v11515_v20, %v11508_v18  ;;  %27434 = vmatprep.subr.bf16.mxu1 %v32657_v3  ;;  %v27462_v18 = vpack.c.bf16 %v30165_v33, %v30161_v29  ;;  %v27507_v29 = vpack.c.bf16 %v11499_v62, %v11492_v23 }
0x16e6   : > { %v27510_v33 = vpack.c.bf16 %v11513_v12, %v11506_v19  ;;  %v11995_v60 = vand.u32 4294901760, %v11941_v2  ;;  %v30445_v19 = vld [vmem:[%s32605_s16 + $0x50] sm:$0xff]  ;;  %v30450_v12 = vld [vmem:[%s32605_s16 + $0x58] sm:$0xff] }
0x16e7   : > { %27457 = vmatpush3.bf16.msra.mxu0 %v27456_v25  ;;  %v27465_v25 = vpack.c.bf16 %v30175_v37, %v30170_v36  ;;  %v11937_v36 = vld [vmem:[%s32605_s16 + $0x8] sm:$0xff]  ;;  %v11938_v37 = vld [vmem:[%s32605_s16 + $0x10] sm:$0xff] }
0x16e8   : > { %27458 = vmatprep.subr.bf16.mxu0 %v32657_v3  ;;  %27436 = vmatpush3.bf16.msra.mxu1 %v30292_v26 }
0x16e9   : > { %27437 = vmatprep.subr.bf16.mxu1 %v32657_v3 }
0x16ec   : > { %27439 = vmatpush3.bf16.msra.mxu1 %v30300_v47 }
0x16ed   : > { %27530 = vmatprep.subr.bf16.mxu1 %v32657_v3 }
0x16ef   : > { %v28877_v1 = vpop.eup %28876 }
0x16f0   : > { %v11302_v27 = vmul.f32 %v28877_v1, %v11301_v35  ;;  %v27495_v1 = vpack.c.bf16 %v11443_v40, %v11436_v44  ;;  %v11983_v40 = vand.u32 4294901760, %v11937_v36 }
0x16f2   : > { %v11307_v43 = vadd.f32 %v11306_v59, %v11302_v27  ;;  %v27468_v59 = vpack.c.bf16 %v30204_v56, %v30190_v52  ;;  %v27498_v27 = vpack.c.bf16 %v11457_v49, %v11450_v45  ;;  %v11939_v45 = vld [vmem:[%s32605_s16 + $0x18] sm:$0xff]  ;;  %v11986_v49 = vand.u32 4294901760, %v11938_v37 }
0x16f3   : > { %v11989_v52 = vand.u32 4294901760, %v11939_v45  ;;  %v11992_v56 = vand.u32 4294901760, %v11940_v51  ;;  %v30433_v62 = vsub.f32 %v11937_v36, %v11983_v40 }
0x16f4   : > { %11330 = vrot.lane.b32.xlu1 %v11307_v43, %s32760_s19  ;;  %v11321_v5 = vrot.slane %v11307_v43, 7  ;;  %v11323_v42 = vrot.slane %v11307_v43, 6  ;;  %v30435_v48 = vsub.f32 %v11938_v37, %v11986_v49  ;;  %v30461_v43 = vld [vmem:[%s32605_s16 + $0x60] sm:$0xff] }
0x16f6   : > { %v11322_v38 = vmul.f32 %v30296_v39, %v11321_v5  ;;  %v11324_v0 = vmul.f32 %v30312_v41, %v11323_v42  ;;  %v30465_v5 = vsub.f32 %v11941_v2, %v11995_v60  ;;  %v12010_v42 = vand.u32 4294901760, %v30445_v19 }
0x16f8   : > { %11326 = vrot.lane.b32.xlu0 %v11322_v38, %s32647_s4 }
0x1766   : > { %v11331_v6 = vpop.permute.xlu1 %11330 }
0x176a   : > { %v11327_v4 = vpop.permute.xlu0 %11326 }
0x176b   : > { %v11333_v9 = vsel %vm679_vm1, %v11324_v0, %v11327_v4  ;;  %v12013_v0 = vand.u32 4294901760, %v30450_v12  ;;  %v11949_v4 = vld [vmem:[%s32605_s16 + $0x68] sm:$0xff] }
0x176c   : > { %v11335_v13 = vsel %vm11334_vm7, %v11333_v9, %v11331_v6  ;;  %v30479_v6 = vld [vmem:[%s32605_s16 + $0x70] sm:$0xff] }
0x176d   : > { %v11344_v15 = vsel %vm11342_vm8, %v11335_v13, 0 }
0x176e   : > { %v30320_v28 = vand.u32 4294901760, %v11344_v15 }
0x1770   : > { %v11424_v55 = vsub.f32 %v11344_v15, %v30320_v28  ;;  %25938 = vmatmul.mubr.f32.vlgmr.msra.gmra.mrb[32].mxu0 %v30320_v28 }
0x1771   : > { %27460 = vmatpush3.bf16.msra.mxu0 %v27459_v21  ;;  %25964 = vmatprep.mubr.msk.f32.mxu0 %vm28991_vm0, %v32653_v8  ;;  %v12016_v21 = vand.u32 4294901760, %v30461_v43 }
0x1772   : > { %27461 = vmatprep.subr.bf16.mxu0 %v32657_v3  ;;  %v11425_v20 = vand.u32 4294901760, %v11424_v55 }
0x1774   : > { %v11426_v22 = vsub.f32 %v11424_v55, %v11425_v20 }
0x1775   : > { %27463 = vmatpush3.bf16.msra.mxu0 %v27462_v18  ;;  %v30497_v18 = vpack.c.bf16 %v11995_v60, %v11992_v56 }
0x1776   : > { %27464 = vmatprep.subr.bf16.mxu0 %v32657_v3  ;;  %v11427_v35 = vand.u32 4294901760, %v11426_v22  ;;  %v30503_v22 = vsub.f32 %v30445_v19, %v12010_v42 }
0x1778   : > { %25911 = vmatmul.mubr.f32.vlgmr.msra.gmra.mrb[32].mxu1 %v11427_v35  ;;  %v30511_v35 = vld [vmem:[%s32605_s16 + $0x90] sm:$0xff] }
0x1779   : > { %27466 = vmatpush3.bf16.msra.mxu0 %v27465_v25  ;;  %v11953_v25 = vld [vmem:[%s32605_s16 + $0x88] sm:$0xff] }
0x177a   : > { %27467 = vmatprep.subr.bf16.mxu0 %v32657_v3 }
0x177d   : > { %27469 = vmatpush3.bf16.msra.mxu0 %v27468_v59  ;;  %v30516_v59 = vsub.f32 %v30450_v12, %v12013_v0 }
0x177e   : > { %27470 = vmatprep.subr.bf16.mxu0 %v32657_v3 }
0x1781   : > { %27472 = vmatpush3.bf16.msra.mxu0 %v27471_v16  ;;  %v12004_v16 = vand.u32 4294901760, %v30427_v53 }
0x1782   : > { %27473 = vmatprep.subr.bf16.mxu0 %v32657_v3 }
0x1783   : > { %v30486_v15 = vsub.f32 %v30427_v53, %v12004_v16 }
0x1785   : > { %27475 = vmatpush3.bf16.msra.mxu0 %v27474_v17  ;;  %v12007_v17 = vand.u32 4294901760, %v30440_v24 }
0x1786   : > { %27476 = vmatprep.subr.bf16.mxu0 %v32657_v3 }
0x1787   : > { %v30564_v12 = vpack.c.bf16 %v12007_v17, %v12004_v16 }
0x1788   : > { %25965 = vmatmul.mubr.f32.vlgmr.msra.gmra.mrb[32].mxu0 %v11424_v55  ;;  %v30495_v55 = vld [vmem:[%s32605_s16 + $0x80] sm:$0xff] }
0x1789   : > { %27478 = vmatpush3.bf16.msra.mxu0 %v30163_v32  ;;  %25991 = vmatprep.mubr.msk.f32.mxu0 %vm28991_vm0, %v32653_v8 }
0x178a   : > { %27479 = vmatprep.subr.bf16.mxu0 %v32657_v3 }
0x178d   : > { %27481 = vmatpush3.bf16.msra.mxu0 %v30217_v50 }
0x178e   : > { %27482 = vmatprep.subr.bf16.mxu0 %v32657_v3 }
0x1791   : > { %27484 = vmatpush3.bf16.msra.mxu0 %v30265_v14 }
0x1792   : > { %27485 = vmatprep.subr.bf16.mxu0 %v32657_v3 }
0x1795   : > { %27487 = vmatpush3.bf16.msra.mxu0 %v30284_v57 }
0x1796   : > { %27488 = vmatprep.subr.bf16.mxu0 %v32657_v3 }
0x1799   : > { %27490 = vmatpush3.bf16.msra.mxu0 %v30292_v26 }
0x179a   : > { %27491 = vmatprep.subr.bf16.mxu0 %v32657_v3 }
0x179d   : > { %27493 = vmatpush3.bf16.msra.mxu0 %v30300_v47 }
0x179e   : > { %27494 = vmatprep.subr.bf16.mxu0 %v32657_v3 }
0x17a0   : > { %25992 = vmatmul.mubr.f32.vlgmr.msra.gmra.mrb[32].mxu0 %v11425_v20  ;;  %v30500_v20 = vsub.f32 %v30440_v24, %v12007_v17 }
0x17a1   : > { %27496 = vmatpush3.bf16.msra.mxu0 %v27495_v1  ;;  %26018 = vmatprep.mubr.msk.f32.mxu0 %vm28991_vm0, %v32653_v8  ;;  %v12019_v1 = vand.u32 4294901760, %v11949_v4 }
0x17a2   : > { %27497 = vmatprep.subr.bf16.mxu0 %v32657_v3 }
0x17a3   : > { %v30531_v36 = vsub.f32 %v11949_v4, %v12019_v1  ;;  %v30576_v16 = vpack.c.bf16 %v12019_v1, %v12016_v21 }
0x17a5   : > { %27499 = vmatpush3.bf16.msra.mxu0 %v27498_v27  ;;  %v30519_v27 = vsub.f32 %v30461_v43, %v12016_v21  ;;  %v30570_v43 = vpack.c.bf16 %v12013_v0, %v12010_v42  ;;  %v11959_v21 = vld [vmem:[%s32605_s16 + $0xb8] sm:$0xff] }
0x17a6   : > { %27500 = vmatprep.subr.bf16.mxu0 %v32657_v3 }
0x17a9   : > { %27502 = vmatpush3.bf16.msra.mxu0 %v27501_v30  ;;  %v12022_v30 = vand.u32 4294901760, %v30479_v6 }
0x17aa   : > { %27503 = vmatprep.subr.bf16.mxu0 %v32657_v3 }
0x17ab   : > { %v30534_v37 = vsub.f32 %v30479_v6, %v12022_v30  ;;  %v11958_v6 = vld [vmem:[%s32605_s16 + $0xb0] sm:$0xff] }
0x17ad   : > { %27505 = vmatpush3.bf16.msra.mxu0 %v27504_v58  ;;  %v11955_v58 = vld [vmem:[%s32605_s16 + $0x98] sm:$0xff] }
0x17ae   : > { %27506 = vmatprep.subr.bf16.mxu0 %v32657_v3  ;;  %v12037_v2 = vand.u32 4294901760, %v11955_v58 }
0x17b1   : > { %27508 = vmatpush3.bf16.msra.mxu0 %v27507_v29 }
0x17b2   : > { %27509 = vmatprep.subr.bf16.mxu0 %v32657_v3 }
0x17b5   : > { %27511 = vmatpush3.bf16.msra.mxu0 %v27510_v33  ;;  %v12028_v33 = vand.u32 4294901760, %v30495_v55 }
0x17b6   : > { %27512 = vmatprep.subr.bf16.mxu0 %v32657_v3 }
0x17b8   : > { %26019 = vmatmul.mubr.f32.vlgmr.msra.gmra.mrb[32].mxu0 %v30320_v28 }
0x17b9   : > { %27514 = vmatpush3.bf16.msra.mxu0 %v30163_v32  ;;  %26045 = vmatprep.mubr.msk.f32.mxu0 %vm28991_vm0, %v32653_v8  ;;  %v11936_v32 = vld [vmem:[%s32605_s16] sm:$0xff] }
0x17ba   : > { %27515 = vmatprep.subr.bf16.mxu0 %v32657_v3  ;;  %v11980_v44 = vand.u32 4294901760, %v11936_v32 }
0x17bc   : > { %v30429_v54 = vpack.c.bf16 %v11983_v40, %v11980_v44  ;;  %v30431_v23 = vsub.f32 %v11936_v32, %v11980_v44  ;;  %v11956_v32 = vld [vmem:[%s32605_s16 + $0xa0] sm:$0xff]  ;;  %v12031_v44 = vand.u32 4294901760, %v11953_v25  ;;  %v12034_v40 = vand.u32 4294901760, %v30511_v35 }
0x17bd   : > { %27517 = vmatpush3.bf16.msra.mxu0 %v30217_v50  ;;  %v11943_v50 = vld [vmem:[%s32605_s16 + $0x38] sm:$0xff] }
0x17be   : > { %27518 = vmatprep.subr.bf16.mxu0 %v32657_v3  ;;  %27532 = vmatpush1.bf16.msra.mxu1 %v30429_v54  ;;  %v12001_v38 = vand.u32 4294901760, %v11943_v50  ;;  %v30552_v60 = vsub.f32 %v30511_v35, %v12034_v40  ;;  %v30588_v42 = vpack.c.bf16 %v12031_v44, %v12028_v33  ;;  %v30594_v0 = vpack.c.bf16 %v12037_v2, %v12034_v40 }
0x17bf   : > { %27533 = vmatprep.subr.bf16.mxu1 %v32657_v3 }
0x17c0   : > { %v30483_v13 = vsub.f32 %v11943_v50, %v12001_v38  ;;  %v30556_v50 = vsub.f32 %v11955_v58, %v12037_v2  ;;  %v32652_v58 = vand.u32 4294901760, %v30431_v23 }
0x17c1   : > { %27520 = vmatpush3.bf16.msra.mxu0 %v30265_v14  ;;  %v30452_v14 = vpack.c.bf16 %v11989_v52, %v11986_v49 }
0x17c2   : > { %27521 = vmatprep.subr.bf16.mxu0 %v32657_v3 }
0x17c3   : > { %27535 = vmatpush1.bf16.msra.mxu1 %v30452_v14 }
0x17c4   : > { %27536 = vmatprep.subr.bf16.mxu1 %v32657_v3 }
0x17c5   : > { %27523 = vmatpush3.bf16.msra.mxu0 %v30284_v57  ;;  %v30454_v57 = vsub.f32 %v11939_v45, %v11989_v52  ;;  %v11957_v45 = vld [vmem:[%s32605_s16 + $0xa8] sm:$0xff] }
0x17c6   : > { %27524 = vmatprep.subr.bf16.mxu0 %v32657_v3  ;;  %v12043_v53 = vand.u32 4294901760, %v11957_v45 }
0x17c7   : > { %27538 = vmatpush1.bf16.msra.mxu1 %v30497_v18 }
0x17c8   : > { %27539 = vmatprep.subr.bf16.mxu1 %v32657_v3  ;;  %v30560_v19 = vsub.f32 %v11957_v45, %v12043_v53 }
0x17c9   : > { %27526 = vmatpush3.bf16.msra.mxu0 %v30292_v26  ;;  %v30456_v26 = vsub.f32 %v11940_v51, %v11992_v56  ;;  %v30543_v51 = vsub.f32 %v30495_v55, %v12028_v33  ;;  %v30549_v56 = vsub.f32 %v11953_v25, %v12031_v44  ;;  %v12049_v55 = vand.u32 4294901760, %v11959_v21  ;;  %v23904_v25 = vld [vmem:[%s32604_s15] ss:$0 sm:$0xff] }
0x17ca   : > { %27527 = vmatprep.subr.bf16.mxu0 %v32657_v3  ;;  %v12087_v44 = vsub.f32 %v30431_v23, %v32652_v58 }
0x17cd   : > { %27529 = vmatpush3.bf16.msra.mxu0 %v30300_v47  ;;  %v11998_v47 = vand.u32 4294901760, %v11942_v63 }
0x17ce   : > { %27638 = vmatprep.subr.bf16.mxu0 %v32657_v3 }
0x17cf   : > { %v30481_v9 = vsub.f32 %v11942_v63, %v11998_v47  ;;  %v30547_v52 = vpack.c.bf16 %v12001_v38, %v11998_v47  ;;  %v12040_v63 = vand.u32 4294901760, %v11956_v32 }
0x17d0   : > { %26046 = vmatmul.mubr.f32.vlgmr.msra.gmra.mrb[32].mxu0 %v30320_v28  ;;  %v11951_v28 = vld [vmem:[%s32605_s16 + $0x78] sm:$0xff] }
0x17d1   : > { %27640 = vmatpush1.bf16.msra.mxu0 %v30429_v54  ;;  %v12025_v29 = vand.u32 4294901760, %v11951_v28  ;;  %v30558_v24 = vsub.f32 %v11956_v32, %v12040_v63  ;;  %27541 = vmatpush1.bf16.msra.mxu1 %v30547_v52  ;;  %v30600_v4 = vpack.c.bf16 %v12043_v53, %v12040_v63  ;;  %v30635_v63 = vsub.f32 %v11959_v21, %v12049_v55 }
0x17d2   : > { %27641 = vmatprep.subr.bf16.mxu0 %v32657_v3  ;;  %27542 = vmatprep.subr.bf16.mxu1 %v32657_v3  ;;  %v12088_v53 = vand.u32 4294901760, %v12087_v44 }
0x17d3   : > { %v30540_v49 = vsub.f32 %v11951_v28, %v12025_v29  ;;  %v30582_v17 = vpack.c.bf16 %v12025_v29, %v12022_v30  ;;  %v12046_v28 = vand.u32 4294901760, %v11958_v6  ;;  %v32649_v29 = vand.u32 4294901760, %v30433_v62 }
0x17d5   : > { %27643 = vmatpush1.bf16.msra.mxu0 %v30452_v14  ;;  %27544 = vmatpush1.bf16.msra.mxu1 %v30564_v12  ;;  %v30617_v35 = vpack.c.bf16 %v12049_v55, %v12046_v28  ;;  %v12094_v40 = vsub.f32 %v30433_v62, %v32649_v29  ;;  %v30633_v2 = vsub.f32 %v11958_v6, %v12046_v28 }
0x17d6   : > { %27644 = vmatprep.subr.bf16.mxu0 %v32657_v3  ;;  %27545 = vmatprep.subr.bf16.mxu1 %v32657_v3 }
0x17d9   : > { %27646 = vmatpush1.bf16.msra.mxu0 %v30497_v18  ;;  %27547 = vmatpush1.bf16.msra.mxu1 %v30570_v43 }
0x17da   : > { %27647 = vmatprep.subr.bf16.mxu0 %v32657_v3  ;;  %27548 = vmatprep.subr.bf16.mxu1 %v32657_v3 }
0x17dd   : > { %27649 = vmatpush1.bf16.msra.mxu0 %v30547_v52  ;;  %27550 = vmatpush1.bf16.msra.mxu1 %v30576_v16 }
0x17de   : > { %27650 = vmatprep.subr.bf16.mxu0 %v32657_v3  ;;  %27551 = vmatprep.subr.bf16.mxu1 %v32657_v3 }
0x17e1   : > { %27652 = vmatpush1.bf16.msra.mxu0 %v30564_v12  ;;  %27553 = vmatpush1.bf16.msra.mxu1 %v30582_v17 }
0x17e2   : > { %27653 = vmatprep.subr.bf16.mxu0 %v32657_v3  ;;  %27554 = vmatprep.subr.bf16.mxu1 %v32657_v3 }
0x17e5   : > { %27655 = vmatpush1.bf16.msra.mxu0 %v30570_v43  ;;  %27556 = vmatpush1.bf16.msra.mxu1 %v30588_v42 }
0x17e6   : > { %27656 = vmatprep.subr.bf16.mxu0 %v32657_v3  ;;  %27557 = vmatprep.subr.bf16.mxu1 %v32657_v3 }
0x17e9   : > { %27658 = vmatpush1.bf16.msra.mxu0 %v30576_v16  ;;  %27559 = vmatpush1.bf16.msra.mxu1 %v30594_v0 }
0x17ea   : > { %27659 = vmatprep.subr.bf16.mxu0 %v32657_v3  ;;  %27560 = vmatprep.subr.bf16.mxu1 %v32657_v3 }
0x17ed   : > { %27661 = vmatpush1.bf16.msra.mxu0 %v30582_v17  ;;  %27562 = vmatpush1.bf16.msra.mxu1 %v30600_v4 }
0x17ee   : > { %27662 = vmatprep.subr.bf16.mxu0 %v32657_v3  ;;  %27563 = vmatprep.subr.bf16.mxu1 %v32657_v3 }
0x17f1   : > { %27664 = vmatpush1.bf16.msra.mxu0 %v30588_v42  ;;  %27565 = vmatpush1.bf16.msra.mxu1 %v30617_v35 }
0x17f2   : > { %27665 = vmatprep.subr.bf16.mxu0 %v32657_v3  ;;  %27566 = vmatprep.subr.bf16.mxu1 %v32657_v3 }
0x17f5   : > { %27667 = vmatpush1.bf16.msra.mxu0 %v30594_v0 }
0x17f6   : > { %27668 = vmatprep.subr.bf16.mxu0 %v32657_v3 }
0x17f9   : > { %27670 = vmatpush1.bf16.msra.mxu0 %v30600_v4 }
0x17fa   : > { %27671 = vmatprep.subr.bf16.mxu0 %v32657_v3 }
0x17fd   : > { %27673 = vmatpush1.bf16.msra.mxu0 %v30617_v35 }
0x17fe   : > { %27710 = vmatprep.subr.bf16.mxu0 %v32657_v3  ;;  %v32663_v3 = vand.u32 4294901760, %v30500_v20 }
0x184b   : > { %v11429_v47 = vpop.f32.mrb[32].mxu1 }
0x184c   : > { %v25912_v38 = vpop.f32.mrb[33].mxu1  ;;  %v11430_v1 = vadd.f32 %v23904_v25, %v11429_v47  ;;  %v12095_v47 = vand.u32 4294901760, %v12094_v40  ;;  %v32651_v25 = vand.u32 4294901760, %v30454_v57  ;;  %v32655_v40 = vand.u32 4294901760, %v30456_v26 }
0x184d   : > { %v32650_v38 = vand.u32 4294901760, %v30435_v48 }
0x184e   : > { %v30644_v29 = vpack.c.bf16 %v12095_v47, %v12088_v53  ;;  %v12108_v21 = vsub.f32 %v30454_v57, %v32651_v25  ;;  %v32656_v53 = vand.u32 4294901760, %v30465_v5  ;;  %v12115_v25 = vsub.f32 %v30456_v26, %v32655_v40 }
0x184f   : > { %v12101_v6 = vsub.f32 %v30435_v48, %v32650_v38 }
0x1850   : > { %v12109_v44 = vand.u32 4294901760, %v12108_v21  ;;  %v32665_v21 = vand.u32 4294901760, %v30481_v9 }
0x18a3   : > { %v11931_v30 = vpop.f32.mrb[32].mxu0 }
0x18a4   : > { %v28368_v33 = vadd.f32 %v11931_v30, %v11430_v1  ;;  %v26047_v32 = vpop.f32.mrb[33].mxu0 }
0x18a6   : > { %v30631_v45 = vmax.f32 %v28368_v33, 0.0  ;;  %v12102_v33 = vand.u32 4294901760, %v12101_v6  ;;  %v12116_v6 = vand.u32 4294901760, %v12115_v25  ;;  %v32662_v25 = vand.u32 4294901760, %v30486_v15 }
0x18a8   : > { %v11961_v1 = vrot.slane %v30631_v45, 7  ;;  %v11977_v30 = vsel %vm11334_vm7, %v30631_v45, 0  ;;  %v30660_v38 = vpack.c.bf16 %v12109_v44, %v12102_v33  ;;  %v12129_v33 = vsub.f32 %v30481_v9, %v32665_v21 }
0x18a9   : > { %v30642_v32 = vand.u32 4294901760, %v11977_v30 }
0x18aa   : > { %v11962_v28 = vmul.f32 %v30296_v39, %v11961_v1  ;;  %v12122_v1 = vsub.f32 %v30465_v5, %v32656_v53  ;;  %v12130_v53 = vand.u32 4294901760, %v12129_v33 }
0x18ab   : > { %v30654_v55 = vsub.f32 %v11977_v30, %v30642_v32 }
0x18ac   : > { %11966 = vrot.lane.b32.xlu1 %v11962_v28, %s32760_s19  ;;  %v32661_v28 = vand.u32 4294901760, %v30483_v13  ;;  %v12123_v58 = vand.u32 4294901760, %v12122_v1  ;;  %v12143_v1 = vsub.f32 %v30486_v15, %v32662_v25 }
0x18ad   : > { %v12069_v47 = vand.u32 4294901760, %v30654_v55 }
0x18ae   : > { %v12136_v44 = vsub.f32 %v30483_v13, %v32661_v28  ;;  %v30677_v40 = vpack.c.bf16 %v12123_v58, %v12116_v6  ;;  %v12144_v28 = vand.u32 4294901760, %v12143_v1  ;;  %v32666_v6 = vand.u32 4294901760, %v30516_v59 }
0x18af   : > { %12488 = vmatprep.mubr.f32.mxu0 %v12069_v47  ;;  %v12070_v30 = vsub.f32 %v30654_v55, %v12069_v47  ;;  %v32670_v1 = vand.u32 4294901760, %v30531_v36 }
0x18b0   : > { %v12137_v47 = vand.u32 4294901760, %v12136_v44  ;;  %v12164_v44 = vsub.f32 %v30516_v59, %v32666_v6  ;;  %v32671_v6 = vand.u32 4294901760, %v30534_v37 }
0x18b1   : > { %v12071_v8 = vand.u32 4294901760, %v12070_v30  ;;  %v12150_v30 = vsub.f32 %v30500_v20, %v32663_v3  ;;  %v32667_v3 = vand.u32 4294901760, %v30519_v27 }
0x18b2   : > { %v30681_v39 = vpack.c.bf16 %v12137_v47, %v12130_v53  ;;  %v12165_v25 = vand.u32 4294901760, %v12164_v44 }
0x18b3   : > { %12072 = vmatprep.mubr.f32.mxu1 %v12071_v8  ;;  %v12151_v58 = vand.u32 4294901760, %v12150_v30  ;;  %v32664_v8 = vand.u32 4294901760, %v30503_v22 }
0x18b5   : > { %v30691_v33 = vpack.c.bf16 %v12151_v58, %v12144_v28  ;;  %v12157_v53 = vsub.f32 %v30503_v22, %v32664_v8  ;;  %v12171_v28 = vsub.f32 %v30519_v27, %v32667_v3  ;;  %v12178_v58 = vsub.f32 %v30531_v36, %v32670_v1 }
0x18b6   : > { %v32675_v1 = vand.u32 4294901760, %v30543_v51 }
0x18b7   : > { %v12158_v47 = vand.u32 4294901760, %v12157_v53  ;;  %v12172_v8 = vand.u32 4294901760, %v12171_v28  ;;  %v12179_v21 = vand.u32 4294901760, %v12178_v58  ;;  %v32674_v53 = vand.u32 4294901760, %v30540_v49 }
0x18b8   : > { %v32678_v28 = vand.u32 4294901760, %v30549_v56 }
0x18b9   : > { %v30701_v30 = vpack.c.bf16 %v12165_v25, %v12158_v47  ;;  %v30711_v44 = vpack.c.bf16 %v12179_v21, %v12172_v8  ;;  %v12185_v25 = vsub.f32 %v30534_v37, %v32671_v6  ;;  %v12192_v47 = vsub.f32 %v30540_v49, %v32674_v53 }
0x18ba   : > { %v12199_v21 = vsub.f32 %v30543_v51, %v32675_v1  ;;  %v12206_v8 = vsub.f32 %v30549_v56, %v32678_v28  ;;  %v32679_v53 = vand.u32 4294901760, %v30552_v60  ;;  %v32683_v28 = vand.u32 4294901760, %v30558_v24 }
0x18bb   : > { %v12186_v3 = vand.u32 4294901760, %v12185_v25  ;;  %v12193_v7 = vand.u32 4294901760, %v12192_v47  ;;  %v32682_v25 = vand.u32 4294901760, %v30556_v50 }
0x18bc   : > { %v12200_v6 = vand.u32 4294901760, %v12199_v21  ;;  %v12207_v10 = vand.u32 4294901760, %v12206_v8  ;;  %v32690_v21 = vand.u32 4294901760, %v30560_v19 }
0x18bd   : > { %v30721_v58 = vpack.c.bf16 %v12193_v7, %v12186_v3  ;;  %v12213_v3 = vsub.f32 %v30552_v60, %v32679_v53  ;;  %v12220_v7 = vsub.f32 %v30556_v50, %v32682_v25  ;;  %v32688_v25 = vand.u32 4294901760, %v30633_v2 }
0x18be   : > { %v30731_v47 = vpack.c.bf16 %v12207_v10, %v12200_v6  ;;  %v12227_v10 = vsub.f32 %v30558_v24, %v32683_v28  ;;  %v12234_v6 = vsub.f32 %v30560_v19, %v32690_v21  ;;  %v27633_v21 = vpack.c.bf16 %v30560_v19, %v30558_v24 }
0x18bf   : > { %v12214_v1 = vand.u32 4294901760, %v12213_v3  ;;  %v12221_v11 = vand.u32 4294901760, %v12220_v7  ;;  %v32689_v3 = vand.u32 4294901760, %v30635_v63 }
0x18c0   : > { %v12228_v53 = vand.u32 4294901760, %v12227_v10  ;;  %v12235_v61 = vand.u32 4294901760, %v12234_v6  ;;  %v27603_v10 = vpack.c.bf16 %v30433_v62, %v30431_v23 }
0x18c1   : > { %v30741_v8 = vpack.c.bf16 %v12221_v11, %v12214_v1  ;;  %v12241_v11 = vsub.f32 %v30633_v2, %v32688_v25  ;;  %v12248_v1 = vsub.f32 %v30635_v63, %v32689_v3  ;;  %v27636_v25 = vpack.c.bf16 %v30635_v63, %v30633_v2 }
0x18c2   : > { %v30751_v7 = vpack.c.bf16 %v12235_v61, %v12228_v53 }
0x18c3   : > { %v12242_v28 = vand.u32 4294901760, %v12241_v11  ;;  %v12249_v34 = vand.u32 4294901760, %v12248_v1  ;;  %v11963_v11 = vrot.slane %v30631_v45, 6  ;;  %v32761_v45 = vmov 0.0|0.0  }
0x18c5   : > { %v30759_v31 = vpack.c.bf16 %v12249_v34, %v12242_v28  ;;  %v11964_v53 = vmul.f32 %v30312_v41, %v11963_v11 }
0x191e   : > { %v11967_v34 = vpop.permute.xlu1 %11966 }
0x191f   : > { %v11969_v61 = vsel %vm11334_vm7, %v11964_v53, %v11967_v34 }
0x1920   : > { %v30788_v28 = vand.u32 4294901760, %v11969_v61 }
0x1922   : > { %v30791_v1 = vsub.f32 %v11969_v61, %v30788_v28 }
0x1924   : > { %v12075_v3 = vand.u32 4294901760, %v30791_v1 }
0x1926   : > { %v12076_v6 = vsub.f32 %v30791_v1, %v12075_v3  ;;  %12492 = vmatmul.mubr.f32.vlgmr.msra.gmra.mrb[34].mxu0 %v12075_v3 }
0x1927   : > { %27712 = vmatpush1.bf16.msra.mxu0 %v30429_v54  ;;  %12730 = vmatprep.mubr.f32.mxu0 %v30642_v32  ;;  %v32763_v54 = vpack.c.bf16 %v30454_v57, %v30435_v48 }
0x1928   : > { %27713 = vmatprep.subr.bf16.mxu0 %v32761_v45  ;;  %v12077_v11 = vand.u32 4294901760, %v12076_v6 }
0x192a   : > { %12078 = vmatmul.mubr.f32.vlgmr.msra.gmra.mrb[34].mxu1 %v12077_v11 }
0x192b   : > { %27568 = vmatpush1.bf16.msra.mxu1 %v30644_v29  ;;  %27715 = vmatpush1.bf16.msra.mxu0 %v30452_v14  ;;  %v32765_v14 = vpack.c.bf16 %v30483_v13, %v30481_v9  ;;  %v32775_v29 = vand.u32 4294901760, %v30454_v57  ;;  %v32781_v57 = vand.u32 4294901760, %v30500_v20 }
0x192c   : > { %12268 = vmatprep.mubr.f32.mxu1 %v30642_v32  ;;  %27569 = vmatprep.subr.bf16.mxu1 %v32761_v45 }
0x192d   : > { %27716 = vmatprep.subr.bf16.mxu0 %v32761_v45 }
0x192f   : > { %27571 = vmatpush1.bf16.msra.mxu1 %v30660_v38  ;;  %27718 = vmatpush1.bf16.msra.mxu0 %v30497_v18  ;;  %v32766_v18 = vpack.c.bf16 %v30500_v20, %v30486_v15  ;;  %v32787_v20 = vand.u32 4294901760, %v30540_v49 }
0x1930   : > { %27572 = vmatprep.subr.bf16.mxu1 %v32761_v45  ;;  %27719 = vmatprep.subr.bf16.mxu0 %v32761_v45 }
0x1933   : > { %27574 = vmatpush1.bf16.msra.mxu1 %v30677_v40  ;;  %27721 = vmatpush1.bf16.msra.mxu0 %v30547_v52  ;;  %v32767_v52 = vpack.c.bf16 %v30516_v59, %v30503_v22  ;;  %v32778_v40 = vand.u32 4294901760, %v30481_v9  ;;  %v32784_v9 = vand.u32 4294901760, %v30519_v27 }
0x1934   : > { %27575 = vmatprep.subr.bf16.mxu1 %v32761_v45  ;;  %27722 = vmatprep.subr.bf16.mxu0 %v32761_v45 }
0x1937   : > { %27577 = vmatpush1.bf16.msra.mxu1 %v30681_v39  ;;  %27724 = vmatpush1.bf16.msra.mxu0 %v30564_v12  ;;  %v32762_v39 = vmov 0.0   ;;  %v32768_v12 = vpack.c.bf16 %v30531_v36, %v30519_v27  ;;  %v32790_v27 = vand.u32 4294901760, %v30552_v60 }
0x1938   : > { %27578 = vmatprep.subr.bf16.mxu1 %v32761_v45  ;;  %27725 = vmatprep.subr.bf16.mxu0 %v32761_v45 }
0x193b   : > { %27580 = vmatpush1.bf16.msra.mxu1 %v30691_v33  ;;  %27727 = vmatpush1.bf16.msra.mxu0 %v30570_v43  ;;  %v32769_v43 = vpack.c.bf16 %v30540_v49, %v30534_v37  ;;  %v32793_v49 = vand.u32 4294901760, %v30560_v19 }
0x193c   : > { %27581 = vmatprep.subr.bf16.mxu1 %v32761_v45  ;;  %27728 = vmatprep.subr.bf16.mxu0 %v32761_v45 }
0x193f   : > { %27583 = vmatpush1.bf16.msra.mxu1 %v30701_v30  ;;  %27730 = vmatpush1.bf16.msra.mxu0 %v30576_v16  ;;  %v32770_v16 = vpack.c.bf16 %v30549_v56, %v30543_v51 }
0x1940   : > { %27584 = vmatprep.subr.bf16.mxu1 %v32761_v45  ;;  %27731 = vmatprep.subr.bf16.mxu0 %v32761_v45 }
0x1943   : > { %27586 = vmatpush1.bf16.msra.mxu1 %v30711_v44  ;;  %27733 = vmatpush1.bf16.msra.mxu0 %v30582_v17  ;;  %v32771_v17 = vpack.c.bf16 %v30556_v50, %v30552_v60 }
0x1944   : > { %27587 = vmatprep.subr.bf16.mxu1 %v32761_v45  ;;  %27734 = vmatprep.subr.bf16.mxu0 %v32761_v45 }
0x1947   : > { %27589 = vmatpush1.bf16.msra.mxu1 %v30721_v58  ;;  %27736 = vmatpush1.bf16.msra.mxu0 %v30588_v42  ;;  %v32772_v42 = vand.u32 4294901760, %v30431_v23  ;;  %v32776_v23 = vand.u32 4294901760, %v30456_v26 }
0x1948   : > { %27590 = vmatprep.subr.bf16.mxu1 %v32761_v45  ;;  %27737 = vmatprep.subr.bf16.mxu0 %v32761_v45 }
0x194b   : > { %27592 = vmatpush1.bf16.msra.mxu1 %v30731_v47  ;;  %27739 = vmatpush1.bf16.msra.mxu0 %v30594_v0  ;;  %v32773_v0 = vand.u32 4294901760, %v30433_v62  ;;  %v32777_v62 = vand.u32 4294901760, %v30465_v5 }
0x194c   : > { %27593 = vmatprep.subr.bf16.mxu1 %v32761_v45  ;;  %27740 = vmatprep.subr.bf16.mxu0 %v32761_v45 }
0x194f   : > { %27595 = vmatpush1.bf16.msra.mxu1 %v30741_v8  ;;  %27742 = vmatpush1.bf16.msra.mxu0 %v30600_v4  ;;  %v27675_v4 = vpack.c.bf16 %v32773_v0, %v32772_v42 }
0x1950   : > { %27596 = vmatprep.subr.bf16.mxu1 %v32761_v45  ;;  %27743 = vmatprep.subr.bf16.mxu0 %v32761_v45 }
0x1953   : > { %27598 = vmatpush1.bf16.msra.mxu1 %v30751_v7  ;;  %27745 = vmatpush1.bf16.msra.mxu0 %v30617_v35  ;;  %v32774_v35 = vand.u32 4294901760, %v30435_v48  ;;  %v32780_v48 = vand.u32 4294901760, %v30486_v15  ;;  %v32786_v15 = vand.u32 4294901760, %v30534_v37  ;;  %v32792_v37 = vand.u32 4294901760, %v30558_v24 }
0x1954   : > { %27599 = vmatprep.subr.bf16.mxu1 %v32761_v45  ;;  %26114 = vmatprep.subr.mxu0 %v32762_v39 }
0x1955   : > { %v27678_v38 = vpack.c.bf16 %v32775_v29, %v32774_v35  ;;  %v27687_v30 = vpack.c.bf16 %v32781_v57, %v32780_v48  ;;  %v27705_v8 = vpack.c.bf16 %v32793_v49, %v32792_v37  ;;  %v23909_v35 = vld [vmem:[%s32595_s6 + $0x30] sm:$0xff] }
0x1956   : > { %12732 = vmatmul.mubr.f32.vlgmr.msra.gmra.mrb[36].mxu0 %v30788_v28 }
0x1957   : > { %27601 = vmatpush1.bf16.msra.mxu1 %v30759_v31  ;;  %26116 = vmatprep.mubr.msk.f32.mxu0 %vm28991_vm0, %v32762_v39  ;;  %v32764_v31 = vpack.c.bf16 %v30465_v5, %v30456_v26  ;;  %v32782_v26 = vand.u32 4294901760, %v30503_v22  ;;  %v32783_v5 = vand.u32 4294901760, %v30516_v59  ;;  %v32788_v22 = vand.u32 4294901760, %v30543_v51 }
0x1958   : > { %27602 = vmatprep.subr.bf16.mxu1 %v32761_v45  ;;  %v32789_v59 = vand.u32 4294901760, %v30549_v56  ;;  %v32794_v51 = vand.u32 4294901760, %v30633_v2  ;;  %v32795_v56 = vand.u32 4294901760, %v30635_v63  ;;  %v23905_v2 = vld [vmem:[%s32606_s17] ss:$0 sm:$0xff] }
0x1959   : > { %v27690_v44 = vpack.c.bf16 %v32783_v5, %v32782_v26 }
0x195a   : > { %12270 = vmatmul.mubr.f32.vlgmr.msra.gmra.mrb[36].mxu1 %v30788_v28  ;;  %v27699_v47 = vpack.c.bf16 %v32789_v59, %v32788_v22  ;;  %v27708_v3 = vpack.c.bf16 %v32795_v56, %v32794_v51 }
0x195b   : > { %27604 = vmatpush1.bf16.msra.mxu1 %v27603_v10  ;;  %12389 = vmatprep.mubr.f32.mxu1 %v30654_v55  ;;  %v27681_v55 = vpack.c.bf16 %v32777_v62, %v32776_v23  ;;  %v23910_v23 = vld [vmem:[%s32595_s6 + $0x38] sm:$0xff]  ;;  %v12785_v62 = vand.u32 4294901760, %v23909_v35 }
0x195c   : > { %27605 = vmatprep.subr.bf16.mxu1 %v32761_v45 }
0x195d   : > { %v12873_v48 = vsub.f32 %v23909_v35, %v12785_v62 }
0x195f   : > { %27607 = vmatpush1.bf16.msra.mxu1 %v32763_v54 }
0x1960   : > { %27608 = vmatprep.subr.bf16.mxu1 %v32761_v45 }
0x1963   : > { %27610 = vmatpush1.bf16.msra.mxu1 %v32764_v31 }
0x1964   : > { %27611 = vmatprep.subr.bf16.mxu1 %v32761_v45 }
0x1967   : > { %27613 = vmatpush1.bf16.msra.mxu1 %v32765_v14 }
0x1968   : > { %27614 = vmatprep.subr.bf16.mxu1 %v32761_v45 }
0x196b   : > { %27616 = vmatpush1.bf16.msra.mxu1 %v32766_v18 }
0x196c   : > { %27617 = vmatprep.subr.bf16.mxu1 %v32761_v45 }
0x196f   : > { %27619 = vmatpush1.bf16.msra.mxu1 %v32767_v52 }
0x1970   : > { %27620 = vmatprep.subr.bf16.mxu1 %v32761_v45 }
0x1973   : > { %27622 = vmatpush1.bf16.msra.mxu1 %v32768_v12 }
0x1974   : > { %27623 = vmatprep.subr.bf16.mxu1 %v32761_v45 }
0x1977   : > { %27625 = vmatpush1.bf16.msra.mxu1 %v32769_v43 }
0x1978   : > { %27626 = vmatprep.subr.bf16.mxu1 %v32761_v45 }
0x197b   : > { %27628 = vmatpush1.bf16.msra.mxu1 %v32770_v16 }
0x197c   : > { %27629 = vmatprep.subr.bf16.mxu1 %v32761_v45 }
0x197f   : > { %27631 = vmatpush1.bf16.msra.mxu1 %v32771_v17 }
0x1980   : > { %27632 = vmatprep.subr.bf16.mxu1 %v32761_v45 }
0x1983   : > { %27634 = vmatpush1.bf16.msra.mxu1 %v27633_v21 }
0x1984   : > { %27635 = vmatprep.subr.bf16.mxu1 %v32761_v45 }
0x1987   : > { %27637 = vmatpush1.bf16.msra.mxu1 %v27636_v25  ;;  %v27696_v25 = vpack.c.bf16 %v32787_v20, %v32786_v15  ;;  %v12874_v15 = vand.u32 4294901760, %v12873_v48 }
0x1988   : > { %27674 = vmatprep.subr.bf16.mxu1 %v32761_v45 }
0x1989   : > { %v12875_v22 = vsub.f32 %v12873_v48, %v12874_v15 }
0x198a   : > { %12392 = vmatmul.mubr.f32.vlgmr.msra.gmra.mrb[38].mxu1 %v30791_v1 }
0x198b   : > { %27676 = vmatpush1.bf16.msra.mxu1 %v27675_v4  ;;  %12634 = vmatprep.mubr.f32.mxu1 %v30642_v32  ;;  %v32779_v32 = vand.u32 4294901760, %v30483_v13  ;;  %v32785_v13 = vand.u32 4294901760, %v30531_v36  ;;  %v32791_v36 = vand.u32 4294901760, %v30556_v50  ;;  %v23907_v4 = vld [vmem:[%s32595_s6 + $0x20] sm:$0xff] }
0x198c   : > { %27677 = vmatprep.subr.bf16.mxu1 %v32761_v45  ;;  %v12779_v29 = vand.u32 4294901760, %v23907_v4 }
0x198d   : > { %v27684_v33 = vpack.c.bf16 %v32779_v32, %v32778_v40  ;;  %v27693_v58 = vpack.c.bf16 %v32785_v13, %v32784_v9  ;;  %v27702_v21 = vpack.c.bf16 %v32791_v36, %v32790_v27 }
0x198e   : > { %v12859_v32 = vsub.f32 %v23907_v4, %v12779_v29 }
0x198f   : > { %27679 = vmatpush1.bf16.msra.mxu1 %v27678_v38 }
0x1990   : > { %27680 = vmatprep.subr.bf16.mxu1 %v32761_v45  ;;  %v12860_v26 = vand.u32 4294901760, %v12859_v32 }
0x1993   : > { %27682 = vmatpush1.bf16.msra.mxu1 %v27681_v55  ;;  %v12788_v55 = vand.u32 4294901760, %v23910_v23 }
0x1994   : > { %27683 = vmatprep.subr.bf16.mxu1 %v32761_v45 }
0x1995   : > { %v12880_v57 = vsub.f32 %v23910_v23, %v12788_v55 }
0x1997   : > { %27685 = vmatpush1.bf16.msra.mxu1 %v27684_v33  ;;  %v12881_v20 = vand.u32 4294901760, %v12880_v57  ;;  %v27762_v37 = vpack.c.bf16 %v12880_v57, %v12873_v48 }
0x1998   : > { %27686 = vmatprep.subr.bf16.mxu1 %v32761_v45 }
0x1999   : > { %v12882_v59 = vsub.f32 %v12880_v57, %v12881_v20 }
0x199b   : > { %27688 = vmatpush1.bf16.msra.mxu1 %v27687_v30  ;;  %v30988_v30 = vpack.c.bf16 %v12788_v55, %v12785_v62  ;;  %v12883_v27 = vand.u32 4294901760, %v12882_v59 }
0x199c   : > { %27689 = vmatprep.subr.bf16.mxu1 %v32761_v45 }
0x199f   : > { %27691 = vmatpush1.bf16.msra.mxu1 %v27690_v44  ;;  %v12861_v44 = vsub.f32 %v12859_v32, %v12860_v26 }
0x19a0   : > { %27692 = vmatprep.subr.bf16.mxu1 %v32761_v45 }
0x19a1   : > { %v12862_v13 = vand.u32 4294901760, %v12861_v44 }
0x19a3   : > { %27694 = vmatpush1.bf16.msra.mxu1 %v27693_v58 }
0x19a4   : > { %27695 = vmatprep.subr.bf16.mxu1 %v32761_v45 }
0x19a7   : > { %27697 = vmatpush1.bf16.msra.mxu1 %v27696_v25 }
0x19a8   : > { %27698 = vmatprep.subr.bf16.mxu1 %v32761_v45 }
0x19ab   : > { %27700 = vmatpush1.bf16.msra.mxu1 %v27699_v47  ;;  %v12876_v47 = vand.u32 4294901760, %v12875_v22 }
0x19ac   : > { %27701 = vmatprep.subr.bf16.mxu1 %v32761_v45 }
0x19ad   : > { %v27756_v36 = vpack.c.bf16 %v12883_v27, %v12876_v47 }
0x19af   : > { %27703 = vmatpush1.bf16.msra.mxu1 %v27702_v21 }
0x19b0   : > { %27704 = vmatprep.subr.bf16.mxu1 %v32761_v45 }
0x19b3   : > { %27706 = vmatpush1.bf16.msra.mxu1 %v27705_v8  ;;  %v27774_v8 = vpack.c.bf16 %v12881_v20, %v12874_v15 }
0x19b4   : > { %27707 = vmatprep.subr.bf16.mxu1 %v32761_v45 }
0x19b7   : > { %27709 = vmatpush1.bf16.msra.mxu1 %v27708_v3 }
0x19b8   : > { %27746 = vmatprep.subr.bf16.mxu1 %v32761_v45 }
0x19ba   : > { %12636 = vmatmul.mubr.f32.vlgmr.msra.gmra.mrb[40].mxu1 %v30788_v28 }
0x19bb   : > { %26056 = vmatprep.mubr.msk.f32.mxu1 %vm28991_vm0, %v32762_v39 }
0x19f9   : > { %v12493_v60 = vpop.f32.mrb[34].mxu0 }
0x19fa   : > { %v12495_v50 = vpop.f32.mrb[35].mxu0 }
0x19fd   : > { %v12079_v24 = vpop.f32.mrb[34].mxu1 }
0x19fe   : > { %v12081_v19 = vpop.f32.mrb[35].mxu1  ;;  %v12080_v10 = vadd.f32 %v23905_v2, %v12079_v24 }
0x1a29   : > { %v12733_v63 = vpop.f32.mrb[36].mxu0 }
0x1a2a   : > { %v12735_v7 = vpop.f32.mrb[37].mxu0 }
0x1a2b   : > { %v32796_v7 = vld [vmem:[#allocation12_spill] sm:$0xff] }
0x1a2d   : > { %v12271_v6 = vpop.f32.mrb[36].mxu1 }
0x1a2e   : > { %v12272_v61 = vadd.f32 %v12271_v6, %v12080_v10  ;;  %v12273_v53 = vpop.f32.mrb[37].mxu1  ;;  %v32797_v6 = vld [vmem:[#allocation13_spill] sm:$0xff] }
0x1a5d   : > { %v12393_v34 = vpop.f32.mrb[38].mxu1 }
0x1a5e   : > { %v12394_v1 = vadd.f32 %v12393_v34, %v12272_v61  ;;  %v12395_v28 = vpop.f32.mrb[39].mxu1 }
0x1a60   : > { %v12494_v11 = vadd.f32 %v12493_v60, %v12394_v1 }
0x1a8d   : > { %v12637_v54 = vpop.f32.mrb[40].mxu1 }
0x1a8e   : > { %v12638_v31 = vadd.f32 %v12637_v54, %v12494_v11  ;;  %v12639_v14 = vpop.f32.mrb[41].mxu1 }
0x1a90   : > { %v12734_v18 = vadd.f32 %v12733_v63, %v12638_v31  ;;  %v23906_v63 = vld [vmem:[%s32600_s11 + $0x2] sm:$0x3] }
0x1a91   : > { %v12762_v10 = vrot.slane %v23906_v63, %v32796_v7  ;;  %v12768_v61 = vrot.slane %v23906_v63, %v32797_v6 }
0x1a92   : > { %v30967_v52 = vadd.f32 %v12734_v18, %v30113_v46  ;;  %v23908_v46 = vld [vmem:[%s32595_s6 + $0x28] sm:$0xff] }
0x1a93   : > { %v12782_v38 = vand.u32 4294901760, %v23908_v46 }
0x1a94   : > { %v12740_v12 = vsel %vm679_vm1, %v30967_v52, 0.0 }
0x1a95   : > { %12741 = vadd.xlane.f32.xlu0 %v12740_v12  ;;  %v30985_v40 = vpack.c.bf16 %v12782_v38, %v12779_v29  ;;  %v12866_v33 = vsub.f32 %v23908_v46, %v12782_v38 }
0x1a97   : > { %27748 = vmatpush3.bf16.msra.mxu1 %v30985_v40  ;;  %v12867_v5 = vand.u32 4294901760, %v12866_v33  ;;  %v27759_v21 = vpack.c.bf16 %v12866_v33, %v12859_v32 }
0x1a98   : > { %27749 = vmatprep.subr.bf16.mxu1 %v32761_v45 }
0x1a99   : > { %v12868_v9 = vsub.f32 %v12866_v33, %v12867_v5  ;;  %v27771_v49 = vpack.c.bf16 %v12867_v5, %v12860_v26 }
0x1a9b   : > { %27751 = vmatpush3.bf16.msra.mxu1 %v30988_v30  ;;  %v12869_v58 = vand.u32 4294901760, %v12868_v9 }
0x1a9c   : > { %27752 = vmatprep.subr.bf16.mxu1 %v32761_v45 }
0x1a9d   : > { %v27753_v25 = vpack.c.bf16 %v12869_v58, %v12862_v13 }
0x1b22   : > { %v12742_v43 = vpop.xlane.xlu0 %12741 }
0x1b23   : > { %v12743_v16 = vmul.f32 0.03125, %v12742_v43 }
0x1b25   : > { %v12744_v17 = vsub.f32 %v30967_v52, %v12743_v16 }
0x1b27   : > { %v12745_v42 = vmul.f32 %v12744_v17, %v12744_v17  ;;  %v12763_v53 = vmul.f32 %v12762_v10, %v12744_v17 }
0x1b29   : > { %v12746_v0 = vsel %vm679_vm1, %v12745_v42, 0.0 }
0x1b2a   : > { %12747 = vadd.xlane.f32.xlu1 %v12746_v0 }
0x1bb7   : > { %v12748_v51 = vpop.xlane.xlu1 %12747 }
0x1bb8   : > { %v12749_v56 = vmul.f32 0.032258064, %v12748_v51 }
0x1bba   : > { %28878 = vrsqrt.f32 %v12749_v56  ;;  %vm12752_vm11 = vcmp.eq.f32.partialorder %v12749_v56, inf  ;;  %v12755_v50 = vand.u32 2147483648, %v12749_v56  ;;  %vm12754_vm12 = vcmp.eq.f32.partialorder %v12749_v56, 0.0 }
0x1bc4   : > { %v28879_v3 = vpop.eup %28878 }
0x1bc5   : > { %v12751_v60 = vmul.f32 %v28879_v3, %v12749_v56 }
0x1bc7   : > { %v12753_v24 = vsel %vm12752_vm11, %v12749_v56, %v12751_v60 }
0x1bc8   : > { %v12756_v19 = vsel %vm12754_vm12, %v12755_v50, %v12753_v24 }
0x1bc9   : > { %v12757_v2 = vadd.f32 1e-06, %v12756_v19 }
0x1bcb   : > { %28880 = vrcp.f32 %v12757_v2 }
0x1bd5   : > { %v28881_v34 = vpop.eup %28880 }
0x1bd6   : > { %v12764_v1 = vmul.f32 %v28881_v34, %v12763_v53 }
0x1bd8   : > { %v12769_v28 = vadd.f32 %v12768_v61, %v12764_v1 }
0x1bda   : > { %v12776_v11 = vsel %vm679_vm1, %v12769_v28, 0 }
0x1bdb   : > { %v12847_v54 = vand.u32 4294901760, %v12776_v11 }
0x1bdd   : > { %v12848_v31 = vsub.f32 %v12776_v11, %v12847_v54 }
0x1bdf   : > { %v12849_v14 = vand.u32 4294901760, %v12848_v31 }
0x1be1   : > { %v12850_v18 = vsub.f32 %v12848_v31, %v12849_v14 }
0x1be3   : > { %v12851_v12 = vand.u32 4294901760, %v12850_v18 }
0x1be5   : > { %26057 = vmatmul.mubr.f32.vlgmr.msra.gmra.mrb[42].mxu1 %v12851_v12 }
0x1be6   : > { %27754 = vmatpush3.bf16.msra.mxu1 %v27753_v25  ;;  %26067 = vmatprep.mubr.msk.f32.mxu1 %vm28991_vm0, %v32762_v39 }
0x1be7   : > { %27755 = vmatprep.subr.bf16.mxu1 %v32761_v45 }
0x1bea   : > { %27757 = vmatpush3.bf16.msra.mxu1 %v27756_v36 }
0x1beb   : > { %27758 = vmatprep.subr.bf16.mxu1 %v32761_v45 }
0x1bed   : > { %26068 = vmatmul.mubr.f32.vlgmr.msra.gmra.mrb[42].mxu1 %v12847_v54 }
0x1bee   : > { %27760 = vmatpush3.bf16.msra.mxu1 %v27759_v21  ;;  %26078 = vmatprep.mubr.msk.f32.mxu1 %vm28991_vm0, %v32762_v39 }
0x1bef   : > { %27761 = vmatprep.subr.bf16.mxu1 %v32761_v45 }
0x1bf2   : > { %27763 = vmatpush3.bf16.msra.mxu1 %v27762_v37 }
0x1bf3   : > { %27764 = vmatprep.subr.bf16.mxu1 %v32761_v45 }
0x1bf5   : > { %26079 = vmatmul.mubr.f32.vlgmr.msra.gmra.mrb[42].mxu1 %v12848_v31 }
0x1bf6   : > { %27766 = vmatpush3.bf16.msra.mxu1 %v30985_v40  ;;  %26089 = vmatprep.mubr.msk.f32.mxu1 %vm28991_vm0, %v32762_v39 }
0x1bf7   : > { %27767 = vmatprep.subr.bf16.mxu1 %v32761_v45 }
0x1bfa   : > { %27769 = vmatpush3.bf16.msra.mxu1 %v30988_v30 }
0x1bfb   : > { %27770 = vmatprep.subr.bf16.mxu1 %v32761_v45 }
0x1bfd   : > { %26090 = vmatmul.mubr.f32.vlgmr.msra.gmra.mrb[42].mxu1 %v12849_v14 }
0x1bfe   : > { %27772 = vmatpush3.bf16.msra.mxu1 %v27771_v49  ;;  %26100 = vmatprep.mubr.msk.f32.mxu1 %vm28991_vm0, %v32762_v39 }
0x1bff   : > { %27773 = vmatprep.subr.bf16.mxu1 %v32761_v45 }
0x1c02   : > { %27775 = vmatpush3.bf16.msra.mxu1 %v27774_v8 }
0x1c03   : > { %27776 = vmatprep.subr.bf16.mxu1 %v32761_v45 }
0x1c05   : > { %26101 = vmatmul.mubr.f32.vlgmr.msra.gmra.mrb[42].mxu1 %v12847_v54 }
0x1c06   : > { %27778 = vmatpush3.bf16.msra.mxu1 %v30985_v40  ;;  %26111 = vmatprep.mubr.msk.f32.mxu1 %vm28991_vm0, %v32762_v39 }
0x1c07   : > { %27779 = vmatprep.subr.bf16.mxu1 %v32761_v45 }
0x1c0a   : > { %27781 = vmatpush3.bf16.msra.mxu1 %v30988_v30 }
0x1c0b   : > { %26144 = vmatprep.subr.mxu1 %v32762_v39 }
0x1c0d   : > { %26112 = vmatmul.mubr.f32.vlgmr.msra.gmra.mrb[42].mxu1 %v12847_v54 }
0x1c0e   : > { %26146 = vmatprep.mubr.msk.f32.mxu1 %vm28991_vm0, %v32762_v39 }
0x1ce0   : > { %v31025_v43 = vpop.f32.mrb[42].mxu1 }
0x1ce1   : > { %13270 = vrot.lane.b32.xlu0 %v31025_v43, %s32798_s27  ;;  %v26113_v16 = vpop.f32.mrb[43].mxu1  ;;  %v13268_v17 = vmul.f32 0.35355338, %v31025_v43 }
0x1ce3   : > { %14186 = vrot.lane.b32.xlu1 %v13268_v17, %s32799_s30  ;;  %v13273_v42 = vsel %vm2264_vm4, %v13268_v17, 0 }
0x1ce4   : > { %v13343_v0 = vand.u32 4294901760, %v13273_v42 }
0x1ce5   : > { %14188 = vrot.lane.b32.xlu0 %v31025_v43, %s32800_s9  ;;  %s23968_s9 = sshll.u32 %s29136_s2, 7 }
0x1ce6   : > { %v13344_v4 = vsub.f32 %v13273_v42, %v13343_v0 }
0x1ce7   : > { %15103 = vrot.lane.b32.xlu1 %v13268_v17, %s32752_s28 }
0x1ce8   : > { %v13345_v46 = vand.u32 4294901760, %v13344_v4 }
0x1ce9   : > { %15105 = vrot.lane.b32.xlu0 %v31025_v43, %s32753_s23  ;;  %s32802_s23 = smov 56  }
0x1cea   : > { %v13346_v38 = vsub.f32 %v13344_v4, %v13345_v46 }
0x1ceb   : > { %16020 = vrot.lane.b32.xlu1 %v13268_v17, %s32754_s3  ;;  %v32801_v17 = vld [vmem:[#allocation16_spill] sm:$0xff] }
0x1cec   : > { %v13347_v55 = vand.u32 4294901760, %v13346_v38 }
0x1ced   : > { %16022 = vrot.lane.b32.xlu0 %v31025_v43, %s32755_s0  ;;  %s32803_s0 = smov 48  }
0x1d53   : > { %v13271_v35 = vpop.permute.xlu0 %13270 }
0x1d54   : > { %v13275_v29 = vsel %vm2264_vm4, %v13271_v35, 0 }
0x1d55   : > { %v13278_v23 = vand.u32 4294901760, %v13275_v29  ;;  %v14187_v48 = vpop.permute.xlu1 %14186 }
0x1d56   : > { %v14190_v30 = vsel %vm2264_vm4, %v14187_v48, 0 }
0x1d57   : > { %v13355_v62 = vsub.f32 %v13275_v29, %v13278_v23  ;;  %26115 = vmatpush3.xpose.msra.mxu0 %v13278_v23  ;;  %v14189_v57 = vpop.permute.xlu0 %14188  ;;  %v14260_v5 = vand.u32 4294901760, %v14190_v30 }
0x1d58   : > { %26119 = vmatprep.subr.mxu0 %v32762_v39  ;;  %v14192_v26 = vsel %vm2264_vm4, %v14189_v57, 0 }
0x1d59   : > { %v13356_v40 = vand.u32 4294901760, %v13355_v62  ;;  %v14195_v44 = vand.u32 4294901760, %v14192_v26  ;;  %v14261_v9 = vsub.f32 %v14190_v30, %v14260_v5  ;;  %v15104_v47 = vpop.permute.xlu1 %15103 }
0x1d5a   : > { %26117 = vmatmul.mubr.f32.vlgmr.msra.gmra.mrb[38].mxu0 %v13347_v55  ;;  %v15107_v36 = vsel %vm2264_vm4, %v15104_v47, 0 }
0x1d5b   : > { %v13357_v32 = vsub.f32 %v13355_v62, %v13356_v40  ;;  %26121 = vmatprep.mubr.msk.f32.mxu0 %vm28991_vm0, %v32762_v39  ;;  %v14272_v13 = vsub.f32 %v14192_v26, %v14195_v44  ;;  %v14262_v58 = vand.u32 4294901760, %v14261_v9  ;;  %v15106_v27 = vpop.permute.xlu0 %15105  ;;  %v15177_v37 = vand.u32 4294901760, %v15107_v36 }
0x1d5c   : > { %v15109_v21 = vsel %vm2264_vm4, %v15106_v27, 0 }
0x1d5d   : > { %v13358_v33 = vand.u32 4294901760, %v13357_v32  ;;  %v14273_v15 = vand.u32 4294901760, %v14272_v13  ;;  %v14263_v20 = vsub.f32 %v14261_v9, %v14262_v58  ;;  %v15112_v49 = vand.u32 4294901760, %v15109_v21  ;;  %v16021_v2 = vpop.permute.xlu1 %16020 }
0x1d5e   : > { %v15178_v8 = vsub.f32 %v15107_v36, %v15177_v37  ;;  %v16024_v10 = vsel %vm2264_vm4, %v16021_v2, 0 }
0x1d5f   : > { %26120 = vmatpush3.xpose.msra.mxu0 %v13358_v33  ;;  %v14274_v25 = vsub.f32 %v14272_v13, %v14273_v15  ;;  %v14264_v22 = vand.u32 4294901760, %v14263_v20  ;;  %v15189_v51 = vsub.f32 %v15109_v21, %v15112_v49  ;;  %v16023_v63 = vpop.permute.xlu0 %16022  ;;  %v16094_v53 = vand.u32 4294901760, %v16024_v10 }
0x1d60   : > { %26124 = vmatprep.subr.mxu0 %v32762_v39  ;;  %v15179_v56 = vand.u32 4294901760, %v15178_v8  ;;  %v16026_v61 = vsel %vm2264_vm4, %v16023_v63, 0 }
0x1d61   : > { %v14275_v59 = vand.u32 4294901760, %v14274_v25  ;;  %v15190_v3 = vand.u32 4294901760, %v15189_v51  ;;  %v16029_v34 = vand.u32 4294901760, %v16026_v61  ;;  %v16095_v1 = vsub.f32 %v16024_v10, %v16094_v53 }
0x1d62   : > { %26122 = vmatmul.mubr.f32.vlgmr.msra.gmra.mrb[38].mxu0 %v13343_v0  ;;  %v15180_v60 = vsub.f32 %v15178_v8, %v15179_v56 }
0x1d63   : > { %26125 = vmatpush3.xpose.msra.mxu0 %v13355_v62  ;;  %26126 = vmatprep.mubr.msk.f32.mxu0 %vm28991_vm0, %v32762_v39  ;;  %v15191_v50 = vsub.f32 %v15189_v51, %v15190_v3  ;;  %v16106_v28 = vsub.f32 %v16026_v61, %v16029_v34  ;;  %v16096_v11 = vand.u32 4294901760, %v16095_v1 }
0x1d64   : > { %26129 = vmatprep.subr.mxu0 %v32762_v39  ;;  %v15181_v24 = vand.u32 4294901760, %v15180_v60 }
0x1d65   : > { %v15192_v19 = vand.u32 4294901760, %v15191_v50  ;;  %v16107_v54 = vand.u32 4294901760, %v16106_v28  ;;  %v16097_v31 = vsub.f32 %v16095_v1, %v16096_v11 }
0x1d67   : > { %v16108_v14 = vsub.f32 %v16106_v28, %v16107_v54  ;;  %v16098_v18 = vand.u32 4294901760, %v16097_v31 }
0x1d69   : > { %v16109_v12 = vand.u32 4294901760, %v16108_v14 }
0x1d6a   : > { %26127 = vmatmul.mubr.f32.vlgmr.msra.gmra.mrb[38].mxu0 %v13344_v4 }
0x1d6b   : > { %26130 = vmatpush3.xpose.msra.mxu0 %v13278_v23  ;;  %26131 = vmatprep.mubr.msk.f32.mxu0 %vm28991_vm0, %v32762_v39 }
0x1d6c   : > { %26134 = vmatprep.subr.mxu0 %v32762_v39 }
0x1d72   : > { %26132 = vmatmul.mubr.f32.vlgmr.msra.gmra.mrb[38].mxu0 %v13345_v46 }
0x1d73   : > { %26135 = vmatpush3.xpose.msra.mxu0 %v13356_v40  ;;  %26136 = vmatprep.mubr.msk.f32.mxu0 %vm28991_vm0, %v32762_v39 }
0x1d74   : > { %26139 = vmatprep.subr.mxu0 %v32762_v39 }
0x1d7a   : > { %26137 = vmatmul.mubr.f32.vlgmr.msra.gmra.mrb[38].mxu0 %v13343_v0 }
0x1d7b   : > { %26140 = vmatpush3.xpose.msra.mxu0 %v13278_v23  ;;  %26141 = vmatprep.mubr.msk.f32.mxu0 %vm28991_vm0, %v32762_v39 }
0x1d7c   : > { %26174 = vmatprep.subr.mxu0 %v32762_v39 }
0x1d82   : > { %26142 = vmatmul.mubr.f32.vlgmr.msra.gmra.mrb[38].mxu0 %v13343_v0 }
0x1d83   : > { %26175 = vmatpush3.xpose.msra.mxu0 %v14195_v44  ;;  %26176 = vmatprep.mubr.msk.f32.mxu0 %vm28991_vm0, %v32762_v39 }
0x1d84   : > { %26179 = vmatprep.subr.mxu0 %v32762_v39 }
0x1d86   : > { %26177 = vmatmul.mubr.f32.vlgmr.msra.gmra.mrb[40].mxu0 %v14264_v22 }
0x1d87   : > { %26180 = vmatpush3.xpose.msra.mxu0 %v14275_v59  ;;  %26181 = vmatprep.mubr.msk.f32.mxu0 %vm28991_vm0, %v32762_v39 }
0x1d88   : > { %26184 = vmatprep.subr.mxu0 %v32762_v39 }
0x1d8e   : > { %26182 = vmatmul.mubr.f32.vlgmr.msra.gmra.mrb[40].mxu0 %v14260_v5 }
0x1d8f   : > { %26185 = vmatpush3.xpose.msra.mxu0 %v14272_v13  ;;  %26186 = vmatprep.mubr.msk.f32.mxu0 %vm28991_vm0, %v32762_v39 }
0x1d90   : > { %26189 = vmatprep.subr.mxu0 %v32762_v39 }
0x1d96   : > { %26187 = vmatmul.mubr.f32.vlgmr.msra.gmra.mrb[40].mxu0 %v14261_v9 }
0x1d97   : > { %26190 = vmatpush3.xpose.msra.mxu0 %v14195_v44  ;;  %26191 = vmatprep.mubr.msk.f32.mxu0 %vm28991_vm0, %v32762_v39 }
0x1d98   : > { %26194 = vmatprep.subr.mxu0 %v32762_v39 }
0x1d9e   : > { %26192 = vmatmul.mubr.f32.vlgmr.msra.gmra.mrb[40].mxu0 %v14262_v58 }
0x1d9f   : > { %26195 = vmatpush3.xpose.msra.mxu0 %v14273_v15  ;;  %26196 = vmatprep.mubr.msk.f32.mxu0 %vm28991_vm0, %v32762_v39 }
0x1da0   : > { %26199 = vmatprep.subr.mxu0 %v32762_v39 }
0x1da6   : > { %26197 = vmatmul.mubr.f32.vlgmr.msra.gmra.mrb[40].mxu0 %v14260_v5 }
0x1da7   : > { %26200 = vmatpush3.xpose.msra.mxu0 %v14195_v44  ;;  %26201 = vmatprep.mubr.msk.f32.mxu0 %vm28991_vm0, %v32762_v39 }
0x1da8   : > { %26234 = vmatprep.subr.mxu0 %v32762_v39 }
0x1dae   : > { %26202 = vmatmul.mubr.f32.vlgmr.msra.gmra.mrb[40].mxu0 %v14260_v5 }
0x1daf   : > { %26235 = vmatpush3.xpose.msra.mxu0 %v15112_v49  ;;  %26236 = vmatprep.mubr.msk.f32.mxu0 %vm28991_vm0, %v32762_v39 }
0x1db0   : > { %26239 = vmatprep.subr.mxu0 %v32762_v39 }
0x1db2   : > { %26237 = vmatmul.mubr.f32.vlgmr.msra.gmra.mrb[42].mxu0 %v15181_v24 }
0x1db3   : > { %26240 = vmatpush3.xpose.msra.mxu0 %v15192_v19  ;;  %26241 = vmatprep.mubr.msk.f32.mxu0 %vm28991_vm0, %v32762_v39 }
0x1db4   : > { %26244 = vmatprep.subr.mxu0 %v32762_v39 }
0x1dba   : > { %26242 = vmatmul.mubr.f32.vlgmr.msra.gmra.mrb[42].mxu0 %v15177_v37 }
0x1dbb   : > { %26245 = vmatpush3.xpose.msra.mxu0 %v15189_v51  ;;  %26246 = vmatprep.mubr.msk.f32.mxu0 %vm28991_vm0, %v32762_v39 }
0x1dbc   : > { %26249 = vmatprep.subr.mxu0 %v32762_v39 }
0x1dc2   : > { %26247 = vmatmul.mubr.f32.vlgmr.msra.gmra.mrb[42].mxu0 %v15178_v8 }
0x1dc3   : > { %26250 = vmatpush3.xpose.msra.mxu0 %v15112_v49  ;;  %26251 = vmatprep.mubr.msk.f32.mxu0 %vm28991_vm0, %v32762_v39 }
0x1dc4   : > { %26254 = vmatprep.subr.mxu0 %v32762_v39 }
0x1dca   : > { %26252 = vmatmul.mubr.f32.vlgmr.msra.gmra.mrb[42].mxu0 %v15179_v56 }
0x1dcb   : > { %26255 = vmatpush3.xpose.msra.mxu0 %v15190_v3  ;;  %26256 = vmatprep.mubr.msk.f32.mxu0 %vm28991_vm0, %v32762_v39 }
0x1dcc   : > { %26259 = vmatprep.subr.mxu0 %v32762_v39 }
0x1dd2   : > { %26257 = vmatmul.mubr.f32.vlgmr.msra.gmra.mrb[42].mxu0 %v15177_v37 }
0x1dd3   : > { %26260 = vmatpush3.xpose.msra.mxu0 %v15112_v49  ;;  %26261 = vmatprep.mubr.msk.f32.mxu0 %vm28991_vm0, %v32762_v39 }
0x1dd4   : > { %26294 = vmatprep.subr.mxu0 %v32762_v39 }
0x1dda   : > { %26262 = vmatmul.mubr.f32.vlgmr.msra.gmra.mrb[42].mxu0 %v15177_v37 }
0x1ddb   : > { %26295 = vmatpush3.xpose.msra.mxu0 %v16029_v34  ;;  %26296 = vmatprep.mubr.msk.f32.mxu0 %vm28991_vm0, %v32762_v39 }
0x1ddc   : > { %26299 = vmatprep.subr.mxu0 %v32762_v39 }
0x1dde   : > { %26297 = vmatmul.mubr.f32.vlgmr.msra.gmra.mrb[44].mxu0 %v16098_v18 }
0x1ddf   : > { %26300 = vmatpush3.xpose.msra.mxu0 %v16109_v12  ;;  %26301 = vmatprep.mubr.msk.f32.mxu0 %vm28991_vm0, %v32762_v39 }
0x1de0   : > { %26304 = vmatprep.subr.mxu0 %v32762_v39 }
0x1de6   : > { %26302 = vmatmul.mubr.f32.vlgmr.msra.gmra.mrb[44].mxu0 %v16094_v53 }
0x1de7   : > { %26305 = vmatpush3.xpose.msra.mxu0 %v16106_v28  ;;  %26306 = vmatprep.mubr.msk.f32.mxu0 %vm28991_vm0, %v32762_v39 }
0x1de8   : > { %26309 = vmatprep.subr.mxu0 %v32762_v39 }
0x1dee   : > { %26307 = vmatmul.mubr.f32.vlgmr.msra.gmra.mrb[44].mxu0 %v16095_v1 }
0x1def   : > { %26310 = vmatpush3.xpose.msra.mxu0 %v16029_v34  ;;  %26311 = vmatprep.mubr.msk.f32.mxu0 %vm28991_vm0, %v32762_v39 }
0x1df0   : > { %26314 = vmatprep.subr.mxu0 %v32762_v39 }
0x1df6   : > { %26312 = vmatmul.mubr.f32.vlgmr.msra.gmra.mrb[44].mxu0 %v16096_v11 }
0x1df7   : > { %26315 = vmatpush3.xpose.msra.mxu0 %v16107_v54  ;;  %26316 = vmatprep.mubr.msk.f32.mxu0 %vm28991_vm0, %v32762_v39 }
0x1df8   : > { %26319 = vmatprep.subr.mxu0 %v32762_v39 }
0x1dfe   : > { %26317 = vmatmul.mubr.f32.vlgmr.msra.gmra.mrb[44].mxu0 %v16094_v53 }
0x1dff   : > { %26320 = vmatpush3.xpose.msra.mxu0 %v16029_v34  ;;  %26321 = vmatprep.mubr.msk.f32.mxu0 %vm28991_vm0, %v32762_v39 }
0x1e00   : > { %27782 = vmatprep.subr.bf16.mxu0 %v32761_v45 }
0x1e06   : > { %26322 = vmatmul.mubr.f32.vlgmr.msra.gmra.mrb[44].mxu0 %v16094_v53 }
0x1e07   : > { %26362 = vmatprep.mubr.msk.f32.mxu0 %vm28991_vm0, %v32762_v39 }
0x1e55   : > { %v13719_v16 = vpop.f32.mrb[38].mxu0 }
0x1e56   : > { %v28369_v42 = vadd.f32 %v13719_v16, %v32801_v17  ;;  %v26143_v0 = vpop.f32.mrb[39].mxu0 }
0x1e58   : > { %v13723_v4 = vsel %vm2264_vm4, %v28369_v42, -inf }
0x1e59   : > { %13724 = vmax.xlane.f32.xlu1 %v13723_v4 }
0x1e81   : > { %v14636_v46 = vpop.f32.mrb[40].mxu0 }
0x1e82   : > { %v28370_v35 = vadd.f32 %v14636_v46, %v32801_v17  ;;  %v26203_v29 = vpop.f32.mrb[41].mxu0 }
0x1e84   : > { %v14640_v38 = vsel %vm2264_vm4, %v28370_v35, -inf }
0x1e85   : > { %14641 = vmax.xlane.f32.xlu0 %v14640_v38 }
0x1ead   : > { %v15553_v23 = vpop.f32.mrb[42].mxu0 }
0x1eae   : > { %v28371_v62 = vadd.f32 %v15553_v23, %v32801_v17  ;;  %v26263_v55 = vpop.f32.mrb[43].mxu0 }
0x1eb0   : > { %v15557_v40 = vsel %vm2264_vm4, %v28371_v62, -inf }
0x1eb1   : > { %15558 = vmax.xlane.f32.xlu1 %v15557_v40 }
0x1ed9   : > { %v16470_v32 = vpop.f32.mrb[44].mxu0 }
0x1eda   : > { %v28372_v33 = vadd.f32 %v16470_v32, %v32801_v17  ;;  %v26323_v48 = vpop.f32.mrb[45].mxu0 }
0x1edc   : > { %v16474_v57 = vsel %vm2264_vm4, %v28372_v33, -inf }
0x1edd   : > { %16475 = vmax.xlane.f32.xlu1 %v16474_v57 }
0x1ee6   : > { %v13725_v30 = vpop.xlane.xlu1 %13724 }
0x1ee7   : > { %v13726_v26 = vsub.f32 %v28369_v42, %v13725_v30 }
0x1ee9   : > { %v13727_v5 = vmul.f32 1.442695, %v13726_v26 }
0x1eeb   : > { %28882 = vpow2.f32 %v13727_v5 }
0x1ef5   : > { %v28883_v44 = vpop.eup %28882 }
0x1ef6   : > { %v13729_v9 = vsel %vm2264_vm4, %v28883_v44, 0.0 }
0x1ef7   : > { %13730 = vadd.xlane.f32.xlu0 %v13729_v9 }
0x1f0d   : > { %13734 = vrot.lane.b32.xlu0 %v31025_v43, %s32760_s19 }
0x1f12   : > { %v14642_v13 = vpop.xlane.xlu0 %14641 }
0x1f13   : > { %v14643_v58 = vsub.f32 %v28370_v35, %v14642_v13 }
0x1f15   : > { %v14644_v15 = vmul.f32 1.442695, %v14643_v58 }
0x1f17   : > { %28884 = vpow2.f32 %v14644_v15 }
0x1f21   : > { %v28885_v20 = vpop.eup %28884 }
0x1f22   : > { %v14646_v25 = vsel %vm2264_vm4, %v28885_v20, 0.0 }
0x1f23   : > { %14647 = vadd.xlane.f32.xlu1 %v14646_v25 }
0x1f34   : > { %14651 = vrot.lane.b32.xlu1 %v31025_v43, %s32802_s23 }
0x1f38   : > { %15568 = vrot.lane.b32.xlu1 %v31025_v43, %s32803_s0 }
0x1f3e   : > { %v15559_v22 = vpop.xlane.xlu1 %15558 }
0x1f3f   : > { %v15560_v59 = vsub.f32 %v28371_v62, %v15559_v22 }
0x1f41   : > { %v15561_v47 = vmul.f32 1.442695, %v15560_v59 }
0x1f43   : > { %28886 = vpow2.f32 %v15561_v47 }
0x1f4d   : > { %v31135_v27 = vpop.eup %28886 }
0x1f4e   : > { %v15563_v36 = vsel %vm2264_vm4, %v31135_v27, 0.0 }
0x1f4f   : > { %15564 = vadd.xlane.f32.xlu0 %v15563_v36 }
0x1f65   : > { %16485 = vrot.lane.b32.xlu0 %v31025_v43, %s32804_s29 }
0x1f6a   : > { %v16476_v21 = vpop.xlane.xlu1 %16475 }
0x1f6b   : > { %v16477_v37 = vsub.f32 %v28372_v33, %v16476_v21 }
0x1f6d   : > { %v16478_v49 = vmul.f32 1.442695, %v16477_v37 }
0x1f6f   : > { %28888 = vpow2.f32 %v16478_v49 }
0x1f79   : > { %v31141_v8 = vpop.eup %28888 }
0x1f7a   : > { %v16480_v51 = vsel %vm2264_vm4, %v31141_v8, 0.0 }
0x1f7b   : > { %16481 = vadd.xlane.f32.xlu1 %v16480_v51 }
0x1f84   : > { %v13731_v56 = vpop.xlane.xlu0 %13730 }
0x1f85   : > { %28890 = vrcp.f32 %v13731_v56 }
0x1f88   : > { %v13735_v3 = vpop.permute.xlu0 %13734 }
0x1f89   : > { %v13741_v60 = vand.u32 4294901760, %v13735_v3 }
0x1f8b   : > { %26145 = vmatpush3.msra.mxu1 %v13741_v60  ;;  %v13818_v43 = vsub.f32 %v13735_v3, %v13741_v60 }
0x1f8c   : > { %26149 = vmatprep.subr.mxu1 %v32762_v39 }
0x1f8d   : > { %v13819_v63 = vand.u32 4294901760, %v13818_v43 }
0x1f8f   : > { %v28891_v50 = vpop.eup %28890  ;;  %v13820_v53 = vsub.f32 %v13818_v43, %v13819_v63 }
0x1f90   : > { %v13733_v24 = vmul.f32 %v28891_v50, %v28883_v44 }
0x1f91   : > { %v13821_v28 = vand.u32 4294901760, %v13820_v53 }
0x1f92   : > { %v13738_v19 = vsel %vm2264_vm4, %v13733_v24, 0 }
0x1f93   : > { %v13806_v2 = vand.u32 4294901760, %v13738_v19 }
0x1f95   : > { %v13807_v10 = vsub.f32 %v13738_v19, %v13806_v2  ;;  %v23911_v19 = vld [vmem:[%s32596_s7 + $0x20] sm:$0xff] }
0x1f97   : > { %v13808_v61 = vand.u32 4294901760, %v13807_v10 }
0x1f99   : > { %v13809_v34 = vsub.f32 %v13807_v10, %v13808_v61 }
0x1f9b   : > { %v13810_v1 = vand.u32 4294901760, %v13809_v34 }
0x1f9d   : > { %26147 = vmatmul.mubr.f32.vlgmr.msra.gmra.mrb[44].mxu1 %v13810_v1 }
0x1f9e   : > { %26150 = vmatpush3.msra.mxu1 %v13821_v28  ;;  %26151 = vmatprep.mubr.msk.f32.mxu1 %vm28991_vm0, %v32762_v39 }
0x1f9f   : > { %26154 = vmatprep.subr.mxu1 %v32762_v39 }
0x1fa5   : > { %26152 = vmatmul.mubr.f32.vlgmr.msra.gmra.mrb[44].mxu1 %v13806_v2 }
0x1fa6   : > { %26155 = vmatpush3.msra.mxu1 %v13818_v43  ;;  %26156 = vmatprep.mubr.msk.f32.mxu1 %vm28991_vm0, %v32762_v39 }
0x1fa7   : > { %26159 = vmatprep.subr.mxu1 %v32762_v39 }
0x1fad   : > { %26157 = vmatmul.mubr.f32.vlgmr.msra.gmra.mrb[44].mxu1 %v13807_v10 }
0x1fae   : > { %26160 = vmatpush3.msra.mxu1 %v13741_v60  ;;  %26161 = vmatprep.mubr.msk.f32.mxu1 %vm28991_vm0, %v32762_v39 }
0x1faf   : > { %26164 = vmatprep.subr.mxu1 %v32762_v39 }
0x1fb0   : > { %v14648_v11 = vpop.xlane.xlu1 %14647 }
0x1fb1   : > { %28892 = vrcp.f32 %v14648_v11 }
0x1fb4   : > { %v14652_v54 = vpop.permute.xlu1 %14651 }
0x1fb5   : > { %26162 = vmatmul.mubr.f32.vlgmr.msra.gmra.mrb[44].mxu1 %v13808_v61  ;;  %v14658_v31 = vand.u32 4294901760, %v14652_v54 }
0x1fb6   : > { %26165 = vmatpush3.msra.mxu1 %v13819_v63  ;;  %26166 = vmatprep.mubr.msk.f32.mxu1 %vm28991_vm0, %v32762_v39  ;;  %v16956_v63 = vand.u32 4294901760, %v23911_v19 }
0x1fb7   : > { %26169 = vmatprep.subr.mxu1 %v32762_v39  ;;  %v14735_v12 = vsub.f32 %v14652_v54, %v14658_v31 }
0x1fb8   : > { %v15569_v62 = vpop.permute.xlu1 %15568  ;;  %v17036_v61 = vsub.f32 %v23911_v19, %v16956_v63 }
0x1fb9   : > { %v14736_v42 = vand.u32 4294901760, %v14735_v12  ;;  %v15575_v55 = vand.u32 4294901760, %v15569_v62 }
0x1fba   : > { %v17037_v34 = vand.u32 4294901760, %v17036_v61 }
0x1fbb   : > { %v28893_v14 = vpop.eup %28892  ;;  %v14737_v46 = vsub.f32 %v14735_v12, %v14736_v42  ;;  %v15652_v32 = vsub.f32 %v15569_v62, %v15575_v55 }
0x1fbc   : > { %v14650_v18 = vmul.f32 %v28893_v14, %v28885_v20  ;;  %v17038_v28 = vsub.f32 %v17036_v61, %v17037_v34 }
0x1fbd   : > { %26167 = vmatmul.mubr.f32.vlgmr.msra.gmra.mrb[44].mxu1 %v13806_v2  ;;  %v14738_v38 = vand.u32 4294901760, %v14737_v46  ;;  %v15653_v30 = vand.u32 4294901760, %v15652_v32 }
0x1fbe   : > { %26170 = vmatpush3.msra.mxu1 %v13741_v60  ;;  %26171 = vmatprep.mubr.msk.f32.mxu1 %vm28991_vm0, %v32762_v39  ;;  %v14655_v16 = vsel %vm2264_vm4, %v14650_v18, 0  ;;  %v17039_v54 = vand.u32 4294901760, %v17038_v28 }
0x1fbf   : > { %26204 = vmatprep.subr.mxu1 %v32762_v39  ;;  %v14723_v17 = vand.u32 4294901760, %v14655_v16  ;;  %v15654_v44 = vsub.f32 %v15652_v32, %v15653_v30 }
0x1fc1   : > { %v14724_v0 = vsub.f32 %v14655_v16, %v14723_v17  ;;  %v15655_v58 = vand.u32 4294901760, %v15654_v44  ;;  %v23913_v16 = vld [vmem:[%s32596_s7 + $0x30] sm:$0xff] }
0x1fc3   : > { %v14725_v4 = vand.u32 4294901760, %v14724_v0 }
0x1fc5   : > { %26172 = vmatmul.mubr.f32.vlgmr.msra.gmra.mrb[44].mxu1 %v13806_v2  ;;  %v14726_v35 = vsub.f32 %v14724_v0, %v14725_v4  ;;  %v23912_v2 = vld [vmem:[%s32596_s7 + $0x28] sm:$0xff] }
0x1fc6   : > { %26205 = vmatpush3.msra.mxu1 %v14658_v31  ;;  %26206 = vmatprep.mubr.msk.f32.mxu1 %vm28991_vm0, %v32762_v39  ;;  %v16959_v10 = vand.u32 4294901760, %v23912_v2 }
0x1fc7   : > { %26209 = vmatprep.subr.mxu1 %v32762_v39  ;;  %v14727_v29 = vand.u32 4294901760, %v14726_v35 }
0x1fc8   : > { %v17043_v53 = vsub.f32 %v23912_v2, %v16959_v10 }
0x1fc9   : > { %26207 = vmatmul.mubr.f32.vlgmr.msra.gmra.mrb[46].mxu1 %v14727_v29 }
0x1fca   : > { %26210 = vmatpush3.msra.mxu1 %v14738_v38  ;;  %26211 = vmatprep.mubr.msk.f32.mxu1 %vm28991_vm0, %v32762_v39  ;;  %v17044_v1 = vand.u32 4294901760, %v17043_v53 }
0x1fcb   : > { %26214 = vmatprep.subr.mxu1 %v32762_v39 }
0x1fcc   : > { %v17045_v11 = vsub.f32 %v17043_v53, %v17044_v1 }
0x1fd1   : > { %26212 = vmatmul.mubr.f32.vlgmr.msra.gmra.mrb[46].mxu1 %v14723_v17 }
0x1fd2   : > { %26215 = vmatpush3.msra.mxu1 %v14735_v12  ;;  %26216 = vmatprep.mubr.msk.f32.mxu1 %vm28991_vm0, %v32762_v39 }
0x1fd3   : > { %26219 = vmatprep.subr.mxu1 %v32762_v39 }
0x1fd9   : > { %26217 = vmatmul.mubr.f32.vlgmr.msra.gmra.mrb[46].mxu1 %v14724_v0 }
0x1fda   : > { %26220 = vmatpush3.msra.mxu1 %v14658_v31  ;;  %26221 = vmatprep.mubr.msk.f32.mxu1 %vm28991_vm0, %v32762_v39 }
0x1fdb   : > { %26224 = vmatprep.subr.mxu1 %v32762_v39 }
0x1fdc   : > { %v15565_v23 = vpop.xlane.xlu0 %15564 }
0x1fdd   : > { %28894 = vrcp.f32 %v15565_v23 }
0x1fe0   : > { %v16486_v20 = vpop.permute.xlu0 %16485 }
0x1fe1   : > { %26222 = vmatmul.mubr.f32.vlgmr.msra.gmra.mrb[46].mxu1 %v14725_v4  ;;  %v16492_v25 = vand.u32 4294901760, %v16486_v20 }
0x1fe2   : > { %26225 = vmatpush3.msra.mxu1 %v14736_v42  ;;  %26226 = vmatprep.mubr.msk.f32.mxu1 %vm28991_vm0, %v32762_v39  ;;  %v16962_v42 = vand.u32 4294901760, %v23913_v16 }
0x1fe3   : > { %26229 = vmatprep.subr.mxu1 %v32762_v39  ;;  %v16569_v59 = vsub.f32 %v16486_v20, %v16492_v25 }
0x1fe4   : > { %v17050_v4 = vsub.f32 %v23913_v16, %v16962_v42  ;;  %v23916_v16 = vld [vmem:[%s32597_s8 + $0x20] sm:$0xff] }
0x1fe5   : > { %v16570_v21 = vand.u32 4294901760, %v16569_v59 }
0x1fe6   : > { %v17051_v35 = vand.u32 4294901760, %v17050_v4 }
0x1fe7   : > { %v28895_v40 = vpop.eup %28894  ;;  %v16571_v51 = vsub.f32 %v16569_v59, %v16570_v21 }
0x1fe8   : > { %v15567_v33 = vmul.f32 %v28895_v40, %v31135_v27  ;;  %v17052_v38 = vsub.f32 %v17050_v4, %v17051_v35 }
0x1fe9   : > { %26227 = vmatmul.mubr.f32.vlgmr.msra.gmra.mrb[46].mxu1 %v14723_v17  ;;  %v16572_v3 = vand.u32 4294901760, %v16571_v51 }
0x1fea   : > { %26230 = vmatpush3.msra.mxu1 %v14658_v31  ;;  %26231 = vmatprep.mubr.msk.f32.mxu1 %vm28991_vm0, %v32762_v39  ;;  %v15572_v48 = vsel %vm2264_vm4, %v15567_v33, 0  ;;  %v17046_v31 = vand.u32 4294901760, %v17045_v11  ;;  %v17053_v62 = vand.u32 4294901760, %v17052_v38  ;;  %v32805_v11 = vld [vmem:[#allocation15_spill] sm:$0xff] }
0x1feb   : > { %26264 = vmatprep.subr.mxu1 %v32762_v39  ;;  %v15640_v57 = vand.u32 4294901760, %v15572_v48 }
0x1fec   : > { %v27789_v14 = vpack.c.bf16 %v17046_v31, %v17039_v54 }
0x1fed   : > { %v15641_v26 = vsub.f32 %v15572_v48, %v15640_v57  ;;  %v27795_v48 = vpack.c.bf16 %v17043_v53, %v17036_v61 }
0x1fef   : > { %v15642_v5 = vand.u32 4294901760, %v15641_v26 }
0x1ff1   : > { %26232 = vmatmul.mubr.f32.vlgmr.msra.gmra.mrb[46].mxu1 %v14723_v17  ;;  %v15643_v9 = vsub.f32 %v15641_v26, %v15642_v5  ;;  %v23914_v17 = vld [vmem:[%s32596_s7 + $0x38] sm:$0xff] }
0x1ff2   : > { %26265 = vmatpush3.msra.mxu1 %v15575_v55  ;;  %26266 = vmatprep.mubr.msk.f32.mxu1 %vm28991_vm0, %v32762_v39  ;;  %v16965_v0 = vand.u32 4294901760, %v23914_v17 }
0x1ff3   : > { %26269 = vmatprep.subr.mxu1 %v32762_v39  ;;  %v15644_v13 = vand.u32 4294901760, %v15643_v9 }
0x1ff4   : > { %v17057_v46 = vsub.f32 %v23914_v17, %v16965_v0  ;;  %v27786_v33 = vpack.c.bf16 %v16965_v0, %v16962_v42  ;;  %v23917_v17 = vld [vmem:[%s32597_s8 + $0x28] sm:$0xff]  ;;  %v23918_v42 = vld [vmem:[%s32597_s8 + $0x30] sm:$0xff]  ;;  %v17482_v0 = vand.u32 4294901760, %v23916_v16 }
0x1ff5   : > { %26267 = vmatmul.mubr.f32.vlgmr.msra.gmra.mrb[48].mxu1 %v15644_v13 }
0x1ff6   : > { %26270 = vmatpush3.msra.mxu1 %v15655_v58  ;;  %26271 = vmatprep.mubr.msk.f32.mxu1 %vm28991_vm0, %v32762_v39  ;;  %v17058_v29 = vand.u32 4294901760, %v17057_v46 }
0x1ff7   : > { %26274 = vmatprep.subr.mxu1 %v32762_v39 }
0x1ff8   : > { %v17059_v23 = vsub.f32 %v17057_v46, %v17058_v29  ;;  %v27810_v44 = vpack.c.bf16 %v17058_v29, %v17051_v35  ;;  %v17488_v35 = vand.u32 4294901760, %v23918_v42 }
0x1ffd   : > { %26272 = vmatmul.mubr.f32.vlgmr.msra.gmra.mrb[48].mxu1 %v15640_v57 }
0x1ffe   : > { %26275 = vmatpush3.msra.mxu1 %v15652_v32  ;;  %26276 = vmatprep.mubr.msk.f32.mxu1 %vm28991_vm0, %v32762_v39  ;;  %v27783_v32 = vpack.c.bf16 %v16959_v10, %v16956_v63 }
0x1fff   : > { %26279 = vmatprep.subr.mxu1 %v32762_v39 }
0x2000   : > { %27784 = vmatpush3.bf16.msra.mxu0 %v27783_v32 }
0x2001   : > { %27785 = vmatprep.subr.bf16.mxu0 %v32761_v45 }
0x2004   : > { %27787 = vmatpush3.bf16.msra.mxu0 %v27786_v33 }
0x2005   : > { %26277 = vmatmul.mubr.f32.vlgmr.msra.gmra.mrb[48].mxu1 %v15641_v26  ;;  %27794 = vmatprep.subr.bf16.mxu0 %v32761_v45  ;;  %v27798_v26 = vpack.c.bf16 %v17057_v46, %v17050_v4  ;;  %v17485_v4 = vand.u32 4294901760, %v23917_v17  ;;  %v23919_v46 = vld [vmem:[%s32597_s8 + $0x38] sm:$0xff] }
0x2006   : > { %26280 = vmatpush3.msra.mxu1 %v15575_v55  ;;  %26281 = vmatprep.mubr.msk.f32.mxu1 %vm28991_vm0, %v32762_v39  ;;  %v17491_v29 = vand.u32 4294901760, %v23919_v46 }
0x2007   : > { %26284 = vmatprep.subr.mxu1 %v32762_v39  ;;  %v31297_v38 = vpack.c.bf16 %v17485_v4, %v17482_v0 }
0x2008   : > { %v16482_v15 = vpop.xlane.xlu1 %16481 }
0x2009   : > { %28896 = vrcp.f32 %v16482_v15 }
0x200d   : > { %26282 = vmatmul.mubr.f32.vlgmr.msra.gmra.mrb[48].mxu1 %v15642_v5  ;;  %v27807_v5 = vpack.c.bf16 %v17044_v1, %v17037_v34 }
0x200e   : > { %26285 = vmatpush3.msra.mxu1 %v15653_v30  ;;  %26286 = vmatprep.mubr.msk.f32.mxu1 %vm28991_vm0, %v32762_v39 }
0x200f   : > { %26289 = vmatprep.subr.mxu1 %v32762_v39 }
0x2013   : > { %v28897_v22 = vpop.eup %28896 }
0x2014   : > { %v16484_v47 = vmul.f32 %v28897_v22, %v31141_v8 }
0x2015   : > { %26287 = vmatmul.mubr.f32.vlgmr.msra.gmra.mrb[48].mxu1 %v15640_v57 }
0x2016   : > { %26290 = vmatpush3.msra.mxu1 %v15575_v55  ;;  %26291 = vmatprep.mubr.msk.f32.mxu1 %vm28991_vm0, %v32762_v39  ;;  %v16489_v27 = vsel %vm2264_vm4, %v16484_v47, 0  ;;  %v17060_v55 = vand.u32 4294901760, %v17059_v23  ;;  %v31299_v23 = vsub.f32 %v23916_v16, %v17482_v0 }
0x2017   : > { %26324 = vmatprep.subr.mxu1 %v32762_v39  ;;  %v16557_v36 = vand.u32 4294901760, %v16489_v27 }
0x2018   : > { %v27792_v40 = vpack.c.bf16 %v17060_v55, %v17053_v62  ;;  %v31301_v62 = vsub.f32 %v23917_v17, %v17485_v4  ;;  %v31303_v55 = vsub.f32 %v23918_v42, %v17488_v35 }
0x2019   : > { %v16558_v37 = vsub.f32 %v16489_v27, %v16557_v36 }
0x201b   : > { %v16559_v49 = vand.u32 4294901760, %v16558_v37 }
0x201d   : > { %26292 = vmatmul.mubr.f32.vlgmr.msra.gmra.mrb[48].mxu1 %v15640_v57  ;;  %v16560_v56 = vsub.f32 %v16558_v37, %v16559_v49 }
0x201e   : > { %26325 = vmatpush3.msra.mxu1 %v16492_v25  ;;  %26326 = vmatprep.mubr.msk.f32.mxu1 %vm28991_vm0, %v32762_v39 }
0x201f   : > { %26329 = vmatprep.subr.mxu1 %v32762_v39  ;;  %v16561_v8 = vand.u32 4294901760, %v16560_v56 }
0x2021   : > { %26327 = vmatmul.mubr.f32.vlgmr.msra.gmra.mrb[50].mxu1 %v16561_v8 }
0x2022   : > { %26330 = vmatpush3.msra.mxu1 %v16572_v3  ;;  %26331 = vmatprep.mubr.msk.f32.mxu1 %vm28991_vm0, %v32762_v39 }
0x2023   : > { %26334 = vmatprep.subr.mxu1 %v32762_v39 }
0x2029   : > { %26332 = vmatmul.mubr.f32.vlgmr.msra.gmra.mrb[50].mxu1 %v16557_v36 }
0x202a   : > { %26335 = vmatpush3.msra.mxu1 %v16569_v59  ;;  %26336 = vmatprep.mubr.msk.f32.mxu1 %vm28991_vm0, %v32762_v39 }
0x202b   : > { %26339 = vmatprep.subr.mxu1 %v32762_v39 }
0x2031   : > { %26337 = vmatmul.mubr.f32.vlgmr.msra.gmra.mrb[50].mxu1 %v16558_v37 }
0x2032   : > { %26340 = vmatpush3.msra.mxu1 %v16492_v25  ;;  %26341 = vmatprep.mubr.msk.f32.mxu1 %vm28991_vm0, %v32762_v39 }
0x2033   : > { %26344 = vmatprep.subr.mxu1 %v32762_v39 }
0x2039   : > { %26342 = vmatmul.mubr.f32.vlgmr.msra.gmra.mrb[50].mxu1 %v16559_v49 }
0x203a   : > { %26345 = vmatpush3.msra.mxu1 %v16570_v21  ;;  %26346 = vmatprep.mubr.msk.f32.mxu1 %vm28991_vm0, %v32762_v39 }
0x203b   : > { %26349 = vmatprep.subr.mxu1 %v32762_v39 }
0x2041   : > { %26347 = vmatmul.mubr.f32.vlgmr.msra.gmra.mrb[50].mxu1 %v16557_v36 }
0x2042   : > { %26350 = vmatpush3.msra.mxu1 %v16492_v25  ;;  %26351 = vmatprep.mubr.msk.f32.mxu1 %vm28991_vm0, %v32762_v39 }
0x2043   : > { %27788 = vmatprep.subr.bf16.mxu1 %v32761_v45 }
0x2049   : > { %26352 = vmatmul.mubr.f32.vlgmr.msra.gmra.mrb[50].mxu1 %v16557_v36 }
0x204a   : > { %26373 = vmatprep.mubr.msk.f32.mxu1 %vm28991_vm0, %v32762_v39  ;;  %27790 = vmatpush3.bf16.msra.mxu1 %v27789_v14 }
0x204b   : > { %27791 = vmatprep.subr.bf16.mxu1 %v32761_v45 }
0x204e   : > { %27793 = vmatpush3.bf16.msra.mxu1 %v27792_v40  ;;  %v31305_v40 = vsub.f32 %v23919_v46, %v17491_v29 }
0x204f   : > { %27800 = vmatprep.subr.bf16.mxu1 %v32761_v45 }
0x2098   : > { %v14182_v60 = vpop.f32.mrb[44].mxu1 }
0x2099   : > { %v26173_v50 = vpop.f32.mrb[45].mxu1 }
0x20c4   : > { %v15099_v24 = vpop.f32.mrb[46].mxu1 }
0x20c5   : > { %16938 = vrot.lane.b32.xlu1 %v15099_v24, %s32756_s25  ;;  %v26233_v43 = vpop.f32.mrb[47].mxu1 }
0x20f0   : > { %v16016_v18 = vpop.f32.mrb[48].mxu1 }
0x20f1   : > { %16942 = vrot.lane.b32.xlu0 %v16016_v18, %s32757_s26  ;;  %v26293_v12 = vpop.f32.mrb[49].mxu1 }
0x20f2   : > { %v32806_v12 = vld [vmem:[#allocation14_spill] sm:$0xff] }
0x211c   : > { %v16933_v57 = vpop.f32.mrb[50].mxu1 }
0x211d   : > { %16946 = vrot.lane.b32.xlu0 %v16933_v57, %s32758_s1  ;;  %v26353_v30 = vpop.f32.mrb[51].mxu1 }
0x2137   : > { %v16939_v9 = vpop.permute.xlu1 %16938 }
0x2138   : > { %v16949_v58 = vsel %vm2264_vm4, %v14182_v60, %v16939_v9  ;;  %v17584_v9 = vand.u32 4294901760, %v31305_v40 }
0x2163   : > { %v16943_v13 = vpop.permute.xlu0 %16942 }
0x2164   : > { %v16950_v15 = vsel %vm5943_vm9, %v16949_v58, %v16943_v13 }
0x218f   : > { %v16947_v20 = vpop.permute.xlu0 %16946 }
0x2190   : > { %v16951_v25 = vsel %vm5945_vm10, %v16950_v15, %v16947_v20  ;;  %v17585_v15 = vsub.f32 %v31305_v40, %v17584_v9 }
0x2191   : > { %v16953_v22 = vsel %vm679_vm1, %v16951_v25, 0 }
0x2192   : > { %v17024_v59 = vand.u32 4294901760, %v16953_v22  ;;  %v17586_v25 = vand.u32 4294901760, %v17585_v15 }
0x2194   : > { %v17025_v47 = vsub.f32 %v16953_v22, %v17024_v59  ;;  %26374 = vmatmul.mubr.f32.vlgmr.msra.gmra.mrb[52].mxu1 %v17024_v59 }
0x2195   : > { %27802 = vmatpush3.bf16.msra.mxu1 %v27783_v32  ;;  %26395 = vmatprep.mubr.msk.f32.mxu1 %vm28991_vm0, %v32762_v39 }
0x2196   : > { %27803 = vmatprep.subr.bf16.mxu1 %v32761_v45  ;;  %v17026_v27 = vand.u32 4294901760, %v17025_v47 }
0x2198   : > { %v17027_v36 = vsub.f32 %v17025_v47, %v17026_v27 }
0x2199   : > { %27805 = vmatpush3.bf16.msra.mxu1 %v27786_v33 }
0x219a   : > { %27812 = vmatprep.subr.bf16.mxu1 %v32761_v45  ;;  %v17028_v21 = vand.u32 4294901760, %v17027_v36 }
0x219c   : > { %26396 = vmatmul.mubr.f32.vlgmr.msra.gmra.mrb[54].mxu1 %v17026_v27  ;;  %26363 = vmatmul.mubr.f32.vlgmr.msra.gmra.mrb[46].mxu0 %v17028_v21 }
0x219d   : > { %27796 = vmatpush3.bf16.msra.mxu0 %v27795_v48  ;;  %27814 = vmatpush3.bf16.msra.mxu1 %v27783_v32  ;;  %v31308_v32 = vpack.c.bf16 %v17491_v29, %v17488_v35  ;;  %v17570_v48 = vand.u32 4294901760, %v31301_v62 }
0x219e   : > { %27797 = vmatprep.subr.bf16.mxu0 %v32761_v45  ;;  %27815 = vmatprep.subr.bf16.mxu1 %v32761_v45 }
0x219f   : > { %26384 = vmatprep.mubr.msk.f32.mxu0 %vm28991_vm0, %v32762_v39  ;;  %26417 = vmatprep.mubr.msk.f32.mxu1 %vm28991_vm0, %v32762_v39  ;;  %v17571_v30 = vsub.f32 %v31301_v62, %v17570_v48 }
0x21a1   : > { %27799 = vmatpush3.bf16.msra.mxu0 %v27798_v26  ;;  %27817 = vmatpush3.bf16.msra.mxu1 %v27786_v33  ;;  %v17563_v33 = vand.u32 4294901760, %v31299_v23 }
0x21a2   : > { %27806 = vmatprep.subr.bf16.mxu0 %v32761_v45  ;;  %27854 = vmatprep.subr.bf16.mxu1 %v32761_v45 }
0x21a3   : > { %v17564_v57 = vsub.f32 %v31299_v23, %v17563_v33  ;;  %v31329_v27 = vpack.c.bf16 %v17570_v48, %v17563_v33 }
0x21a4   : > { %26385 = vmatmul.mubr.f32.vlgmr.msra.gmra.mrb[48].mxu0 %v17025_v47  ;;  %26418 = vmatmul.mubr.f32.vlgmr.msra.gmra.mrb[56].mxu1 %v17024_v59  ;;  %v27834_v47 = vpack.c.bf16 %v31305_v40, %v31303_v55 }
0x21a5   : > { %27808 = vmatpush3.bf16.msra.mxu0 %v27807_v5  ;;  %26406 = vmatprep.mubr.msk.f32.mxu0 %vm28991_vm0, %v32762_v39  ;;  %v17565_v26 = vand.u32 4294901760, %v17564_v57  ;;  %v17572_v5 = vand.u32 4294901760, %v17571_v30 }
0x21a6   : > { %27809 = vmatprep.subr.bf16.mxu0 %v32761_v45  ;;  %26490 = vmatprep.mubr.msk.f32.mxu1 %vm28991_vm0, %v32762_v39 }
0x21a7   : > { %v31319_v13 = vpack.c.bf16 %v17572_v5, %v17565_v26 }
0x21a9   : > { %27811 = vmatpush3.bf16.msra.mxu0 %v27810_v44  ;;  %v17577_v44 = vand.u32 4294901760, %v31303_v55 }
0x21aa   : > { %27818 = vmatprep.subr.bf16.mxu0 %v32761_v45 }
0x21ab   : > { %v17578_v58 = vsub.f32 %v31303_v55, %v17577_v44  ;;  %v31331_v36 = vpack.c.bf16 %v17584_v9, %v17577_v44 }
0x21ac   : > { %26407 = vmatmul.mubr.f32.vlgmr.msra.gmra.mrb[50].mxu0 %v17024_v59  ;;  %v27831_v59 = vpack.c.bf16 %v31301_v62, %v31299_v23 }
0x21ad   : > { %26428 = vmatprep.mubr.msk.f32.mxu0 %vm28991_vm0, %v32762_v39  ;;  %27820 = vmatpush3.bf16.msra.mxu0 %v31297_v38  ;;  %v17579_v20 = vand.u32 4294901760, %v17578_v58 }
0x21ae   : > { %27821 = vmatprep.subr.bf16.mxu0 %v32761_v45 }
0x21af   : > { %v31323_v22 = vpack.c.bf16 %v17586_v25, %v17579_v20 }
0x21b1   : > { %27823 = vmatpush3.bf16.msra.mxu0 %v31308_v32 }
0x21b2   : > { %27824 = vmatprep.subr.bf16.mxu0 %v32761_v45 }
0x2267   : > { %v17121_v37 = vpop.f32.mrb[52].mxu1 }
0x2268   : > { %v26375_v49 = vpop.f32.mrb[53].mxu1 }
0x226f   : > { %v17278_v51 = vpop.f32.mrb[54].mxu1  ;;  %v17030_v56 = vpop.f32.mrb[46].mxu0 }
0x2270   : > { %v17122_v8 = vadd.f32 %v17121_v37, %v17030_v56  ;;  %v26397_v3 = vpop.f32.mrb[55].mxu1  ;;  %v26364_v60 = vpop.f32.mrb[47].mxu0 }
0x2277   : > { %v17201_v50 = vpop.f32.mrb[48].mxu0  ;;  %v17436_v24 = vpop.f32.mrb[56].mxu1 }
0x2278   : > { %v17202_v43 = vadd.f32 %v17201_v50, %v17122_v8  ;;  %v26386_v19 = vpop.f32.mrb[49].mxu0  ;;  %v26419_v2 = vpop.f32.mrb[57].mxu1 }
0x227a   : > { %v17279_v63 = vadd.f32 %v17278_v51, %v17202_v43 }
0x227f   : > { %v17361_v10 = vpop.f32.mrb[50].mxu0 }
0x2280   : > { %v17362_v61 = vadd.f32 %v17361_v10, %v17279_v63  ;;  %v26408_v53 = vpop.f32.mrb[51].mxu0 }
0x2282   : > { %v17437_v34 = vadd.f32 %v17436_v24, %v17362_v61 }
0x2284   : > { %v31267_v1 = vadd.f32 %v17437_v34, %v30967_v52 }
0x2286   : > { %v17443_v28 = vsel %vm679_vm1, %v31267_v1, 0.0 }
0x2287   : > { %17444 = vadd.xlane.f32.xlu0 %v17443_v28 }
0x229d   : > { %17972 = vrot.lane.b32.xlu0 %v32805_v11, %s32760_s19 }
0x22a1   : > { %18924 = vrot.lane.b32.xlu0 %v32805_v11, %s32802_s23 }
0x2314   : > { %v17445_v54 = vpop.xlane.xlu0 %17444 }
0x2315   : > { %v17446_v31 = vmul.f32 0.03125, %v17445_v54 }
0x2317   : > { %v31276_v14 = vsub.f32 %v31267_v1, %v17446_v31 }
0x2318   : > { %v17973_v21 = vpop.permute.xlu0 %17972 }
0x2319   : > { %v17448_v18 = vmul.f32 %v31276_v14, %v31276_v14  ;;  %v17979_v37 = vsel %vm2264_vm4, %v17973_v21, 0  ;;  %v23915_v21 = vld [vmem:[%s32601_s12 + $0x2] sm:$0x3] }
0x231a   : > { %v17984_v51 = vand.u32 4294901760, %v17979_v37 }
0x231b   : > { %v17449_v52 = vsel %vm679_vm1, %v17448_v18, 0.0 }
0x231c   : > { %17450 = vadd.xlane.f32.xlu1 %v17449_v52  ;;  %v18925_v49 = vpop.permute.xlu0 %18924  ;;  %v31337_v3 = vsub.f32 %v17979_v37, %v17984_v51  ;;  %v17465_v37 = vrot.slane %v23915_v21, %v32796_v7 }
0x231d   : > { %v31335_v56 = vsel %vm2264_vm4, %v18925_v49, 0  ;;  %v17471_v49 = vrot.slane %v23915_v21, %v32797_v6 }
0x231e   : > { %v18935_v60 = vand.u32 4294901760, %v31335_v56  ;;  %v18063_v43 = vand.u32 4294901760, %v31337_v3 }
0x2320   : > { %v31344_v19 = vsub.f32 %v31335_v56, %v18935_v60  ;;  %v18064_v34 = vsub.f32 %v31337_v3, %v18063_v43 }
0x2322   : > { %v19014_v28 = vand.u32 4294901760, %v31344_v19  ;;  %v18065_v4 = vand.u32 4294901760, %v18064_v34 }
0x2324   : > { %v19015_v46 = vsub.f32 %v31344_v19, %v19014_v28 }
0x2326   : > { %v19016_v58 = vand.u32 4294901760, %v19015_v46 }
0x232d   : > { %17974 = vrot.lane.b32.xlu1 %v32806_v12, %s32760_s19 }
0x2331   : > { %18926 = vrot.lane.b32.xlu1 %v32806_v12, %s32802_s23 }
0x23a9   : > { %v17451_v8 = vpop.xlane.xlu1 %17450 }
0x23aa   : > { %v17452_v50 = vmul.f32 0.032258064, %v17451_v8 }
0x23ac   : > { %28898 = vrsqrt.f32 %v17452_v50  ;;  %vm17455_vm13 = vcmp.eq.f32.partialorder %v17452_v50, inf  ;;  %vm17457_vm2 = vcmp.eq.f32.partialorder %v17452_v50, 0.0  ;;  %v17458_v57 = vand.u32 2147483648, %v17452_v50 }
0x23ad   : > { %v17975_v24 = vpop.permute.xlu1 %17974 }
0x23ae   : > { %v17981_v2 = vsel %vm2264_vm4, %v17975_v24, 0 }
0x23af   : > { %v17987_v63 = vand.u32 4294901760, %v17981_v2 }
0x23b1   : > { %v31347_v10 = vpack.c.bf16 %v17987_v63, %v17984_v51  ;;  %v31349_v61 = vsub.f32 %v17981_v2, %v17987_v63  ;;  %v18927_v53 = vpop.permute.xlu1 %18926  ;;  %v17466_v51 = vmul.f32 %v17465_v37, %v31276_v14 }
0x23b2   : > { %v31354_v54 = vsel %vm2264_vm4, %v18927_v53, 0 }
0x23b3   : > { %v18070_v31 = vand.u32 4294901760, %v31349_v61  ;;  %v27861_v18 = vpack.c.bf16 %v31349_v61, %v31337_v3  ;;  %v18938_v52 = vand.u32 4294901760, %v31354_v54  ;;  %27856 = vmatpush3.bf16.xpose.msra.mxu1 %v31347_v10 }
0x23b4   : > { %27857 = vmatprep.subr.bf16.mxu1 %v32761_v45 }
0x23b5   : > { %v18071_v16 = vsub.f32 %v31349_v61, %v18070_v31  ;;  %v31366_v17 = vsub.f32 %v31354_v54, %v18938_v52  ;;  %v31368_v42 = vpack.c.bf16 %v18070_v31, %v18063_v43 }
0x23b6   : > { %v28899_v0 = vpop.eup %28898 }
0x23b7   : > { %v17454_v35 = vmul.f32 %v28899_v0, %v17452_v50  ;;  %v18072_v29 = vand.u32 4294901760, %v18071_v16  ;;  %v19021_v33 = vand.u32 4294901760, %v31366_v17  ;;  %v27897_v48 = vpack.c.bf16 %v31366_v17, %v31344_v19 }
0x23b9   : > { %v17456_v30 = vsel %vm17455_vm13, %v17452_v50, %v17454_v35  ;;  %v19022_v26 = vsub.f32 %v31366_v17, %v19021_v33  ;;  %v31375_v5 = vpack.c.bf16 %v18072_v29, %v18065_v4  ;;  %v31377_v44 = vpack.c.bf16 %v19021_v33, %v19014_v28 }
0x23ba   : > { %v17459_v9 = vsel %vm17457_vm2, %v17458_v57, %v17456_v30 }
0x23bb   : > { %v17460_v15 = vadd.f32 1e-06, %v17459_v9  ;;  %v19023_v20 = vand.u32 4294901760, %v19022_v26 }
0x23bd   : > { %28900 = vrcp.f32 %v17460_v15  ;;  %v31379_v25 = vpack.c.bf16 %v19023_v20, %v19016_v58 }
0x23c7   : > { %v28901_v8 = vpop.eup %28900 }
0x23c8   : > { %v17467_v50 = vmul.f32 %v28901_v8, %v17466_v51 }
0x23ca   : > { %v17472_v24 = vadd.f32 %v17471_v49, %v17467_v50 }
0x23cc   : > { %v17479_v43 = vsel %vm679_vm1, %v17472_v24, 0 }
0x23cd   : > { %v17550_v2 = vand.u32 4294901760, %v17479_v43 }
0x23cf   : > { %v17551_v63 = vsub.f32 %v17479_v43, %v17550_v2 }
0x23d1   : > { %v17552_v53 = vand.u32 4294901760, %v17551_v63 }
0x23d3   : > { %v17553_v34 = vsub.f32 %v17551_v63, %v17552_v53 }
0x23d5   : > { %v17554_v28 = vand.u32 4294901760, %v17553_v34 }
0x23d7   : > { %26429 = vmatmul.mubr.f32.vlgmr.msra.gmra.mrb[52].mxu0 %v17554_v28 }
0x23d8   : > { %27826 = vmatpush3.bf16.msra.mxu0 %v31319_v13  ;;  %26439 = vmatprep.mubr.msk.f32.mxu0 %vm28991_vm0, %v32762_v39 }
0x23d9   : > { %27827 = vmatprep.subr.bf16.mxu0 %v32761_v45 }
0x23dc   : > { %27829 = vmatpush3.bf16.msra.mxu0 %v31323_v22 }
0x23dd   : > { %27830 = vmatprep.subr.bf16.mxu0 %v32761_v45 }
0x23df   : > { %26440 = vmatmul.mubr.f32.vlgmr.msra.gmra.mrb[52].mxu0 %v17550_v2 }
0x23e0   : > { %27832 = vmatpush3.bf16.msra.mxu0 %v27831_v59  ;;  %26450 = vmatprep.mubr.msk.f32.mxu0 %vm28991_vm0, %v32762_v39  ;;  %v27891_v59 = vpack.c.bf16 %v18938_v52, %v18935_v60  ;;  %v32807_v60 = vld [vmem:[#allocation17_spill] sm:$0xff] }
0x23e1   : > { %27833 = vmatprep.subr.bf16.mxu0 %v32761_v45 }
0x23e4   : > { %27835 = vmatpush3.bf16.msra.mxu0 %v27834_v47 }
0x23e5   : > { %27836 = vmatprep.subr.bf16.mxu0 %v32761_v45 }
0x23e7   : > { %26451 = vmatmul.mubr.f32.vlgmr.msra.gmra.mrb[52].mxu0 %v17551_v63 }
0x23e8   : > { %27838 = vmatpush3.bf16.msra.mxu0 %v31297_v38  ;;  %26461 = vmatprep.mubr.msk.f32.mxu0 %vm28991_vm0, %v32762_v39 }
0x23e9   : > { %27839 = vmatprep.subr.bf16.mxu0 %v32761_v45 }
0x23ec   : > { %27841 = vmatpush3.bf16.msra.mxu0 %v31308_v32 }
0x23ed   : > { %27842 = vmatprep.subr.bf16.mxu0 %v32761_v45 }
0x23ef   : > { %26462 = vmatmul.mubr.f32.vlgmr.msra.gmra.mrb[52].mxu0 %v17552_v53 }
0x23f0   : > { %27844 = vmatpush3.bf16.msra.mxu0 %v31329_v27  ;;  %26472 = vmatprep.mubr.msk.f32.mxu0 %vm28991_vm0, %v32762_v39 }
0x23f1   : > { %27845 = vmatprep.subr.bf16.mxu0 %v32761_v45 }
0x23f4   : > { %27847 = vmatpush3.bf16.msra.mxu0 %v31331_v36 }
0x23f5   : > { %27848 = vmatprep.subr.bf16.mxu0 %v32761_v45 }
0x23f7   : > { %26473 = vmatmul.mubr.f32.vlgmr.msra.gmra.mrb[52].mxu0 %v17550_v2 }
0x23f8   : > { %27850 = vmatpush3.bf16.msra.mxu0 %v31297_v38  ;;  %26483 = vmatprep.mubr.msk.f32.mxu0 %vm28991_vm0, %v32762_v39 }
0x23f9   : > { %27851 = vmatprep.subr.bf16.mxu0 %v32761_v45 }
0x23fc   : > { %27853 = vmatpush3.bf16.msra.mxu0 %v31308_v32 }
0x23fd   : > { %27872 = vmatprep.subr.bf16.mxu0 %v32761_v45 }
0x23ff   : > { %26484 = vmatmul.mubr.f32.vlgmr.msra.gmra.mrb[52].mxu0 %v17550_v2 }
0x2400   : > { %26532 = vmatprep.mubr.msk.f32.mxu0 %vm28991_vm0, %v32762_v39 }
0x24d2   : > { %v17962_v14 = vpop.f32.mrb[52].mxu0 }
0x24d3   : > { %v31424_v23 = vmul.f32 0.35355338, %v17962_v14  ;;  %v26485_v62 = vpop.f32.mrb[53].mxu0 }
0x24d5   : > { %v17977_v38 = vsel %vm2264_vm4, %v31424_v23, 0  ;;  %18922 = vrot.lane.b32.xlu0 %v31424_v23, %s32799_s30  ;;  %s32809_s30 = smov 32  }
0x24d6   : > { %v18050_v55 = vand.u32 4294901760, %v17977_v38 }
0x24d8   : > { %v18051_v40 = vsub.f32 %v17977_v38, %v18050_v55 }
0x24da   : > { %v18052_v13 = vand.u32 4294901760, %v18051_v40 }
0x24dc   : > { %v18053_v32 = vsub.f32 %v18051_v40, %v18052_v13 }
0x24de   : > { %v18054_v22 = vand.u32 4294901760, %v18053_v32 }
0x24e0   : > { %26491 = vmatmul.mubr.f32.vlgmr.msra.gmra.mrb[58].mxu1 %v18054_v22 }
0x24e1   : > { %27859 = vmatpush3.bf16.xpose.msra.mxu1 %v31375_v5  ;;  %26497 = vmatprep.mubr.msk.f32.mxu1 %vm28991_vm0, %v32762_v39 }
0x24e2   : > { %27860 = vmatprep.subr.bf16.mxu1 %v32761_v45 }
0x24e8   : > { %26498 = vmatmul.mubr.f32.vlgmr.msra.gmra.mrb[58].mxu1 %v18050_v55 }
0x24e9   : > { %27862 = vmatpush3.bf16.xpose.msra.mxu1 %v27861_v18  ;;  %26504 = vmatprep.mubr.msk.f32.mxu1 %vm28991_vm0, %v32762_v39 }
0x24ea   : > { %27863 = vmatprep.subr.bf16.mxu1 %v32761_v45 }
0x24f0   : > { %26505 = vmatmul.mubr.f32.vlgmr.msra.gmra.mrb[58].mxu1 %v18051_v40 }
0x24f1   : > { %27865 = vmatpush3.bf16.xpose.msra.mxu1 %v31347_v10  ;;  %26511 = vmatprep.mubr.msk.f32.mxu1 %vm28991_vm0, %v32762_v39 }
0x24f2   : > { %27866 = vmatprep.subr.bf16.mxu1 %v32761_v45 }
0x24f8   : > { %26512 = vmatmul.mubr.f32.vlgmr.msra.gmra.mrb[58].mxu1 %v18052_v13 }
0x24f9   : > { %27868 = vmatpush3.bf16.xpose.msra.mxu1 %v31368_v42  ;;  %26518 = vmatprep.mubr.msk.f32.mxu1 %vm28991_vm0, %v32762_v39 }
0x24fa   : > { %27869 = vmatprep.subr.bf16.mxu1 %v32761_v45 }
0x2500   : > { %26519 = vmatmul.mubr.f32.vlgmr.msra.gmra.mrb[58].mxu1 %v18050_v55 }
0x2501   : > { %27871 = vmatpush3.bf16.xpose.msra.mxu1 %v31347_v10  ;;  %26525 = vmatprep.mubr.msk.f32.mxu1 %vm28991_vm0, %v32762_v39 }
0x2502   : > { %27890 = vmatprep.subr.bf16.mxu1 %v32761_v45 }
0x2508   : > { %26526 = vmatmul.mubr.f32.vlgmr.msra.gmra.mrb[58].mxu1 %v18050_v55 }
0x2509   : > { %27892 = vmatpush3.bf16.xpose.msra.mxu1 %v27891_v59  ;;  %26574 = vmatprep.mubr.msk.f32.mxu1 %vm28991_vm0, %v32762_v39 }
0x250a   : > { %27893 = vmatprep.subr.bf16.mxu1 %v32761_v45 }
0x2547   : > { %v18923_v47 = vpop.permute.xlu0 %18922 }
0x2548   : > { %v18928_v27 = vsel %vm2264_vm4, %v18923_v47, 0 }
0x2549   : > { %v19001_v36 = vand.u32 4294901760, %v18928_v27 }
0x254b   : > { %v19002_v3 = vsub.f32 %v18928_v27, %v19001_v36 }
0x254d   : > { %v19003_v10 = vand.u32 4294901760, %v19002_v3 }
0x254f   : > { %v19004_v61 = vsub.f32 %v19002_v3, %v19003_v10 }
0x2551   : > { %v19005_v31 = vand.u32 4294901760, %v19004_v61 }
0x2553   : > { %26575 = vmatmul.mubr.f32.vlgmr.msra.gmra.mrb[60].mxu1 %v19005_v31 }
0x2554   : > { %27895 = vmatpush3.bf16.xpose.msra.mxu1 %v31379_v25  ;;  %26581 = vmatprep.mubr.msk.f32.mxu1 %vm28991_vm0, %v32762_v39 }
0x2555   : > { %27896 = vmatprep.subr.bf16.mxu1 %v32761_v45 }
0x255b   : > { %26582 = vmatmul.mubr.f32.vlgmr.msra.gmra.mrb[60].mxu1 %v19001_v36 }
0x255c   : > { %27898 = vmatpush3.bf16.xpose.msra.mxu1 %v27897_v48  ;;  %26588 = vmatprep.mubr.msk.f32.mxu1 %vm28991_vm0, %v32762_v39 }
0x255d   : > { %27899 = vmatprep.subr.bf16.mxu1 %v32761_v45 }
0x2563   : > { %26589 = vmatmul.mubr.f32.vlgmr.msra.gmra.mrb[60].mxu1 %v19002_v3 }
0x2564   : > { %27901 = vmatpush3.bf16.xpose.msra.mxu1 %v27891_v59  ;;  %26595 = vmatprep.mubr.msk.f32.mxu1 %vm28991_vm0, %v32762_v39 }
0x2565   : > { %27902 = vmatprep.subr.bf16.mxu1 %v32761_v45 }
0x256b   : > { %26596 = vmatmul.mubr.f32.vlgmr.msra.gmra.mrb[60].mxu1 %v19003_v10 }
0x256c   : > { %27904 = vmatpush3.bf16.xpose.msra.mxu1 %v31377_v44  ;;  %26602 = vmatprep.mubr.msk.f32.mxu1 %vm28991_vm0, %v32762_v39 }
0x256d   : > { %27905 = vmatprep.subr.bf16.mxu1 %v32761_v45 }
0x2573   : > { %26603 = vmatmul.mubr.f32.vlgmr.msra.gmra.mrb[60].mxu1 %v19001_v36 }
0x2574   : > { %27907 = vmatpush3.bf16.xpose.msra.mxu1 %v27891_v59  ;;  %26609 = vmatprep.mubr.msk.f32.mxu1 %vm28991_vm0, %v32762_v39 }
0x2575   : > { %27944 = vmatprep.subr.bf16.mxu1 %v32761_v45 }
0x257b   : > { %26610 = vmatmul.mubr.f32.vlgmr.msra.gmra.mrb[60].mxu1 %v19001_v36 }
0x257c   : > { %26700 = vmatprep.mubr.msk.f32.mxu1 %vm28991_vm0, %v32762_v39 }
0x25db   : > { %v18438_v56 = vpop.f32.mrb[58].mxu1 }
0x25dc   : > { %v31483_v19 = vadd.f32 %v18438_v56, %v32807_v60  ;;  %v26527_v54 = vpop.f32.mrb[59].mxu1 }
0x25de   : > { %32808 = vst [vmem:[#allocation12_spill] sm:$0xff] %v31483_v19  ;;  %v18442_v18 = vsel %vm7438_vm14, %v31483_v19, -inf }
0x25df   : > { %18443 = vmax.xlane.f32.xlu1 %v18442_v18 }
0x25f0   : > { %18455 = vrot.lane.b32.xlu1 %v32806_v12, %s32809_s30 }
0x264e   : > { %v19389_v52 = vpop.f32.mrb[60].mxu1 }
0x264f   : > { %v31490_v16 = vadd.f32 %v19389_v52, %v32807_v60  ;;  %v26611_v17 = vpop.f32.mrb[61].mxu1 }
0x2651   : > { %32810 = vst [vmem:[#allocation13_spill] sm:$0xff] %v31490_v16  ;;  %v19394_v42 = vsel %vm7438_vm14, %v31490_v16, -inf }
0x2652   : > { %19395 = vmax.xlane.f32.xlu0 %v19394_v42 }
0x266c   : > { %v18444_v0 = vpop.xlane.xlu1 %18443 }
0x266d   : > { %v18445_v4 = vsub.f32 %v31483_v19, %v18444_v0 }
0x266f   : > { %v18446_v46 = vmul.f32 1.442695, %v18445_v4 }
0x2670   : > { %v18456_v5 = vpop.permute.xlu1 %18455 }
0x2671   : > { %28902 = vpow2.f32 %v18446_v46  ;;  %v18461_v9 = vsel %vm7458_vm15, %v18456_v5, 0 }
0x2672   : > { %v18467_v15 = vand.u32 4294901760, %v18461_v9 }
0x2674   : > { %v18549_v51 = vsub.f32 %v18461_v9, %v18467_v15 }
0x2676   : > { %v18550_v34 = vand.u32 4294901760, %v18549_v51 }
0x2678   : > { %v18551_v59 = vsub.f32 %v18549_v51, %v18550_v34 }
0x267a   : > { %v18552_v56 = vand.u32 4294901760, %v18551_v59 }
0x267b   : > { %v28903_v35 = vpop.eup %28902 }
0x267c   : > { %v18448_v29 = vsel %vm7438_vm14, %v28903_v35, 0.0 }
0x267d   : > { %18449 = vadd.xlane.f32.xlu0 %v18448_v29 }
0x2693   : > { %18453 = vrot.lane.b32.xlu0 %v32805_v11, %s32809_s30 }
0x2697   : > { %19407 = vrot.lane.b32.xlu0 %v32806_v12, %s32758_s1 }
0x269b   : > { %19405 = vrot.lane.b32.xlu0 %v32805_v11, %s32758_s1 }
0x269f   : > { %19876 = vrot.lane.b32.xlu0 %v32805_v11, %s32803_s0 }
0x26a3   : > { %19878 = vrot.lane.b32.xlu0 %v32806_v12, %s32803_s0  ;;  %s29009_s0 = smov [#allocation2]  }
0x26a4   : > { %s28930_s24 = sshll.u32 %s29009_s0, 4  ;;  %s28931_s24 = int_to_ptr.vmem [resolvable:$false] %s28930_s24 }
0x26a5   : > { %s28932_s18 = scalar_lea.vmem %s28931_s24, 256 }
0x26a7   : > { %19874 = vrot.lane.b32.xlu0 %v31424_v23, %s32752_s28 }
0x26df   : > { %v19396_v33 = vpop.xlane.xlu0 %19395 }
0x26e0   : > { %v19397_v48 = vsub.f32 %v31490_v16, %v19396_v33 }
0x26e2   : > { %v19398_v57 = vmul.f32 1.442695, %v19397_v48 }
0x26e4   : > { %28904 = vpow2.f32 %v19398_v57 }
0x26ee   : > { %v31509_v30 = vpop.eup %28904 }
0x26ef   : > { %v19400_v26 = vsel %vm7438_vm14, %v31509_v30, 0.0 }
0x26f0   : > { %19401 = vadd.xlane.f32.xlu1 %v19400_v26 }
0x270a   : > { %v18450_v44 = vpop.xlane.xlu0 %18449 }
0x270b   : > { %28906 = vrcp.f32 %v18450_v44 }
0x270e   : > { %v18454_v58 = vpop.permute.xlu0 %18453 }
0x270f   : > { %v18464_v20 = vand.u32 4294901760, %v18454_v58 }
0x2711   : > { %v27873_v25 = vpack.c.bf16 %v18467_v15, %v18464_v20  ;;  %v18542_v21 = vsub.f32 %v18454_v58, %v18464_v20 }
0x2712   : > { %v19408_v37 = vpop.permute.xlu0 %19407 }
0x2713   : > { %v19413_v49 = vsel %vm7458_vm15, %v19408_v37, 0  ;;  %27874 = vmatpush3.bf16.msra.mxu0 %v27873_v25  ;;  %v18543_v43 = vand.u32 4294901760, %v18542_v21  ;;  %v27879_v17 = vpack.c.bf16 %v18549_v51, %v18542_v21 }
0x2714   : > { %v19419_v8 = vand.u32 4294901760, %v19413_v49  ;;  %27875 = vmatprep.subr.bf16.mxu0 %v32761_v45 }
0x2715   : > { %v28907_v50 = vpop.eup %28906  ;;  %v18544_v55 = vsub.f32 %v18542_v21, %v18543_v43  ;;  %v27885_v42 = vpack.c.bf16 %v18550_v34, %v18543_v43 }
0x2716   : > { %v18452_v24 = vmul.f32 %v28907_v50, %v28903_v35  ;;  %v31516_v2 = vsub.f32 %v19413_v49, %v19419_v8  ;;  %v19406_v63 = vpop.permute.xlu0 %19405 }
0x2717   : > { %v19416_v53 = vand.u32 4294901760, %v19406_v63  ;;  %v18545_v3 = vand.u32 4294901760, %v18544_v55 }
0x2718   : > { %v19502_v28 = vand.u32 4294901760, %v31516_v2  ;;  %v18459_v14 = vsel %vm7438_vm14, %v18452_v24, 0 }
0x2719   : > { %v19494_v62 = vsub.f32 %v19406_v63, %v19416_v53  ;;  %v18530_v38 = vand.u32 4294901760, %v18459_v14  ;;  %v27876_v52 = vpack.c.bf16 %v18552_v56, %v18545_v3  ;;  %v27909_v0 = vpack.c.bf16 %v19419_v8, %v19416_v53 }
0x271a   : > { %v19503_v40 = vsub.f32 %v31516_v2, %v19502_v28 }
0x271b   : > { %v19495_v13 = vand.u32 4294901760, %v19494_v62  ;;  %v27915_v32 = vpack.c.bf16 %v31516_v2, %v19494_v62  ;;  %v18531_v22 = vsub.f32 %v18459_v14, %v18530_v38 }
0x271c   : > { %v19504_v10 = vand.u32 4294901760, %v19503_v40 }
0x271d   : > { %v19496_v47 = vsub.f32 %v19494_v62, %v19495_v13  ;;  %v18532_v27 = vand.u32 4294901760, %v18531_v22  ;;  %v27921_v36 = vpack.c.bf16 %v19502_v28, %v19495_v13 }
0x271f   : > { %v19497_v61 = vand.u32 4294901760, %v19496_v47  ;;  %v18533_v31 = vsub.f32 %v18531_v22, %v18532_v27 }
0x2721   : > { %v18534_v54 = vand.u32 4294901760, %v18533_v31  ;;  %v27912_v18 = vpack.c.bf16 %v19504_v10, %v19497_v61 }
0x2723   : > { %26533 = vmatmul.mubr.f32.vlgmr.msra.gmra.mrb[54].mxu0 %v18534_v54 }
0x2724   : > { %27877 = vmatpush3.bf16.msra.mxu0 %v27876_v52  ;;  %26539 = vmatprep.mubr.msk.f32.mxu0 %vm28991_vm0, %v32762_v39 }
0x2725   : > { %27878 = vmatprep.subr.bf16.mxu0 %v32761_v45 }
0x272b   : > { %26540 = vmatmul.mubr.f32.vlgmr.msra.gmra.mrb[54].mxu0 %v18530_v38 }
0x272c   : > { %27880 = vmatpush3.bf16.msra.mxu0 %v27879_v17  ;;  %26546 = vmatprep.mubr.msk.f32.mxu0 %vm28991_vm0, %v32762_v39 }
0x272d   : > { %27881 = vmatprep.subr.bf16.mxu0 %v32761_v45 }
0x2733   : > { %26547 = vmatmul.mubr.f32.vlgmr.msra.gmra.mrb[54].mxu0 %v18531_v22 }
0x2734   : > { %27883 = vmatpush3.bf16.msra.mxu0 %v27873_v25  ;;  %26553 = vmatprep.mubr.msk.f32.mxu0 %vm28991_vm0, %v32762_v39 }
0x2735   : > { %27884 = vmatprep.subr.bf16.mxu0 %v32761_v45 }
0x273b   : > { %26554 = vmatmul.mubr.f32.vlgmr.msra.gmra.mrb[54].mxu0 %v18532_v27 }
0x273c   : > { %27886 = vmatpush3.bf16.msra.mxu0 %v27885_v42  ;;  %26560 = vmatprep.mubr.msk.f32.mxu0 %vm28991_vm0, %v32762_v39 }
0x273d   : > { %27887 = vmatprep.subr.bf16.mxu0 %v32761_v45 }
0x2743   : > { %26561 = vmatmul.mubr.f32.vlgmr.msra.gmra.mrb[54].mxu0 %v18530_v38 }
0x2744   : > { %27889 = vmatpush3.bf16.msra.mxu0 %v27873_v25  ;;  %26567 = vmatprep.mubr.msk.f32.mxu0 %vm28991_vm0, %v32762_v39 }
0x2745   : > { %27908 = vmatprep.subr.bf16.mxu0 %v32761_v45 }
0x274b   : > { %26568 = vmatmul.mubr.f32.vlgmr.msra.gmra.mrb[54].mxu0 %v18530_v38 }
0x274c   : > { %27910 = vmatpush3.bf16.msra.mxu0 %v27909_v0  ;;  %26616 = vmatprep.mubr.msk.f32.mxu0 %vm28991_vm0, %v32762_v39 }
0x274d   : > { %27911 = vmatprep.subr.bf16.mxu0 %v32761_v45 }
0x277d   : > { %v19402_v4 = vpop.xlane.xlu1 %19401 }
0x277e   : > { %28908 = vrcp.f32 %v19402_v4 }
0x2788   : > { %v28909_v46 = vpop.eup %28908 }
0x2789   : > { %v19404_v35 = vmul.f32 %v28909_v46, %v31509_v30  ;;  %v19877_v30 = vpop.permute.xlu0 %19876 }
0x278a   : > { %v19882_v15 = vsel %vm2264_vm4, %v19877_v30, 0 }
0x278b   : > { %v19411_v29 = vsel %vm7438_vm14, %v19404_v35, 0  ;;  %v19887_v21 = vand.u32 4294901760, %v19882_v15 }
0x278c   : > { %v19482_v33 = vand.u32 4294901760, %v19411_v29 }
0x278d   : > { %v19879_v44 = vpop.permute.xlu0 %19878  ;;  %v19965_v51 = vsub.f32 %v19882_v15, %v19887_v21 }
0x278e   : > { %v19483_v48 = vsub.f32 %v19411_v29, %v19482_v33  ;;  %v19884_v9 = vsel %vm2264_vm4, %v19879_v44, 0 }
0x278f   : > { %v19890_v20 = vand.u32 4294901760, %v19884_v9  ;;  %v19966_v24 = vand.u32 4294901760, %v19965_v51 }
0x2790   : > { %v19484_v57 = vand.u32 4294901760, %v19483_v48 }
0x2791   : > { %v19875_v58 = vpop.permute.xlu0 %19874  ;;  %v19972_v49 = vsub.f32 %v19884_v9, %v19890_v20  ;;  %v27927_v2 = vpack.c.bf16 %v19890_v20, %v19887_v21  ;;  %v19967_v53 = vsub.f32 %v19965_v51, %v19966_v24 }
0x2792   : > { %v19485_v26 = vsub.f32 %v19483_v48, %v19484_v57  ;;  %v19880_v25 = vsel %vm2264_vm4, %v19875_v58, 0 }
0x2793   : > { %v19953_v37 = vand.u32 4294901760, %v19880_v25  ;;  %v19973_v50 = vand.u32 4294901760, %v19972_v49  ;;  %v19968_v14 = vand.u32 4294901760, %v19967_v53  ;;  %v27933_v55 = vpack.c.bf16 %v19972_v49, %v19965_v51 }
0x2794   : > { %v19486_v5 = vand.u32 4294901760, %v19485_v26 }
0x2795   : > { %v19954_v8 = vsub.f32 %v19880_v25, %v19953_v37  ;;  %v19974_v63 = vsub.f32 %v19972_v49, %v19973_v50  ;;  %v27939_v40 = vpack.c.bf16 %v19973_v50, %v19966_v24 }
0x2796   : > { %26617 = vmatmul.mubr.f32.vlgmr.msra.gmra.mrb[56].mxu0 %v19486_v5 }
0x2797   : > { %27913 = vmatpush3.bf16.msra.mxu0 %v27912_v18  ;;  %26623 = vmatprep.mubr.msk.f32.mxu0 %vm28991_vm0, %v32762_v39  ;;  %v19955_v43 = vand.u32 4294901760, %v19954_v8  ;;  %v19975_v28 = vand.u32 4294901760, %v19974_v63 }
0x2798   : > { %27914 = vmatprep.subr.bf16.mxu0 %v32761_v45 }
0x2799   : > { %v19956_v34 = vsub.f32 %v19954_v8, %v19955_v43  ;;  %v27930_v38 = vpack.c.bf16 %v19975_v28, %v19968_v14 }
0x279b   : > { %v19957_v62 = vand.u32 4294901760, %v19956_v34 }
0x279e   : > { %26624 = vmatmul.mubr.f32.vlgmr.msra.gmra.mrb[56].mxu0 %v19482_v33 }
0x279f   : > { %27916 = vmatpush3.bf16.msra.mxu0 %v27915_v32  ;;  %26630 = vmatprep.mubr.msk.f32.mxu0 %vm28991_vm0, %v32762_v39 }
0x27a0   : > { %27917 = vmatprep.subr.bf16.mxu0 %v32761_v45 }
0x27a6   : > { %26631 = vmatmul.mubr.f32.vlgmr.msra.gmra.mrb[56].mxu0 %v19483_v48 }
0x27a7   : > { %27919 = vmatpush3.bf16.msra.mxu0 %v27909_v0  ;;  %26637 = vmatprep.mubr.msk.f32.mxu0 %vm28991_vm0, %v32762_v39 }
0x27a8   : > { %27920 = vmatprep.subr.bf16.mxu0 %v32761_v45 }
0x27ae   : > { %26638 = vmatmul.mubr.f32.vlgmr.msra.gmra.mrb[56].mxu0 %v19484_v57 }
0x27af   : > { %27922 = vmatpush3.bf16.msra.mxu0 %v27921_v36  ;;  %26644 = vmatprep.mubr.msk.f32.mxu0 %vm28991_vm0, %v32762_v39 }
0x27b0   : > { %27923 = vmatprep.subr.bf16.mxu0 %v32761_v45 }
0x27b6   : > { %26645 = vmatmul.mubr.f32.vlgmr.msra.gmra.mrb[56].mxu0 %v19482_v33 }
0x27b7   : > { %27925 = vmatpush3.bf16.msra.mxu0 %v27909_v0  ;;  %26651 = vmatprep.mubr.msk.f32.mxu0 %vm28991_vm0, %v32762_v39 }
0x27b8   : > { %27926 = vmatprep.subr.bf16.mxu0 %v32761_v45 }
0x27be   : > { %26652 = vmatmul.mubr.f32.vlgmr.msra.gmra.mrb[56].mxu0 %v19482_v33 }
0x27bf   : > { %26658 = vmatprep.mubr.msk.f32.mxu0 %vm28991_vm0, %v32762_v39 }
0x27c0   : > { %27928 = vmatpush3.bf16.xpose.msra.mxu0 %v27927_v2 }
0x27c1   : > { %27929 = vmatprep.subr.bf16.mxu0 %v32761_v45 }
0x27c7   : > { %26659 = vmatmul.mubr.f32.vlgmr.msra.gmra.mrb[58].mxu0 %v19957_v62 }
0x27c8   : > { %27931 = vmatpush3.bf16.xpose.msra.mxu0 %v27930_v38  ;;  %26665 = vmatprep.mubr.msk.f32.mxu0 %vm28991_vm0, %v32762_v39 }
0x27c9   : > { %27932 = vmatprep.subr.bf16.mxu0 %v32761_v45 }
0x27cf   : > { %26666 = vmatmul.mubr.f32.vlgmr.msra.gmra.mrb[58].mxu0 %v19953_v37 }
0x27d0   : > { %27934 = vmatpush3.bf16.xpose.msra.mxu0 %v27933_v55  ;;  %26672 = vmatprep.mubr.msk.f32.mxu0 %vm28991_vm0, %v32762_v39 }
0x27d1   : > { %27935 = vmatprep.subr.bf16.mxu0 %v32761_v45 }
0x27d7   : > { %26673 = vmatmul.mubr.f32.vlgmr.msra.gmra.mrb[58].mxu0 %v19954_v8 }
0x27d8   : > { %27937 = vmatpush3.bf16.xpose.msra.mxu0 %v27927_v2  ;;  %26679 = vmatprep.mubr.msk.f32.mxu0 %vm28991_vm0, %v32762_v39 }
0x27d9   : > { %27938 = vmatprep.subr.bf16.mxu0 %v32761_v45 }
0x27df   : > { %26680 = vmatmul.mubr.f32.vlgmr.msra.gmra.mrb[58].mxu0 %v19955_v43 }
0x27e0   : > { %27940 = vmatpush3.bf16.xpose.msra.mxu0 %v27939_v40  ;;  %26686 = vmatprep.mubr.msk.f32.mxu0 %vm28991_vm0, %v32762_v39 }
0x27e1   : > { %27941 = vmatprep.subr.bf16.mxu0 %v32761_v45 }
0x27e7   : > { %26687 = vmatmul.mubr.f32.vlgmr.msra.gmra.mrb[58].mxu0 %v19953_v37 }
0x27e8   : > { %27943 = vmatpush3.bf16.xpose.msra.mxu0 %v27927_v2  ;;  %26693 = vmatprep.mubr.msk.f32.mxu0 %vm28991_vm0, %v32762_v39 }
0x27e9   : > { %27980 = vmatprep.subr.bf16.mxu0 %v32761_v45 }
0x27ef   : > { %26694 = vmatmul.mubr.f32.vlgmr.msra.gmra.mrb[58].mxu0 %v19953_v37 }
0x27f0   : > { %26784 = vmatprep.mubr.msk.f32.mxu0 %vm28991_vm0, %v32762_v39 }
0x281e   : > { %v31580_v13 = vpop.f32.mrb[54].mxu0 }
0x281f   : > { %v26569_v32 = vpop.f32.mrb[55].mxu0 }
0x2891   : > { %v31582_v22 = vpop.f32.mrb[56].mxu0 }
0x2892   : > { %v26653_v59 = vpop.f32.mrb[57].mxu0 }
0x28c2   : > { %v20341_v47 = vpop.f32.mrb[58].mxu0 }
0x28c3   : > { %v31585_v27 = vadd.f32 %v20341_v47, %v32807_v60  ;;  %v26695_v36 = vpop.f32.mrb[59].mxu0 }
0x28c5   : > { %32811 = vst [vmem:[#allocation16_spill] sm:$0xff] %v31585_v27  ;;  %v20346_v3 = vsel %vm7438_vm14, %v31585_v27, -inf }
0x28c6   : > { %20347 = vmax.xlane.f32.xlu0 %v20346_v3 }
0x28dc   : > { %20357 = vrot.lane.b32.xlu0 %v32805_v11, %s32757_s26 }
0x2953   : > { %v20348_v10 = vpop.xlane.xlu0 %20347 }
0x2954   : > { %v20349_v61 = vsub.f32 %v31585_v27, %v20348_v10 }
0x2956   : > { %v20350_v31 = vmul.f32 1.442695, %v20349_v61 }
0x2957   : > { %v20358_v52 = vpop.permute.xlu0 %20357 }
0x2958   : > { %28910 = vpow2.f32 %v20350_v31  ;;  %v20368_v0 = vand.u32 4294901760, %v20358_v52 }
0x295a   : > { %v20446_v29 = vsub.f32 %v20358_v52, %v20368_v0 }
0x295c   : > { %v20447_v26 = vand.u32 4294901760, %v20446_v29 }
0x295e   : > { %v20448_v9 = vsub.f32 %v20446_v29, %v20447_v26 }
0x2960   : > { %v20449_v25 = vand.u32 4294901760, %v20448_v9 }
0x2962   : > { %v28911_v56 = vpop.eup %28910 }
0x2963   : > { %v20352_v54 = vsel %vm7438_vm14, %v28911_v56, 0.0 }
0x2964   : > { %20353 = vadd.xlane.f32.xlu1 %v20352_v54 }
0x2975   : > { %20359 = vrot.lane.b32.xlu1 %v32806_v12, %s32757_s26 }
0x2979   : > { %20828 = vrot.lane.b32.xlu1 %v32805_v11, %s32804_s29 }
0x297d   : > { %20830 = vrot.lane.b32.xlu1 %v32806_v12, %s32804_s29  ;;  %s655_s29 = sand.u32 1, %s28980_s22  }
0x297e   : > { %s23898_s4 = sshll.u32 %s655_s29, 3  ;;  %s23792_s2 = scalar_lea.sflag [#allocation3], %s655_s29 }
0x297f   : > { %s657_s23 = scalar_lea.vmem [#allocation2], %s23898_s4 }
0x2980   : > { %s23805_s20 = sshll.u32 %s657_s23, 4  ;;  %s32549_s20 = int_to_ptr.vmem [resolvable:$true] %s23805_s20 }
0x2981   : > { %20826 = vrot.lane.b32.xlu1 %v31424_v23, %s32754_s3  ;;  %p28933_p0 = scmp.lt.s32.totalorder %s32549_s20, %s28931_s24 }
0x29f1   : > { %v20354_v18 = vpop.xlane.xlu1 %20353 }
0x29f2   : > { %28912 = vrcp.f32 %v20354_v18 }
0x29f5   : > { %v20360_v17 = vpop.permute.xlu1 %20359 }
0x29f6   : > { %v20365_v42 = vsel %vm7458_vm15, %v20360_v17, 0 }
0x29f7   : > { %v20371_v4 = vand.u32 4294901760, %v20365_v42 }
0x29f9   : > { %v27945_v46 = vpack.c.bf16 %v20371_v4, %v20368_v0  ;;  %v20453_v35 = vsub.f32 %v20365_v42, %v20371_v4  ;;  %v20829_v51 = vpop.permute.xlu1 %20828 }
0x29fa   : > { %v20834_v2 = vsel %vm2264_vm4, %v20829_v51, 0 }
0x29fb   : > { %27946 = vmatpush3.bf16.msra.mxu1 %v27945_v46  ;;  %v20454_v57 = vand.u32 4294901760, %v20453_v35  ;;  %v27951_v49 = vpack.c.bf16 %v20453_v35, %v20446_v29  ;;  %v20839_v34 = vand.u32 4294901760, %v20834_v2 }
0x29fc   : > { %v28913_v33 = vpop.eup %28912  ;;  %27947 = vmatprep.subr.bf16.mxu1 %v32761_v45 }
0x29fd   : > { %v20356_v48 = vmul.f32 %v28913_v33, %v28911_v56  ;;  %v20455_v30 = vsub.f32 %v20453_v35, %v20454_v57  ;;  %v20831_v8 = vpop.permute.xlu1 %20830  ;;  %v27957_v50 = vpack.c.bf16 %v20454_v57, %v20447_v26  ;;  %v20917_v62 = vsub.f32 %v20834_v2, %v20839_v34 }
0x29fe   : > { %v20836_v24 = vsel %vm2264_vm4, %v20831_v8, 0 }
0x29ff   : > { %v20363_v23 = vsel %vm7438_vm14, %v20356_v48, 0  ;;  %v20456_v15 = vand.u32 4294901760, %v20455_v30  ;;  %v20842_v63 = vand.u32 4294901760, %v20836_v24  ;;  %v20918_v40 = vand.u32 4294901760, %v20917_v62 }
0x2a00   : > { %v20434_v5 = vand.u32 4294901760, %v20363_v23 }
0x2a01   : > { %v27948_v37 = vpack.c.bf16 %v20456_v15, %v20449_v25  ;;  %v20827_v43 = vpop.permute.xlu1 %20826  ;;  %v20924_v14 = vsub.f32 %v20836_v24, %v20842_v63  ;;  %v27963_v59 = vpack.c.bf16 %v20842_v63, %v20839_v34  ;;  %v20919_v36 = vsub.f32 %v20917_v62, %v20918_v40 }
0x2a02   : > { %v20435_v44 = vsub.f32 %v20363_v23, %v20434_v5  ;;  %v20832_v53 = vsel %vm2264_vm4, %v20827_v43, 0 }
0x2a03   : > { %v20905_v28 = vand.u32 4294901760, %v20832_v53  ;;  %v20925_v55 = vand.u32 4294901760, %v20924_v14  ;;  %v20920_v61 = vand.u32 4294901760, %v20919_v36  ;;  %v27969_v54 = vpack.c.bf16 %v20924_v14, %v20917_v62 }
0x2a04   : > { %v20436_v58 = vand.u32 4294901760, %v20435_v44 }
0x2a05   : > { %v20906_v38 = vsub.f32 %v20832_v53, %v20905_v28  ;;  %v20926_v47 = vsub.f32 %v20924_v14, %v20925_v55  ;;  %v27975_v18 = vpack.c.bf16 %v20925_v55, %v20918_v40  ;;  %v23921_v14 = vld [vmem:[%s32599_s10 + $0x28] sm:$0xff] }
0x2a06   : > { %v20437_v20 = vsub.f32 %v20435_v44, %v20436_v58 }
0x2a07   : > { %v20907_v32 = vand.u32 4294901760, %v20906_v38  ;;  %v20927_v10 = vand.u32 4294901760, %v20926_v47 }
0x2a08   : > { %v20438_v21 = vand.u32 4294901760, %v20437_v20 }
0x2a09   : > { %v20908_v3 = vsub.f32 %v20906_v38, %v20907_v32  ;;  %v27966_v56 = vpack.c.bf16 %v20927_v10, %v20920_v61 }
0x2a0a   : > { %26701 = vmatmul.mubr.f32.vlgmr.msra.gmra.mrb[62].mxu1 %v20438_v21 }
0x2a0b   : > { %27949 = vmatpush3.bf16.msra.mxu1 %v27948_v37  ;;  %26707 = vmatprep.mubr.msk.f32.mxu1 %vm28991_vm0, %v32762_v39  ;;  %v20909_v31 = vand.u32 4294901760, %v20908_v3 }
0x2a0c   : > { %27950 = vmatprep.subr.bf16.mxu1 %v32761_v45 }
0x2a12   : > { %26708 = vmatmul.mubr.f32.vlgmr.msra.gmra.mrb[62].mxu1 %v20434_v5 }
0x2a13   : > { %27952 = vmatpush3.bf16.msra.mxu1 %v27951_v49  ;;  %26714 = vmatprep.mubr.msk.f32.mxu1 %vm28991_vm0, %v32762_v39 }
0x2a14   : > { %27953 = vmatprep.subr.bf16.mxu1 %v32761_v45 }
0x2a1a   : > { %26715 = vmatmul.mubr.f32.vlgmr.msra.gmra.mrb[62].mxu1 %v20435_v44 }
0x2a1b   : > { %27955 = vmatpush3.bf16.msra.mxu1 %v27945_v46  ;;  %26721 = vmatprep.mubr.msk.f32.mxu1 %vm28991_vm0, %v32762_v39 }
0x2a1c   : > { %27956 = vmatprep.subr.bf16.mxu1 %v32761_v45 }
0x2a22   : > { %26722 = vmatmul.mubr.f32.vlgmr.msra.gmra.mrb[62].mxu1 %v20436_v58 }
0x2a23   : > { %27958 = vmatpush3.bf16.msra.mxu1 %v27957_v50  ;;  %26728 = vmatprep.mubr.msk.f32.mxu1 %vm28991_vm0, %v32762_v39 }
0x2a24   : > { %27959 = vmatprep.subr.bf16.mxu1 %v32761_v45 }
0x2a2a   : > { %26729 = vmatmul.mubr.f32.vlgmr.msra.gmra.mrb[62].mxu1 %v20434_v5 }
0x2a2b   : > { %27961 = vmatpush3.bf16.msra.mxu1 %v27945_v46  ;;  %26735 = vmatprep.mubr.msk.f32.mxu1 %vm28991_vm0, %v32762_v39 }
0x2a2c   : > { %27962 = vmatprep.subr.bf16.mxu1 %v32761_v45 }
0x2a32   : > { %26736 = vmatmul.mubr.f32.vlgmr.msra.gmra.mrb[62].mxu1 %v20434_v5 }
0x2a33   : > { %26742 = vmatprep.mubr.msk.f32.mxu1 %vm28991_vm0, %v32762_v39 }
0x2a34   : > { %27964 = vmatpush3.bf16.xpose.msra.mxu1 %v27963_v59 }
0x2a35   : > { %27965 = vmatprep.subr.bf16.mxu1 %v32761_v45 }
0x2a3b   : > { %26743 = vmatmul.mubr.f32.vlgmr.msra.gmra.mrb[64].mxu1 %v20909_v31  ;;  %v23922_v31 = vld [vmem:[%s32599_s10 + $0x30] sm:$0xff] }
0x2a3c   : > { %27967 = vmatpush3.bf16.xpose.msra.mxu1 %v27966_v56  ;;  %26749 = vmatprep.mubr.msk.f32.mxu1 %vm28991_vm0, %v32762_v39  ;;  %v23923_v56 = vld [vmem:[%s32599_s10 + $0x38] sm:$0xff] }
0x2a3d   : > { %27968 = vmatprep.subr.bf16.mxu1 %v32761_v45 }
0x2a43   : > { %26750 = vmatmul.mubr.f32.vlgmr.msra.gmra.mrb[64].mxu1 %v20905_v28 }
0x2a44   : > { %27970 = vmatpush3.bf16.xpose.msra.mxu1 %v27969_v54  ;;  %26756 = vmatprep.mubr.msk.f32.mxu1 %vm28991_vm0, %v32762_v39  ;;  %v21803_v54 = vand.u32 4294901760, %v23922_v31 }
0x2a45   : > { %27971 = vmatprep.subr.bf16.mxu1 %v32761_v45 }
0x2a4b   : > { %26757 = vmatmul.mubr.f32.vlgmr.msra.gmra.mrb[64].mxu1 %v20906_v38  ;;  %v21800_v38 = vand.u32 4294901760, %v23921_v14 }
0x2a4c   : > { %27973 = vmatpush3.bf16.xpose.msra.mxu1 %v27963_v59  ;;  %26763 = vmatprep.mubr.msk.f32.mxu1 %vm28991_vm0, %v32762_v39 }
0x2a4d   : > { %27974 = vmatprep.subr.bf16.mxu1 %v32761_v45  ;;  %v31684_v40 = vsub.f32 %v23921_v14, %v21800_v38 }
0x2a53   : > { %26764 = vmatmul.mubr.f32.vlgmr.msra.gmra.mrb[64].mxu1 %v20907_v32 }
0x2a54   : > { %27976 = vmatpush3.bf16.xpose.msra.mxu1 %v27975_v18  ;;  %26770 = vmatprep.mubr.msk.f32.mxu1 %vm28991_vm0, %v32762_v39  ;;  %v21806_v18 = vand.u32 4294901760, %v23923_v56 }
0x2a55   : > { %27977 = vmatprep.subr.bf16.mxu1 %v32761_v45 }
0x2a5b   : > { %26771 = vmatmul.mubr.f32.vlgmr.msra.gmra.mrb[64].mxu1 %v20905_v28 }
0x2a5c   : > { %27979 = vmatpush3.bf16.xpose.msra.mxu1 %v27963_v59  ;;  %26777 = vmatprep.mubr.msk.f32.mxu1 %vm28991_vm0, %v32762_v39  ;;  %v21885_v59 = vand.u32 4294901760, %v31684_v40 }
0x2a5d   : > { %28004 = vmatprep.subr.bf16.mxu1 %v32761_v45 }
0x2a5e   : > { %v21886_v36 = vsub.f32 %v31684_v40, %v21885_v59 }
0x2a60   : > { %v21887_v10 = vand.u32 4294901760, %v21886_v36 }
0x2a63   : > { %26778 = vmatmul.mubr.f32.vlgmr.msra.gmra.mrb[64].mxu1 %v20905_v28  ;;  %v23920_v28 = vld [vmem:[%s32599_s10 + $0x20] sm:$0xff] }
0x2a64   : > { %26841 = vmatprep.mubr.msk.f32.mxu1 %vm28991_vm0, %v32762_v39  ;;  %v21797_v62 = vand.u32 4294901760, %v23920_v28 }
0x2a66   : > { %v31682_v55 = vsub.f32 %v23920_v28, %v21797_v62 }
0x2a68   : > { %v21878_v32 = vand.u32 4294901760, %v31682_v55 }
0x2a6a   : > { %v21879_v47 = vsub.f32 %v31682_v55, %v21878_v32 }
0x2a6c   : > { %v21880_v3 = vand.u32 4294901760, %v21879_v47 }
0x2a6e   : > { %v28005_v61 = vpack.c.bf16 %v21887_v10, %v21880_v3 }
0x2a70   : > { %28006 = vmatpush3.bf16.msra.mxu1 %v28005_v61 }
0x2a71   : > { %28007 = vmatprep.subr.bf16.mxu1 %v32761_v45 }
0x2b05   : > { %v20822_v52 = vpop.f32.mrb[62].mxu1 }
0x2b06   : > { %v26737_v17 = vpop.f32.mrb[63].mxu1 }
0x2b07   : > { %v21898_v17 = vsub.f32 %v23923_v56, %v21806_v18 }
0x2b36   : > { %v21293_v42 = vpop.f32.mrb[64].mxu1 }
0x2b37   : > { %v31643_v0 = vadd.f32 %v21293_v42, %v32807_v60  ;;  %v26779_v4 = vpop.f32.mrb[65].mxu1 }
0x2b38   : > { %v21899_v4 = vand.u32 4294901760, %v21898_v17 }
0x2b39   : > { %32812 = vst [vmem:[#allocation15_spill] sm:$0xff] %v31643_v0  ;;  %v21298_v46 = vsel %vm7438_vm14, %v31643_v0, -inf }
0x2b3a   : > { %21299 = vmax.xlane.f32.xlu1 %v21298_v46 }
0x2b4b   : > { %21311 = vrot.lane.b32.xlu1 %v32806_v12, %s32756_s25 }
0x2b4f   : > { %21779 = vrot.lane.b32.xlu1 %v31582_v22, %s32756_s25 }
0x2b53   : > { %21783 = vrot.lane.b32.xlu1 %v20822_v52, %s32757_s26  ;;  %v21891_v52 = vsub.f32 %v23922_v31, %v21803_v54 }
0x2b55   : > { %v21892_v42 = vand.u32 4294901760, %v21891_v52 }
0x2b57   : > { %v21893_v46 = vsub.f32 %v21891_v52, %v21892_v42 }
0x2bc7   : > { %v21300_v35 = vpop.xlane.xlu1 %21299 }
0x2bc8   : > { %v21301_v29 = vsub.f32 %v31643_v0, %v21300_v35  ;;  %v21900_v35 = vsub.f32 %v21898_v17, %v21899_v4 }
0x2bca   : > { %v21302_v33 = vmul.f32 1.442695, %v21301_v29  ;;  %v21894_v29 = vand.u32 4294901760, %v21893_v46 }
0x2bcb   : > { %v21312_v57 = vpop.permute.xlu1 %21311 }
0x2bcc   : > { %28914 = vpow2.f32 %v21302_v33  ;;  %v21317_v12 = vsel %vm7458_vm15, %v21312_v57, 0  ;;  %v21901_v33 = vand.u32 4294901760, %v21900_v35  ;;  %v28002_v57 = vpack.c.bf16 %v21806_v18, %v21803_v54  ;;  %v23925_v18 = vld [vmem:[%s32603_s14 + $0x60] sm:$0xff] }
0x2bcd   : > { %v21323_v23 = vand.u32 4294901760, %v21317_v12 }
0x2bcf   : > { %v21405_v9 = vsub.f32 %v21317_v12, %v21323_v23 }
0x2bd1   : > { %v21406_v25 = vand.u32 4294901760, %v21405_v9 }
0x2bd3   : > { %v21407_v51 = vsub.f32 %v21405_v9, %v21406_v25 }
0x2bd5   : > { %v21408_v43 = vand.u32 4294901760, %v21407_v51  ;;  %v28023_v51 = vpack.c.bf16 %v21885_v59, %v21878_v32 }
0x2bd6   : > { %v28915_v60 = vpop.eup %28914 }
0x2bd7   : > { %v21304_v48 = vsel %vm7438_vm14, %v28915_v60, 0.0 }
0x2bd8   : > { %21305 = vadd.xlane.f32.xlu0 %v21304_v48  ;;  %v27999_v48 = vpack.c.bf16 %v21800_v38, %v21797_v62 }
0x2bee   : > { %21309 = vrot.lane.b32.xlu0 %v32805_v11, %s32756_s25  ;;  %s32856_s25 = sld [smem:[#allocation28_spill]] }
0x2bf4   : > { %s32547_s26 = scalar_lea.hbm %s32856_s25, %s23968_s9 }
0x2c65   : > { %v21306_v26 = vpop.xlane.xlu0 %21305 }
0x2c66   : > { %28916 = vrcp.f32 %v21306_v26 }
0x2c69   : > { %v21310_v22 = vpop.permute.xlu0 %21309 }
0x2c6a   : > { %v21320_v5 = vand.u32 4294901760, %v21310_v22 }
0x2c6c   : > { %v27981_v30 = vpack.c.bf16 %v21323_v23, %v21320_v5  ;;  %v21398_v44 = vsub.f32 %v21310_v22, %v21320_v5  ;;  %v28014_v22 = vpack.c.bf16 %v21898_v17, %v21891_v52  ;;  %v28026_v23 = vpack.c.bf16 %v21899_v4, %v21892_v42  ;;  %v21780_v5 = vpop.permute.xlu1 %21779  ;;  %v23927_v52 = vld [vmem:[%s32603_s14 + $0x70] sm:$0xff]  ;;  %v23928_v4 = vld [vmem:[%s32603_s14 + $0x78] sm:$0xff] }
0x2c6d   : > { %v22354_v17 = vand.u32 4294901760, %v23925_v18  ;;  %v22360_v46 = vand.u32 4294901760, %v23927_v52  ;;  %v22363_v35 = vand.u32 4294901760, %v23928_v4 }
0x2c6e   : > { %27982 = vmatpush3.bf16.msra.mxu0 %v27981_v30  ;;  %v21399_v20 = vand.u32 4294901760, %v21398_v44  ;;  %v27987_v53 = vpack.c.bf16 %v21405_v9, %v21398_v44 }
0x2c6f   : > { %27983 = vmatprep.subr.bf16.mxu0 %v32761_v45 }
0x2c70   : > { %v28917_v58 = vpop.eup %28916  ;;  %v21400_v37 = vsub.f32 %v21398_v44, %v21399_v20  ;;  %v27993_v34 = vpack.c.bf16 %v21406_v25, %v21399_v20  ;;  %v21790_v44 = vsel %vm2264_vm4, %v31580_v13, %v21780_v5  ;;  %v28011_v13 = vpack.c.bf16 %v31684_v40, %v31682_v55 }
0x2c71   : > { %v21308_v15 = vmul.f32 %v28917_v58, %v28915_v60  ;;  %v28008_v60 = vpack.c.bf16 %v21901_v33, %v21894_v29  ;;  %v31755_v33 = vsub.f32 %v23925_v18, %v22354_v17 }
0x2c72   : > { %v21401_v50 = vand.u32 4294901760, %v21400_v37 }
0x2c73   : > { %v21315_v11 = vsel %vm7438_vm14, %v21308_v15, 0  ;;  %28009 = vmatpush3.bf16.msra.mxu1 %v28008_v60  ;;  %vm23788_vm14 = vcmask 343040  }
0x2c74   : > { %v21386_v21 = vand.u32 4294901760, %v21315_v11  ;;  %v27984_v63 = vpack.c.bf16 %v21408_v43, %v21401_v50  ;;  %28016 = vmatprep.subr.bf16.mxu1 %v32761_v45 }
0x2c76   : > { %v21387_v49 = vsub.f32 %v21315_v11, %v21386_v21 }
0x2c78   : > { %v21388_v8 = vand.u32 4294901760, %v21387_v49 }
0x2c7a   : > { %v21389_v24 = vsub.f32 %v21387_v49, %v21388_v8 }
0x2c7c   : > { %v21390_v2 = vand.u32 4294901760, %v21389_v24 }
0x2c7e   : > { %26785 = vmatmul.mubr.f32.vlgmr.msra.gmra.mrb[60].mxu0 %v21390_v2 }
0x2c7f   : > { %27985 = vmatpush3.bf16.msra.mxu0 %v27984_v63  ;;  %26791 = vmatprep.mubr.msk.f32.mxu0 %vm28991_vm0, %v32762_v39 }
0x2c80   : > { %27986 = vmatprep.subr.bf16.mxu0 %v32761_v45 }
0x2c86   : > { %26792 = vmatmul.mubr.f32.vlgmr.msra.gmra.mrb[60].mxu0 %v21386_v21 }
0x2c87   : > { %27988 = vmatpush3.bf16.msra.mxu0 %v27987_v53  ;;  %26798 = vmatprep.mubr.msk.f32.mxu0 %vm28991_vm0, %v32762_v39 }
0x2c88   : > { %27989 = vmatprep.subr.bf16.mxu0 %v32761_v45 }
0x2c8e   : > { %26799 = vmatmul.mubr.f32.vlgmr.msra.gmra.mrb[60].mxu0 %v21387_v49 }
0x2c8f   : > { %27991 = vmatpush3.bf16.msra.mxu0 %v27981_v30  ;;  %26805 = vmatprep.mubr.msk.f32.mxu0 %vm28991_vm0, %v32762_v39 }
0x2c90   : > { %27992 = vmatprep.subr.bf16.mxu0 %v32761_v45 }
0x2c96   : > { %26806 = vmatmul.mubr.f32.vlgmr.msra.gmra.mrb[60].mxu0 %v21388_v8 }
0x2c97   : > { %27994 = vmatpush3.bf16.msra.mxu0 %v27993_v34  ;;  %26812 = vmatprep.mubr.msk.f32.mxu0 %vm28991_vm0, %v32762_v39 }
0x2c98   : > { %27995 = vmatprep.subr.bf16.mxu0 %v32761_v45 }
0x2c9e   : > { %26813 = vmatmul.mubr.f32.vlgmr.msra.gmra.mrb[60].mxu0 %v21386_v21 }
0x2c9f   : > { %27997 = vmatpush3.bf16.msra.mxu0 %v27981_v30  ;;  %26819 = vmatprep.mubr.msk.f32.mxu0 %vm28991_vm0, %v32762_v39  ;;  %v21784_v30 = vpop.permute.xlu1 %21783 }
0x2ca0   : > { %27998 = vmatprep.subr.bf16.mxu0 %v32761_v45  ;;  %v21791_v9 = vsel %vm5943_vm9, %v21790_v44, %v21784_v30 }
0x2ca6   : > { %26820 = vmatmul.mubr.f32.vlgmr.msra.gmra.mrb[60].mxu0 %v21386_v21 }
0x2ca7   : > { %26830 = vmatprep.mubr.msk.f32.mxu0 %vm28991_vm0, %v32762_v39  ;;  %28000 = vmatpush3.bf16.msra.mxu0 %v27999_v48 }
0x2ca8   : > { %28001 = vmatprep.subr.bf16.mxu0 %v32761_v45 }
0x2cab   : > { %28003 = vmatpush3.bf16.msra.mxu0 %v28002_v57 }
0x2cac   : > { %28010 = vmatprep.subr.bf16.mxu0 %v32761_v45 }
0x2d79   : > { %v21774_v26 = vpop.f32.mrb[60].mxu0 }
0x2d7a   : > { %21787 = vrot.lane.b32.xlu1 %v21774_v26, %s32758_s1  ;;  %v26821_v12 = vpop.f32.mrb[61].mxu0  ;;  %v31764_v26 = vpack.c.bf16 %v22363_v35, %v22360_v46  ;;  %s32853_s1 = sld [smem:[#allocation26_spill]] }
0x2dec   : > { %v21788_v58 = vpop.permute.xlu1 %21787 }
0x2ded   : > { %v21792_v15 = vsel %vm5945_vm10, %v21791_v9, %v21788_v58 }
0x2dee   : > { %v21794_v20 = vsel %vm679_vm1, %v21792_v15, 0  ;;  %v23929_v15 = vld [vmem:[%s32603_s14 + $0x80] sm:$0xff] }
0x2def   : > { %v21865_v25 = vand.u32 4294901760, %v21794_v20 }
0x2df1   : > { %v21866_v11 = vsub.f32 %v21794_v20, %v21865_v25  ;;  %26842 = vmatmul.mubr.f32.vlgmr.msra.gmra.mrb[66].mxu1 %v21865_v25  ;;  %v23930_v20 = vld [vmem:[%s32603_s14 + $0x88] sm:$0xff] }
0x2df2   : > { %28018 = vmatpush3.bf16.msra.mxu1 %v27999_v48  ;;  %26863 = vmatprep.mubr.msk.f32.mxu1 %vm28991_vm0, %v32762_v39 }
0x2df3   : > { %28019 = vmatprep.subr.bf16.mxu1 %v32761_v45  ;;  %v21867_v21 = vand.u32 4294901760, %v21866_v11 }
0x2df5   : > { %v21868_v37 = vsub.f32 %v21866_v11, %v21867_v21 }
0x2df6   : > { %28021 = vmatpush3.bf16.msra.mxu1 %v28002_v57 }
0x2df7   : > { %28028 = vmatprep.subr.bf16.mxu1 %v32761_v45  ;;  %v21869_v49 = vand.u32 4294901760, %v21868_v37 }
0x2df9   : > { %26864 = vmatmul.mubr.f32.vlgmr.msra.gmra.mrb[68].mxu1 %v21867_v21  ;;  %26831 = vmatmul.mubr.f32.vlgmr.msra.gmra.mrb[62].mxu0 %v21869_v49  ;;  %v23924_v49 = vld [vmem:[%s32602_s13 + $0x2] sm:$0x3] }
0x2dfa   : > { %28012 = vmatpush3.bf16.msra.mxu0 %v28011_v13  ;;  %28030 = vmatpush3.bf16.msra.mxu1 %v27999_v48  ;;  %v31759_v48 = vsub.f32 %v23927_v52, %v22360_v46 }
0x2dfb   : > { %28013 = vmatprep.subr.bf16.mxu0 %v32761_v45  ;;  %28031 = vmatprep.subr.bf16.mxu1 %v32761_v45 }
0x2dfc   : > { %26852 = vmatprep.mubr.msk.f32.mxu0 %vm28991_vm0, %v32762_v39  ;;  %26885 = vmatprep.mubr.msk.f32.mxu1 %vm28991_vm0, %v32762_v39 }
0x2dfe   : > { %28015 = vmatpush3.bf16.msra.mxu0 %v28014_v22  ;;  %28033 = vmatpush3.bf16.msra.mxu1 %v28002_v57  ;;  %v31761_v57 = vsub.f32 %v23928_v4, %v22363_v35  ;;  %v22457_v35 = vand.u32 4294901760, %v31759_v48 }
0x2dff   : > { %28022 = vmatprep.subr.bf16.mxu0 %v32761_v45  ;;  %28142 = vmatprep.subr.bf16.mxu1 %v32761_v45 }
0x2e01   : > { %26853 = vmatmul.mubr.f32.vlgmr.msra.gmra.mrb[64].mxu0 %v21866_v11  ;;  %26886 = vmatmul.mubr.f32.vlgmr.msra.gmra.mrb[70].mxu1 %v21865_v25  ;;  %v22369_v11 = vand.u32 4294901760, %v23930_v20 }
0x2e02   : > { %28024 = vmatpush3.bf16.msra.mxu0 %v28023_v51  ;;  %26874 = vmatprep.mubr.msk.f32.mxu0 %vm28991_vm0, %v32762_v39  ;;  %v23931_v51 = vld [vmem:[%s32603_s14 + $0x90] sm:$0xff] }
0x2e03   : > { %28025 = vmatprep.subr.bf16.mxu0 %v32761_v45  ;;  %v31779_v13 = vsub.f32 %v23930_v20, %v22369_v11 }
0x2e06   : > { %28027 = vmatpush3.bf16.msra.mxu0 %v28026_v23 }
0x2e07   : > { %28034 = vmatprep.subr.bf16.mxu0 %v32761_v45 }
0x2e09   : > { %26875 = vmatmul.mubr.f32.vlgmr.msra.gmra.mrb[66].mxu0 %v21865_v25  ;;  %v22366_v25 = vand.u32 4294901760, %v23929_v15 }
0x2e0a   : > { %26912 = vmatprep.mubr.msk.f32.mxu0 %vm28991_vm0, %v32762_v39 }
0x2e0b   : > { %v31775_v21 = vpack.c.bf16 %v22369_v11, %v22366_v25  ;;  %v31777_v37 = vsub.f32 %v23929_v15, %v22366_v25  ;;  %v22478_v25 = vand.u32 4294901760, %v31779_v13 }
0x2e0d   : > { %v22471_v20 = vand.u32 4294901760, %v31777_v37 }
0x2ec4   : > { %v21962_v8 = vpop.f32.mrb[66].mxu1 }
0x2ec5   : > { %v26843_v50 = vpop.f32.mrb[67].mxu1 }
0x2ec6   : > { %v22372_v50 = vand.u32 4294901760, %v23931_v51 }
0x2ecc   : > { %v22119_v24 = vpop.f32.mrb[68].mxu1  ;;  %v21871_v43 = vpop.f32.mrb[62].mxu0 }
0x2ecd   : > { %v21963_v2 = vadd.f32 %v21962_v8, %v21871_v43  ;;  %v26865_v63 = vpop.f32.mrb[69].mxu1  ;;  %v26832_v53 = vpop.f32.mrb[63].mxu0  ;;  %v23932_v8 = vld [vmem:[%s32603_s14 + $0x98] sm:$0xff]  ;;  %v22307_v43 = vrot.slane %v23924_v49, %v32796_v7 }
0x2ece   : > { %v23933_v63 = vld [vmem:[%s32603_s14 + $0xa0] sm:$0xff]  ;;  %v23934_v53 = vld [vmem:[%s32603_s14 + $0xa8] sm:$0xff] }
0x2ed4   : > { %v22042_v34 = vpop.f32.mrb[64].mxu0  ;;  %v22277_v28 = vpop.f32.mrb[70].mxu1 }
0x2ed5   : > { %v22043_v14 = vadd.f32 %v22042_v34, %v21963_v2  ;;  %v26854_v62 = vpop.f32.mrb[65].mxu0  ;;  %v26887_v38 = vpop.f32.mrb[71].mxu1  ;;  %v22378_v34 = vand.u32 4294901760, %v23933_v63 }
0x2ed7   : > { %v22120_v55 = vadd.f32 %v22119_v24, %v22043_v14  ;;  %v22375_v24 = vand.u32 4294901760, %v23932_v8  ;;  %v22313_v14 = vrot.slane %v23924_v49, %v32797_v6  ;;  %v31817_v6 = vsub.f32 %v23933_v63, %v22378_v34 }
0x2ed8   : > { %v22472_v49 = vsub.f32 %v31777_v37, %v22471_v20 }
0x2ed9   : > { %v31793_v2 = vpack.c.bf16 %v22375_v24, %v22372_v50 }
0x2edc   : > { %v22202_v40 = vpop.f32.mrb[66].mxu0 }
0x2edd   : > { %v22203_v32 = vadd.f32 %v22202_v40, %v22120_v55  ;;  %v26876_v59 = vpop.f32.mrb[67].mxu0  ;;  %v23935_v55 = vld [vmem:[%s32603_s14 + $0xb0] sm:$0xff]  ;;  %v23936_v40 = vld [vmem:[%s32603_s14 + $0xb8] sm:$0xff] }
0x2ede   : > { %v31812_v59 = vsub.f32 %v23931_v51, %v22372_v50  ;;  %v22479_v51 = vsub.f32 %v31779_v13, %v22478_v25 }
0x2edf   : > { %v22278_v47 = vadd.f32 %v22277_v28, %v22203_v32  ;;  %v22381_v28 = vand.u32 4294901760, %v23934_v53 }
0x2ee0   : > { %v22480_v50 = vand.u32 4294901760, %v22479_v51 }
0x2ee1   : > { %v31735_v36 = vadd.f32 %v22278_v47, %v31267_v1  ;;  %v23926_v1 = vld [vmem:[%s32603_s14 + $0x68] sm:$0xff]  ;;  %v31804_v7 = vpack.c.bf16 %v22381_v28, %v22378_v34  ;;  %v31814_v47 = vsub.f32 %v23932_v8, %v22375_v24  ;;  %v22473_v8 = vand.u32 4294901760, %v22472_v49 }
0x2ee2   : > { %v22357_v42 = vand.u32 4294901760, %v23926_v1  ;;  %v22485_v24 = vand.u32 4294901760, %v31812_v59  ;;  %v28077_v49 = vpack.c.bf16 %v31779_v13, %v31777_v37  ;;  %v23942_v13 = vld [vmem:[%s32605_s16 + $0xd8] sm:$0xff] }
0x2ee3   : > { %32813 = vst [vmem:[#allocation14_spill] sm:$0xff] %v31735_v36  ;;  %v22285_v3 = vsel %vm679_vm1, %v31735_v36, 0.0  ;;  %v28059_v63 = vpack.c.bf16 %v22480_v50, %v22473_v8  ;;  %v28080_v51 = vpack.c.bf16 %v31814_v47, %v31812_v59 }
0x2ee4   : > { %22286 = vadd.xlane.f32.xlu0 %v22285_v3  ;;  %v31753_v29 = vpack.c.bf16 %v22357_v42, %v22354_v17  ;;  %v31757_v60 = vsub.f32 %v23926_v1, %v22357_v42  ;;  %v31819_v3 = vsub.f32 %v23934_v53, %v22381_v28  ;;  %v22486_v53 = vsub.f32 %v31812_v59, %v22485_v24  ;;  %v23944_v59 = vld [vmem:[%s32605_s16 + $0xe8] sm:$0xff] }
0x2ee6   : > { %28036 = vmatpush3.bf16.msra.mxu0 %v31753_v29  ;;  %v22487_v28 = vand.u32 4294901760, %v22486_v53  ;;  %v28083_v8 = vpack.c.bf16 %v31819_v3, %v31817_v6 }
0x2ee7   : > { %28037 = vmatprep.subr.bf16.mxu0 %v32761_v45 }
0x2eea   : > { %28039 = vmatpush3.bf16.msra.mxu0 %v31764_v26 }
0x2eeb   : > { %28040 = vmatprep.subr.bf16.mxu0 %v32761_v45 }
0x2eee   : > { %28042 = vmatpush3.bf16.msra.mxu0 %v31775_v21 }
0x2eef   : > { %28043 = vmatprep.subr.bf16.mxu0 %v32761_v45 }
0x2ef2   : > { %28045 = vmatpush3.bf16.msra.mxu0 %v31793_v2 }
0x2ef3   : > { %28046 = vmatprep.subr.bf16.mxu0 %v32761_v45 }
0x2ef6   : > { %28048 = vmatpush3.bf16.msra.mxu0 %v31804_v7 }
0x2ef7   : > { %28049 = vmatprep.subr.bf16.mxu0 %v32761_v45 }
0x2f71   : > { %v22287_v10 = vpop.xlane.xlu0 %22286 }
0x2f72   : > { %v22288_v61 = vmul.f32 0.03125, %v22287_v10  ;;  %v22384_v10 = vand.u32 4294901760, %v23935_v55 }
0x2f74   : > { %v22289_v31 = vsub.f32 %v31735_v36, %v22288_v61  ;;  %v22387_v61 = vand.u32 4294901760, %v23936_v40  ;;  %v31826_v1 = vsub.f32 %v23935_v55, %v22384_v10 }
0x2f76   : > { %v22290_v56 = vmul.f32 %v22289_v31, %v22289_v31  ;;  %v22308_v62 = vmul.f32 %v22307_v43, %v22289_v31  ;;  %v22443_v31 = vand.u32 4294901760, %v31755_v33  ;;  %v31824_v18 = vpack.c.bf16 %v22387_v61, %v22384_v10 }
0x2f77   : > { %v31828_v52 = vsub.f32 %v23936_v40, %v22387_v61  ;;  %v22492_v43 = vand.u32 4294901760, %v31814_v47 }
0x2f78   : > { %v22291_v54 = vsel %vm679_vm1, %v22290_v56, 0.0  ;;  %v22444_v17 = vsub.f32 %v31755_v33, %v22443_v31  ;;  %28051 = vmatpush3.bf16.msra.mxu0 %v31824_v18 }
0x2f79   : > { %22292 = vadd.xlane.f32.xlu1 %v22291_v54  ;;  %v22450_v54 = vand.u32 4294901760, %v31757_v60  ;;  %28052 = vmatprep.subr.bf16.mxu0 %v32761_v45  ;;  %v22493_v34 = vsub.f32 %v31814_v47, %v22492_v43  ;;  %v28086_v50 = vpack.c.bf16 %v31828_v52, %v31826_v1  ;;  %v22998_v47 = vand.u32 4294901760, %v23942_v13 }
0x2f7a   : > { %v22445_v46 = vand.u32 4294901760, %v22444_v17  ;;  %v22513_v17 = vand.u32 4294901760, %v31826_v1 }
0x2f7b   : > { %v22451_v4 = vsub.f32 %v31757_v60, %v22450_v54 }
0x3006   : > { %v22293_v12 = vpop.xlane.xlu1 %22292 }
0x3007   : > { %v22294_v22 = vmul.f32 0.032258064, %v22293_v12  ;;  %v22464_v12 = vand.u32 4294901760, %v31761_v57 }
0x3009   : > { %28918 = vrsqrt.f32 %v22294_v22  ;;  %vm22297_vm4 = vcmp.eq.f32.partialorder %v22294_v22, inf  ;;  %v22300_v30 = vand.u32 2147483648, %v22294_v22  ;;  %vm22299_vm9 = vcmp.eq.f32.partialorder %v22294_v22, 0.0 }
0x3013   : > { %v28919_v23 = vpop.eup %28918 }
0x3014   : > { %v22296_v5 = vmul.f32 %v28919_v23, %v22294_v22 }
0x3016   : > { %v22298_v44 = vsel %vm22297_vm4, %v22294_v22, %v22296_v5  ;;  %v32814_v22 = vld [vmem:[#allocation18_spill] sm:$0xff]  ;;  %v22452_v5 = vand.u32 4294901760, %v22451_v4 }
0x3017   : > { %v22301_v9 = vsel %vm22299_vm9, %v22300_v30, %v22298_v44  ;;  %v22458_v30 = vsub.f32 %v31759_v48, %v22457_v35  ;;  %v22465_v44 = vsub.f32 %v31761_v57, %v22464_v12 }
0x3018   : > { %v22302_v58 = vadd.f32 1e-06, %v22301_v9  ;;  %v28053_v9 = vpack.c.bf16 %v22452_v5, %v22445_v46  ;;  %v22514_v46 = vsub.f32 %v31826_v1, %v22513_v17 }
0x3019   : > { %v22466_v15 = vand.u32 4294901760, %v22465_v44 }
0x301a   : > { %28920 = vrcp.f32 %v22302_v58  ;;  %v22459_v58 = vand.u32 4294901760, %v22458_v30  ;;  %v22515_v5 = vand.u32 4294901760, %v22514_v46 }
0x301c   : > { %v28056_v11 = vpack.c.bf16 %v22466_v15, %v22459_v58  ;;  %v28071_v58 = vpack.c.bf16 %v31757_v60, %v31755_v33  ;;  %v28074_v15 = vpack.c.bf16 %v31761_v57, %v31759_v48  ;;  %v28113_v33 = vpack.c.bf16 %v22478_v25, %v22471_v20  ;;  %v32019_v20 = vld [vmem:[%s32605_s16 + $0x108] sm:$0xff]  ;;  %v32024_v25 = vld [vmem:[%s32605_s16 + $0x110] sm:$0xff] }
0x301d   : > { %v28116_v60 = vpack.c.bf16 %v22492_v43, %v22485_v24  ;;  %v32033_v43 = vsub.f32 %v23942_v13, %v22998_v47 }
0x3024   : > { %v28921_v38 = vpop.eup %28920 }
0x3025   : > { %v22309_v32 = vmul.f32 %v28921_v38, %v22308_v62  ;;  %v22499_v62 = vand.u32 4294901760, %v31817_v6  ;;  %v22506_v38 = vand.u32 4294901760, %v31819_v3 }
0x3027   : > { %v22314_v56 = vadd.f32 %v22313_v14, %v22309_v32  ;;  %v22494_v14 = vand.u32 4294901760, %v22493_v34  ;;  %v22500_v40 = vsub.f32 %v31817_v6, %v22499_v62  ;;  %v22507_v32 = vsub.f32 %v31819_v3, %v22506_v38 }
0x3028   : > { %v28119_v48 = vpack.c.bf16 %v22506_v38, %v22499_v62  ;;  %v23004_v3 = vand.u32 4294901760, %v23944_v59  ;;  %v32040_v62 = vld [vmem:[%s32605_s16 + $0x120] sm:$0xff] }
0x3029   : > { %22339 = vrot.lane.b32.xlu1 %v22314_v56, %s32760_s19  ;;  %v22330_v42 = vrot.slane %v22314_v56, 7  ;;  %v28062_v55 = vpack.c.bf16 %v22494_v14, %v22487_v28  ;;  %v22501_v10 = vand.u32 4294901760, %v22500_v40  ;;  %v22508_v61 = vand.u32 4294901760, %v22507_v32 }
0x302a   : > { %v22332_v53 = vrot.slane %v22314_v56, 6  ;;  %v28107_v56 = vpack.c.bf16 %v22450_v54, %v22443_v31  ;;  %v23945_v31 = vld [vmem:[%s32605_s16 + $0xf0] sm:$0xff]  ;;  %v23946_v54 = vld [vmem:[%s32605_s16 + $0xf8] sm:$0xff]  ;;  %v32044_v38 = vsub.f32 %v23944_v59, %v23004_v3 }
0x302b   : > { %v22331_v23 = vmul.f32 %v32814_v22, %v22330_v42  ;;  %v22520_v42 = vand.u32 4294901760, %v31828_v52  ;;  %v28065_v4 = vpack.c.bf16 %v22508_v61, %v22501_v10 }
0x302c   : > { %v22333_v34 = vmul.f32 %v30312_v41, %v22332_v53  ;;  %v23025_v53 = vand.u32 4294901760, %v32040_v62 }
0x302d   : > { %22335 = vrot.lane.b32.xlu0 %v22331_v23, %s32809_s30  ;;  %v22521_v23 = vsub.f32 %v31828_v52, %v22520_v42  ;;  %v28122_v57 = vpack.c.bf16 %v22520_v42, %v22513_v17  ;;  %v23010_v17 = vand.u32 4294901760, %v23946_v54 }
0x302f   : > { %v22522_v30 = vand.u32 4294901760, %v22521_v23 }
0x3031   : > { %v28068_v44 = vpack.c.bf16 %v22522_v30, %v22515_v5 }
0x309b   : > { %v22340_v14 = vpop.permute.xlu1 %22339 }
0x309f   : > { %v22336_v28 = vpop.permute.xlu0 %22335 }
0x30a0   : > { %v22342_v40 = vsel %vm679_vm1, %v22333_v34, %v22336_v28  ;;  %v23954_v34 = vld [vmem:[%s32605_s16 + $0x138] sm:$0xff]  ;;  %v23955_v28 = vld [vmem:[%s32605_s16 + $0x140] sm:$0xff] }
0x30a1   : > { %v22343_v32 = vsel %vm11334_vm7, %v22342_v40, %v22340_v14 }
0x30a2   : > { %v22351_v10 = vsel %vm11342_vm8, %v22343_v32, 0 }
0x30a3   : > { %v31897_v61 = vand.u32 4294901760, %v22351_v10 }
0x30a5   : > { %v22431_v46 = vsub.f32 %v22351_v10, %v31897_v61  ;;  %v23956_v10 = vld [vmem:[%s32605_s16 + $0x148] sm:$0xff] }
0x30a7   : > { %v22432_v23 = vand.u32 4294901760, %v22431_v46 }
0x30a9   : > { %v22433_v5 = vsub.f32 %v22431_v46, %v22432_v23 }
0x30ab   : > { %v22434_v30 = vand.u32 4294901760, %v22433_v5  ;;  %v32092_v5 = vsub.f32 %v32040_v62, %v23025_v53 }
0x30ad   : > { %26913 = vmatmul.mubr.f32.vlgmr.msra.gmra.mrb[68].mxu0 %v22434_v30 }
0x30ae   : > { %28054 = vmatpush3.bf16.msra.mxu0 %v28053_v9  ;;  %26939 = vmatprep.mubr.msk.f32.mxu0 %vm28991_vm0, %v32762_v39  ;;  %v28110_v9 = vpack.c.bf16 %v22464_v12, %v22457_v35 }
0x30af   : > { %28055 = vmatprep.subr.bf16.mxu0 %v32761_v45 }
0x30b2   : > { %28057 = vmatpush3.bf16.msra.mxu0 %v28056_v11  ;;  %v32029_v11 = vld [vmem:[%s32605_s16 + $0x118] sm:$0xff] }
0x30b3   : > { %28058 = vmatprep.subr.bf16.mxu0 %v32761_v45 }
0x30b6   : > { %28060 = vmatpush3.bf16.msra.mxu0 %v28059_v63 }
0x30b7   : > { %28061 = vmatprep.subr.bf16.mxu0 %v32761_v45 }
0x30ba   : > { %28063 = vmatpush3.bf16.msra.mxu0 %v28062_v55  ;;  %v23007_v55 = vand.u32 4294901760, %v23945_v31 }
0x30bb   : > { %28064 = vmatprep.subr.bf16.mxu0 %v32761_v45 }
0x30be   : > { %28066 = vmatpush3.bf16.msra.mxu0 %v28065_v4  ;;  %v23016_v4 = vand.u32 4294901760, %v32019_v20 }
0x30bf   : > { %28067 = vmatprep.subr.bf16.mxu0 %v32761_v45 }
0x30c0   : > { %v32075_v40 = vsub.f32 %v32019_v20, %v23016_v4 }
0x30c2   : > { %28069 = vmatpush3.bf16.msra.mxu0 %v28068_v44  ;;  %v23019_v44 = vand.u32 4294901760, %v32024_v25 }
0x30c3   : > { %28070 = vmatprep.subr.bf16.mxu0 %v32761_v45 }
0x30c4   : > { %v32078_v32 = vsub.f32 %v32024_v25, %v23019_v44 }
0x30c5   : > { %26940 = vmatmul.mubr.f32.vlgmr.msra.gmra.mrb[68].mxu0 %v31897_v61 }
0x30c6   : > { %28072 = vmatpush3.bf16.msra.mxu0 %v28071_v58  ;;  %26966 = vmatprep.mubr.msk.f32.mxu0 %vm28991_vm0, %v32762_v39  ;;  %v23022_v58 = vand.u32 4294901760, %v32029_v11 }
0x30c7   : > { %28073 = vmatprep.subr.bf16.mxu0 %v32761_v45 }
0x30c8   : > { %v32137_v20 = vpack.c.bf16 %v23022_v58, %v23019_v44 }
0x30ca   : > { %28075 = vmatpush3.bf16.msra.mxu0 %v28074_v15  ;;  %v23952_v15 = vld [vmem:[%s32605_s16 + $0x128] sm:$0xff] }
0x30cb   : > { %28076 = vmatprep.subr.bf16.mxu0 %v32761_v45 }
0x30ce   : > { %28078 = vmatpush3.bf16.msra.mxu0 %v28077_v49  ;;  %v23953_v49 = vld [vmem:[%s32605_s16 + $0x130] sm:$0xff] }
0x30cf   : > { %28079 = vmatprep.subr.bf16.mxu0 %v32761_v45  ;;  %v23031_v30 = vand.u32 4294901760, %v23953_v49 }
0x30d2   : > { %28081 = vmatpush3.bf16.msra.mxu0 %v28080_v51  ;;  %v32058_v51 = vsub.f32 %v23945_v31, %v23007_v55 }
0x30d3   : > { %28082 = vmatprep.subr.bf16.mxu0 %v32761_v45 }
0x30d6   : > { %28084 = vmatpush3.bf16.msra.mxu0 %v28083_v8  ;;  %v32060_v8 = vsub.f32 %v23946_v54, %v23010_v17 }
0x30d7   : > { %28085 = vmatprep.subr.bf16.mxu0 %v32761_v45 }
0x30da   : > { %28087 = vmatpush3.bf16.msra.mxu0 %v28086_v50 }
0x30db   : > { %28088 = vmatprep.subr.bf16.mxu0 %v32761_v45 }
0x30dd   : > { %26967 = vmatmul.mubr.f32.vlgmr.msra.gmra.mrb[68].mxu0 %v22431_v46  ;;  %v32089_v46 = vsub.f32 %v32029_v11, %v23022_v58 }
0x30de   : > { %28090 = vmatpush3.bf16.msra.mxu0 %v31753_v29  ;;  %26993 = vmatprep.mubr.msk.f32.mxu0 %vm28991_vm0, %v32762_v39 }
0x30df   : > { %28091 = vmatprep.subr.bf16.mxu0 %v32761_v45 }
0x30e2   : > { %28093 = vmatpush3.bf16.msra.mxu0 %v31764_v26 }
0x30e3   : > { %28094 = vmatprep.subr.bf16.mxu0 %v32761_v45 }
0x30e6   : > { %28096 = vmatpush3.bf16.msra.mxu0 %v31775_v21 }
0x30e7   : > { %28097 = vmatprep.subr.bf16.mxu0 %v32761_v45 }
0x30ea   : > { %28099 = vmatpush3.bf16.msra.mxu0 %v31793_v2 }
0x30eb   : > { %28100 = vmatprep.subr.bf16.mxu0 %v32761_v45 }
0x30ee   : > { %28102 = vmatpush3.bf16.msra.mxu0 %v31804_v7 }
0x30ef   : > { %28103 = vmatprep.subr.bf16.mxu0 %v32761_v45 }
0x30f2   : > { %28105 = vmatpush3.bf16.msra.mxu0 %v31824_v18 }
0x30f3   : > { %28106 = vmatprep.subr.bf16.mxu0 %v32761_v45 }
0x30f5   : > { %26994 = vmatmul.mubr.f32.vlgmr.msra.gmra.mrb[68].mxu0 %v22432_v23  ;;  %v23028_v23 = vand.u32 4294901760, %v23952_v15 }
0x30f6   : > { %28108 = vmatpush3.bf16.msra.mxu0 %v28107_v56  ;;  %27020 = vmatprep.mubr.msk.f32.mxu0 %vm28991_vm0, %v32762_v39  ;;  %v23958_v56 = vld [vmem:[%s32605_s16 + $0x158] sm:$0xff] }
0x30f7   : > { %28109 = vmatprep.subr.bf16.mxu0 %v32761_v45  ;;  %v23046_v13 = vand.u32 4294901760, %v23958_v56  ;;  %v32143_v25 = vpack.c.bf16 %v23028_v23, %v23025_v53 }
0x30fa   : > { %28111 = vmatpush3.bf16.msra.mxu0 %v28110_v9  ;;  %v23034_v9 = vand.u32 4294901760, %v23954_v34 }
0x30fb   : > { %28112 = vmatprep.subr.bf16.mxu0 %v32761_v45 }
0x30fc   : > { %v32149_v11 = vpack.c.bf16 %v23034_v9, %v23031_v30 }
0x30fe   : > { %28114 = vmatpush3.bf16.msra.mxu0 %v28113_v33  ;;  %v23037_v33 = vand.u32 4294901760, %v23955_v28 }
0x30ff   : > { %28115 = vmatprep.subr.bf16.mxu0 %v32761_v45 }
0x3102   : > { %28117 = vmatpush3.bf16.msra.mxu0 %v28116_v60  ;;  %v23959_v60 = vld [vmem:[%s32605_s16 + $0x160] sm:$0xff] }
0x3103   : > { %28118 = vmatprep.subr.bf16.mxu0 %v32761_v45 }
0x3106   : > { %28120 = vmatpush3.bf16.msra.mxu0 %v28119_v48  ;;  %v32102_v48 = vsub.f32 %v23952_v15, %v23028_v23 }
0x3107   : > { %28121 = vmatprep.subr.bf16.mxu0 %v32761_v45 }
0x310a   : > { %28123 = vmatpush3.bf16.msra.mxu0 %v28122_v57  ;;  %v32104_v57 = vsub.f32 %v23953_v49, %v23031_v30  ;;  %v23938_v49 = vld [vmem:[%s32604_s15 + $0x1] ss:$0 sm:$0xff] }
0x310b   : > { %28124 = vmatprep.subr.bf16.mxu0 %v32761_v45 }
0x310d   : > { %27021 = vmatmul.mubr.f32.vlgmr.msra.gmra.mrb[68].mxu0 %v31897_v61 }
0x310e   : > { %28126 = vmatpush3.bf16.msra.mxu0 %v31753_v29  ;;  %27047 = vmatprep.mubr.msk.f32.mxu0 %vm28991_vm0, %v32762_v39  ;;  %v23939_v39 = vld [vmem:[%s32605_s16 + $0xc0] sm:$0xff]  ;;  %v23940_v29 = vld [vmem:[%s32605_s16 + $0xc8] sm:$0xff] }
0x310f   : > { %28127 = vmatprep.subr.bf16.mxu0 %v32761_v45  ;;  %v22992_v37 = vand.u32 4294901760, %v23940_v29 }
0x3111   : > { %v32012_v35 = vsub.f32 %v23940_v29, %v22992_v37 }
0x3112   : > { %28129 = vmatpush3.bf16.msra.mxu0 %v31764_v26  ;;  %v23941_v26 = vld [vmem:[%s32605_s16 + $0xd0] sm:$0xff] }
0x3113   : > { %28130 = vmatprep.subr.bf16.mxu0 %v32761_v45 }
0x3116   : > { %28132 = vmatpush3.bf16.msra.mxu0 %v31775_v21  ;;  %v22989_v21 = vand.u32 4294901760, %v23939_v39 }
0x3117   : > { %28133 = vmatprep.subr.bf16.mxu0 %v32761_v45 }
0x3118   : > { %v32008_v1 = vpack.c.bf16 %v22992_v37, %v22989_v21  ;;  %v32010_v52 = vsub.f32 %v23939_v39, %v22989_v21  ;;  %v23040_v39 = vand.u32 4294901760, %v23956_v10  ;;  %v32109_v21 = vsub.f32 %v23954_v34, %v23034_v9 }
0x3119   : > { %v32111_v37 = vsub.f32 %v23955_v28, %v23037_v33  ;;  %v32695_v28 = vand.u32 4294901760, %v32012_v35 }
0x311a   : > { %28135 = vmatpush3.bf16.msra.mxu0 %v31793_v2  ;;  %v22995_v2 = vand.u32 4294901760, %v23941_v26  ;;  %28144 = vmatpush1.bf16.msra.mxu1 %v32008_v1  ;;  %v32155_v62 = vpack.c.bf16 %v23040_v39, %v23037_v33  ;;  %v32703_v34 = vand.u32 4294901760, %v32010_v52 }
0x311b   : > { %28136 = vmatprep.subr.bf16.mxu0 %v32761_v45  ;;  %28145 = vmatprep.subr.bf16.mxu1 %v32761_v45  ;;  %v23103_v30 = vsub.f32 %v32012_v35, %v32695_v28 }
0x311c   : > { %v32014_v12 = vsub.f32 %v23941_v26, %v22995_v2  ;;  %v32031_v24 = vpack.c.bf16 %v22998_v47, %v22995_v2  ;;  %v23960_v26 = vld [vmem:[%s32605_s16 + $0x168] sm:$0xff]  ;;  %v32115_v2 = vpack.c.bf16 %v23010_v17, %v23007_v55  ;;  %v23049_v47 = vand.u32 4294901760, %v23959_v60 }
0x311d   : > { %v23096_v23 = vsub.f32 %v32010_v52, %v32703_v34 }
0x311e   : > { %28138 = vmatpush3.bf16.msra.mxu0 %v31804_v7  ;;  %v23943_v7 = vld [vmem:[%s32605_s16 + $0xe0] sm:$0xff]  ;;  %28147 = vmatpush1.bf16.msra.mxu1 %v32031_v24  ;;  %v32125_v31 = vsub.f32 %v23959_v60, %v23049_v47 }
0x311f   : > { %28139 = vmatprep.subr.bf16.mxu0 %v32761_v45  ;;  %v23001_v6 = vand.u32 4294901760, %v23943_v7  ;;  %28148 = vmatprep.subr.bf16.mxu1 %v32761_v45  ;;  %v23097_v60 = vand.u32 4294901760, %v23096_v23  ;;  %v32693_v23 = vand.u32 4294901760, %v32044_v38 }
0x3121   : > { %v32035_v63 = vsub.f32 %v23943_v7, %v23001_v6  ;;  %v32072_v14 = vpack.c.bf16 %v23004_v3, %v23001_v6  ;;  %v32117_v7 = vsub.f32 %v23956_v10, %v23040_v39  ;;  %v32123_v6 = vsub.f32 %v23958_v56, %v23046_v13 }
0x3122   : > { %28141 = vmatpush3.bf16.msra.mxu0 %v31824_v18  ;;  %v32006_v18 = vld [vmem:[%s32605_s16 + $0x100] sm:$0xff]  ;;  %v23052_v3 = vand.u32 4294901760, %v23960_v26  ;;  %v23104_v39 = vand.u32 4294901760, %v23103_v30 }
0x3123   : > { %28250 = vmatprep.subr.bf16.mxu0 %v32761_v45  ;;  %v23013_v42 = vand.u32 4294901760, %v32006_v18  ;;  %28150 = vmatpush1.bf16.msra.mxu1 %v32072_v14 }
0x3124   : > { %28151 = vmatprep.subr.bf16.mxu1 %v32761_v45  ;;  %v32127_v54 = vsub.f32 %v23960_v26, %v23052_v3  ;;  %v32167_v17 = vpack.c.bf16 %v23052_v3, %v23049_v47  ;;  %v32691_v26 = vand.u32 4294901760, %v32033_v43 }
0x3125   : > { %27048 = vmatmul.mubr.f32.vlgmr.msra.gmra.mrb[68].mxu0 %v31897_v61  ;;  %v32063_v50 = vsub.f32 %v32006_v18, %v23013_v42  ;;  %v23957_v61 = vld [vmem:[%s32605_s16 + $0x150] sm:$0xff]  ;;  %v32131_v18 = vpack.c.bf16 %v23016_v4, %v23013_v42  ;;  %v23962_v4 = vld [vmem:[%s32605_s16 + $0x178] sm:$0xff] }
0x3126   : > { %28252 = vmatpush1.bf16.msra.mxu0 %v32008_v1  ;;  %v23043_v29 = vand.u32 4294901760, %v23957_v61  ;;  %v23961_v42 = vld [vmem:[%s32605_s16 + $0x170] sm:$0xff]  ;;  %v23058_v58 = vand.u32 4294901760, %v23962_v4 }
0x3127   : > { %28253 = vmatprep.subr.bf16.mxu0 %v32761_v45  ;;  %28153 = vmatpush1.bf16.msra.mxu1 %v32115_v2  ;;  %v23055_v44 = vand.u32 4294901760, %v23961_v42 }
0x3128   : > { %v32119_v59 = vsub.f32 %v23957_v61, %v23043_v29  ;;  %28154 = vmatprep.subr.bf16.mxu1 %v32761_v45  ;;  %v32161_v55 = vpack.c.bf16 %v23046_v13, %v23043_v29  ;;  %v32202_v33 = vsub.f32 %v23962_v4, %v23058_v58  ;;  %v32694_v29 = vand.u32 4294901760, %v32014_v12 }
0x3129   : > { %v32181_v15 = vpack.c.bf16 %v23058_v58, %v23055_v44  ;;  %v32200_v9 = vsub.f32 %v23961_v42, %v23055_v44  ;;  %v23117_v4 = vsub.f32 %v32033_v43, %v32691_v26 }
0x312a   : > { %28255 = vmatpush1.bf16.msra.mxu0 %v32031_v24  ;;  %v23110_v42 = vsub.f32 %v32014_v12, %v32694_v29  ;;  %v32698_v29 = vand.u32 4294901760, %v32075_v40 }
0x312b   : > { %28256 = vmatprep.subr.bf16.mxu0 %v32761_v45  ;;  %28156 = vmatpush1.bf16.msra.mxu1 %v32131_v18 }
0x312c   : > { %28157 = vmatprep.subr.bf16.mxu1 %v32761_v45 }
0x312e   : > { %28258 = vmatpush1.bf16.msra.mxu0 %v32072_v14 }
0x312f   : > { %28259 = vmatprep.subr.bf16.mxu0 %v32761_v45  ;;  %28159 = vmatpush1.bf16.msra.mxu1 %v32137_v20 }
0x3130   : > { %28160 = vmatprep.subr.bf16.mxu1 %v32761_v45 }
0x3132   : > { %28261 = vmatpush1.bf16.msra.mxu0 %v32115_v2 }
0x3133   : > { %28262 = vmatprep.subr.bf16.mxu0 %v32761_v45  ;;  %28162 = vmatpush1.bf16.msra.mxu1 %v32143_v25 }
0x3134   : > { %28163 = vmatprep.subr.bf16.mxu1 %v32761_v45 }
0x3136   : > { %28264 = vmatpush1.bf16.msra.mxu0 %v32131_v18 }
0x3137   : > { %28265 = vmatprep.subr.bf16.mxu0 %v32761_v45  ;;  %28165 = vmatpush1.bf16.msra.mxu1 %v32149_v11 }
0x3138   : > { %28166 = vmatprep.subr.bf16.mxu1 %v32761_v45 }
0x313a   : > { %28267 = vmatpush1.bf16.msra.mxu0 %v32137_v20 }
0x313b   : > { %28268 = vmatprep.subr.bf16.mxu0 %v32761_v45  ;;  %28168 = vmatpush1.bf16.msra.mxu1 %v32155_v62 }
0x313c   : > { %28169 = vmatprep.subr.bf16.mxu1 %v32761_v45 }
0x313e   : > { %28270 = vmatpush1.bf16.msra.mxu0 %v32143_v25 }
0x313f   : > { %28271 = vmatprep.subr.bf16.mxu0 %v32761_v45  ;;  %28171 = vmatpush1.bf16.msra.mxu1 %v32161_v55 }
0x3140   : > { %28172 = vmatprep.subr.bf16.mxu1 %v32761_v45 }
0x3142   : > { %28273 = vmatpush1.bf16.msra.mxu0 %v32149_v11 }
0x3143   : > { %28274 = vmatprep.subr.bf16.mxu0 %v32761_v45  ;;  %28174 = vmatpush1.bf16.msra.mxu1 %v32167_v17 }
0x3144   : > { %28175 = vmatprep.subr.bf16.mxu1 %v32761_v45 }
0x3146   : > { %28276 = vmatpush1.bf16.msra.mxu0 %v32155_v62 }
0x3147   : > { %28277 = vmatprep.subr.bf16.mxu0 %v32761_v45  ;;  %28177 = vmatpush1.bf16.msra.mxu1 %v32181_v15 }
0x3148   : > { %28178 = vmatprep.subr.bf16.mxu1 %v32761_v45 }
0x314a   : > { %28279 = vmatpush1.bf16.msra.mxu0 %v32161_v55 }
0x314b   : > { %28280 = vmatprep.subr.bf16.mxu0 %v32761_v45 }
0x314e   : > { %28282 = vmatpush1.bf16.msra.mxu0 %v32167_v17 }
0x314f   : > { %28283 = vmatprep.subr.bf16.mxu0 %v32761_v45 }
0x3152   : > { %28285 = vmatpush1.bf16.msra.mxu0 %v32181_v15 }
0x3153   : > { %28322 = vmatprep.subr.bf16.mxu0 %v32761_v45 }
0x31f8   : > { %v22938_v53 = vpop.f32.mrb[68].mxu0 }
0x31f9   : > { %v28377_v10 = vadd.f32 %v23938_v49, %v22938_v53  ;;  %v27049_v61 = vpop.f32.mrb[69].mxu0  ;;  %v32211_v49 = vpack.c.bf16 %v23104_v39, %v23097_v60  ;;  %v23111_v53 = vand.u32 4294901760, %v23110_v42  ;;  %v32700_v42 = vand.u32 4294901760, %v32058_v51 }
0x31fa   : > { %v32692_v61 = vand.u32 4294901760, %v32035_v63 }
0x31fb   : > { %v32198_v56 = vmax.f32 %v28377_v10, 0.0  ;;  %v23118_v10 = vand.u32 4294901760, %v23117_v4  ;;  %v32696_v4 = vand.u32 4294901760, %v32060_v8 }
0x31fc   : > { %v23124_v39 = vsub.f32 %v32035_v63, %v32692_v61 }
0x31fd   : > { %v22970_v13 = vrot.slane %v32198_v56, 7  ;;  %v22986_v47 = vsel %vm11334_vm7, %v32198_v56, 0  ;;  %v32227_v60 = vpack.c.bf16 %v23118_v10, %v23111_v53  ;;  %v23138_v53 = vsub.f32 %v32058_v51, %v32700_v42 }
0x31fe   : > { %v32209_v3 = vand.u32 4294901760, %v22986_v47  ;;  %v23145_v10 = vsub.f32 %v32060_v8, %v32696_v4 }
0x31ff   : > { %v22971_v44 = vmul.f32 %v32814_v22, %v22970_v13  ;;  %v23131_v22 = vsub.f32 %v32044_v38, %v32693_v23  ;;  %v23139_v23 = vand.u32 4294901760, %v23138_v53 }
0x3200   : > { %v32221_v58 = vsub.f32 %v22986_v47, %v32209_v3  ;;  %v23125_v47 = vand.u32 4294901760, %v23124_v39  ;;  %v32697_v39 = vand.u32 4294901760, %v32063_v50 }
0x3201   : > { %22975 = vrot.lane.b32.xlu0 %v22971_v44, %s32760_s19  ;;  %v23132_v44 = vand.u32 4294901760, %v23131_v22  ;;  %s28926_s19 = scalar_lea.vmem %s32549_s20, 128 }
0x3202   : > { %v23078_v30 = vand.u32 4294901760, %v32221_v58  ;;  %v23152_v22 = vsub.f32 %v32063_v50, %v32697_v39  ;;  %p28927_p11 = scmp.ne.s32.totalorder %s32549_s20, %s28926_s19  ;;  %p28934_p1 = scmp.lt.s32.totalorder %s28932_s18, %s28926_s19 }
0x3203   : > { %v32244_v61 = vpack.c.bf16 %v23132_v44, %v23125_v47  ;;  %v32701_v44 = vand.u32 4294901760, %v32089_v46 }
0x3204   : > { %23497 = vmatprep.mubr.f32.mxu0 %v23078_v30  ;;  %v23079_v13 = vsub.f32 %v32221_v58, %v23078_v30  ;;  %v23146_v30 = vand.u32 4294901760, %v23145_v10  ;;  %v23153_v4 = vand.u32 4294901760, %v23152_v22  ;;  %v32704_v22 = vand.u32 4294901760, %v32102_v48  ;;  %p28928_p12 = pnand %p28927_p11, %p29153_p5  ;;  %p28935_p2 = por %p28934_p1, %p28933_p0 }
0x3205   : > { %v23173_v10 = vsub.f32 %v32089_v46, %v32701_v44  ;;  %v32705_v44 = vand.u32 4294901760, %v32104_v57 }
0x3206   : > { %v23080_v26 = vand.u32 4294901760, %v23079_v13  ;;  %v32248_v28 = vpack.c.bf16 %v23146_v30, %v23139_v23  ;;  %v23159_v13 = vsub.f32 %v32075_v40, %v32698_v29  ;;  %v32702_v29 = vand.u32 4294901760, %v32092_v5  ;;  %p28929_p13 = pneg %p28928_p12 }
0x3207   : > { %v23174_v39 = vand.u32 4294901760, %v23173_v10 }
0x3208   : > { %23081 = vmatprep.mubr.f32.mxu1 %v23080_v26  ;;  %v23160_v47 = vand.u32 4294901760, %v23159_v13  ;;  %v32699_v26 = vand.u32 4294901760, %v32078_v32  ;;  %p28936_p3 = pnand %p28935_p2, %p28929_p13 }
0x320a   : > { %v32258_v53 = vpack.c.bf16 %v23160_v47, %v23153_v4  ;;  %v23166_v23 = vsub.f32 %v32078_v32, %v32699_v26  ;;  %v23180_v4 = vsub.f32 %v32092_v5, %v32702_v29  ;;  %v23187_v47 = vsub.f32 %v32102_v48, %v32704_v22 }
0x320b   : > { %v32708_v22 = vand.u32 4294901760, %v32111_v37 }
0x320c   : > { %v23167_v30 = vand.u32 4294901760, %v23166_v23  ;;  %v23181_v26 = vand.u32 4294901760, %v23180_v4  ;;  %v23188_v42 = vand.u32 4294901760, %v23187_v47  ;;  %v32707_v23 = vand.u32 4294901760, %v32109_v21 }
0x320d   : > { %v32710_v4 = vand.u32 4294901760, %v32117_v7 }
0x320e   : > { %v32268_v13 = vpack.c.bf16 %v23174_v39, %v23167_v30  ;;  %v32278_v10 = vpack.c.bf16 %v23188_v42, %v23181_v26  ;;  %v23194_v39 = vsub.f32 %v32104_v57, %v32705_v44  ;;  %v23201_v30 = vsub.f32 %v32109_v21, %v32707_v23 }
0x320f   : > { %v23208_v42 = vsub.f32 %v32111_v37, %v32708_v22  ;;  %v23215_v26 = vsub.f32 %v32117_v7, %v32710_v4  ;;  %v32711_v23 = vand.u32 4294901760, %v32119_v59  ;;  %v32714_v4 = vand.u32 4294901760, %v32125_v31 }
0x3210   : > { %v23195_v29 = vand.u32 4294901760, %v23194_v39  ;;  %v23202_v34 = vand.u32 4294901760, %v23201_v30  ;;  %v32713_v39 = vand.u32 4294901760, %v32123_v6 }
0x3211   : > { %v23209_v44 = vand.u32 4294901760, %v23208_v42  ;;  %v23216_v0 = vand.u32 4294901760, %v23215_v26  ;;  %v32719_v42 = vand.u32 4294901760, %v32127_v54 }
0x3212   : > { %v32288_v47 = vpack.c.bf16 %v23202_v34, %v23195_v29  ;;  %v23222_v34 = vsub.f32 %v32119_v59, %v32711_v23  ;;  %v23229_v29 = vsub.f32 %v32123_v6, %v32713_v39  ;;  %v32717_v39 = vand.u32 4294901760, %v32200_v9 }
0x3213   : > { %v32298_v30 = vpack.c.bf16 %v23216_v0, %v23209_v44  ;;  %v23236_v0 = vsub.f32 %v32125_v31, %v32714_v4  ;;  %v23243_v44 = vsub.f32 %v32127_v54, %v32719_v42  ;;  %v28245_v42 = vpack.c.bf16 %v32127_v54, %v32125_v31 }
0x3214   : > { %v23223_v22 = vand.u32 4294901760, %v23222_v34  ;;  %v23230_v27 = vand.u32 4294901760, %v23229_v29  ;;  %v32718_v34 = vand.u32 4294901760, %v32202_v33 }
0x3215   : > { %v23237_v23 = vand.u32 4294901760, %v23236_v0  ;;  %v23244_v16 = vand.u32 4294901760, %v23243_v44  ;;  %v28215_v0 = vpack.c.bf16 %v32012_v35, %v32010_v52 }
0x3216   : > { %v32308_v26 = vpack.c.bf16 %v23230_v27, %v23223_v22  ;;  %v23250_v27 = vsub.f32 %v32200_v9, %v32717_v39  ;;  %v23257_v22 = vsub.f32 %v32202_v33, %v32718_v34  ;;  %v28248_v39 = vpack.c.bf16 %v32202_v33, %v32200_v9 }
0x3217   : > { %v32318_v29 = vpack.c.bf16 %v23244_v16, %v23237_v23 }
0x3218   : > { %v23251_v4 = vand.u32 4294901760, %v23250_v27  ;;  %v23258_v19 = vand.u32 4294901760, %v23257_v22  ;;  %v22972_v27 = vrot.slane %v32198_v56, 6 }
0x321a   : > { %v32326_v36 = vpack.c.bf16 %v23258_v19, %v23251_v4  ;;  %v22973_v23 = vmul.f32 %v30312_v41, %v22972_v27 }
0x3273   : > { %v22976_v19 = vpop.permute.xlu0 %22975 }
0x3274   : > { %v22978_v16 = vsel %vm11334_vm7, %v22973_v23, %v22976_v19 }
0x3275   : > { %v32355_v4 = vand.u32 4294901760, %v22978_v16 }
0x3277   : > { %v32358_v22 = vsub.f32 %v22978_v16, %v32355_v4 }
0x3279   : > { %v23084_v34 = vand.u32 4294901760, %v32358_v22 }
0x327b   : > { %v23085_v44 = vsub.f32 %v32358_v22, %v23084_v34  ;;  %23501 = vmatmul.mubr.f32.vlgmr.msra.gmra.mrb[70].mxu0 %v23084_v34 }
0x327c   : > { %28324 = vmatpush1.bf16.msra.mxu0 %v32008_v1  ;;  %23739 = vmatprep.mubr.f32.mxu0 %v32209_v3  ;;  %v32815_v1 = vpack.c.bf16 %v32033_v43, %v32014_v12 }
0x327d   : > { %28325 = vmatprep.subr.bf16.mxu0 %v32761_v45  ;;  %v23086_v41 = vand.u32 4294901760, %v23085_v44 }
0x327f   : > { %23087 = vmatmul.mubr.f32.vlgmr.msra.gmra.mrb[72].mxu1 %v23086_v41 }
0x3280   : > { %28180 = vmatpush1.bf16.msra.mxu1 %v32211_v49  ;;  %28327 = vmatpush1.bf16.msra.mxu0 %v32031_v24  ;;  %v32817_v24 = vpack.c.bf16 %v32060_v8, %v32058_v51 }
0x3281   : > { %23277 = vmatprep.mubr.f32.mxu1 %v32209_v3  ;;  %28181 = vmatprep.subr.bf16.mxu1 %v32761_v45 }
0x3282   : > { %28328 = vmatprep.subr.bf16.mxu0 %v32761_v45 }
0x3284   : > { %28183 = vmatpush1.bf16.msra.mxu1 %v32227_v60  ;;  %28330 = vmatpush1.bf16.msra.mxu0 %v32072_v14  ;;  %v32818_v14 = vpack.c.bf16 %v32075_v40, %v32063_v50 }
0x3285   : > { %28184 = vmatprep.subr.bf16.mxu1 %v32761_v45  ;;  %28331 = vmatprep.subr.bf16.mxu0 %v32761_v45 }
0x3288   : > { %28186 = vmatpush1.bf16.msra.mxu1 %v32244_v61  ;;  %28333 = vmatpush1.bf16.msra.mxu0 %v32115_v2  ;;  %v32819_v2 = vpack.c.bf16 %v32089_v46, %v32078_v32 }
0x3289   : > { %28187 = vmatprep.subr.bf16.mxu1 %v32761_v45  ;;  %28334 = vmatprep.subr.bf16.mxu0 %v32761_v45 }
0x328c   : > { %28189 = vmatpush1.bf16.msra.mxu1 %v32248_v28  ;;  %28336 = vmatpush1.bf16.msra.mxu0 %v32131_v18  ;;  %v32820_v18 = vpack.c.bf16 %v32102_v48, %v32092_v5  ;;  %v32827_v28 = vand.u32 4294901760, %v32033_v43  ;;  %v32833_v43 = vand.u32 4294901760, %v32075_v40  ;;  %v32839_v40 = vand.u32 4294901760, %v32109_v21 }
0x328d   : > { %28190 = vmatprep.subr.bf16.mxu1 %v32761_v45  ;;  %28337 = vmatprep.subr.bf16.mxu0 %v32761_v45 }
0x3290   : > { %28192 = vmatpush1.bf16.msra.mxu1 %v32258_v53  ;;  %28339 = vmatpush1.bf16.msra.mxu0 %v32137_v20  ;;  %v32821_v20 = vpack.c.bf16 %v32109_v21, %v32104_v57  ;;  %v32845_v21 = vand.u32 4294901760, %v32127_v54  ;;  %v23964_v54 = vld [vmem:[%s32606_s17 + $0x1] ss:$0 sm:$0xff] }
0x3291   : > { %28193 = vmatprep.subr.bf16.mxu1 %v32761_v45  ;;  %28340 = vmatprep.subr.bf16.mxu0 %v32761_v45 }
0x3294   : > { %28195 = vmatpush1.bf16.msra.mxu1 %v32268_v13  ;;  %28342 = vmatpush1.bf16.msra.mxu0 %v32143_v25  ;;  %v32822_v25 = vpack.c.bf16 %v32117_v7, %v32111_v37 }
0x3295   : > { %28196 = vmatprep.subr.bf16.mxu1 %v32761_v45  ;;  %28343 = vmatprep.subr.bf16.mxu0 %v32761_v45 }
0x3298   : > { %28198 = vmatpush1.bf16.msra.mxu1 %v32278_v10  ;;  %28345 = vmatpush1.bf16.msra.mxu0 %v32149_v11  ;;  %v32823_v11 = vpack.c.bf16 %v32123_v6, %v32119_v59 }
0x3299   : > { %28199 = vmatprep.subr.bf16.mxu1 %v32761_v45  ;;  %28346 = vmatprep.subr.bf16.mxu0 %v32761_v45 }
0x329c   : > { %28201 = vmatpush1.bf16.msra.mxu1 %v32288_v47  ;;  %28348 = vmatpush1.bf16.msra.mxu0 %v32155_v62  ;;  %v32824_v62 = vand.u32 4294901760, %v32010_v52  ;;  %v32828_v52 = vand.u32 4294901760, %v32035_v63 }
0x329d   : > { %28202 = vmatprep.subr.bf16.mxu1 %v32761_v45  ;;  %28349 = vmatprep.subr.bf16.mxu0 %v32761_v45 }
0x32a0   : > { %28204 = vmatpush1.bf16.msra.mxu1 %v32298_v30  ;;  %28351 = vmatpush1.bf16.msra.mxu0 %v32161_v55  ;;  %v32825_v55 = vand.u32 4294901760, %v32012_v35  ;;  %v32829_v35 = vand.u32 4294901760, %v32044_v38 }
0x32a1   : > { %28205 = vmatprep.subr.bf16.mxu1 %v32761_v45  ;;  %28352 = vmatprep.subr.bf16.mxu0 %v32761_v45 }
0x32a2   : > { %v28293_v49 = vpack.c.bf16 %v32829_v35, %v32828_v52 }
0x32a4   : > { %28207 = vmatpush1.bf16.msra.mxu1 %v32308_v26  ;;  %28354 = vmatpush1.bf16.msra.mxu0 %v32167_v17  ;;  %v28287_v17 = vpack.c.bf16 %v32825_v55, %v32824_v62  ;;  %v32850_v62 = vld [vmem:[#allocation13_spill] sm:$0xff] }
0x32a5   : > { %28208 = vmatprep.subr.bf16.mxu1 %v32761_v45  ;;  %28355 = vmatprep.subr.bf16.mxu0 %v32761_v45 }
0x32a8   : > { %28210 = vmatpush1.bf16.msra.mxu1 %v32318_v29  ;;  %28357 = vmatpush1.bf16.msra.mxu0 %v32181_v15  ;;  %v32826_v15 = vand.u32 4294901760, %v32014_v12  ;;  %v32832_v12 = vand.u32 4294901760, %v32063_v50  ;;  %v32838_v50 = vand.u32 4294901760, %v32104_v57  ;;  %v32844_v57 = vand.u32 4294901760, %v32125_v31 }
0x32a9   : > { %28211 = vmatprep.subr.bf16.mxu1 %v32761_v45 }
0x32aa   : > { %v28290_v56 = vpack.c.bf16 %v32827_v28, %v32826_v15  ;;  %v28299_v60 = vpack.c.bf16 %v32833_v43, %v32832_v12  ;;  %v28308_v10 = vpack.c.bf16 %v32839_v40, %v32838_v50  ;;  %v28317_v30 = vpack.c.bf16 %v32845_v21, %v32844_v57  ;;  %v32852_v28 = vld [vmem:[#allocation15_spill] sm:$0xff] }
0x32ab   : > { %23741 = vmatmul.mubr.f32.vlgmr.msra.gmra.mrb[72].mxu0 %v32355_v4 }
0x32ac   : > { %28213 = vmatpush1.bf16.msra.mxu1 %v32326_v36  ;;  %v32816_v36 = vpack.c.bf16 %v32044_v38, %v32035_v63  ;;  %v32834_v63 = vand.u32 4294901760, %v32078_v32  ;;  %v32835_v38 = vand.u32 4294901760, %v32089_v46  ;;  %v32840_v32 = vand.u32 4294901760, %v32111_v37 }
0x32ad   : > { %28214 = vmatprep.subr.bf16.mxu1 %v32761_v45  ;;  %v32841_v46 = vand.u32 4294901760, %v32117_v7  ;;  %v32846_v37 = vand.u32 4294901760, %v32200_v9  ;;  %v32847_v7 = vand.u32 4294901760, %v32202_v33 }
0x32ae   : > { %v28302_v53 = vpack.c.bf16 %v32835_v38, %v32834_v63  ;;  %v23965_v63 = vld [vmem:[%s32853_s1] ss:$0 sm:$0xff] }
0x32af   : > { %23279 = vmatmul.mubr.f32.vlgmr.msra.gmra.mrb[74].mxu1 %v32355_v4  ;;  %v28311_v47 = vpack.c.bf16 %v32841_v46, %v32840_v32 }
0x32b0   : > { %28216 = vmatpush1.bf16.msra.mxu1 %v28215_v0  ;;  %23398 = vmatprep.mubr.f32.mxu1 %v32221_v58  ;;  %v32830_v58 = vand.u32 4294901760, %v32058_v51  ;;  %v32836_v51 = vand.u32 4294901760, %v32092_v5  ;;  %v32842_v5 = vand.u32 4294901760, %v32119_v59 }
0x32b1   : > { %28217 = vmatprep.subr.bf16.mxu1 %v32761_v45 }
0x32b4   : > { %28219 = vmatpush1.bf16.msra.mxu1 %v32815_v1  ;;  %v32848_v1 = vld [vmem:[#allocation14_spill] sm:$0xff] }
0x32b5   : > { %28220 = vmatprep.subr.bf16.mxu1 %v32761_v45 }
0x32b8   : > { %28222 = vmatpush1.bf16.msra.mxu1 %v32816_v36 }
0x32b9   : > { %28223 = vmatprep.subr.bf16.mxu1 %v32761_v45 }
0x32bc   : > { %28225 = vmatpush1.bf16.msra.mxu1 %v32817_v24 }
0x32bd   : > { %28226 = vmatprep.subr.bf16.mxu1 %v32761_v45 }
0x32c0   : > { %28228 = vmatpush1.bf16.msra.mxu1 %v32818_v14 }
0x32c1   : > { %28229 = vmatprep.subr.bf16.mxu1 %v32761_v45 }
0x32c4   : > { %28231 = vmatpush1.bf16.msra.mxu1 %v32819_v2 }
0x32c5   : > { %28232 = vmatprep.subr.bf16.mxu1 %v32761_v45 }
0x32c8   : > { %28234 = vmatpush1.bf16.msra.mxu1 %v32820_v18 }
0x32c9   : > { %28235 = vmatprep.subr.bf16.mxu1 %v32761_v45 }
0x32cc   : > { %28237 = vmatpush1.bf16.msra.mxu1 %v32821_v20 }
0x32cd   : > { %28238 = vmatprep.subr.bf16.mxu1 %v32761_v45 }
0x32d0   : > { %28240 = vmatpush1.bf16.msra.mxu1 %v32822_v25 }
0x32d1   : > { %28241 = vmatprep.subr.bf16.mxu1 %v32761_v45 }
0x32d4   : > { %28243 = vmatpush1.bf16.msra.mxu1 %v32823_v11  ;;  %v32849_v11 = vld [vmem:[#allocation12_spill] sm:$0xff] }
0x32d5   : > { %28244 = vmatprep.subr.bf16.mxu1 %v32761_v45  ;;  %v19393_v55 = vadd.f32 %v32850_v62, %v32849_v11 }
0x32d8   : > { %28246 = vmatpush1.bf16.msra.mxu1 %v28245_v42  ;;  %v28320_v42 = vpack.c.bf16 %v32847_v7, %v32846_v37 }
0x32d9   : > { %28247 = vmatprep.subr.bf16.mxu1 %v32761_v45 }
0x32dc   : > { %28249 = vmatpush1.bf16.msra.mxu1 %v28248_v39 }
0x32dd   : > { %28286 = vmatprep.subr.bf16.mxu1 %v32761_v45 }
0x32df   : > { %23401 = vmatmul.mubr.f32.vlgmr.msra.gmra.mrb[76].mxu1 %v32358_v22 }
0x32e0   : > { %28288 = vmatpush1.bf16.msra.mxu1 %v28287_v17  ;;  %23643 = vmatprep.mubr.f32.mxu1 %v32209_v3  ;;  %v32831_v3 = vand.u32 4294901760, %v32060_v8  ;;  %v32837_v8 = vand.u32 4294901760, %v32102_v48  ;;  %v32843_v48 = vand.u32 4294901760, %v32123_v6  ;;  %v32851_v17 = vld [vmem:[#allocation16_spill] sm:$0xff] }
0x32e1   : > { %28289 = vmatprep.subr.bf16.mxu1 %v32761_v45  ;;  %v20345_v15 = vadd.f32 %v32851_v17, %v19393_v55 }
0x32e2   : > { %v28296_v61 = vpack.c.bf16 %v32831_v3, %v32830_v58  ;;  %v28305_v13 = vpack.c.bf16 %v32837_v8, %v32836_v51  ;;  %v28314_v39 = vpack.c.bf16 %v32843_v48, %v32842_v5  ;;  %v23966_v51 = vld [vmem:[%s32854_s5] ss:$0 sm:$0xff] }
0x32e4   : > { %28291 = vmatpush1.bf16.msra.mxu1 %v28290_v56  ;;  %v21297_v56 = vadd.f32 %v32852_v28, %v20345_v15 }
0x32e5   : > { %28292 = vmatprep.subr.bf16.mxu1 %v32761_v45 }
0x32e6   : > { %v22281_v52 = vmul.f32 0.25, %v21297_v56 }
0x32e8   : > { %28294 = vmatpush1.bf16.msra.mxu1 %v28293_v49 }
0x32e9   : > { %28295 = vmatprep.subr.bf16.mxu1 %v32761_v45 }
0x32ec   : > { %28297 = vmatpush1.bf16.msra.mxu1 %v28296_v61 }
0x32ed   : > { %28298 = vmatprep.subr.bf16.mxu1 %v32761_v45 }
0x32f0   : > { %28300 = vmatpush1.bf16.msra.mxu1 %v28299_v60 }
0x32f1   : > { %28301 = vmatprep.subr.bf16.mxu1 %v32761_v45 }
0x32f4   : > { %28303 = vmatpush1.bf16.msra.mxu1 %v28302_v53 }
0x32f5   : > { %28304 = vmatprep.subr.bf16.mxu1 %v32761_v45 }
0x32f8   : > { %28306 = vmatpush1.bf16.msra.mxu1 %v28305_v13 }
0x32f9   : > { %28307 = vmatprep.subr.bf16.mxu1 %v32761_v45 }
0x32fc   : > { %28309 = vmatpush1.bf16.msra.mxu1 %v28308_v10 }
0x32fd   : > { %28310 = vmatprep.subr.bf16.mxu1 %v32761_v45 }
0x3300   : > { %28312 = vmatpush1.bf16.msra.mxu1 %v28311_v47 }
0x3301   : > { %28313 = vmatprep.subr.bf16.mxu1 %v32761_v45 }
0x3304   : > { %28315 = vmatpush1.bf16.msra.mxu1 %v28314_v39 }
0x3305   : > { %28316 = vmatprep.subr.bf16.mxu1 %v32761_v45 }
0x3308   : > { %28318 = vmatpush1.bf16.msra.mxu1 %v28317_v30 }
0x3309   : > { %28319 = vmatprep.subr.bf16.mxu1 %v32761_v45 }
0x330c   : > { %28321 = vmatpush1.bf16.msra.mxu1 %v28320_v42 }
0x330f   : > { %23645 = vmatmul.mubr.f32.vlgmr.msra.gmra.mrb[78].mxu1 %v32355_v4 }
0x334e   : > { %v23502_v59 = vpop.f32.mrb[70].mxu0 }
0x334f   : > { %v23504_v6 = vpop.f32.mrb[71].mxu0 }
0x3352   : > { %v23088_v26 = vpop.f32.mrb[72].mxu1 }
0x3353   : > { %v23090_v31 = vpop.f32.mrb[73].mxu1  ;;  %v23089_v0 = vadd.f32 %v23964_v54, %v23088_v26 }
0x337e   : > { %v23742_v34 = vpop.f32.mrb[72].mxu0 }
0x337f   : > { %v23744_v29 = vpop.f32.mrb[73].mxu0 }
0x3382   : > { %v23280_v9 = vpop.f32.mrb[74].mxu1 }
0x3383   : > { %v23281_v44 = vadd.f32 %v23280_v9, %v23089_v0  ;;  %v23282_v33 = vpop.f32.mrb[75].mxu1 }
0x33b2   : > { %v23402_v16 = vpop.f32.mrb[76].mxu1 }
0x33b3   : > { %v23403_v23 = vadd.f32 %v23402_v16, %v23281_v44  ;;  %v23404_v45 = vpop.f32.mrb[77].mxu1 }
0x33b5   : > { %v23503_v27 = vadd.f32 %v23502_v59, %v23403_v23 }
0x33e2   : > { %v23646_v19 = vpop.f32.mrb[78].mxu1 }
0x33e3   : > { %v23647_v4 = vadd.f32 %v23646_v19, %v23503_v27  ;;  %v23648_v22 = vpop.f32.mrb[79].mxu1 }
0x33e5   : > { %v23743_v41 = vadd.f32 %v23742_v34, %v23647_v4 }
0x33e7   : > { %v23746_v36 = vadd.f32 %v23743_v41, %v32848_v1 }
0x33e9   : > { %v23749_v24 = vsel %vm679_vm1, %v23746_v36, 0.0 }
0x33ea   : > { %23750 = vadd.xlane.f32.xlu1 %v23749_v24 }
0x3477   : > { %v23751_v14 = vpop.xlane.xlu1 %23750 }
0x3478   : > { %v23752_v2 = vmul.f32 0.03125, %v23751_v14 }
0x347a   : > { %v23753_v18 = vsub.f32 %v23746_v36, %v23752_v2 }
0x347c   : > { %v23754_v20 = vmul.f32 %v23753_v18, %v23753_v18  ;;  %v23774_v38 = vmul.f32 %v23965_v63, %v23753_v18 }
0x347e   : > { %v23755_v25 = vsel %vm679_vm1, %v23754_v20, 0.0 }
0x347f   : > { %23756 = vadd.xlane.f32.xlu0 %v23755_v25 }
0x3495   : > { %23784 = vrot.lane.b32.xlu0 %v22281_v52, %s32809_s30 }
0x350c   : > { %v23757_v35 = vpop.xlane.xlu0 %23756 }
0x350d   : > { %v23758_v49 = vmul.f32 0.032258064, %v23757_v35 }
0x350f   : > { %28922 = vrsqrt.f32 %v23758_v49  ;;  %vm23761_vm0 = vcmp.eq.f32.partialorder %v23758_v49, inf  ;;  %v23764_v61 = vand.u32 2147483648, %v23758_v49  ;;  %vm23763_vm10 = vcmp.eq.f32.partialorder %v23758_v49, 0.0 }
0x3510   : > { %v23785_v50 = vpop.permute.xlu0 %23784 }
0x3519   : > { %v28923_v58 = vpop.eup %28922 }
0x351a   : > { %v23760_v3 = vmul.f32 %v28923_v58, %v23758_v49 }
0x351c   : > { %v23762_v12 = vsel %vm23761_vm0, %v23758_v49, %v23760_v3 }
0x351d   : > { %v23765_v43 = vsel %vm23763_vm10, %v23764_v61, %v23762_v12 }
0x351e   : > { %v23766_v60 = vadd.f32 1e-06, %v23765_v43 }
0x3520   : > { %28924 = vrcp.f32 %v23766_v60 }
0x352a   : > { %v28925_v53 = vpop.eup %28924 }
0x352b   : > { %v23775_v8 = vmul.f32 %v28925_v53, %v23774_v38 }
0x352d   : > { %v23782_v13 = vadd.f32 %v23966_v51, %v23775_v8 }
0x352f   : > { %v23787_v40 = vsel %vm679_vm1, %v23782_v13, %v23785_v50 }
0x3530   : > { %v23789_v10 = vsel %vm23788_vm14, %v23787_v40, 0.0 }
0x3531   : > { %23790 = vst [vmem:[%s657_s23] sm:$0xff] %v23789_v10 }
0x3532   : > { %28939 = shalt.err (!%p28936_p3)
}
0x3533   : > { %s28940_s29 = scalar_lea.hbm %s32547_s26, 128  ;;  %s28944_s30 = scalar_lea.hbm %s32856_s25, 256 }
0x3534   : > { %p28941_p4 = scmp.ne.s32.totalorder %s32547_s26, %s28940_s29  ;;  %p28945_p9 = scmp.lt.u32.totalorder %s32547_s26, %s32856_s25 }
0x3535   : > { %p28946_p10 = scmp.lt.u32.totalorder %s28944_s30, %s28940_s29  ;;  %p28948_p12 = scmp.lt.u32.totalorder %s28940_s29, %s32547_s26 }
0x3536   : > { %p28942_p7 = pnand %p28941_p4, %p29153_p5 }
0x3537   : > { %p28947_p11 = por %p28946_p10, %p28945_p9 }
0x3538   : > { %p28943_p8 = pneg %p28942_p7 }
0x3539   : > { %p28949_p13 = por %p28948_p12, %p28947_p11 }
0x353b   : > { %p28950_p0 = pnand %p28949_p13, %p28943_p8 }
0x353d   : > { %28953 = shalt.err (!%p28950_p0)
}
0x353e   : > { %28776 = dma.vmem_to_hbm [thread:$0]  (%p29153_p5), %s32549_s20, 128, %s32547_s26, %s23792_s2  }
0x353f PF: > { %s32857_s9 = sld [smem:[#allocation7_spill]]  ;;  %s32858_s23 = sld [smem:[#allocation5_spill]] }
0x3545   : > { %p28782_p1 = scmp.ge.s32.totalorder %s32857_s9, 2  ;;  %s23817_s3 = sand.u32 1, %s32858_s23  }
0x3546   : > { %s23818_s19 = scalar_lea.sflag [#allocation3], %s23817_s3 }
0x3547   : > { %p28779_p2 = pnand %p28782_p1, %p29157_p6 }
0x3549   : > { %28971 = dma.done.wait (!%p28779_p2), %s23818_s19, 128  }
0x354a   : > { %28973 = vsyncadd (!%p28779_p2), %s23818_s19, 4294967168  ;;  %s32860_s24 = sld [smem:[#allocation8_spill]]  ;;  %s32861_s0 = sld [smem:[#allocation6_spill]] }
0x354b   : > { %s32862_s23 = sld [smem:[#allocation9_spill]]  ;;  %s32863_s1 = smov %s28980_s22 }
0x3550   : > { %p30_p3 = scmp.ge.s32.totalorder %s32860_s24, 4   ;;  %s32864_s22 = smov %s32861_s0 }
0x3552   :  { %32 = sbr.rel (!%p30_p3) target bundleno = 14 (0xe), region = 155 }
0x3559   :  { %23823 = vsyncpa [#allocation3], 1 }
0x355a   :  { %23825 = vsyncpa [#allocation3 + $0x1], 1 }

</bundles_post_ra>
